<compile_context>
chip_gen: v5e
topology: v5e:2x2
jax: 0.10.0
libtpu: 0.0.40
codegen_flags: <defaults>
</compile_context>

<pallas_src>
import functools

import jax
import jax.numpy as jnp
from jax.experimental import pallas as pl
from jax.experimental.pallas import tpu as pltpu

_LANE = 128
_SUBLANE = 8
_GATE_ORDER = (0, 1, 3, 2)          # (i, f, o, g): sigmoid gates contiguous, tanh last


def _round_up(n, m):
    return ((n + m - 1) // m) * m


# ----------------------------------------------------------------------------
# fused kernel: [preamble x-projection] -> per-step (inference LSTM -> sample z
# -> generator LSTM); the time recurrence runs inside the kernel.
# ----------------------------------------------------------------------------
def _sequential_vb_kernel(x_ref, eps_ref,
                          wx_inf_ref, wh_inf_ref, b_inf_ref,
                          w_io_ref, b_io_ref,
                          wz_gen_ref, wh_gen_ref, b_gen_ref,
                          w_go_ref, b_go_ref,
                          qz_ref, xh_ref,
                          xproj_ref):
    T, B, NZP = eps_ref.shape            # B is already sublane-padded (multiple of 8)
    HP = wh_inf_ref.shape[0]             # padded hidden size (multiple of 128)
    XP = x_ref.shape[1]                  # padded x size (multiple of 128)
    G = 4 * HP

    # ---- preamble: whole-sequence inference x-projection as ONE MXU matmul ------
    # (inference-LSTM bias folded in here, once; per-step work is only h @ W_h)
    xproj_ref[...] = (jnp.dot(x_ref[...], wx_inf_ref[...],
                              preferred_element_type=jnp.float32)
                      + b_inf_ref[...])

    # ---- hoisted bias broadcasts (not CSE'd if left inside the unrolled loop) ---
    b_io = jnp.broadcast_to(b_io_ref[...], (B, 2 * NZP))
    b_gen = jnp.broadcast_to(b_gen_ref[...], (B, G))
    b_go = jnp.broadcast_to(b_go_ref[...], (B, XP))

    def gates_to_hc(gates, c):
        # gate layout is (i, f, o, g): one EUP push covers all three sigmoids
        sig = jax.nn.sigmoid(gates[:, :3 * HP])
        i = sig[:, 0 * HP:1 * HP]
        f = sig[:, 1 * HP:2 * HP]
        o = sig[:, 2 * HP:3 * HP]
        g = jnp.tanh(gates[:, 3 * HP:])
        c_new = f * c + i * g
        h_new = o * jnp.tanh(c_new)
        return h_new, c_new

    def step(t, carry):
        h_i, c_i, h_g, c_g = carry

        # ---- inference LSTM: x-projection precomputed, only K=HP recurrent dot --
        row = pl.multiple_of(t * B, B)
        gates_i = (xproj_ref[pl.ds(row, B), :]
                   + jnp.dot(h_i.astype(jnp.bfloat16), wh_inf_ref[...],
                             preferred_element_type=jnp.float32))
        h_i, c_i = gates_to_hc(gates_i, c_i)

        # Gaussian head: columns [0:NZP] = mu, [NZP:2*NZP] = log_sigma (lane-aligned)
        head = jnp.dot(h_i.astype(jnp.bfloat16), w_io_ref[...],
                       preferred_element_type=jnp.float32) + b_io
        mu = head[:, :NZP]
        log_sigma = head[:, NZP:]

        # ---- reparameterized sample (stays in vregs, never touches HBM) ---------
        z = mu + jnp.exp(log_sigma) * eps_ref[t]

        # ---- generator LSTM: two K=128 dots, no per-step concat -----------------
        gates_g = (jnp.dot(z.astype(jnp.bfloat16), wz_gen_ref[...],
                           preferred_element_type=jnp.float32)
                   + jnp.dot(h_g.astype(jnp.bfloat16), wh_gen_ref[...],
                             preferred_element_type=jnp.float32)
                   + b_gen)
        h_g, c_g = gates_to_hc(gates_g, c_g)
        x_hat = jnp.dot(h_g.astype(jnp.bfloat16), w_go_ref[...],
                        preferred_element_type=jnp.float32) + b_go

        # lane-dense, full-sublane per-step stores (B padded to 8)
        qz_ref[t] = head
        xh_ref[t] = x_hat
        return h_i, c_i, h_g, c_g

    h0 = jnp.zeros((B, HP), jnp.float32)
    jax.lax.fori_loop(0, T, step, (h0, h0, h0, h0),
                      unroll=(True if T <= 32 else 8))


# ----------------------------------------------------------------------------
# weight preparation: fold embeddings, reorder gates to (i,f,o,g), pad to
# lane-aligned sizes, cast MXU operands to bf16
# ----------------------------------------------------------------------------
def _pad_gate_cols(w, hp):
    # (K, 4H) in (i,f,g,o) order -> (K, 4*hp) in (i,f,o,g) order, each gate block
    # zero-padded from H to hp columns
    k, four_h = w.shape
    h = four_h // 4
    w4 = w.reshape(k, 4, h)[:, _GATE_ORDER, :]
    w4 = jnp.pad(w4, ((0, 0), (0, 0), (0, hp - h)))
    return w4.reshape(k, 4 * hp)


def _pad_to(a, rows, cols):
    r, c = a.shape
    return jnp.pad(a, ((0, rows - r), (0, cols - c)))


def _prep_weights(p):
    X = p["inf_w_emb"].shape[0]
    H = p["inf_w_hh"].shape[0]
    NZ = p["inf_w_out"].shape[1] // 2
    XP = _round_up(X, _LANE)
    HP = _round_up(H, _LANE)
    NZP = _round_up(NZ, _LANE)

    def fused_lstm(w_emb, b_emb, w_ih, w_hh, b_lstm, in_pad):
        # fold the embedding Linear into the LSTM input weights (no nonlinearity in
        # between, so this is exact); keep W_x and W_h SEPARATE so the x-projection
        # can be hoisted out of the recurrence.
        w_x = w_emb @ w_ih                               # (IN, 4H)
        b = b_emb @ w_ih + b_lstm                        # (1, 4H)
        w_x = _pad_gate_cols(w_x, HP)                    # (IN, 4HP)
        w_x = jnp.pad(w_x, ((0, in_pad - w_x.shape[0]), (0, 0)))
        w_h = _pad_gate_cols(w_hh, HP)                   # (H, 4HP)
        w_h = jnp.pad(w_h, ((0, HP - H), (0, 0)))        # (HP, 4HP)
        b = _pad_gate_cols(b, HP)                        # (1, 4HP)
        return (w_x.astype(jnp.bfloat16), w_h.astype(jnp.bfloat16),
                b.astype(jnp.float32))

    wx_inf, wh_inf, b_inf = fused_lstm(p["inf_w_emb"], p["inf_b_emb"],
                                       p["inf_w_ih"], p["inf_w_hh"],
                                       p["inf_b_lstm"], XP)
    wz_gen, wh_gen, b_gen = fused_lstm(p["gen_w_emb"], p["gen_b_emb"],
                                       p["gen_w_ih"], p["gen_w_hh"],
                                       p["gen_b_lstm"], NZP)

    # inference head: (H, 2NZ) -> (HP, 2*NZP), mu block then log_sigma block
    w_mu = _pad_to(p["inf_w_out"][:, :NZ], HP, NZP)
    w_ls = _pad_to(p["inf_w_out"][:, NZ:], HP, NZP)
    w_io = jnp.concatenate([w_mu, w_ls], axis=1).astype(jnp.bfloat16)
    b_mu = _pad_to(p["inf_b_out"][:, :NZ], 1, NZP)
    b_ls = _pad_to(p["inf_b_out"][:, NZ:], 1, NZP)
    b_io = jnp.concatenate([b_mu, b_ls], axis=1).astype(jnp.float32)

    # generator head: (H, X) -> (HP, XP)
    w_go = _pad_to(p["gen_w_out"], HP, XP).astype(jnp.bfloat16)
    b_go = _pad_to(p["gen_b_out"], 1, XP).astype(jnp.float32)

    weights = (wx_inf, wh_inf, b_inf, w_io, b_io,
               wz_gen, wh_gen, b_gen, w_go, b_go)
    dims = dict(X=X, H=H, NZ=NZ, XP=XP, HP=HP, NZP=NZP)
    return weights, dims


# ----------------------------------------------------------------------------
# SequentialVB forward (layout plumbing in plain JAX, recurrence in the kernel)
# ----------------------------------------------------------------------------
def sequential_vb_forward(params, x, output_length, conditioning_length, key):
    """x: (B, T, x_dim) batch-major, like the PyTorch module."""
    B, T, X = x.shape
    NZ = params["inf_w_out"].shape[1] // 2       # static: derived from weight SHAPE
    total_len = output_length + conditioning_length
    assert total_len == T, "generator rolls out output_length + conditioning_length steps"

    weights, d = _prep_weights(params)
    XP, NZP, HP = d["XP"], d["NZP"], d["HP"]
    BP = _round_up(B, _SUBLANE)                  # pad batch to full f32 sublanes

    # time-major, pad (B -> BP, X -> XP); x is consumed exactly once by the preamble
    # MXU matmul, so ship it as bf16 and pre-flattened to (T*BP, XP).
    x_tm = jnp.transpose(x, (1, 0, 2)).astype(jnp.float32)
    x_tm = jnp.pad(x_tm, ((0, 0), (0, BP - B), (0, XP - X)))
    x_flat = x_tm.reshape(T * BP, XP).astype(jnp.bfloat16)

    # reparameterization noise (whole sequence, DMA'd into VMEM once)
    # TODO(synk): could be generated in-kernel via pltpu.prng_seed/stateful_normal to
    # drop this input stream; kept host-side for a deterministic, checkable stream.
    eps = jax.random.normal(key, (T, B, NZ), jnp.float32)
    eps = jnp.pad(eps, ((0, 0), (0, BP - B), (0, NZP - NZ)))

    # TODO(synk): for production sizes add a batch-tile grid axis ("parallel", 2x on
    # v7x dual TensorCores) and a time-chunk axis ("arbitrary", h/c carried in VMEM
    # scratch) so the resident footprint respects v7x's 64 MiB VMEM / v5e's 16 MiB
    # default scoped limit; at these toy sizes the whole problem fits trivially.
    vmem = pl.BlockSpec(memory_space=pltpu.MemorySpace.VMEM)
    qz_tm, xh_tm = pl.pallas_call(
        _sequential_vb_kernel,
        in_specs=[vmem] * 12,
        out_specs=(vmem, vmem),
        out_shape=(
            jax.ShapeDtypeStruct((T, BP, 2 * NZP), jnp.float32),   # [mu | log_sigma]
            jax.ShapeDtypeStruct((T, BP, XP), jnp.float32),        # x_hat
        ),
        scratch_shapes=[pltpu.VMEM((T * BP, 4 * HP), jnp.float32)],  # hoisted x-proj
    )(x_flat, eps, *weights)

    # back to batch-major, strip batch/lane padding
    mu = qz_tm[:, :B, :NZ]
    ls = qz_tm[:, :B, NZP:NZP + NZ]
    q_z = jnp.transpose(jnp.concatenate([mu, ls], axis=-1), (1, 0, 2))   # (B, T, 2NZ)
    x_hat = jnp.transpose(xh_tm[:, :B, :X], (1, 0, 2))                   # (B, T, X)
    # fixed prior: standard normal -> (mu=0, log_sigma=0)
    p_z = jnp.zeros((B, T, 2 * NZ), jnp.float32)

    # outputs = rmap(lambda ten: ten[:, conditioning_length:], outputs)
    outputs = {
        "x": x_hat[:, conditioning_length:],
        "q_z": q_z[:, conditioning_length:],
        "p_z": p_z[:, conditioning_length:],
        "conditioning_length": conditioning_length,
    }
    return outputs


# ----------------------------------------------------------------------------
# deterministic parameter construction (logical / unpadded weights)
# ----------------------------------------------------------------------------
def make_params(key, x_dim, nz_vae, hidden):
    ks = jax.random.split(key, 10)
    s = 0.1

    def w(k, shape):
        return s * jax.random.normal(k, shape, jnp.float32)

    return {
        # inference net: Linear(x_dim->H) -> LSTM(H) -> Linear(H->2*nz_vae)
        "inf_w_emb": w(ks[0], (x_dim, hidden)),
        "inf_b_emb": jnp.zeros((1, hidden), jnp.float32),
        "inf_w_ih": w(ks[1], (hidden, 4 * hidden)),
        "inf_w_hh": w(ks[2], (hidden, 4 * hidden)),
        "inf_b_lstm": jnp.zeros((1, 4 * hidden), jnp.float32),
        "inf_w_out": w(ks[3], (hidden, 2 * nz_vae)),
        "inf_b_out": jnp.zeros((1, 2 * nz_vae), jnp.float32),
        # generator (gen_lstm): Linear(nz_vae->H) -> LSTM(H) -> Linear(H->x_dim)
        "gen_w_emb": w(ks[4], (nz_vae, hidden)),
        "gen_b_emb": jnp.zeros((1, hidden), jnp.float32),
        "gen_w_ih": w(ks[5], (hidden, 4 * hidden)),
        "gen_w_hh": w(ks[6], (hidden, 4 * hidden)),
        "gen_b_lstm": jnp.zeros((1, 4 * hidden), jnp.float32),
        "gen_w_out": w(ks[7], (hidden, x_dim)),
        "gen_b_out": jnp.zeros((1, x_dim), jnp.float32),
    }


# ----------------------------------------------------------------------------
# pure-JAX (f32, unfused) reference for a sanity check
# ----------------------------------------------------------------------------
def _reference_forward(params, x, output_length, conditioning_length, key):
    B, T, X = x.shape
    NZ = params["inf_w_out"].shape[1] // 2
    H = params["inf_w_hh"].shape[0]
    eps = jax.random.normal(key, (T, B, NZ), jnp.float32)

    def lstm(inp, h, c, w_ih, w_hh, b):
        gates = inp @ w_ih + h @ w_hh + b
        i = jax.nn.sigmoid(gates[:, :H])
        f = jax.nn.sigmoid(gates[:, H:2 * H])
        g = jnp.tanh(gates[:, 2 * H:3 * H])
        o = jax.nn.sigmoid(gates[:, 3 * H:])
        c = f * c + i * g
        return o * jnp.tanh(c), c

    h_i = c_i = h_g = c_g = jnp.zeros((B, H), jnp.float32)
    qz_list, x_list = [], []
    for t in range(T):
        emb = x[:, t] @ params["inf_w_emb"] + params["inf_b_emb"]
        h_i, c_i = lstm(emb, h_i, c_i, params["inf_w_ih"],
                        params["inf_w_hh"], params["inf_b_lstm"])
        qz = h_i @ params["inf_w_out"] + params["inf_b_out"]
        mu, ls = qz[:, :NZ], qz[:, NZ:]
        z = mu + jnp.exp(ls) * eps[t]
        embg = z @ params["gen_w_emb"] + params["gen_b_emb"]
        h_g, c_g = lstm(embg, h_g, c_g, params["gen_w_ih"],
                        params["gen_w_hh"], params["gen_b_lstm"])
        xh = h_g @ params["gen_w_out"] + params["gen_b_out"]
        qz_list.append(qz)
        x_list.append(xh)
    q_z = jnp.stack(qz_list, axis=1)[:, conditioning_length:]
    x_hat = jnp.stack(x_list, axis=1)[:, conditioning_length:]
    return q_z, x_hat


if __name__ == "__main__":
    B, T, X_DIM = 2, 8, 16
    NZ_VAE, HIDDEN = 8, 32          # hp.nz_vae, hp.nz_mid_lstm
    COND_LEN, OUT_LEN = 3, 5        # conditioning_length, output_length

    root = jax.random.PRNGKey(0)
    k_param, k_x, k_eps = jax.random.split(root, 3)

    params = make_params(k_param, X_DIM, NZ_VAE, HIDDEN)
    x = jax.random.normal(k_x, (B, T, X_DIM), jnp.float32)

    fwd = jax.jit(functools.partial(sequential_vb_forward,
                                    output_length=OUT_LEN,
                                    conditioning_length=COND_LEN))
    outputs = fwd(params, x, key=k_eps)
    jax.block_until_ready(outputs)

    assert outputs["x"].shape == (B, T - COND_LEN, X_DIM)
    assert outputs["q_z"].shape == (B, T - COND_LEN, 2 * NZ_VAE)
    assert outputs["p_z"].shape == (B, T - COND_LEN, 2 * NZ_VAE)

    # numerical sanity check vs. pure-JAX f32 reference (loose tol: bf16 MXU operands)
    ref_qz, ref_x = _reference_forward(params, x, OUT_LEN, COND_LEN, k_eps)
    assert jnp.allclose(outputs["q_z"], ref_qz, atol=5e-2, rtol=5e-2)
    assert jnp.allclose(outputs["x"], ref_x, atol=5e-2, rtol=5e-2)

    print("KERNEL_OK")
</pallas_src>

<mosaic_0001>
module attributes {stable_mosaic.version = 11 : i64} {
  func.func @_sequential_vb_kernel(%arg0: memref<64x128xbf16, #tpu.memory_space<vmem>>, %arg1: memref<8x8x128xf32, #tpu.memory_space<vmem>>, %arg2: memref<128x512xbf16, #tpu.memory_space<vmem>>, %arg3: memref<128x512xbf16, #tpu.memory_space<vmem>>, %arg4: memref<1x512xf32, #tpu.memory_space<vmem>>, %arg5: memref<128x256xbf16, #tpu.memory_space<vmem>>, %arg6: memref<1x256xf32, #tpu.memory_space<vmem>>, %arg7: memref<128x512xbf16, #tpu.memory_space<vmem>>, %arg8: memref<128x512xbf16, #tpu.memory_space<vmem>>, %arg9: memref<1x512xf32, #tpu.memory_space<vmem>>, %arg10: memref<128x128xbf16, #tpu.memory_space<vmem>>, %arg11: memref<1x128xf32, #tpu.memory_space<vmem>>, %arg12: memref<8x8x256xf32, #tpu.memory_space<vmem>>, %arg13: memref<8x8x128xf32, #tpu.memory_space<vmem>>, %arg14: memref<64x512xf32, #tpu.memory_space<vmem>>) attributes {dimension_semantics = [], scalar_prefetch = 0 : i64, scratch_operands = 1 : i64, tpu.core_type = #tpu.core_type<tc>} {
    %c0 = arith.constant 0 : index
    %c0_0 = arith.constant 0 : index
    %0 = vector.load %arg0[%c0, %c0_0] : memref<64x128xbf16, #tpu.memory_space<vmem>>, vector<64x128xbf16>
    %c0_1 = arith.constant 0 : index
    %c0_2 = arith.constant 0 : index
    %1 = vector.load %arg2[%c0_1, %c0_2] : memref<128x512xbf16, #tpu.memory_space<vmem>>, vector<128x512xbf16>
    %cst = arith.constant dense<0.000000e+00> : vector<64x512xf32>
    %2 = tpu.matmul %0, %1, %cst {dimension_numbers = #tpu.dot_dimension_numbers<[1], [0], [0], [1], [0, 0, 1, 1], [], []>} : vector<64x128xbf16>, vector<128x512xbf16>, vector<64x512xf32> -> vector<64x512xf32>
    %c0_3 = arith.constant 0 : index
    %c0_4 = arith.constant 0 : index
    %3 = vector.load %arg4[%c0_3, %c0_4] : memref<1x512xf32, #tpu.memory_space<vmem>>, vector<1x512xf32>
    %4 = vector.broadcast %3 : vector<1x512xf32> to vector<64x512xf32>
    %5 = arith.addf %2, %4 : vector<64x512xf32>
    %c0_5 = arith.constant 0 : index
    %c0_6 = arith.constant 0 : index
    %6 = vector.load %arg14[%c0_5, %c0_6] : memref<64x512xf32, #tpu.memory_space<vmem>>, vector<64x512xf32>
    tpu.vector_store %arg14[%c0_5, %c0_6], %5 {strides = array<i32>} : memref<64x512xf32, #tpu.memory_space<vmem>>, vector<64x512xf32>,
    %c0_7 = arith.constant 0 : index
    %c0_8 = arith.constant 0 : index
    %7 = vector.load %arg6[%c0_7, %c0_8] : memref<1x256xf32, #tpu.memory_space<vmem>>, vector<1x256xf32>
    %8 = vector.shape_cast %7 : vector<1x256xf32> to vector<1x256xf32>
    %9 = vector.broadcast %8 : vector<1x256xf32> to vector<8x256xf32>
    %c0_9 = arith.constant 0 : index
    %c0_10 = arith.constant 0 : index
    %10 = vector.load %arg9[%c0_9, %c0_10] : memref<1x512xf32, #tpu.memory_space<vmem>>, vector<1x512xf32>
    %11 = vector.shape_cast %10 : vector<1x512xf32> to vector<1x512xf32>
    %12 = vector.broadcast %11 : vector<1x512xf32> to vector<8x512xf32>
    %c0_11 = arith.constant 0 : index
    %c0_12 = arith.constant 0 : index
    %13 = vector.load %arg11[%c0_11, %c0_12] : memref<1x128xf32, #tpu.memory_space<vmem>>, vector<1x128xf32>
    %14 = vector.shape_cast %13 : vector<1x128xf32> to vector<1x128xf32>
    %15 = vector.broadcast %14 : vector<1x128xf32> to vector<8x128xf32>
    %cst_13 = arith.constant 0.000000e+00 : f32
    %16 = vector.broadcast %cst_13 : f32 to vector<8x128xf32>
    %c0_i32 = arith.constant 0 : i32
    %c8_i32 = arith.constant 8 : i32
    %17 = arith.muli %c0_i32, %c8_i32 : i32
    %18 = tpu.assume_multiple %17, 8 : i32
    %19 = arith.index_cast %18 : i32 to index
    %c0_14 = arith.constant 0 : index
    %20 = vector.load %arg14[%19, %c0_14] : memref<64x512xf32, #tpu.memory_space<vmem>>, vector<8x512xf32>
    %21 = arith.truncf %16 : vector<8x128xf32> to vector<8x128xbf16>
    %c0_15 = arith.constant 0 : index
    %c0_16 = arith.constant 0 : index
    %22 = vector.load %arg3[%c0_15, %c0_16] : memref<128x512xbf16, #tpu.memory_space<vmem>>, vector<128x512xbf16>
    %cst_17 = arith.constant dense<0.000000e+00> : vector<8x512xf32>
    %23 = tpu.matmul %21, %22, %cst_17 {dimension_numbers = #tpu.dot_dimension_numbers<[1], [0], [0], [1], [0, 0, 1, 1], [], []>} : vector<8x128xbf16>, vector<128x512xbf16>, vector<8x512xf32> -> vector<8x512xf32>
    %24 = arith.addf %20, %23 : vector<8x512xf32>
    %25 = vector.extract_strided_slice %24 {offsets = [0, 0], sizes = [8, 384], strides = [1, 1]} : vector<8x512xf32> to vector<8x384xf32>
    %26 = arith.negf %25 : vector<8x384xf32>
    %27 = math.exp %26 : vector<8x384xf32>
    %cst_18 = arith.constant 1.000000e+00 : f32
    %28 = vector.broadcast %cst_18 : f32 to vector<8x384xf32>
    %29 = arith.addf %28, %27 : vector<8x384xf32>
    %30 = arith.divf %28, %29 : vector<8x384xf32>
    %31 = vector.extract_strided_slice %30 {offsets = [0, 0], sizes = [8, 128], strides = [1, 1]} : vector<8x384xf32> to vector<8x128xf32>
    %32 = vector.extract_strided_slice %30 {offsets = [0, 128], sizes = [8, 128], strides = [1, 1]} : vector<8x384xf32> to vector<8x128xf32>
    %33 = vector.extract_strided_slice %30 {offsets = [0, 256], sizes = [8, 128], strides = [1, 1]} : vector<8x384xf32> to vector<8x128xf32>
    %34 = vector.extract_strided_slice %24 {offsets = [0, 384], sizes = [8, 128], strides = [1, 1]} : vector<8x512xf32> to vector<8x128xf32>
    %35 = math.tanh %34 : vector<8x128xf32>
    %36 = arith.mulf %32, %16 : vector<8x128xf32>
    %37 = arith.mulf %31, %35 : vector<8x128xf32>
    %38 = arith.addf %36, %37 : vector<8x128xf32>
    %39 = math.tanh %38 : vector<8x128xf32>
    %40 = arith.mulf %33, %39 : vector<8x128xf32>
    %41 = arith.truncf %40 : vector<8x128xf32> to vector<8x128xbf16>
    %c0_19 = arith.constant 0 : index
    %c0_20 = arith.constant 0 : index
    %42 = vector.load %arg5[%c0_19, %c0_20] : memref<128x256xbf16, #tpu.memory_space<vmem>>, vector<128x256xbf16>
    %cst_21 = arith.constant dense<0.000000e+00> : vector<8x256xf32>
    %43 = tpu.matmul %41, %42, %cst_21 {dimension_numbers = #tpu.dot_dimension_numbers<[1], [0], [0], [1], [0, 0, 1, 1], [], []>} : vector<8x128xbf16>, vector<128x256xbf16>, vector<8x256xf32> -> vector<8x256xf32>
    %44 = arith.addf %43, %9 : vector<8x256xf32>
    %45 = vector.extract_strided_slice %44 {offsets = [0, 0], sizes = [8, 128], strides = [1, 1]} : vector<8x256xf32> to vector<8x128xf32>
    %46 = vector.extract_strided_slice %44 {offsets = [0, 128], sizes = [8, 128], strides = [1, 1]} : vector<8x256xf32> to vector<8x128xf32>
    %47 = math.exp %46 : vector<8x128xf32>
    %48 = arith.index_cast %c0_i32 : i32 to index
    %c0_22 = arith.constant 0 : index
    %c0_23 = arith.constant 0 : index
    %49 = vector.load %arg1[%48, %c0_22, %c0_23] : memref<8x8x128xf32, #tpu.memory_space<vmem>>, vector<1x8x128xf32>
    %50 = vector.shape_cast %49 : vector<1x8x128xf32> to vector<8x128xf32>
    %51 = arith.mulf %47, %50 : vector<8x128xf32>
    %52 = arith.addf %45, %51 : vector<8x128xf32>
    %53 = arith.truncf %52 : vector<8x128xf32> to vector<8x128xbf16>
    %c0_24 = arith.constant 0 : index
    %c0_25 = arith.constant 0 : index
    %54 = vector.load %arg7[%c0_24, %c0_25] : memref<128x512xbf16, #tpu.memory_space<vmem>>, vector<128x512xbf16>
    %cst_26 = arith.constant dense<0.000000e+00> : vector<8x512xf32>
    %55 = tpu.matmul %53, %54, %cst_26 {dimension_numbers = #tpu.dot_dimension_numbers<[1], [0], [0], [1], [0, 0, 1, 1], [], []>} : vector<8x128xbf16>, vector<128x512xbf16>, vector<8x512xf32> -> vector<8x512xf32>
    %56 = arith.truncf %16 : vector<8x128xf32> to vector<8x128xbf16>
    %c0_27 = arith.constant 0 : index
    %c0_28 = arith.constant 0 : index
    %57 = vector.load %arg8[%c0_27, %c0_28] : memref<128x512xbf16, #tpu.memory_space<vmem>>, vector<128x512xbf16>
    %cst_29 = arith.constant dense<0.000000e+00> : vector<8x512xf32>
    %58 = tpu.matmul %56, %57, %cst_29 {dimension_numbers = #tpu.dot_dimension_numbers<[1], [0], [0], [1], [0, 0, 1, 1], [], []>} : vector<8x128xbf16>, vector<128x512xbf16>, vector<8x512xf32> -> vector<8x512xf32>
    %59 = arith.addf %55, %58 : vector<8x512xf32>
    %60 = arith.addf %59, %12 : vector<8x512xf32>
    %61 = vector.extract_strided_slice %60 {offsets = [0, 0], sizes = [8, 384], strides = [1, 1]} : vector<8x512xf32> to vector<8x384xf32>
    %62 = arith.negf %61 : vector<8x384xf32>
    %63 = math.exp %62 : vector<8x384xf32>
    %cst_30 = arith.constant 1.000000e+00 : f32
    %64 = vector.broadcast %cst_30 : f32 to vector<8x384xf32>
    %65 = arith.addf %64, %63 : vector<8x384xf32>
    %66 = arith.divf %64, %65 : vector<8x384xf32>
    %67 = vector.extract_strided_slice %66 {offsets = [0, 0], sizes = [8, 128], strides = [1, 1]} : vector<8x384xf32> to vector<8x128xf32>
    %68 = vector.extract_strided_slice %66 {offsets = [0, 128], sizes = [8, 128], strides = [1, 1]} : vector<8x384xf32> to vector<8x128xf32>
    %69 = vector.extract_strided_slice %66 {offsets = [0, 256], sizes = [8, 128], strides = [1, 1]} : vector<8x384xf32> to vector<8x128xf32>
    %70 = vector.extract_strided_slice %60 {offsets = [0, 384], sizes = [8, 128], strides = [1, 1]} : vector<8x512xf32> to vector<8x128xf32>
    %71 = math.tanh %70 : vector<8x128xf32>
    %72 = arith.mulf %68, %16 : vector<8x128xf32>
    %73 = arith.mulf %67, %71 : vector<8x128xf32>
    %74 = arith.addf %72, %73 : vector<8x128xf32>
    %75 = math.tanh %74 : vector<8x128xf32>
    %76 = arith.mulf %69, %75 : vector<8x128xf32>
    %77 = arith.truncf %76 : vector<8x128xf32> to vector<8x128xbf16>
    %c0_31 = arith.constant 0 : index
    %c0_32 = arith.constant 0 : index
    %78 = vector.load %arg10[%c0_31, %c0_32] : memref<128x128xbf16, #tpu.memory_space<vmem>>, vector<128x128xbf16>
    %cst_33 = arith.constant dense<0.000000e+00> : vector<8x128xf32>
    %79 = tpu.matmul %77, %78, %cst_33 {dimension_numbers = #tpu.dot_dimension_numbers<[1], [0], [0], [1], [0, 0, 1, 1], [], []>} : vector<8x128xbf16>, vector<128x128xbf16>, vector<8x128xf32> -> vector<8x128xf32>
    %80 = arith.addf %79, %15 : vector<8x128xf32>
    %81 = arith.index_cast %c0_i32 : i32 to index
    %c0_34 = arith.constant 0 : index
    %c0_35 = arith.constant 0 : index
    %82 = vector.load %arg12[%81, %c0_34, %c0_35] : memref<8x8x256xf32, #tpu.memory_space<vmem>>, vector<1x8x256xf32>
    %83 = vector.shape_cast %82 : vector<1x8x256xf32> to vector<8x256xf32>
    %84 = vector.shape_cast %44 : vector<8x256xf32> to vector<1x8x256xf32>
    tpu.vector_store %arg12[%81, %c0_34, %c0_35], %84 {strides = array<i32>} : memref<8x8x256xf32, #tpu.memory_space<vmem>>, vector<1x8x256xf32>,
    %85 = arith.index_cast %c0_i32 : i32 to index
    %c0_36 = arith.constant 0 : index
    %c0_37 = arith.constant 0 : index
    %86 = vector.load %arg13[%85, %c0_36, %c0_37] : memref<8x8x128xf32, #tpu.memory_space<vmem>>, vector<1x8x128xf32>
    %87 = vector.shape_cast %86 : vector<1x8x128xf32> to vector<8x128xf32>
    %88 = vector.shape_cast %80 : vector<8x128xf32> to vector<1x8x128xf32>
    tpu.vector_store %arg13[%85, %c0_36, %c0_37], %88 {strides = array<i32>} : memref<8x8x128xf32, #tpu.memory_space<vmem>>, vector<1x8x128xf32>,
    %c1_i32 = arith.constant 1 : i32
    %c8_i32_38 = arith.constant 8 : i32
    %89 = arith.muli %c1_i32, %c8_i32_38 : i32
    %90 = tpu.assume_multiple %89, 8 : i32
    %91 = arith.index_cast %90 : i32 to index
    %c0_39 = arith.constant 0 : index
    %92 = vector.load %arg14[%91, %c0_39] : memref<64x512xf32, #tpu.memory_space<vmem>>, vector<8x512xf32>
    %93 = arith.truncf %40 : vector<8x128xf32> to vector<8x128xbf16>
    %c0_40 = arith.constant 0 : index
    %c0_41 = arith.constant 0 : index
    %94 = vector.load %arg3[%c0_40, %c0_41] : memref<128x512xbf16, #tpu.memory_space<vmem>>, vector<128x512xbf16>
    %cst_42 = arith.constant dense<0.000000e+00> : vector<8x512xf32>
    %95 = tpu.matmul %93, %94, %cst_42 {dimension_numbers = #tpu.dot_dimension_numbers<[1], [0], [0], [1], [0, 0, 1, 1], [], []>} : vector<8x128xbf16>, vector<128x512xbf16>, vector<8x512xf32> -> vector<8x512xf32>
    %96 = arith.addf %92, %95 : vector<8x512xf32>
    %97 = vector.extract_strided_slice %96 {offsets = [0, 0], sizes = [8, 384], strides = [1, 1]} : vector<8x512xf32> to vector<8x384xf32>
    %98 = arith.negf %97 : vector<8x384xf32>
    %99 = math.exp %98 : vector<8x384xf32>
    %cst_43 = arith.constant 1.000000e+00 : f32
    %100 = vector.broadcast %cst_43 : f32 to vector<8x384xf32>
    %101 = arith.addf %100, %99 : vector<8x384xf32>
    %102 = arith.divf %100, %101 : vector<8x384xf32>
    %103 = vector.extract_strided_slice %102 {offsets = [0, 0], sizes = [8, 128], strides = [1, 1]} : vector<8x384xf32> to vector<8x128xf32>
    %104 = vector.extract_strided_slice %102 {offsets = [0, 128], sizes = [8, 128], strides = [1, 1]} : vector<8x384xf32> to vector<8x128xf32>
    %105 = vector.extract_strided_slice %102 {offsets = [0, 256], sizes = [8, 128], strides = [1, 1]} : vector<8x384xf32> to vector<8x128xf32>
    %106 = vector.extract_strided_slice %96 {offsets = [0, 384], sizes = [8, 128], strides = [1, 1]} : vector<8x512xf32> to vector<8x128xf32>
    %107 = math.tanh %106 : vector<8x128xf32>
    %108 = arith.mulf %104, %38 : vector<8x128xf32>
    %109 = arith.mulf %103, %107 : vector<8x128xf32>
    %110 = arith.addf %108, %109 : vector<8x128xf32>
    %111 = math.tanh %110 : vector<8x128xf32>
    %112 = arith.mulf %105, %111 : vector<8x128xf32>
    %113 = arith.truncf %112 : vector<8x128xf32> to vector<8x128xbf16>
    %c0_44 = arith.constant 0 : index
    %c0_45 = arith.constant 0 : index
    %114 = vector.load %arg5[%c0_44, %c0_45] : memref<128x256xbf16, #tpu.memory_space<vmem>>, vector<128x256xbf16>
    %cst_46 = arith.constant dense<0.000000e+00> : vector<8x256xf32>
    %115 = tpu.matmul %113, %114, %cst_46 {dimension_numbers = #tpu.dot_dimension_numbers<[1], [0], [0], [1], [0, 0, 1, 1], [], []>} : vector<8x128xbf16>, vector<128x256xbf16>, vector<8x256xf32> -> vector<8x256xf32>
    %116 = arith.addf %115, %9 : vector<8x256xf32>
    %117 = vector.extract_strided_slice %116 {offsets = [0, 0], sizes = [8, 128], strides = [1, 1]} : vector<8x256xf32> to vector<8x128xf32>
    %118 = vector.extract_strided_slice %116 {offsets = [0, 128], sizes = [8, 128], strides = [1, 1]} : vector<8x256xf32> to vector<8x128xf32>
    %119 = math.exp %118 : vector<8x128xf32>
    %120 = arith.index_cast %c1_i32 : i32 to index
    %c0_47 = arith.constant 0 : index
    %c0_48 = arith.constant 0 : index
    %121 = vector.load %arg1[%120, %c0_47, %c0_48] : memref<8x8x128xf32, #tpu.memory_space<vmem>>, vector<1x8x128xf32>
    %122 = vector.shape_cast %121 : vector<1x8x128xf32> to vector<8x128xf32>
    %123 = arith.mulf %119, %122 : vector<8x128xf32>
    %124 = arith.addf %117, %123 : vector<8x128xf32>
    %125 = arith.truncf %124 : vector<8x128xf32> to vector<8x128xbf16>
    %c0_49 = arith.constant 0 : index
    %c0_50 = arith.constant 0 : index
    %126 = vector.load %arg7[%c0_49, %c0_50] : memref<128x512xbf16, #tpu.memory_space<vmem>>, vector<128x512xbf16>
    %cst_51 = arith.constant dense<0.000000e+00> : vector<8x512xf32>
    %127 = tpu.matmul %125, %126, %cst_51 {dimension_numbers = #tpu.dot_dimension_numbers<[1], [0], [0], [1], [0, 0, 1, 1], [], []>} : vector<8x128xbf16>, vector<128x512xbf16>, vector<8x512xf32> -> vector<8x512xf32>
    %128 = arith.truncf %76 : vector<8x128xf32> to vector<8x128xbf16>
    %c0_52 = arith.constant 0 : index
    %c0_53 = arith.constant 0 : index
    %129 = vector.load %arg8[%c0_52, %c0_53] : memref<128x512xbf16, #tpu.memory_space<vmem>>, vector<128x512xbf16>
    %cst_54 = arith.constant dense<0.000000e+00> : vector<8x512xf32>
    %130 = tpu.matmul %128, %129, %cst_54 {dimension_numbers = #tpu.dot_dimension_numbers<[1], [0], [0], [1], [0, 0, 1, 1], [], []>} : vector<8x128xbf16>, vector<128x512xbf16>, vector<8x512xf32> -> vector<8x512xf32>
    %131 = arith.addf %127, %130 : vector<8x512xf32>
    %132 = arith.addf %131, %12 : vector<8x512xf32>
    %133 = vector.extract_strided_slice %132 {offsets = [0, 0], sizes = [8, 384], strides = [1, 1]} : vector<8x512xf32> to vector<8x384xf32>
    %134 = arith.negf %133 : vector<8x384xf32>
    %135 = math.exp %134 : vector<8x384xf32>
    %cst_55 = arith.constant 1.000000e+00 : f32
    %136 = vector.broadcast %cst_55 : f32 to vector<8x384xf32>
    %137 = arith.addf %136, %135 : vector<8x384xf32>
    %138 = arith.divf %136, %137 : vector<8x384xf32>
    %139 = vector.extract_strided_slice %138 {offsets = [0, 0], sizes = [8, 128], strides = [1, 1]} : vector<8x384xf32> to vector<8x128xf32>
    %140 = vector.extract_strided_slice %138 {offsets = [0, 128], sizes = [8, 128], strides = [1, 1]} : vector<8x384xf32> to vector<8x128xf32>
    %141 = vector.extract_strided_slice %138 {offsets = [0, 256], sizes = [8, 128], strides = [1, 1]} : vector<8x384xf32> to vector<8x128xf32>
    %142 = vector.extract_strided_slice %132 {offsets = [0, 384], sizes = [8, 128], strides = [1, 1]} : vector<8x512xf32> to vector<8x128xf32>
    %143 = math.tanh %142 : vector<8x128xf32>
    %144 = arith.mulf %140, %74 : vector<8x128xf32>
    %145 = arith.mulf %139, %143 : vector<8x128xf32>
    %146 = arith.addf %144, %145 : vector<8x128xf32>
    %147 = math.tanh %146 : vector<8x128xf32>
    %148 = arith.mulf %141, %147 : vector<8x128xf32>
    %149 = arith.truncf %148 : vector<8x128xf32> to vector<8x128xbf16>
    %c0_56 = arith.constant 0 : index
    %c0_57 = arith.constant 0 : index
    %150 = vector.load %arg10[%c0_56, %c0_57] : memref<128x128xbf16, #tpu.memory_space<vmem>>, vector<128x128xbf16>
    %cst_58 = arith.constant dense<0.000000e+00> : vector<8x128xf32>
    %151 = tpu.matmul %149, %150, %cst_58 {dimension_numbers = #tpu.dot_dimension_numbers<[1], [0], [0], [1], [0, 0, 1, 1], [], []>} : vector<8x128xbf16>, vector<128x128xbf16>, vector<8x128xf32> -> vector<8x128xf32>
    %152 = arith.addf %151, %15 : vector<8x128xf32>
    %153 = arith.index_cast %c1_i32 : i32 to index
    %c0_59 = arith.constant 0 : index
    %c0_60 = arith.constant 0 : index
    %154 = vector.load %arg12[%153, %c0_59, %c0_60] : memref<8x8x256xf32, #tpu.memory_space<vmem>>, vector<1x8x256xf32>
    %155 = vector.shape_cast %154 : vector<1x8x256xf32> to vector<8x256xf32>
    %156 = vector.shape_cast %116 : vector<8x256xf32> to vector<1x8x256xf32>
    tpu.vector_store %arg12[%153, %c0_59, %c0_60], %156 {strides = array<i32>} : memref<8x8x256xf32, #tpu.memory_space<vmem>>, vector<1x8x256xf32>,
    %157 = arith.index_cast %c1_i32 : i32 to index
    %c0_61 = arith.constant 0 : index
    %c0_62 = arith.constant 0 : index
    %158 = vector.load %arg13[%157, %c0_61, %c0_62] : memref<8x8x128xf32, #tpu.memory_space<vmem>>, vector<1x8x128xf32>
    %159 = vector.shape_cast %158 : vector<1x8x128xf32> to vector<8x128xf32>
    %160 = vector.shape_cast %152 : vector<8x128xf32> to vector<1x8x128xf32>
    tpu.vector_store %arg13[%157, %c0_61, %c0_62], %160 {strides = array<i32>} : memref<8x8x128xf32, #tpu.memory_space<vmem>>, vector<1x8x128xf32>,
    %c2_i32 = arith.constant 2 : i32
    %c8_i32_63 = arith.constant 8 : i32
    %161 = arith.muli %c2_i32, %c8_i32_63 : i32
    %162 = tpu.assume_multiple %161, 8 : i32
    %163 = arith.index_cast %162 : i32 to index
    %c0_64 = arith.constant 0 : index
    %164 = vector.load %arg14[%163, %c0_64] : memref<64x512xf32, #tpu.memory_space<vmem>>, vector<8x512xf32>
    %165 = arith.truncf %112 : vector<8x128xf32> to vector<8x128xbf16>
    %c0_65 = arith.constant 0 : index
    %c0_66 = arith.constant 0 : index
    %166 = vector.load %arg3[%c0_65, %c0_66] : memref<128x512xbf16, #tpu.memory_space<vmem>>, vector<128x512xbf16>
    %cst_67 = arith.constant dense<0.000000e+00> : vector<8x512xf32>
    %167 = tpu.matmul %165, %166, %cst_67 {dimension_numbers = #tpu.dot_dimension_numbers<[1], [0], [0], [1], [0, 0, 1, 1], [], []>} : vector<8x128xbf16>, vector<128x512xbf16>, vector<8x512xf32> -> vector<8x512xf32>
    %168 = arith.addf %164, %167 : vector<8x512xf32>
    %169 = vector.extract_strided_slice %168 {offsets = [0, 0], sizes = [8, 384], strides = [1, 1]} : vector<8x512xf32> to vector<8x384xf32>
    %170 = arith.negf %169 : vector<8x384xf32>
    %171 = math.exp %170 : vector<8x384xf32>
    %cst_68 = arith.constant 1.000000e+00 : f32
    %172 = vector.broadcast %cst_68 : f32 to vector<8x384xf32>
    %173 = arith.addf %172, %171 : vector<8x384xf32>
    %174 = arith.divf %172, %173 : vector<8x384xf32>
    %175 = vector.extract_strided_slice %174 {offsets = [0, 0], sizes = [8, 128], strides = [1, 1]} : vector<8x384xf32> to vector<8x128xf32>
    %176 = vector.extract_strided_slice %174 {offsets = [0, 128], sizes = [8, 128], strides = [1, 1]} : vector<8x384xf32> to vector<8x128xf32>
    %177 = vector.extract_strided_slice %174 {offsets = [0, 256], sizes = [8, 128], strides = [1, 1]} : vector<8x384xf32> to vector<8x128xf32>
    %178 = vector.extract_strided_slice %168 {offsets = [0, 384], sizes = [8, 128], strides = [1, 1]} : vector<8x512xf32> to vector<8x128xf32>
    %179 = math.tanh %178 : vector<8x128xf32>
    %180 = arith.mulf %176, %110 : vector<8x128xf32>
    %181 = arith.mulf %175, %179 : vector<8x128xf32>
    %182 = arith.addf %180, %181 : vector<8x128xf32>
    %183 = math.tanh %182 : vector<8x128xf32>
    %184 = arith.mulf %177, %183 : vector<8x128xf32>
    %185 = arith.truncf %184 : vector<8x128xf32> to vector<8x128xbf16>
    %c0_69 = arith.constant 0 : index
    %c0_70 = arith.constant 0 : index
    %186 = vector.load %arg5[%c0_69, %c0_70] : memref<128x256xbf16, #tpu.memory_space<vmem>>, vector<128x256xbf16>
    %cst_71 = arith.constant dense<0.000000e+00> : vector<8x256xf32>
    %187 = tpu.matmul %185, %186, %cst_71 {dimension_numbers = #tpu.dot_dimension_numbers<[1], [0], [0], [1], [0, 0, 1, 1], [], []>} : vector<8x128xbf16>, vector<128x256xbf16>, vector<8x256xf32> -> vector<8x256xf32>
    %188 = arith.addf %187, %9 : vector<8x256xf32>
    %189 = vector.extract_strided_slice %188 {offsets = [0, 0], sizes = [8, 128], strides = [1, 1]} : vector<8x256xf32> to vector<8x128xf32>
    %190 = vector.extract_strided_slice %188 {offsets = [0, 128], sizes = [8, 128], strides = [1, 1]} : vector<8x256xf32> to vector<8x128xf32>
    %191 = math.exp %190 : vector<8x128xf32>
    %192 = arith.index_cast %c2_i32 : i32 to index
    %c0_72 = arith.constant 0 : index
    %c0_73 = arith.constant 0 : index
    %193 = vector.load %arg1[%192, %c0_72, %c0_73] : memref<8x8x128xf32, #tpu.memory_space<vmem>>, vector<1x8x128xf32>
    %194 = vector.shape_cast %193 : vector<1x8x128xf32> to vector<8x128xf32>
    %195 = arith.mulf %191, %194 : vector<8x128xf32>
    %196 = arith.addf %189, %195 : vector<8x128xf32>
    %197 = arith.truncf %196 : vector<8x128xf32> to vector<8x128xbf16>
    %c0_74 = arith.constant 0 : index
    %c0_75 = arith.constant 0 : index
    %198 = vector.load %arg7[%c0_74, %c0_75] : memref<128x512xbf16, #tpu.memory_space<vmem>>, vector<128x512xbf16>
    %cst_76 = arith.constant dense<0.000000e+00> : vector<8x512xf32>
    %199 = tpu.matmul %197, %198, %cst_76 {dimension_numbers = #tpu.dot_dimension_numbers<[1], [0], [0], [1], [0, 0, 1, 1], [], []>} : vector<8x128xbf16>, vector<128x512xbf16>, vector<8x512xf32> -> vector<8x512xf32>
    %200 = arith.truncf %148 : vector<8x128xf32> to vector<8x128xbf16>
    %c0_77 = arith.constant 0 : index
    %c0_78 = arith.constant 0 : index
    %201 = vector.load %arg8[%c0_77, %c0_78] : memref<128x512xbf16, #tpu.memory_space<vmem>>, vector<128x512xbf16>
    %cst_79 = arith.constant dense<0.000000e+00> : vector<8x512xf32>
    %202 = tpu.matmul %200, %201, %cst_79 {dimension_numbers = #tpu.dot_dimension_numbers<[1], [0], [0], [1], [0, 0, 1, 1], [], []>} : vector<8x128xbf16>, vector<128x512xbf16>, vector<8x512xf32> -> vector<8x512xf32>
    %203 = arith.addf %199, %202 : vector<8x512xf32>
    %204 = arith.addf %203, %12 : vector<8x512xf32>
    %205 = vector.extract_strided_slice %204 {offsets = [0, 0], sizes = [8, 384], strides = [1, 1]} : vector<8x512xf32> to vector<8x384xf32>
    %206 = arith.negf %205 : vector<8x384xf32>
    %207 = math.exp %206 : vector<8x384xf32>
    %cst_80 = arith.constant 1.000000e+00 : f32
    %208 = vector.broadcast %cst_80 : f32 to vector<8x384xf32>
    %209 = arith.addf %208, %207 : vector<8x384xf32>
    %210 = arith.divf %208, %209 : vector<8x384xf32>
    %211 = vector.extract_strided_slice %210 {offsets = [0, 0], sizes = [8, 128], strides = [1, 1]} : vector<8x384xf32> to vector<8x128xf32>
    %212 = vector.extract_strided_slice %210 {offsets = [0, 128], sizes = [8, 128], strides = [1, 1]} : vector<8x384xf32> to vector<8x128xf32>
    %213 = vector.extract_strided_slice %210 {offsets = [0, 256], sizes = [8, 128], strides = [1, 1]} : vector<8x384xf32> to vector<8x128xf32>
    %214 = vector.extract_strided_slice %204 {offsets = [0, 384], sizes = [8, 128], strides = [1, 1]} : vector<8x512xf32> to vector<8x128xf32>
    %215 = math.tanh %214 : vector<8x128xf32>
    %216 = arith.mulf %212, %146 : vector<8x128xf32>
    %217 = arith.mulf %211, %215 : vector<8x128xf32>
    %218 = arith.addf %216, %217 : vector<8x128xf32>
    %219 = math.tanh %218 : vector<8x128xf32>
    %220 = arith.mulf %213, %219 : vector<8x128xf32>
    %221 = arith.truncf %220 : vector<8x128xf32> to vector<8x128xbf16>
    %c0_81 = arith.constant 0 : index
    %c0_82 = arith.constant 0 : index
    %222 = vector.load %arg10[%c0_81, %c0_82] : memref<128x128xbf16, #tpu.memory_space<vmem>>, vector<128x128xbf16>
    %cst_83 = arith.constant dense<0.000000e+00> : vector<8x128xf32>
    %223 = tpu.matmul %221, %222, %cst_83 {dimension_numbers = #tpu.dot_dimension_numbers<[1], [0], [0], [1], [0, 0, 1, 1], [], []>} : vector<8x128xbf16>, vector<128x128xbf16>, vector<8x128xf32> -> vector<8x128xf32>
    %224 = arith.addf %223, %15 : vector<8x128xf32>
    %225 = arith.index_cast %c2_i32 : i32 to index
    %c0_84 = arith.constant 0 : index
    %c0_85 = arith.constant 0 : index
    %226 = vector.load %arg12[%225, %c0_84, %c0_85] : memref<8x8x256xf32, #tpu.memory_space<vmem>>, vector<1x8x256xf32>
    %227 = vector.shape_cast %226 : vector<1x8x256xf32> to vector<8x256xf32>
    %228 = vector.shape_cast %188 : vector<8x256xf32> to vector<1x8x256xf32>
    tpu.vector_store %arg12[%225, %c0_84, %c0_85], %228 {strides = array<i32>} : memref<8x8x256xf32, #tpu.memory_space<vmem>>, vector<1x8x256xf32>,
    %229 = arith.index_cast %c2_i32 : i32 to index
    %c0_86 = arith.constant 0 : index
    %c0_87 = arith.constant 0 : index
    %230 = vector.load %arg13[%229, %c0_86, %c0_87] : memref<8x8x128xf32, #tpu.memory_space<vmem>>, vector<1x8x128xf32>
    %231 = vector.shape_cast %230 : vector<1x8x128xf32> to vector<8x128xf32>
    %232 = vector.shape_cast %224 : vector<8x128xf32> to vector<1x8x128xf32>
    tpu.vector_store %arg13[%229, %c0_86, %c0_87], %232 {strides = array<i32>} : memref<8x8x128xf32, #tpu.memory_space<vmem>>, vector<1x8x128xf32>,
    %c3_i32 = arith.constant 3 : i32
    %c8_i32_88 = arith.constant 8 : i32
    %233 = arith.muli %c3_i32, %c8_i32_88 : i32
    %234 = tpu.assume_multiple %233, 8 : i32
    %235 = arith.index_cast %234 : i32 to index
    %c0_89 = arith.constant 0 : index
    %236 = vector.load %arg14[%235, %c0_89] : memref<64x512xf32, #tpu.memory_space<vmem>>, vector<8x512xf32>
    %237 = arith.truncf %184 : vector<8x128xf32> to vector<8x128xbf16>
    %c0_90 = arith.constant 0 : index
    %c0_91 = arith.constant 0 : index
    %238 = vector.load %arg3[%c0_90, %c0_91] : memref<128x512xbf16, #tpu.memory_space<vmem>>, vector<128x512xbf16>
    %cst_92 = arith.constant dense<0.000000e+00> : vector<8x512xf32>
    %239 = tpu.matmul %237, %238, %cst_92 {dimension_numbers = #tpu.dot_dimension_numbers<[1], [0], [0], [1], [0, 0, 1, 1], [], []>} : vector<8x128xbf16>, vector<128x512xbf16>, vector<8x512xf32> -> vector<8x512xf32>
    %240 = arith.addf %236, %239 : vector<8x512xf32>
    %241 = vector.extract_strided_slice %240 {offsets = [0, 0], sizes = [8, 384], strides = [1, 1]} : vector<8x512xf32> to vector<8x384xf32>
    %242 = arith.negf %241 : vector<8x384xf32>
    %243 = math.exp %242 : vector<8x384xf32>
    %cst_93 = arith.constant 1.000000e+00 : f32
    %244 = vector.broadcast %cst_93 : f32 to vector<8x384xf32>
    %245 = arith.addf %244, %243 : vector<8x384xf32>
    %246 = arith.divf %244, %245 : vector<8x384xf32>
    %247 = vector.extract_strided_slice %246 {offsets = [0, 0], sizes = [8, 128], strides = [1, 1]} : vector<8x384xf32> to vector<8x128xf32>
    %248 = vector.extract_strided_slice %246 {offsets = [0, 128], sizes = [8, 128], strides = [1, 1]} : vector<8x384xf32> to vector<8x128xf32>
    %249 = vector.extract_strided_slice %246 {offsets = [0, 256], sizes = [8, 128], strides = [1, 1]} : vector<8x384xf32> to vector<8x128xf32>
    %250 = vector.extract_strided_slice %240 {offsets = [0, 384], sizes = [8, 128], strides = [1, 1]} : vector<8x512xf32> to vector<8x128xf32>
    %251 = math.tanh %250 : vector<8x128xf32>
    %252 = arith.mulf %248, %182 : vector<8x128xf32>
    %253 = arith.mulf %247, %251 : vector<8x128xf32>
    %254 = arith.addf %252, %253 : vector<8x128xf32>
    %255 = math.tanh %254 : vector<8x128xf32>
    %256 = arith.mulf %249, %255 : vector<8x128xf32>
    %257 = arith.truncf %256 : vector<8x128xf32> to vector<8x128xbf16>
    %c0_94 = arith.constant 0 : index
    %c0_95 = arith.constant 0 : index
    %258 = vector.load %arg5[%c0_94, %c0_95] : memref<128x256xbf16, #tpu.memory_space<vmem>>, vector<128x256xbf16>
    %cst_96 = arith.constant dense<0.000000e+00> : vector<8x256xf32>
    %259 = tpu.matmul %257, %258, %cst_96 {dimension_numbers = #tpu.dot_dimension_numbers<[1], [0], [0], [1], [0, 0, 1, 1], [], []>} : vector<8x128xbf16>, vector<128x256xbf16>, vector<8x256xf32> -> vector<8x256xf32>
    %260 = arith.addf %259, %9 : vector<8x256xf32>
    %261 = vector.extract_strided_slice %260 {offsets = [0, 0], sizes = [8, 128], strides = [1, 1]} : vector<8x256xf32> to vector<8x128xf32>
    %262 = vector.extract_strided_slice %260 {offsets = [0, 128], sizes = [8, 128], strides = [1, 1]} : vector<8x256xf32> to vector<8x128xf32>
    %263 = math.exp %262 : vector<8x128xf32>
    %264 = arith.index_cast %c3_i32 : i32 to index
    %c0_97 = arith.constant 0 : index
    %c0_98 = arith.constant 0 : index
    %265 = vector.load %arg1[%264, %c0_97, %c0_98] : memref<8x8x128xf32, #tpu.memory_space<vmem>>, vector<1x8x128xf32>
    %266 = vector.shape_cast %265 : vector<1x8x128xf32> to vector<8x128xf32>
    %267 = arith.mulf %263, %266 : vector<8x128xf32>
    %268 = arith.addf %261, %267 : vector<8x128xf32>
    %269 = arith.truncf %268 : vector<8x128xf32> to vector<8x128xbf16>
    %c0_99 = arith.constant 0 : index
    %c0_100 = arith.constant 0 : index
    %270 = vector.load %arg7[%c0_99, %c0_100] : memref<128x512xbf16, #tpu.memory_space<vmem>>, vector<128x512xbf16>
    %cst_101 = arith.constant dense<0.000000e+00> : vector<8x512xf32>
    %271 = tpu.matmul %269, %270, %cst_101 {dimension_numbers = #tpu.dot_dimension_numbers<[1], [0], [0], [1], [0, 0, 1, 1], [], []>} : vector<8x128xbf16>, vector<128x512xbf16>, vector<8x512xf32> -> vector<8x512xf32>
    %272 = arith.truncf %220 : vector<8x128xf32> to vector<8x128xbf16>
    %c0_102 = arith.constant 0 : index
    %c0_103 = arith.constant 0 : index
    %273 = vector.load %arg8[%c0_102, %c0_103] : memref<128x512xbf16, #tpu.memory_space<vmem>>, vector<128x512xbf16>
    %cst_104 = arith.constant dense<0.000000e+00> : vector<8x512xf32>
    %274 = tpu.matmul %272, %273, %cst_104 {dimension_numbers = #tpu.dot_dimension_numbers<[1], [0], [0], [1], [0, 0, 1, 1], [], []>} : vector<8x128xbf16>, vector<128x512xbf16>, vector<8x512xf32> -> vector<8x512xf32>
    %275 = arith.addf %271, %274 : vector<8x512xf32>
    %276 = arith.addf %275, %12 : vector<8x512xf32>
    %277 = vector.extract_strided_slice %276 {offsets = [0, 0], sizes = [8, 384], strides = [1, 1]} : vector<8x512xf32> to vector<8x384xf32>
    %278 = arith.negf %277 : vector<8x384xf32>
    %279 = math.exp %278 : vector<8x384xf32>
    %cst_105 = arith.constant 1.000000e+00 : f32
    %280 = vector.broadcast %cst_105 : f32 to vector<8x384xf32>
    %281 = arith.addf %280, %279 : vector<8x384xf32>
    %282 = arith.divf %280, %281 : vector<8x384xf32>
    %283 = vector.extract_strided_slice %282 {offsets = [0, 0], sizes = [8, 128], strides = [1, 1]} : vector<8x384xf32> to vector<8x128xf32>
    %284 = vector.extract_strided_slice %282 {offsets = [0, 128], sizes = [8, 128], strides = [1, 1]} : vector<8x384xf32> to vector<8x128xf32>
    %285 = vector.extract_strided_slice %282 {offsets = [0, 256], sizes = [8, 128], strides = [1, 1]} : vector<8x384xf32> to vector<8x128xf32>
    %286 = vector.extract_strided_slice %276 {offsets = [0, 384], sizes = [8, 128], strides = [1, 1]} : vector<8x512xf32> to vector<8x128xf32>
    %287 = math.tanh %286 : vector<8x128xf32>
    %288 = arith.mulf %284, %218 : vector<8x128xf32>
    %289 = arith.mulf %283, %287 : vector<8x128xf32>
    %290 = arith.addf %288, %289 : vector<8x128xf32>
    %291 = math.tanh %290 : vector<8x128xf32>
    %292 = arith.mulf %285, %291 : vector<8x128xf32>
    %293 = arith.truncf %292 : vector<8x128xf32> to vector<8x128xbf16>
    %c0_106 = arith.constant 0 : index
    %c0_107 = arith.constant 0 : index
    %294 = vector.load %arg10[%c0_106, %c0_107] : memref<128x128xbf16, #tpu.memory_space<vmem>>, vector<128x128xbf16>
    %cst_108 = arith.constant dense<0.000000e+00> : vector<8x128xf32>
    %295 = tpu.matmul %293, %294, %cst_108 {dimension_numbers = #tpu.dot_dimension_numbers<[1], [0], [0], [1], [0, 0, 1, 1], [], []>} : vector<8x128xbf16>, vector<128x128xbf16>, vector<8x128xf32> -> vector<8x128xf32>
    %296 = arith.addf %295, %15 : vector<8x128xf32>
    %297 = arith.index_cast %c3_i32 : i32 to index
    %c0_109 = arith.constant 0 : index
    %c0_110 = arith.constant 0 : index
    %298 = vector.load %arg12[%297, %c0_109, %c0_110] : memref<8x8x256xf32, #tpu.memory_space<vmem>>, vector<1x8x256xf32>
    %299 = vector.shape_cast %298 : vector<1x8x256xf32> to vector<8x256xf32>
    %300 = vector.shape_cast %260 : vector<8x256xf32> to vector<1x8x256xf32>
    tpu.vector_store %arg12[%297, %c0_109, %c0_110], %300 {strides = array<i32>} : memref<8x8x256xf32, #tpu.memory_space<vmem>>, vector<1x8x256xf32>,
    %301 = arith.index_cast %c3_i32 : i32 to index
    %c0_111 = arith.constant 0 : index
    %c0_112 = arith.constant 0 : index
    %302 = vector.load %arg13[%301, %c0_111, %c0_112] : memref<8x8x128xf32, #tpu.memory_space<vmem>>, vector<1x8x128xf32>
    %303 = vector.shape_cast %302 : vector<1x8x128xf32> to vector<8x128xf32>
    %304 = vector.shape_cast %296 : vector<8x128xf32> to vector<1x8x128xf32>
    tpu.vector_store %arg13[%301, %c0_111, %c0_112], %304 {strides = array<i32>} : memref<8x8x128xf32, #tpu.memory_space<vmem>>, vector<1x8x128xf32>,
    %c4_i32 = arith.constant 4 : i32
    %c8_i32_113 = arith.constant 8 : i32
    %305 = arith.muli %c4_i32, %c8_i32_113 : i32
    %306 = tpu.assume_multiple %305, 8 : i32
    %307 = arith.index_cast %306 : i32 to index
    %c0_114 = arith.constant 0 : index
    %308 = vector.load %arg14[%307, %c0_114] : memref<64x512xf32, #tpu.memory_space<vmem>>, vector<8x512xf32>
    %309 = arith.truncf %256 : vector<8x128xf32> to vector<8x128xbf16>
    %c0_115 = arith.constant 0 : index
    %c0_116 = arith.constant 0 : index
    %310 = vector.load %arg3[%c0_115, %c0_116] : memref<128x512xbf16, #tpu.memory_space<vmem>>, vector<128x512xbf16>
    %cst_117 = arith.constant dense<0.000000e+00> : vector<8x512xf32>
    %311 = tpu.matmul %309, %310, %cst_117 {dimension_numbers = #tpu.dot_dimension_numbers<[1], [0], [0], [1], [0, 0, 1, 1], [], []>} : vector<8x128xbf16>, vector<128x512xbf16>, vector<8x512xf32> -> vector<8x512xf32>
    %312 = arith.addf %308, %311 : vector<8x512xf32>
    %313 = vector.extract_strided_slice %312 {offsets = [0, 0], sizes = [8, 384], strides = [1, 1]} : vector<8x512xf32> to vector<8x384xf32>
    %314 = arith.negf %313 : vector<8x384xf32>
    %315 = math.exp %314 : vector<8x384xf32>
    %cst_118 = arith.constant 1.000000e+00 : f32
    %316 = vector.broadcast %cst_118 : f32 to vector<8x384xf32>
    %317 = arith.addf %316, %315 : vector<8x384xf32>
    %318 = arith.divf %316, %317 : vector<8x384xf32>
    %319 = vector.extract_strided_slice %318 {offsets = [0, 0], sizes = [8, 128], strides = [1, 1]} : vector<8x384xf32> to vector<8x128xf32>
    %320 = vector.extract_strided_slice %318 {offsets = [0, 128], sizes = [8, 128], strides = [1, 1]} : vector<8x384xf32> to vector<8x128xf32>
    %321 = vector.extract_strided_slice %318 {offsets = [0, 256], sizes = [8, 128], strides = [1, 1]} : vector<8x384xf32> to vector<8x128xf32>
    %322 = vector.extract_strided_slice %312 {offsets = [0, 384], sizes = [8, 128], strides = [1, 1]} : vector<8x512xf32> to vector<8x128xf32>
    %323 = math.tanh %322 : vector<8x128xf32>
    %324 = arith.mulf %320, %254 : vector<8x128xf32>
    %325 = arith.mulf %319, %323 : vector<8x128xf32>
    %326 = arith.addf %324, %325 : vector<8x128xf32>
    %327 = math.tanh %326 : vector<8x128xf32>
    %328 = arith.mulf %321, %327 : vector<8x128xf32>
    %329 = arith.truncf %328 : vector<8x128xf32> to vector<8x128xbf16>
    %c0_119 = arith.constant 0 : index
    %c0_120 = arith.constant 0 : index
    %330 = vector.load %arg5[%c0_119, %c0_120] : memref<128x256xbf16, #tpu.memory_space<vmem>>, vector<128x256xbf16>
    %cst_121 = arith.constant dense<0.000000e+00> : vector<8x256xf32>
    %331 = tpu.matmul %329, %330, %cst_121 {dimension_numbers = #tpu.dot_dimension_numbers<[1], [0], [0], [1], [0, 0, 1, 1], [], []>} : vector<8x128xbf16>, vector<128x256xbf16>, vector<8x256xf32> -> vector<8x256xf32>
    %332 = arith.addf %331, %9 : vector<8x256xf32>
    %333 = vector.extract_strided_slice %332 {offsets = [0, 0], sizes = [8, 128], strides = [1, 1]} : vector<8x256xf32> to vector<8x128xf32>
    %334 = vector.extract_strided_slice %332 {offsets = [0, 128], sizes = [8, 128], strides = [1, 1]} : vector<8x256xf32> to vector<8x128xf32>
    %335 = math.exp %334 : vector<8x128xf32>
    %336 = arith.index_cast %c4_i32 : i32 to index
    %c0_122 = arith.constant 0 : index
    %c0_123 = arith.constant 0 : index
    %337 = vector.load %arg1[%336, %c0_122, %c0_123] : memref<8x8x128xf32, #tpu.memory_space<vmem>>, vector<1x8x128xf32>
    %338 = vector.shape_cast %337 : vector<1x8x128xf32> to vector<8x128xf32>
    %339 = arith.mulf %335, %338 : vector<8x128xf32>
    %340 = arith.addf %333, %339 : vector<8x128xf32>
    %341 = arith.truncf %340 : vector<8x128xf32> to vector<8x128xbf16>
    %c0_124 = arith.constant 0 : index
    %c0_125 = arith.constant 0 : index
    %342 = vector.load %arg7[%c0_124, %c0_125] : memref<128x512xbf16, #tpu.memory_space<vmem>>, vector<128x512xbf16>
    %cst_126 = arith.constant dense<0.000000e+00> : vector<8x512xf32>
    %343 = tpu.matmul %341, %342, %cst_126 {dimension_numbers = #tpu.dot_dimension_numbers<[1], [0], [0], [1], [0, 0, 1, 1], [], []>} : vector<8x128xbf16>, vector<128x512xbf16>, vector<8x512xf32> -> vector<8x512xf32>
    %344 = arith.truncf %292 : vector<8x128xf32> to vector<8x128xbf16>
    %c0_127 = arith.constant 0 : index
    %c0_128 = arith.constant 0 : index
    %345 = vector.load %arg8[%c0_127, %c0_128] : memref<128x512xbf16, #tpu.memory_space<vmem>>, vector<128x512xbf16>
    %cst_129 = arith.constant dense<0.000000e+00> : vector<8x512xf32>
    %346 = tpu.matmul %344, %345, %cst_129 {dimension_numbers = #tpu.dot_dimension_numbers<[1], [0], [0], [1], [0, 0, 1, 1], [], []>} : vector<8x128xbf16>, vector<128x512xbf16>, vector<8x512xf32> -> vector<8x512xf32>
    %347 = arith.addf %343, %346 : vector<8x512xf32>
    %348 = arith.addf %347, %12 : vector<8x512xf32>
    %349 = vector.extract_strided_slice %348 {offsets = [0, 0], sizes = [8, 384], strides = [1, 1]} : vector<8x512xf32> to vector<8x384xf32>
    %350 = arith.negf %349 : vector<8x384xf32>
    %351 = math.exp %350 : vector<8x384xf32>
    %cst_130 = arith.constant 1.000000e+00 : f32
    %352 = vector.broadcast %cst_130 : f32 to vector<8x384xf32>
    %353 = arith.addf %352, %351 : vector<8x384xf32>
    %354 = arith.divf %352, %353 : vector<8x384xf32>
    %355 = vector.extract_strided_slice %354 {offsets = [0, 0], sizes = [8, 128], strides = [1, 1]} : vector<8x384xf32> to vector<8x128xf32>
    %356 = vector.extract_strided_slice %354 {offsets = [0, 128], sizes = [8, 128], strides = [1, 1]} : vector<8x384xf32> to vector<8x128xf32>
    %357 = vector.extract_strided_slice %354 {offsets = [0, 256], sizes = [8, 128], strides = [1, 1]} : vector<8x384xf32> to vector<8x128xf32>
    %358 = vector.extract_strided_slice %348 {offsets = [0, 384], sizes = [8, 128], strides = [1, 1]} : vector<8x512xf32> to vector<8x128xf32>
    %359 = math.tanh %358 : vector<8x128xf32>
    %360 = arith.mulf %356, %290 : vector<8x128xf32>
    %361 = arith.mulf %355, %359 : vector<8x128xf32>
    %362 = arith.addf %360, %361 : vector<8x128xf32>
    %363 = math.tanh %362 : vector<8x128xf32>
    %364 = arith.mulf %357, %363 : vector<8x128xf32>
    %365 = arith.truncf %364 : vector<8x128xf32> to vector<8x128xbf16>
    %c0_131 = arith.constant 0 : index
    %c0_132 = arith.constant 0 : index
    %366 = vector.load %arg10[%c0_131, %c0_132] : memref<128x128xbf16, #tpu.memory_space<vmem>>, vector<128x128xbf16>
    %cst_133 = arith.constant dense<0.000000e+00> : vector<8x128xf32>
    %367 = tpu.matmul %365, %366, %cst_133 {dimension_numbers = #tpu.dot_dimension_numbers<[1], [0], [0], [1], [0, 0, 1, 1], [], []>} : vector<8x128xbf16>, vector<128x128xbf16>, vector<8x128xf32> -> vector<8x128xf32>
    %368 = arith.addf %367, %15 : vector<8x128xf32>
    %369 = arith.index_cast %c4_i32 : i32 to index
    %c0_134 = arith.constant 0 : index
    %c0_135 = arith.constant 0 : index
    %370 = vector.load %arg12[%369, %c0_134, %c0_135] : memref<8x8x256xf32, #tpu.memory_space<vmem>>, vector<1x8x256xf32>
    %371 = vector.shape_cast %370 : vector<1x8x256xf32> to vector<8x256xf32>
    %372 = vector.shape_cast %332 : vector<8x256xf32> to vector<1x8x256xf32>
    tpu.vector_store %arg12[%369, %c0_134, %c0_135], %372 {strides = array<i32>} : memref<8x8x256xf32, #tpu.memory_space<vmem>>, vector<1x8x256xf32>,
    %373 = arith.index_cast %c4_i32 : i32 to index
    %c0_136 = arith.constant 0 : index
    %c0_137 = arith.constant 0 : index
    %374 = vector.load %arg13[%373, %c0_136, %c0_137] : memref<8x8x128xf32, #tpu.memory_space<vmem>>, vector<1x8x128xf32>
    %375 = vector.shape_cast %374 : vector<1x8x128xf32> to vector<8x128xf32>
    %376 = vector.shape_cast %368 : vector<8x128xf32> to vector<1x8x128xf32>
    tpu.vector_store %arg13[%373, %c0_136, %c0_137], %376 {strides = array<i32>} : memref<8x8x128xf32, #tpu.memory_space<vmem>>, vector<1x8x128xf32>,
    %c5_i32 = arith.constant 5 : i32
    %c8_i32_138 = arith.constant 8 : i32
    %377 = arith.muli %c5_i32, %c8_i32_138 : i32
    %378 = tpu.assume_multiple %377, 8 : i32
    %379 = arith.index_cast %378 : i32 to index
    %c0_139 = arith.constant 0 : index
    %380 = vector.load %arg14[%379, %c0_139] : memref<64x512xf32, #tpu.memory_space<vmem>>, vector<8x512xf32>
    %381 = arith.truncf %328 : vector<8x128xf32> to vector<8x128xbf16>
    %c0_140 = arith.constant 0 : index
    %c0_141 = arith.constant 0 : index
    %382 = vector.load %arg3[%c0_140, %c0_141] : memref<128x512xbf16, #tpu.memory_space<vmem>>, vector<128x512xbf16>
    %cst_142 = arith.constant dense<0.000000e+00> : vector<8x512xf32>
    %383 = tpu.matmul %381, %382, %cst_142 {dimension_numbers = #tpu.dot_dimension_numbers<[1], [0], [0], [1], [0, 0, 1, 1], [], []>} : vector<8x128xbf16>, vector<128x512xbf16>, vector<8x512xf32> -> vector<8x512xf32>
    %384 = arith.addf %380, %383 : vector<8x512xf32>
    %385 = vector.extract_strided_slice %384 {offsets = [0, 0], sizes = [8, 384], strides = [1, 1]} : vector<8x512xf32> to vector<8x384xf32>
    %386 = arith.negf %385 : vector<8x384xf32>
    %387 = math.exp %386 : vector<8x384xf32>
    %cst_143 = arith.constant 1.000000e+00 : f32
    %388 = vector.broadcast %cst_143 : f32 to vector<8x384xf32>
    %389 = arith.addf %388, %387 : vector<8x384xf32>
    %390 = arith.divf %388, %389 : vector<8x384xf32>
    %391 = vector.extract_strided_slice %390 {offsets = [0, 0], sizes = [8, 128], strides = [1, 1]} : vector<8x384xf32> to vector<8x128xf32>
    %392 = vector.extract_strided_slice %390 {offsets = [0, 128], sizes = [8, 128], strides = [1, 1]} : vector<8x384xf32> to vector<8x128xf32>
    %393 = vector.extract_strided_slice %390 {offsets = [0, 256], sizes = [8, 128], strides = [1, 1]} : vector<8x384xf32> to vector<8x128xf32>
    %394 = vector.extract_strided_slice %384 {offsets = [0, 384], sizes = [8, 128], strides = [1, 1]} : vector<8x512xf32> to vector<8x128xf32>
    %395 = math.tanh %394 : vector<8x128xf32>
    %396 = arith.mulf %392, %326 : vector<8x128xf32>
    %397 = arith.mulf %391, %395 : vector<8x128xf32>
    %398 = arith.addf %396, %397 : vector<8x128xf32>
    %399 = math.tanh %398 : vector<8x128xf32>
    %400 = arith.mulf %393, %399 : vector<8x128xf32>
    %401 = arith.truncf %400 : vector<8x128xf32> to vector<8x128xbf16>
    %c0_144 = arith.constant 0 : index
    %c0_145 = arith.constant 0 : index
    %402 = vector.load %arg5[%c0_144, %c0_145] : memref<128x256xbf16, #tpu.memory_space<vmem>>, vector<128x256xbf16>
    %cst_146 = arith.constant dense<0.000000e+00> : vector<8x256xf32>
    %403 = tpu.matmul %401, %402, %cst_146 {dimension_numbers = #tpu.dot_dimension_numbers<[1], [0], [0], [1], [0, 0, 1, 1], [], []>} : vector<8x128xbf16>, vector<128x256xbf16>, vector<8x256xf32> -> vector<8x256xf32>
    %404 = arith.addf %403, %9 : vector<8x256xf32>
    %405 = vector.extract_strided_slice %404 {offsets = [0, 0], sizes = [8, 128], strides = [1, 1]} : vector<8x256xf32> to vector<8x128xf32>
    %406 = vector.extract_strided_slice %404 {offsets = [0, 128], sizes = [8, 128], strides = [1, 1]} : vector<8x256xf32> to vector<8x128xf32>
    %407 = math.exp %406 : vector<8x128xf32>
    %408 = arith.index_cast %c5_i32 : i32 to index
    %c0_147 = arith.constant 0 : index
    %c0_148 = arith.constant 0 : index
    %409 = vector.load %arg1[%408, %c0_147, %c0_148] : memref<8x8x128xf32, #tpu.memory_space<vmem>>, vector<1x8x128xf32>
    %410 = vector.shape_cast %409 : vector<1x8x128xf32> to vector<8x128xf32>
    %411 = arith.mulf %407, %410 : vector<8x128xf32>
    %412 = arith.addf %405, %411 : vector<8x128xf32>
    %413 = arith.truncf %412 : vector<8x128xf32> to vector<8x128xbf16>
    %c0_149 = arith.constant 0 : index
    %c0_150 = arith.constant 0 : index
    %414 = vector.load %arg7[%c0_149, %c0_150] : memref<128x512xbf16, #tpu.memory_space<vmem>>, vector<128x512xbf16>
    %cst_151 = arith.constant dense<0.000000e+00> : vector<8x512xf32>
    %415 = tpu.matmul %413, %414, %cst_151 {dimension_numbers = #tpu.dot_dimension_numbers<[1], [0], [0], [1], [0, 0, 1, 1], [], []>} : vector<8x128xbf16>, vector<128x512xbf16>, vector<8x512xf32> -> vector<8x512xf32>
    %416 = arith.truncf %364 : vector<8x128xf32> to vector<8x128xbf16>
    %c0_152 = arith.constant 0 : index
    %c0_153 = arith.constant 0 : index
    %417 = vector.load %arg8[%c0_152, %c0_153] : memref<128x512xbf16, #tpu.memory_space<vmem>>, vector<128x512xbf16>
    %cst_154 = arith.constant dense<0.000000e+00> : vector<8x512xf32>
    %418 = tpu.matmul %416, %417, %cst_154 {dimension_numbers = #tpu.dot_dimension_numbers<[1], [0], [0], [1], [0, 0, 1, 1], [], []>} : vector<8x128xbf16>, vector<128x512xbf16>, vector<8x512xf32> -> vector<8x512xf32>
    %419 = arith.addf %415, %418 : vector<8x512xf32>
    %420 = arith.addf %419, %12 : vector<8x512xf32>
    %421 = vector.extract_strided_slice %420 {offsets = [0, 0], sizes = [8, 384], strides = [1, 1]} : vector<8x512xf32> to vector<8x384xf32>
    %422 = arith.negf %421 : vector<8x384xf32>
    %423 = math.exp %422 : vector<8x384xf32>
    %cst_155 = arith.constant 1.000000e+00 : f32
    %424 = vector.broadcast %cst_155 : f32 to vector<8x384xf32>
    %425 = arith.addf %424, %423 : vector<8x384xf32>
    %426 = arith.divf %424, %425 : vector<8x384xf32>
    %427 = vector.extract_strided_slice %426 {offsets = [0, 0], sizes = [8, 128], strides = [1, 1]} : vector<8x384xf32> to vector<8x128xf32>
    %428 = vector.extract_strided_slice %426 {offsets = [0, 128], sizes = [8, 128], strides = [1, 1]} : vector<8x384xf32> to vector<8x128xf32>
    %429 = vector.extract_strided_slice %426 {offsets = [0, 256], sizes = [8, 128], strides = [1, 1]} : vector<8x384xf32> to vector<8x128xf32>
    %430 = vector.extract_strided_slice %420 {offsets = [0, 384], sizes = [8, 128], strides = [1, 1]} : vector<8x512xf32> to vector<8x128xf32>
    %431 = math.tanh %430 : vector<8x128xf32>
    %432 = arith.mulf %428, %362 : vector<8x128xf32>
    %433 = arith.mulf %427, %431 : vector<8x128xf32>
    %434 = arith.addf %432, %433 : vector<8x128xf32>
    %435 = math.tanh %434 : vector<8x128xf32>
    %436 = arith.mulf %429, %435 : vector<8x128xf32>
    %437 = arith.truncf %436 : vector<8x128xf32> to vector<8x128xbf16>
    %c0_156 = arith.constant 0 : index
    %c0_157 = arith.constant 0 : index
    %438 = vector.load %arg10[%c0_156, %c0_157] : memref<128x128xbf16, #tpu.memory_space<vmem>>, vector<128x128xbf16>
    %cst_158 = arith.constant dense<0.000000e+00> : vector<8x128xf32>
    %439 = tpu.matmul %437, %438, %cst_158 {dimension_numbers = #tpu.dot_dimension_numbers<[1], [0], [0], [1], [0, 0, 1, 1], [], []>} : vector<8x128xbf16>, vector<128x128xbf16>, vector<8x128xf32> -> vector<8x128xf32>
    %440 = arith.addf %439, %15 : vector<8x128xf32>
    %441 = arith.index_cast %c5_i32 : i32 to index
    %c0_159 = arith.constant 0 : index
    %c0_160 = arith.constant 0 : index
    %442 = vector.load %arg12[%441, %c0_159, %c0_160] : memref<8x8x256xf32, #tpu.memory_space<vmem>>, vector<1x8x256xf32>
    %443 = vector.shape_cast %442 : vector<1x8x256xf32> to vector<8x256xf32>
    %444 = vector.shape_cast %404 : vector<8x256xf32> to vector<1x8x256xf32>
    tpu.vector_store %arg12[%441, %c0_159, %c0_160], %444 {strides = array<i32>} : memref<8x8x256xf32, #tpu.memory_space<vmem>>, vector<1x8x256xf32>,
    %445 = arith.index_cast %c5_i32 : i32 to index
    %c0_161 = arith.constant 0 : index
    %c0_162 = arith.constant 0 : index
    %446 = vector.load %arg13[%445, %c0_161, %c0_162] : memref<8x8x128xf32, #tpu.memory_space<vmem>>, vector<1x8x128xf32>
    %447 = vector.shape_cast %446 : vector<1x8x128xf32> to vector<8x128xf32>
    %448 = vector.shape_cast %440 : vector<8x128xf32> to vector<1x8x128xf32>
    tpu.vector_store %arg13[%445, %c0_161, %c0_162], %448 {strides = array<i32>} : memref<8x8x128xf32, #tpu.memory_space<vmem>>, vector<1x8x128xf32>,
    %c6_i32 = arith.constant 6 : i32
    %c8_i32_163 = arith.constant 8 : i32
    %449 = arith.muli %c6_i32, %c8_i32_163 : i32
    %450 = tpu.assume_multiple %449, 8 : i32
    %451 = arith.index_cast %450 : i32 to index
    %c0_164 = arith.constant 0 : index
    %452 = vector.load %arg14[%451, %c0_164] : memref<64x512xf32, #tpu.memory_space<vmem>>, vector<8x512xf32>
    %453 = arith.truncf %400 : vector<8x128xf32> to vector<8x128xbf16>
    %c0_165 = arith.constant 0 : index
    %c0_166 = arith.constant 0 : index
    %454 = vector.load %arg3[%c0_165, %c0_166] : memref<128x512xbf16, #tpu.memory_space<vmem>>, vector<128x512xbf16>
    %cst_167 = arith.constant dense<0.000000e+00> : vector<8x512xf32>
    %455 = tpu.matmul %453, %454, %cst_167 {dimension_numbers = #tpu.dot_dimension_numbers<[1], [0], [0], [1], [0, 0, 1, 1], [], []>} : vector<8x128xbf16>, vector<128x512xbf16>, vector<8x512xf32> -> vector<8x512xf32>
    %456 = arith.addf %452, %455 : vector<8x512xf32>
    %457 = vector.extract_strided_slice %456 {offsets = [0, 0], sizes = [8, 384], strides = [1, 1]} : vector<8x512xf32> to vector<8x384xf32>
    %458 = arith.negf %457 : vector<8x384xf32>
    %459 = math.exp %458 : vector<8x384xf32>
    %cst_168 = arith.constant 1.000000e+00 : f32
    %460 = vector.broadcast %cst_168 : f32 to vector<8x384xf32>
    %461 = arith.addf %460, %459 : vector<8x384xf32>
    %462 = arith.divf %460, %461 : vector<8x384xf32>
    %463 = vector.extract_strided_slice %462 {offsets = [0, 0], sizes = [8, 128], strides = [1, 1]} : vector<8x384xf32> to vector<8x128xf32>
    %464 = vector.extract_strided_slice %462 {offsets = [0, 128], sizes = [8, 128], strides = [1, 1]} : vector<8x384xf32> to vector<8x128xf32>
    %465 = vector.extract_strided_slice %462 {offsets = [0, 256], sizes = [8, 128], strides = [1, 1]} : vector<8x384xf32> to vector<8x128xf32>
    %466 = vector.extract_strided_slice %456 {offsets = [0, 384], sizes = [8, 128], strides = [1, 1]} : vector<8x512xf32> to vector<8x128xf32>
    %467 = math.tanh %466 : vector<8x128xf32>
    %468 = arith.mulf %464, %398 : vector<8x128xf32>
    %469 = arith.mulf %463, %467 : vector<8x128xf32>
    %470 = arith.addf %468, %469 : vector<8x128xf32>
    %471 = math.tanh %470 : vector<8x128xf32>
    %472 = arith.mulf %465, %471 : vector<8x128xf32>
    %473 = arith.truncf %472 : vector<8x128xf32> to vector<8x128xbf16>
    %c0_169 = arith.constant 0 : index
    %c0_170 = arith.constant 0 : index
    %474 = vector.load %arg5[%c0_169, %c0_170] : memref<128x256xbf16, #tpu.memory_space<vmem>>, vector<128x256xbf16>
    %cst_171 = arith.constant dense<0.000000e+00> : vector<8x256xf32>
    %475 = tpu.matmul %473, %474, %cst_171 {dimension_numbers = #tpu.dot_dimension_numbers<[1], [0], [0], [1], [0, 0, 1, 1], [], []>} : vector<8x128xbf16>, vector<128x256xbf16>, vector<8x256xf32> -> vector<8x256xf32>
    %476 = arith.addf %475, %9 : vector<8x256xf32>
    %477 = vector.extract_strided_slice %476 {offsets = [0, 0], sizes = [8, 128], strides = [1, 1]} : vector<8x256xf32> to vector<8x128xf32>
    %478 = vector.extract_strided_slice %476 {offsets = [0, 128], sizes = [8, 128], strides = [1, 1]} : vector<8x256xf32> to vector<8x128xf32>
    %479 = math.exp %478 : vector<8x128xf32>
    %480 = arith.index_cast %c6_i32 : i32 to index
    %c0_172 = arith.constant 0 : index
    %c0_173 = arith.constant 0 : index
    %481 = vector.load %arg1[%480, %c0_172, %c0_173] : memref<8x8x128xf32, #tpu.memory_space<vmem>>, vector<1x8x128xf32>
    %482 = vector.shape_cast %481 : vector<1x8x128xf32> to vector<8x128xf32>
    %483 = arith.mulf %479, %482 : vector<8x128xf32>
    %484 = arith.addf %477, %483 : vector<8x128xf32>
    %485 = arith.truncf %484 : vector<8x128xf32> to vector<8x128xbf16>
    %c0_174 = arith.constant 0 : index
    %c0_175 = arith.constant 0 : index
    %486 = vector.load %arg7[%c0_174, %c0_175] : memref<128x512xbf16, #tpu.memory_space<vmem>>, vector<128x512xbf16>
    %cst_176 = arith.constant dense<0.000000e+00> : vector<8x512xf32>
    %487 = tpu.matmul %485, %486, %cst_176 {dimension_numbers = #tpu.dot_dimension_numbers<[1], [0], [0], [1], [0, 0, 1, 1], [], []>} : vector<8x128xbf16>, vector<128x512xbf16>, vector<8x512xf32> -> vector<8x512xf32>
    %488 = arith.truncf %436 : vector<8x128xf32> to vector<8x128xbf16>
    %c0_177 = arith.constant 0 : index
    %c0_178 = arith.constant 0 : index
    %489 = vector.load %arg8[%c0_177, %c0_178] : memref<128x512xbf16, #tpu.memory_space<vmem>>, vector<128x512xbf16>
    %cst_179 = arith.constant dense<0.000000e+00> : vector<8x512xf32>
    %490 = tpu.matmul %488, %489, %cst_179 {dimension_numbers = #tpu.dot_dimension_numbers<[1], [0], [0], [1], [0, 0, 1, 1], [], []>} : vector<8x128xbf16>, vector<128x512xbf16>, vector<8x512xf32> -> vector<8x512xf32>
    %491 = arith.addf %487, %490 : vector<8x512xf32>
    %492 = arith.addf %491, %12 : vector<8x512xf32>
    %493 = vector.extract_strided_slice %492 {offsets = [0, 0], sizes = [8, 384], strides = [1, 1]} : vector<8x512xf32> to vector<8x384xf32>
    %494 = arith.negf %493 : vector<8x384xf32>
    %495 = math.exp %494 : vector<8x384xf32>
    %cst_180 = arith.constant 1.000000e+00 : f32
    %496 = vector.broadcast %cst_180 : f32 to vector<8x384xf32>
    %497 = arith.addf %496, %495 : vector<8x384xf32>
    %498 = arith.divf %496, %497 : vector<8x384xf32>
    %499 = vector.extract_strided_slice %498 {offsets = [0, 0], sizes = [8, 128], strides = [1, 1]} : vector<8x384xf32> to vector<8x128xf32>
    %500 = vector.extract_strided_slice %498 {offsets = [0, 128], sizes = [8, 128], strides = [1, 1]} : vector<8x384xf32> to vector<8x128xf32>
    %501 = vector.extract_strided_slice %498 {offsets = [0, 256], sizes = [8, 128], strides = [1, 1]} : vector<8x384xf32> to vector<8x128xf32>
    %502 = vector.extract_strided_slice %492 {offsets = [0, 384], sizes = [8, 128], strides = [1, 1]} : vector<8x512xf32> to vector<8x128xf32>
    %503 = math.tanh %502 : vector<8x128xf32>
    %504 = arith.mulf %500, %434 : vector<8x128xf32>
    %505 = arith.mulf %499, %503 : vector<8x128xf32>
    %506 = arith.addf %504, %505 : vector<8x128xf32>
    %507 = math.tanh %506 : vector<8x128xf32>
    %508 = arith.mulf %501, %507 : vector<8x128xf32>
    %509 = arith.truncf %508 : vector<8x128xf32> to vector<8x128xbf16>
    %c0_181 = arith.constant 0 : index
    %c0_182 = arith.constant 0 : index
    %510 = vector.load %arg10[%c0_181, %c0_182] : memref<128x128xbf16, #tpu.memory_space<vmem>>, vector<128x128xbf16>
    %cst_183 = arith.constant dense<0.000000e+00> : vector<8x128xf32>
    %511 = tpu.matmul %509, %510, %cst_183 {dimension_numbers = #tpu.dot_dimension_numbers<[1], [0], [0], [1], [0, 0, 1, 1], [], []>} : vector<8x128xbf16>, vector<128x128xbf16>, vector<8x128xf32> -> vector<8x128xf32>
    %512 = arith.addf %511, %15 : vector<8x128xf32>
    %513 = arith.index_cast %c6_i32 : i32 to index
    %c0_184 = arith.constant 0 : index
    %c0_185 = arith.constant 0 : index
    %514 = vector.load %arg12[%513, %c0_184, %c0_185] : memref<8x8x256xf32, #tpu.memory_space<vmem>>, vector<1x8x256xf32>
    %515 = vector.shape_cast %514 : vector<1x8x256xf32> to vector<8x256xf32>
    %516 = vector.shape_cast %476 : vector<8x256xf32> to vector<1x8x256xf32>
    tpu.vector_store %arg12[%513, %c0_184, %c0_185], %516 {strides = array<i32>} : memref<8x8x256xf32, #tpu.memory_space<vmem>>, vector<1x8x256xf32>,
    %517 = arith.index_cast %c6_i32 : i32 to index
    %c0_186 = arith.constant 0 : index
    %c0_187 = arith.constant 0 : index
    %518 = vector.load %arg13[%517, %c0_186, %c0_187] : memref<8x8x128xf32, #tpu.memory_space<vmem>>, vector<1x8x128xf32>
    %519 = vector.shape_cast %518 : vector<1x8x128xf32> to vector<8x128xf32>
    %520 = vector.shape_cast %512 : vector<8x128xf32> to vector<1x8x128xf32>
    tpu.vector_store %arg13[%517, %c0_186, %c0_187], %520 {strides = array<i32>} : memref<8x8x128xf32, #tpu.memory_space<vmem>>, vector<1x8x128xf32>,
    %c7_i32 = arith.constant 7 : i32
    %c8_i32_188 = arith.constant 8 : i32
    %521 = arith.muli %c7_i32, %c8_i32_188 : i32
    %522 = tpu.assume_multiple %521, 8 : i32
    %523 = arith.index_cast %522 : i32 to index
    %c0_189 = arith.constant 0 : index
    %524 = vector.load %arg14[%523, %c0_189] : memref<64x512xf32, #tpu.memory_space<vmem>>, vector<8x512xf32>
    %525 = arith.truncf %472 : vector<8x128xf32> to vector<8x128xbf16>
    %c0_190 = arith.constant 0 : index
    %c0_191 = arith.constant 0 : index
    %526 = vector.load %arg3[%c0_190, %c0_191] : memref<128x512xbf16, #tpu.memory_space<vmem>>, vector<128x512xbf16>
    %cst_192 = arith.constant dense<0.000000e+00> : vector<8x512xf32>
    %527 = tpu.matmul %525, %526, %cst_192 {dimension_numbers = #tpu.dot_dimension_numbers<[1], [0], [0], [1], [0, 0, 1, 1], [], []>} : vector<8x128xbf16>, vector<128x512xbf16>, vector<8x512xf32> -> vector<8x512xf32>
    %528 = arith.addf %524, %527 : vector<8x512xf32>
    %529 = vector.extract_strided_slice %528 {offsets = [0, 0], sizes = [8, 384], strides = [1, 1]} : vector<8x512xf32> to vector<8x384xf32>
    %530 = arith.negf %529 : vector<8x384xf32>
    %531 = math.exp %530 : vector<8x384xf32>
    %cst_193 = arith.constant 1.000000e+00 : f32
    %532 = vector.broadcast %cst_193 : f32 to vector<8x384xf32>
    %533 = arith.addf %532, %531 : vector<8x384xf32>
    %534 = arith.divf %532, %533 : vector<8x384xf32>
    %535 = vector.extract_strided_slice %534 {offsets = [0, 0], sizes = [8, 128], strides = [1, 1]} : vector<8x384xf32> to vector<8x128xf32>
    %536 = vector.extract_strided_slice %534 {offsets = [0, 128], sizes = [8, 128], strides = [1, 1]} : vector<8x384xf32> to vector<8x128xf32>
    %537 = vector.extract_strided_slice %534 {offsets = [0, 256], sizes = [8, 128], strides = [1, 1]} : vector<8x384xf32> to vector<8x128xf32>
    %538 = vector.extract_strided_slice %528 {offsets = [0, 384], sizes = [8, 128], strides = [1, 1]} : vector<8x512xf32> to vector<8x128xf32>
    %539 = math.tanh %538 : vector<8x128xf32>
    %540 = arith.mulf %536, %470 : vector<8x128xf32>
    %541 = arith.mulf %535, %539 : vector<8x128xf32>
    %542 = arith.addf %540, %541 : vector<8x128xf32>
    %543 = math.tanh %542 : vector<8x128xf32>
    %544 = arith.mulf %537, %543 : vector<8x128xf32>
    %545 = arith.truncf %544 : vector<8x128xf32> to vector<8x128xbf16>
    %c0_194 = arith.constant 0 : index
    %c0_195 = arith.constant 0 : index
    %546 = vector.load %arg5[%c0_194, %c0_195] : memref<128x256xbf16, #tpu.memory_space<vmem>>, vector<128x256xbf16>
    %cst_196 = arith.constant dense<0.000000e+00> : vector<8x256xf32>
    %547 = tpu.matmul %545, %546, %cst_196 {dimension_numbers = #tpu.dot_dimension_numbers<[1], [0], [0], [1], [0, 0, 1, 1], [], []>} : vector<8x128xbf16>, vector<128x256xbf16>, vector<8x256xf32> -> vector<8x256xf32>
    %548 = arith.addf %547, %9 : vector<8x256xf32>
    %549 = vector.extract_strided_slice %548 {offsets = [0, 0], sizes = [8, 128], strides = [1, 1]} : vector<8x256xf32> to vector<8x128xf32>
    %550 = vector.extract_strided_slice %548 {offsets = [0, 128], sizes = [8, 128], strides = [1, 1]} : vector<8x256xf32> to vector<8x128xf32>
    %551 = math.exp %550 : vector<8x128xf32>
    %552 = arith.index_cast %c7_i32 : i32 to index
    %c0_197 = arith.constant 0 : index
    %c0_198 = arith.constant 0 : index
    %553 = vector.load %arg1[%552, %c0_197, %c0_198] : memref<8x8x128xf32, #tpu.memory_space<vmem>>, vector<1x8x128xf32>
    %554 = vector.shape_cast %553 : vector<1x8x128xf32> to vector<8x128xf32>
    %555 = arith.mulf %551, %554 : vector<8x128xf32>
    %556 = arith.addf %549, %555 : vector<8x128xf32>
    %557 = arith.truncf %556 : vector<8x128xf32> to vector<8x128xbf16>
    %c0_199 = arith.constant 0 : index
    %c0_200 = arith.constant 0 : index
    %558 = vector.load %arg7[%c0_199, %c0_200] : memref<128x512xbf16, #tpu.memory_space<vmem>>, vector<128x512xbf16>
    %cst_201 = arith.constant dense<0.000000e+00> : vector<8x512xf32>
    %559 = tpu.matmul %557, %558, %cst_201 {dimension_numbers = #tpu.dot_dimension_numbers<[1], [0], [0], [1], [0, 0, 1, 1], [], []>} : vector<8x128xbf16>, vector<128x512xbf16>, vector<8x512xf32> -> vector<8x512xf32>
    %560 = arith.truncf %508 : vector<8x128xf32> to vector<8x128xbf16>
    %c0_202 = arith.constant 0 : index
    %c0_203 = arith.constant 0 : index
    %561 = vector.load %arg8[%c0_202, %c0_203] : memref<128x512xbf16, #tpu.memory_space<vmem>>, vector<128x512xbf16>
    %cst_204 = arith.constant dense<0.000000e+00> : vector<8x512xf32>
    %562 = tpu.matmul %560, %561, %cst_204 {dimension_numbers = #tpu.dot_dimension_numbers<[1], [0], [0], [1], [0, 0, 1, 1], [], []>} : vector<8x128xbf16>, vector<128x512xbf16>, vector<8x512xf32> -> vector<8x512xf32>
    %563 = arith.addf %559, %562 : vector<8x512xf32>
    %564 = arith.addf %563, %12 : vector<8x512xf32>
    %565 = vector.extract_strided_slice %564 {offsets = [0, 0], sizes = [8, 384], strides = [1, 1]} : vector<8x512xf32> to vector<8x384xf32>
    %566 = arith.negf %565 : vector<8x384xf32>
    %567 = math.exp %566 : vector<8x384xf32>
    %cst_205 = arith.constant 1.000000e+00 : f32
    %568 = vector.broadcast %cst_205 : f32 to vector<8x384xf32>
    %569 = arith.addf %568, %567 : vector<8x384xf32>
    %570 = arith.divf %568, %569 : vector<8x384xf32>
    %571 = vector.extract_strided_slice %570 {offsets = [0, 0], sizes = [8, 128], strides = [1, 1]} : vector<8x384xf32> to vector<8x128xf32>
    %572 = vector.extract_strided_slice %570 {offsets = [0, 128], sizes = [8, 128], strides = [1, 1]} : vector<8x384xf32> to vector<8x128xf32>
    %573 = vector.extract_strided_slice %570 {offsets = [0, 256], sizes = [8, 128], strides = [1, 1]} : vector<8x384xf32> to vector<8x128xf32>
    %574 = vector.extract_strided_slice %564 {offsets = [0, 384], sizes = [8, 128], strides = [1, 1]} : vector<8x512xf32> to vector<8x128xf32>
    %575 = math.tanh %574 : vector<8x128xf32>
    %576 = arith.mulf %572, %506 : vector<8x128xf32>
    %577 = arith.mulf %571, %575 : vector<8x128xf32>
    %578 = arith.addf %576, %577 : vector<8x128xf32>
    %579 = math.tanh %578 : vector<8x128xf32>
    %580 = arith.mulf %573, %579 : vector<8x128xf32>
    %581 = arith.truncf %580 : vector<8x128xf32> to vector<8x128xbf16>
    %c0_206 = arith.constant 0 : index
    %c0_207 = arith.constant 0 : index
    %582 = vector.load %arg10[%c0_206, %c0_207] : memref<128x128xbf16, #tpu.memory_space<vmem>>, vector<128x128xbf16>
    %cst_208 = arith.constant dense<0.000000e+00> : vector<8x128xf32>
    %583 = tpu.matmul %581, %582, %cst_208 {dimension_numbers = #tpu.dot_dimension_numbers<[1], [0], [0], [1], [0, 0, 1, 1], [], []>} : vector<8x128xbf16>, vector<128x128xbf16>, vector<8x128xf32> -> vector<8x128xf32>
    %584 = arith.addf %583, %15 : vector<8x128xf32>
    %585 = arith.index_cast %c7_i32 : i32 to index
    %c0_209 = arith.constant 0 : index
    %c0_210 = arith.constant 0 : index
    %586 = vector.load %arg12[%585, %c0_209, %c0_210] : memref<8x8x256xf32, #tpu.memory_space<vmem>>, vector<1x8x256xf32>
    %587 = vector.shape_cast %586 : vector<1x8x256xf32> to vector<8x256xf32>
    %588 = vector.shape_cast %548 : vector<8x256xf32> to vector<1x8x256xf32>
    tpu.vector_store %arg12[%585, %c0_209, %c0_210], %588 {strides = array<i32>} : memref<8x8x256xf32, #tpu.memory_space<vmem>>, vector<1x8x256xf32>,
    %589 = arith.index_cast %c7_i32 : i32 to index
    %c0_211 = arith.constant 0 : index
    %c0_212 = arith.constant 0 : index
    %590 = vector.load %arg13[%589, %c0_211, %c0_212] : memref<8x8x128xf32, #tpu.memory_space<vmem>>, vector<1x8x128xf32>
    %591 = vector.shape_cast %590 : vector<1x8x128xf32> to vector<8x128xf32>
    %592 = vector.shape_cast %584 : vector<8x128xf32> to vector<1x8x128xf32>
    tpu.vector_store %arg13[%589, %c0_211, %c0_212], %592 {strides = array<i32>} : memref<8x8x128xf32, #tpu.memory_space<vmem>>, vector<1x8x128xf32>,
    %c8_i32_213 = arith.constant 8 : i32
    return
  }
}

</mosaic_0001>

<bundles_post_ra>
// kernel: sequential_vb_forward.1
= control target key start
LH: loop header
LB: loop body
LE: loop exit
PB: predicated region body
PF: predicated region fallthrough
CT: control target
= control target key end

     0   :  { %s21593_s2 = inlined_call_operand.vmem [shape: bf16[128,512], index: 2, kind: input, shape index: {}]   ;;  %s21594_s3 = inlined_call_operand.vmem [shape: bf16[128,512], index: 3, kind: input, shape index: {}]   ;;  %s21595_s0 = inlined_call_operand.vmem [shape: bf16[64,128], index: 0, kind: input, shape index: {}]   ;;  %s21596_s4 = inlined_call_operand.vmem [shape: f32[1,512], index: 4, kind: input, shape index: {}]   ;;  %s21597_s5 = inlined_call_operand.vmem [shape: bf16[128,256], index: 5, kind: input, shape index: {}]   ;;  %s21598_s8 = inlined_call_operand.vmem [shape: bf16[128,512], index: 8, kind: input, shape index: {}]   ;;  %s21599_s7 = inlined_call_operand.vmem [shape: bf16[128,512], index: 7, kind: input, shape index: {}]   ;;  %s21600_s6 = inlined_call_operand.vmem [shape: f32[1,256], index: 6, kind: input, shape index: {}]   ;;  %s21601_s12 = inlined_call_operand.vmem [shape: f32[8,8,256], index: 12, kind: output, shape index: {0}]   ;;  %s21602_s10 = inlined_call_operand.vmem [shape: bf16[128,128], index: 10, kind: input, shape index: {}]   ;;  %s21603_s1 = inlined_call_operand.vmem [shape: f32[8,8,128], index: 1, kind: input, shape index: {}]   ;;  %s21604_s9 = inlined_call_operand.vmem [shape: f32[1,512], index: 9, kind: input, shape index: {}]   ;;  %s21605_s11 = inlined_call_operand.vmem [shape: f32[1,128], index: 11, kind: input, shape index: {}]   ;;  %s21606_s13 = inlined_call_operand.vmem [shape: f32[8,8,128], index: 13, kind: output, shape index: {1}]  }
   0x1   :  { %v9276_v0 = vld [vmem:[%s21593_s2 + $0xe0] sm:$0xf]  ;;  %v13240_v1 = vld [vmem:[%s21593_s2 + $0xec] sm:$0xf0]  ;;  %v13238_v2 = vld [vmem:[%s21593_s2 + $0xe4] sm:$0xf] }
   0x2   :  { %v9277_v3 = vor.u32 %v13240_v1, %v9276_v0  ;;  %v9278_v4 = vld [vmem:[%s21593_s2 + $0xf0] sm:$0xf0]  ;;  %v9284_v5 = vld [vmem:[%s21593_s2 + $0xe8] sm:$0xf]  ;;  %v13241_v6 = vld [vmem:[%s21593_s2 + $0xf4] sm:$0xf0] }
   0x3   :  { %v9281_v7 = vor.u32 %v13238_v2, %v9278_v4  ;;  %v9285_v8 = vor.u32 %v13241_v6, %v9284_v5  ;;  %v13239_v9 = vld [vmem:[%s21593_s2 + $0xec] sm:$0xf]  ;;  %v9286_v10 = vld [vmem:[%s21593_s2 + $0xf8] sm:$0xf0]  ;;  %v9260_v11 = vld [vmem:[%s21593_s2 + $0xc0] sm:$0xf] }
   0x4   :  { %278 = vmatpush.bf16.msra.mxu0 %v9277_v3  ;;  %v9289_v12 = vor.u32 %v13239_v9, %v9286_v10  ;;  %v13236_v13 = vld [vmem:[%s21593_s2 + $0xcc] sm:$0xf0]  ;;  %v13234_v14 = vld [vmem:[%s21593_s2 + $0xc4] sm:$0xf]  ;;  %v9262_v15 = vld [vmem:[%s21593_s2 + $0xd0] sm:$0xf0] }
   0x5   :  { %307 = vmatpush.bf16.msra.mxu1 %v9281_v7  ;;  %336 = vmatpush.bf16.msra.mxu2 %v9285_v8  ;;  %v9261_v16 = vor.u32 %v13236_v13, %v9260_v11  ;;  %v9265_v17 = vor.u32 %v13234_v14, %v9262_v15  ;;  %v9268_v18 = vld [vmem:[%s21593_s2 + $0xc8] sm:$0xf]  ;;  %v13237_v19 = vld [vmem:[%s21593_s2 + $0xd4] sm:$0xf0]  ;;  %v13235_v20 = vld [vmem:[%s21593_s2 + $0xcc] sm:$0xf] }
   0x6   :  { %365 = vmatpush.bf16.msra.mxu3 %v9289_v12  ;;  %v9269_v21 = vor.u32 %v13237_v19, %v9268_v18  ;;  %v9270_v22 = vld [vmem:[%s21593_s2 + $0xd8] sm:$0xf0]  ;;  %v9244_v23 = vld [vmem:[%s21593_s2 + $0xa0] sm:$0xf]  ;;  %v13232_v24 = vld [vmem:[%s21593_s2 + $0xac] sm:$0xf0] }
   0x7   :  { %v9273_v25 = vor.u32 %v13235_v20, %v9270_v22  ;;  %v13230_v26 = vld [vmem:[%s21593_s2 + $0xa4] sm:$0xf]  ;;  %v9246_v27 = vld [vmem:[%s21593_s2 + $0xb0] sm:$0xf0]  ;;  %v9252_v28 = vld [vmem:[%s21593_s2 + $0xa8] sm:$0xf]  ;;  %v9245_v29 = vor.u32 %v13232_v24, %v9244_v23 }
   0x8   :  { %279 = vmatpush.bf16.msra.mxu0 %v9261_v16  ;;  %v13233_v30 = vld [vmem:[%s21593_s2 + $0xb4] sm:$0xf0]  ;;  %v13231_v31 = vld [vmem:[%s21593_s2 + $0xac] sm:$0xf]  ;;  %v9254_v32 = vld [vmem:[%s21593_s2 + $0xb8] sm:$0xf0]  ;;  %v9249_v33 = vor.u32 %v13230_v26, %v9246_v27 }
   0x9   :  { %308 = vmatpush.bf16.msra.mxu1 %v9265_v17  ;;  %337 = vmatpush.bf16.msra.mxu2 %v9269_v21  ;;  %v9253_v34 = vor.u32 %v13233_v30, %v9252_v28  ;;  %v9228_v35 = vld [vmem:[%s21593_s2 + $0x80] sm:$0xf]  ;;  %v13228_v36 = vld [vmem:[%s21593_s2 + $0x8c] sm:$0xf0]  ;;  %v13226_v37 = vld [vmem:[%s21593_s2 + $0x84] sm:$0xf]  ;;  %v9257_v38 = vor.u32 %v13231_v31, %v9254_v32 }
   0xa   :  { %366 = vmatpush.bf16.msra.mxu3 %v9273_v25  ;;  %v9230_v39 = vld [vmem:[%s21593_s2 + $0x90] sm:$0xf0]  ;;  %v9236_v40 = vld [vmem:[%s21593_s2 + $0x88] sm:$0xf]  ;;  %v13229_v41 = vld [vmem:[%s21593_s2 + $0x94] sm:$0xf0]  ;;  %v9229_v44 = vor.u32 %v13228_v36, %v9228_v35 }
   0xb   :  { %v13227_v42 = vld [vmem:[%s21593_s2 + $0x8c] sm:$0xf]  ;;  %v9238_v43 = vld [vmem:[%s21593_s2 + $0x98] sm:$0xf0]  ;;  %v9233_v45 = vor.u32 %v13226_v37, %v9230_v39  ;;  %v9237_v46 = vor.u32 %v13229_v41, %v9236_v40  ;;  %v9212_v47 = vld [vmem:[%s21593_s2 + $0x60] sm:$0xf] }
   0xc   :  { %280 = vmatpush.bf16.msra.mxu0 %v9245_v29  ;;  %v13224_v48 = vld [vmem:[%s21593_s2 + $0x6c] sm:$0xf0]  ;;  %v13222_v49 = vld [vmem:[%s21593_s2 + $0x64] sm:$0xf]  ;;  %v9241_v50 = vor.u32 %v13227_v42, %v9238_v43  ;;  %v9214_v51 = vld [vmem:[%s21593_s2 + $0x70] sm:$0xf0] }
   0xd   :  { %309 = vmatpush.bf16.msra.mxu1 %v9249_v33  ;;  %338 = vmatpush.bf16.msra.mxu2 %v9253_v34  ;;  %v9220_v52 = vld [vmem:[%s21593_s2 + $0x68] sm:$0xf]  ;;  %v13225_v53 = vld [vmem:[%s21593_s2 + $0x74] sm:$0xf0]  ;;  %v13223_v54 = vld [vmem:[%s21593_s2 + $0x6c] sm:$0xf]  ;;  %v9213_v56 = vor.u32 %v13224_v48, %v9212_v47  ;;  %v9217_v57 = vor.u32 %v13222_v49, %v9214_v51 }
   0xe   :  { %367 = vmatpush.bf16.msra.mxu3 %v9257_v38  ;;  %v9222_v55 = vld [vmem:[%s21593_s2 + $0x78] sm:$0xf0]  ;;  %v9221_v58 = vor.u32 %v13225_v53, %v9220_v52  ;;  %v9196_v59 = vld [vmem:[%s21593_s2 + $0x40] sm:$0xf]  ;;  %v13220_v60 = vld [vmem:[%s21593_s2 + $0x4c] sm:$0xf0] }
   0xf   :  { %v13218_v61 = vld [vmem:[%s21593_s2 + $0x44] sm:$0xf]  ;;  %v9225_v62 = vor.u32 %v13223_v54, %v9222_v55  ;;  %v9198_v63 = vld [vmem:[%s21593_s2 + $0x50] sm:$0xf0]  ;;  %v9204_v0 = vld [vmem:[%s21593_s2 + $0x48] sm:$0xf]  ;;  %v9197_v4 = vor.u32 %v13220_v60, %v9196_v59 }
  0x10   :  { %281 = vmatpush.bf16.msra.mxu0 %v9229_v44  ;;  %v13221_v1 = vld [vmem:[%s21593_s2 + $0x54] sm:$0xf0]  ;;  %v13219_v2 = vld [vmem:[%s21593_s2 + $0x4c] sm:$0xf]  ;;  %v9206_v3 = vld [vmem:[%s21593_s2 + $0x58] sm:$0xf0]  ;;  %v9201_v5 = vor.u32 %v13218_v61, %v9198_v63 }
  0x11   :  { %310 = vmatpush.bf16.msra.mxu1 %v9233_v45  ;;  %339 = vmatpush.bf16.msra.mxu2 %v9237_v46  ;;  %v9205_v6 = vor.u32 %v13221_v1, %v9204_v0  ;;  %v9180_v7 = vld [vmem:[%s21593_s2 + $0x20] sm:$0xf]  ;;  %v13216_v8 = vld [vmem:[%s21593_s2 + $0x2c] sm:$0xf0]  ;;  %v13214_v9 = vld [vmem:[%s21593_s2 + $0x24] sm:$0xf]  ;;  %v9209_v10 = vor.u32 %v13219_v2, %v9206_v3 }
  0x12   :  { %368 = vmatpush.bf16.msra.mxu3 %v9241_v50  ;;  %v9182_v11 = vld [vmem:[%s21593_s2 + $0x30] sm:$0xf0]  ;;  %v9188_v12 = vld [vmem:[%s21593_s2 + $0x28] sm:$0xf]  ;;  %v13217_v13 = vld [vmem:[%s21593_s2 + $0x34] sm:$0xf0]  ;;  %v9181_v16 = vor.u32 %v13216_v8, %v9180_v7 }
  0x13   :  { %v13215_v14 = vld [vmem:[%s21593_s2 + $0x2c] sm:$0xf]  ;;  %v9190_v15 = vld [vmem:[%s21593_s2 + $0x38] sm:$0xf0]  ;;  %v9164_v17 = vld [vmem:[%s21593_s2] sm:$0xf]  ;;  %v9185_v18 = vor.u32 %v13214_v9, %v9182_v11  ;;  %v9189_v19 = vor.u32 %v13217_v13, %v9188_v12 }
  0x14   :  { %282 = vmatpush.bf16.msra.mxu0 %v9213_v56  ;;  %v13212_v20 = vld [vmem:[%s21593_s2 + $0xc] sm:$0xf0]  ;;  %v13210_v21 = vld [vmem:[%s21593_s2 + $0x4] sm:$0xf]  ;;  %v9166_v22 = vld [vmem:[%s21593_s2 + $0x10] sm:$0xf0]  ;;  %v9193_v23 = vor.u32 %v13215_v14, %v9190_v15 }
  0x15   :  { %311 = vmatpush.bf16.msra.mxu1 %v9217_v57  ;;  %340 = vmatpush.bf16.msra.mxu2 %v9221_v58  ;;  %v9172_v24 = vld [vmem:[%s21593_s2 + $0x8] sm:$0xf]  ;;  %v13213_v25 = vld [vmem:[%s21593_s2 + $0x14] sm:$0xf0]  ;;  %v13211_v26 = vld [vmem:[%s21593_s2 + $0xc] sm:$0xf]  ;;  %v9165_v30 = vor.u32 %v13212_v20, %v9164_v17  ;;  %v9169_v33 = vor.u32 %v13210_v21, %v9166_v22 }
  0x16   :  { %369 = vmatpush.bf16.msra.mxu3 %v9225_v62  ;;  %v9174_v27 = vld [vmem:[%s21593_s2 + $0x18] sm:$0xf0]  ;;  %v9404_v28 = vld [vmem:[%s21594_s3 + $0xe0] sm:$0xf]  ;;  %v13272_v29 = vld [vmem:[%s21594_s3 + $0xec] sm:$0xf0]  ;;  %v9173_v34 = vor.u32 %v13213_v25, %v9172_v24 }
  0x17   :  { %v13270_v31 = vld [vmem:[%s21594_s3 + $0xe4] sm:$0xf]  ;;  %v9406_v32 = vld [vmem:[%s21594_s3 + $0xf0] sm:$0xf0]  ;;  %v9177_v36 = vor.u32 %v13211_v26, %v9174_v27  ;;  %v9405_v37 = vor.u32 %v13272_v29, %v9404_v28  ;;  %v9412_v38 = vld [vmem:[%s21594_s3 + $0xe8] sm:$0xf] }
  0x18   :  { %283 = vmatpush.bf16.msra.mxu0 %v9197_v4  ;;  %v13206_v35 = vld [vmem:[%s21595_s0] sm:$0xff]  ;;  %v13273_v39 = vld [vmem:[%s21594_s3 + $0xf4] sm:$0xf0]  ;;  %v9409_v41 = vor.u32 %v13270_v31, %v9406_v32  ;;  %v13268_v42 = vld [vmem:[%s21594_s3 + $0xcc] sm:$0xf0] }
  0x19   :  { %312 = vmatpush.bf16.msra.mxu1 %v9201_v5  ;;  %341 = vmatpush.bf16.msra.mxu2 %v9205_v6  ;;  %v9388_v40 = vld [vmem:[%s21594_s3 + $0xc0] sm:$0xf]  ;;  %v13271_v43 = vld [vmem:[%s21594_s3 + $0xec] sm:$0xf]  ;;  %v9414_v44 = vld [vmem:[%s21594_s3 + $0xf8] sm:$0xf0]  ;;  %v9413_v47 = vor.u32 %v13273_v39, %v9412_v38 }
  0x1a   :  { %370 = vmatpush.bf16.msra.mxu3 %v9209_v10  ;;  %v13266_v45 = vld [vmem:[%s21594_s3 + $0xc4] sm:$0xf]  ;;  %v9390_v46 = vld [vmem:[%s21594_s3 + $0xd0] sm:$0xf0]  ;;  %v9389_v48 = vor.u32 %v13268_v42, %v9388_v40  ;;  %v9396_v49 = vld [vmem:[%s21594_s3 + $0xc8] sm:$0xf]  ;;  %v9417_v51 = vor.u32 %v13271_v43, %v9414_v44 }
  0x1b   :  { %v13269_v50 = vld [vmem:[%s21594_s3 + $0xd4] sm:$0xf0]  ;;  %v9372_v52 = vld [vmem:[%s21594_s3 + $0xa0] sm:$0xf]  ;;  %v9393_v53 = vor.u32 %v13266_v45, %v9390_v46  ;;  %v13264_v54 = vld [vmem:[%s21594_s3 + $0xac] sm:$0xf0] }
  0x1c   :  { %284 = vmatpush.bf16.msra.mxu0 %v9181_v16  ;;  %v13267_v55 = vld [vmem:[%s21594_s3 + $0xcc] sm:$0xf]  ;;  %v9398_v56 = vld [vmem:[%s21594_s3 + $0xd8] sm:$0xf0]  ;;  %v13262_v57 = vld [vmem:[%s21594_s3 + $0xa4] sm:$0xf]  ;;  %v9397_v59 = vor.u32 %v13269_v50, %v9396_v49  ;;  %v9373_v60 = vor.u32 %v13264_v54, %v9372_v52 }
  0x1d   :  { %313 = vmatpush.bf16.msra.mxu1 %v9185_v18  ;;  %342 = vmatpush.bf16.msra.mxu2 %v9189_v19  ;;  %v9374_v58 = vld [vmem:[%s21594_s3 + $0xb0] sm:$0xf0]  ;;  %v9380_v61 = vld [vmem:[%s21594_s3 + $0xa8] sm:$0xf]  ;;  %v13265_v62 = vld [vmem:[%s21594_s3 + $0xb4] sm:$0xf0]  ;;  %v9401_v63 = vor.u32 %v13267_v55, %v9398_v56 }
  0x1e   :  { %371 = vmatpush.bf16.msra.mxu3 %v9193_v23  ;;  %v9356_v0 = vld [vmem:[%s21594_s3 + $0x80] sm:$0xf]  ;;  %v9377_v1 = vor.u32 %v13262_v57, %v9374_v58  ;;  %v13260_v2 = vld [vmem:[%s21594_s3 + $0x8c] sm:$0xf0]  ;;  %v13263_v3 = vld [vmem:[%s21594_s3 + $0xac] sm:$0xf]  ;;  %v9381_v7 = vor.u32 %v13265_v62, %v9380_v61 }
  0x1f   :  { %v9382_v4 = vld [vmem:[%s21594_s3 + $0xb8] sm:$0xf0]  ;;  %v13258_v5 = vld [vmem:[%s21594_s3 + $0x84] sm:$0xf]  ;;  %v9358_v6 = vld [vmem:[%s21594_s3 + $0x90] sm:$0xf0]  ;;  %v9357_v8 = vor.u32 %v13260_v2, %v9356_v0 }
  0x20   :  { %285 = vmatpush.bf16.msra.mxu0 %v9165_v30  ;;  %v9364_v9 = vld [vmem:[%s21594_s3 + $0x88] sm:$0xf]  ;;  %v13261_v10 = vld [vmem:[%s21594_s3 + $0x94] sm:$0xf0]  ;;  %v9385_v11 = vor.u32 %v13263_v3, %v9382_v4  ;;  %v9340_v12 = vld [vmem:[%s21594_s3 + $0x60] sm:$0xf]  ;;  %v9361_v13 = vor.u32 %v13258_v5, %v9358_v6 }
  0x21   :  { %314 = vmatpush.bf16.msra.mxu1 %v9169_v33  ;;  %343 = vmatpush.bf16.msra.mxu2 %v9173_v34  ;;  %v13256_v14 = vld [vmem:[%s21594_s3 + $0x6c] sm:$0xf0]  ;;  %v13259_v15 = vld [vmem:[%s21594_s3 + $0x8c] sm:$0xf]  ;;  %v9366_v16 = vld [vmem:[%s21594_s3 + $0x98] sm:$0xf0]  ;;  %v9365_v20 = vor.u32 %v13261_v10, %v9364_v9 }
  0x22   :  { %372 = vmatpush.bf16.msra.mxu3 %v9177_v36  ;;  %v13254_v17 = vld [vmem:[%s21594_s3 + $0x64] sm:$0xf]  ;;  %v9342_v18 = vld [vmem:[%s21594_s3 + $0x70] sm:$0xf0]  ;;  %v13207_v19 = vld [vmem:[%s21595_s0 + $0x8] sm:$0xff]  ;;  %v9341_v21 = vor.u32 %v13256_v14, %v9340_v12  ;;  %v9369_v24 = vor.u32 %v13259_v15, %v9366_v16  ;;  %v14482_v4 = vmov 0  }
  0x23   :  { %286 = vmatmul.bf16.vlgmr.msra.gmra.mxu0 %v13206_v35  ;;  %v9348_v22 = vld [vmem:[%s21594_s3 + $0x68] sm:$0xf]  ;;  %v13257_v23 = vld [vmem:[%s21594_s3 + $0x74] sm:$0xf0]  ;;  %v9324_v25 = vld [vmem:[%s21594_s3 + $0x40] sm:$0xf]  ;;  %v9345_v26 = vor.u32 %v13254_v17, %v9342_v18 }
  0x24   :  { %645 = vmatpush.bf16.msrb.mxu0 %v9405_v37  ;;  %315 = vmatmul.bf16.vlgmr.msra.gmra.mxu1 %v13206_v35  ;;  %v13252_v27 = vld [vmem:[%s21594_s3 + $0x4c] sm:$0xf0]  ;;  %v13255_v28 = vld [vmem:[%s21594_s3 + $0x6c] sm:$0xf]  ;;  %v9350_v29 = vld [vmem:[%s21594_s3 + $0x78] sm:$0xf0]  ;;  %v9349_v32 = vor.u32 %v13257_v23, %v9348_v22 }
  0x25   :  { %658 = vmatpush.bf16.msrb.mxu1 %v9409_v41  ;;  %344 = vmatmul.bf16.vlgmr.msra.gmra.mxu2 %v13206_v35  ;;  %v13250_v30 = vld [vmem:[%s21594_s3 + $0x44] sm:$0xf]  ;;  %v9326_v31 = vld [vmem:[%s21594_s3 + $0x50] sm:$0xf0]  ;;  %v9325_v33 = vor.u32 %v13252_v27, %v9324_v25  ;;  %v9332_v34 = vld [vmem:[%s21594_s3 + $0x48] sm:$0xf]  ;;  %v9353_v36 = vor.u32 %v13255_v28, %v9350_v29 }
  0x26   :  { %373 = vmatmul.bf16.vlgmr.msra.gmra.mxu3 %v13206_v35  ;;  %671 = vmatpush.bf16.msrb.mxu2 %v9413_v47  ;;  %v13253_v35 = vld [vmem:[%s21594_s3 + $0x54] sm:$0xf0]  ;;  %v9329_v37 = vor.u32 %v13250_v30, %v9326_v31  ;;  %v9308_v39 = vld [vmem:[%s21594_s3 + $0x20] sm:$0xf]  ;;  %v13248_v40 = vld [vmem:[%s21594_s3 + $0x2c] sm:$0xf0] }
  0x27   :  { %684 = vmatpush.bf16.msrb.mxu3 %v9417_v51  ;;  %v9333_v38 = vor.u32 %v13253_v35, %v9332_v34  ;;  %v13246_v41 = vld [vmem:[%s21594_s3 + $0x24] sm:$0xf]  ;;  %v9309_v42 = vor.u32 %v13248_v40, %v9308_v39  ;;  %v9310_v43 = vld [vmem:[%s21594_s3 + $0x30] sm:$0xf0]  ;;  %v9316_v44 = vld [vmem:[%s21594_s3 + $0x28] sm:$0xf] }
  0x28   :  { %646 = vmatpush.bf16.msrb.mxu0 %v9389_v48  ;;  %v13249_v45 = vld [vmem:[%s21594_s3 + $0x34] sm:$0xf0]  ;;  %v9313_v46 = vor.u32 %v13246_v41, %v9310_v43  ;;  %v13251_v47 = vld [vmem:[%s21594_s3 + $0x4c] sm:$0xf]  ;;  %v9334_v48 = vld [vmem:[%s21594_s3 + $0x58] sm:$0xf0] }
  0x29   :  { %659 = vmatpush.bf16.msrb.mxu1 %v9393_v53  ;;  %v9292_v49 = vld [vmem:[%s21594_s3] sm:$0xf]  ;;  %v9337_v50 = vor.u32 %v13251_v47, %v9334_v48  ;;  %v13244_v51 = vld [vmem:[%s21594_s3 + $0xc] sm:$0xf0]  ;;  %v13242_v52 = vld [vmem:[%s21594_s3 + $0x4] sm:$0xf]  ;;  %v9317_v54 = vor.u32 %v13249_v45, %v9316_v44 }
  0x2a   :  { %672 = vmatpush.bf16.msrb.mxu2 %v9397_v59  ;;  %v9294_v53 = vld [vmem:[%s21594_s3 + $0x10] sm:$0xf0]  ;;  %v13247_v55 = vld [vmem:[%s21594_s3 + $0x2c] sm:$0xf]  ;;  %v9318_v56 = vld [vmem:[%s21594_s3 + $0x38] sm:$0xf0]  ;;  %v9293_v57 = vor.u32 %v13244_v51, %v9292_v49 }
  0x2b   :  { %685 = vmatpush.bf16.msrb.mxu3 %v9401_v63  ;;  %v9321_v58 = vor.u32 %v13247_v55, %v9318_v56  ;;  %v9300_v59 = vld [vmem:[%s21594_s3 + $0x8] sm:$0xf]  ;;  %v9297_v61 = vor.u32 %v13242_v52, %v9294_v53  ;;  %v13243_v62 = vld [vmem:[%s21594_s3 + $0xc] sm:$0xf]  ;;  %v9302_v63 = vld [vmem:[%s21594_s3 + $0x18] sm:$0xf0] }
  0x2c   :  { %647 = vmatpush.bf16.msrb.mxu0 %v9373_v60  ;;  %v13245_v60 = vld [vmem:[%s21594_s3 + $0x14] sm:$0xf0]  ;;  %v13208_v2 = vld [vmem:[%s21595_s0 + $0x10] sm:$0xff]  ;;  %v9481_v45 = vld [vmem:[%s21597_s5 + $0x78] sm:$0xf0] }
  0x2d   :  { %660 = vmatpush.bf16.msrb.mxu1 %v9377_v1  ;;  %v9301_v0 = vor.u32 %v13245_v60, %v9300_v59  ;;  %v9305_v1 = vor.u32 %v13243_v62, %v9302_v63  ;;  %v13209_v3 = vld [vmem:[%s21595_s0 + $0x18] sm:$0xff]  ;;  %v9479_v40 = vld [vmem:[%s21597_s5 + $0x70] sm:$0xf]  ;;  %v9471_v52 = vld [vmem:[%s21597_s5 + $0x60] sm:$0xf] }
  0x2e   :  { %673 = vmatpush.bf16.msrb.mxu2 %v9381_v7  ;;  %v13289_v41 = vld [vmem:[%s21597_s5 + $0x74] sm:$0xf0]  ;;  %v13287_v53 = vld [vmem:[%s21597_s5 + $0x64] sm:$0xf0]  ;;  %v9473_v56 = vld [vmem:[%s21597_s5 + $0x68] sm:$0xf0] }
  0x2f   :  { %686 = vmatpush.bf16.msrb.mxu3 %v9385_v11  ;;  %v84_v11 = vld [vmem:[%s21596_s4] sm:$0xf]  ;;  %v9480_v44 = vor.u32 %v13289_v41, %v9479_v40  ;;  %v9472_v55 = vor.u32 %v13287_v53, %v9471_v52  ;;  %v13285_v59 = vld [vmem:[%s21597_s5 + $0x54] sm:$0xf0]  ;;  %v13284_v60 = vld [vmem:[%s21597_s5 + $0x54] sm:$0xf] }
  0x30   :  { %648 = vmatpush.bf16.msrb.mxu0 %v9357_v8  ;;  %v14968_v12 = vperm.slane %v84_v11, 0  ;;  %v14972_v14 = vperm.slane %v84_v11, 1  ;;  %v9465_v63 = vld [vmem:[%s21597_s5 + $0x58] sm:$0xf0]  ;;  %v13281_v40 = vld [vmem:[%s21597_s5 + $0x34] sm:$0xf0] }
  0x31   :  { %661 = vmatpush.bf16.msrb.mxu1 %v9361_v13  ;;  %v13280_v41 = vld [vmem:[%s21597_s5 + $0x34] sm:$0xf] }
  0x32   :  { %674 = vmatpush.bf16.msrb.mxu2 %v9365_v20  ;;  %v14982_v20 = vperm.slane %v84_v11, 2 }
  0x33   :  { %687 = vmatpush.bf16.msrb.mxu3 %v9369_v24  ;;  %291 = vmatmul.bf16.gmra.mxu0 %v13207_v19 }
  0x34   :  { %649 = vmatpush.bf16.msrb.mxu0 %v9341_v21  ;;  %320 = vmatmul.bf16.gmra.mxu1 %v13207_v19  ;;  %v14984_v21 = vperm.slane %v84_v11, 3 }
  0x35   :  { %662 = vmatpush.bf16.msrb.mxu1 %v9345_v26  ;;  %349 = vmatmul.bf16.gmra.mxu2 %v13207_v19 }
  0x36   :  { %378 = vmatmul.bf16.gmra.mxu3 %v13207_v19  ;;  %675 = vmatpush.bf16.msrb.mxu2 %v9349_v32 }
  0x37   :  { %688 = vmatpush.bf16.msrb.mxu3 %v9353_v36 }
  0x38   :  { %650 = vmatpush.bf16.msrb.mxu0 %v9325_v33 }
  0x39   :  { %663 = vmatpush.bf16.msrb.mxu1 %v9329_v37 }
  0x3a   :  { %676 = vmatpush.bf16.msrb.mxu2 %v9333_v38 }
  0x3b   :  { %689 = vmatpush.bf16.msrb.mxu3 %v9337_v50 }
  0x3c   :  { %651 = vmatpush.bf16.msrb.mxu0 %v9309_v42  ;;  %v13288_v42 = vld [vmem:[%s21597_s5 + $0x74] sm:$0xf] }
  0x3d   :  { %664 = vmatpush.bf16.msrb.mxu1 %v9313_v46  ;;  %v9484_v48 = vor.u32 %v13288_v42, %v9481_v45 }
  0x3e   :  { %677 = vmatpush.bf16.msrb.mxu2 %v9317_v54  ;;  %v13286_v54 = vld [vmem:[%s21597_s5 + $0x64] sm:$0xf] }
  0x3f   :  { %690 = vmatpush.bf16.msrb.mxu3 %v9321_v58  ;;  %v9463_v58 = vld [vmem:[%s21597_s5 + $0x50] sm:$0xf] }
  0x40   :  { %652 = vmatpush.bf16.msrb.mxu0 %v9293_v57  ;;  %v9476_v57 = vor.u32 %v13286_v54, %v9473_v56  ;;  %v9464_v62 = vor.u32 %v13285_v59, %v9463_v58 }
  0x41   :  { %665 = vmatpush.bf16.msrb.mxu1 %v9297_v61 }
  0x42   :  { %678 = vmatpush.bf16.msrb.mxu2 %v9301_v0 }
  0x43   :  { %691 = vmatpush.bf16.msrb.mxu3 %v9305_v1  ;;  %296 = vmatmul.bf16.gmra.mxu0 %v13208_v2 }
  0x44   :  { %325 = vmatmul.bf16.gmra.mxu1 %v13208_v2  ;;  %861 = vmatpush.bf16.msra.mxu0 %v9480_v44 }
  0x45   :  { %354 = vmatmul.bf16.gmra.mxu2 %v13208_v2  ;;  %874 = vmatpush.bf16.msra.mxu1 %v9484_v48 }
  0x46   :  { %383 = vmatmul.bf16.gmra.mxu3 %v13208_v2 }
  0x48   :  { %862 = vmatpush.bf16.msra.mxu0 %v9472_v55 }
  0x49   :  { %875 = vmatpush.bf16.msra.mxu1 %v9476_v57  ;;  %v13279_v57 = vld [vmem:[%s21597_s5 + $0x24] sm:$0xf0] }
  0x4c   :  { %863 = vmatpush.bf16.msra.mxu0 %v9464_v62 }
  0x53   :  { %301 = vmatmul.bf16.gmra.mxu0 %v13209_v3 }
  0x54   :  { %330 = vmatmul.bf16.gmra.mxu1 %v13209_v3 }
  0x55   :  { %359 = vmatmul.bf16.gmra.mxu2 %v13209_v3 }
  0x56   :  { %388 = vmatmul.bf16.gmra.mxu3 %v13209_v3  ;;  %v9468_v3 = vor.u32 %v13284_v60, %v9465_v63  ;;  %v9441_v60 = vld [vmem:[%s21597_s5 + $0x28] sm:$0xf0]  ;;  %v9431_v63 = vld [vmem:[%s21597_s5 + $0x10] sm:$0xf] }
  0x58   :  { %876 = vmatpush.bf16.msra.mxu1 %v9468_v3  ;;  %v13276_v3 = vld [vmem:[%s21597_s5 + $0x14] sm:$0xf] }
  0x63   :  { %653 = vmatmul.bf16.vlgmr.msrb.gmra.mxu0 %v14482_v4 }
  0x64   :  { %666 = vmatmul.bf16.vlgmr.msrb.gmra.mxu1 %v14482_v4 }
  0x65   :  { %679 = vmatmul.bf16.vlgmr.msrb.gmra.mxu2 %v14482_v4 }
  0x66   :  { %692 = vmatmul.bf16.vlgmr.msrb.gmra.mxu3 %v14482_v4 }
  0xa0   :  { %v14953_v5 = vpop.f32.mrf.mxu0 }
  0xa1   :  { %v14955_v6 = vpop.f32.mrf.mxu1  ;;  %v288_v42 = vadd.f32 %v14953_v5, %v14968_v12  ;;  %v9439_v5 = vld [vmem:[%s21597_s5 + $0x20] sm:$0xf] }
  0xa2   :  { %v317_v48 = vadd.f32 %v14955_v6, %v14972_v14  ;;  %v13278_v6 = vld [vmem:[%s21597_s5 + $0x24] sm:$0xf]  ;;  %v9440_v59 = vor.u32 %v13279_v57, %v9439_v5 }
  0xa3   :  { %v9444_v62 = vor.u32 %v13278_v6, %v9441_v60 }
  0xa8   :  { %v14957_v7 = vpop.f32.mrf.mxu2  ;;  %v14961_v9 = vpop.f32.mrf.mxu0 }
  0xa9   :  { %v14959_v8 = vpop.f32.mrf.mxu3  ;;  %v14963_v10 = vpop.f32.mrf.mxu1 }
  0xaa   :  { %v375_v57 = vadd.f32 %v14959_v8, %v14984_v21  ;;  %v9607_v8 = vld [vmem:[%s21598_s8 + $0xe8] sm:$0xf] }
  0xb0   :  { %v14970_v13 = vpop.f32.mrf.mxu2  ;;  %v292_v16 = vpop.f32.mrf.mxu0 }
  0xb1   :  { %v14974_v15 = vpop.f32.mrf.mxu3  ;;  %v14977_v17 = vadd.f32 %v292_v16, %v14968_v12  ;;  %v321_v18 = vpop.f32.mrf.mxu1 }
  0xb2   :  { %v14980_v19 = vadd.f32 %v321_v18, %v14972_v14  ;;  %v9455_v18 = vld [vmem:[%s21597_s5 + $0x40] sm:$0xf] }
  0xb8   :  { %v350_v22 = vpop.f32.mrf.mxu2  ;;  %v14989_v25 = vpop.f32.mrf.mxu0 }
  0xb9   :  { %v14987_v23 = vadd.f32 %v350_v22, %v14982_v20  ;;  %v379_v24 = vpop.f32.mrf.mxu3  ;;  %v14994_v27 = vpop.f32.mrf.mxu1  ;;  %v13283_v22 = vld [vmem:[%s21597_s5 + $0x44] sm:$0xf0] }
  0xba   :  { %v14992_v26 = vadd.f32 %v379_v24, %v14984_v21  ;;  %v13282_v24 = vld [vmem:[%s21597_s5 + $0x44] sm:$0xf] }
  0xc0   :  { %v14996_v28 = vpop.f32.mrf.mxu2  ;;  %v297_v30 = vpop.f32.mrf.mxu0 }
  0xc1   :  { %v14998_v29 = vpop.f32.mrf.mxu3  ;;  %v15001_v31 = vadd.f32 %v297_v30, %v14968_v12  ;;  %v326_v32 = vpop.f32.mrf.mxu1  ;;  %v9456_v30 = vor.u32 %v13283_v22, %v9455_v18  ;;  %v346_v18 = vadd.f32 %v14957_v7, %v14982_v20  ;;  %v13274_v7 = vld [vmem:[%s21597_s5 + $0x4] sm:$0xf] }
  0xc2   :  { %v15004_v33 = vadd.f32 %v326_v32, %v14972_v14  ;;  %v9457_v32 = vld [vmem:[%s21597_s5 + $0x48] sm:$0xf0] }
  0xc3   :  { %864 = vmatpush.bf16.msra.mxu0 %v9456_v30  ;;  %v9423_v30 = vld [vmem:[%s21597_s5] sm:$0xf] }
  0xc8   :  { %v355_v34 = vpop.f32.mrf.mxu2  ;;  %v15009_v37 = vpop.f32.mrf.mxu0 }
  0xc9   :  { %v15007_v35 = vadd.f32 %v355_v34, %v14982_v20  ;;  %v384_v36 = vpop.f32.mrf.mxu3  ;;  %v15014_v39 = vpop.f32.mrf.mxu1  ;;  %v9460_v34 = vor.u32 %v13282_v24, %v9457_v32  ;;  %v9433_v24 = vld [vmem:[%s21597_s5 + $0x18] sm:$0xf0]  ;;  %v13275_v32 = vld [vmem:[%s21597_s5 + $0x4] sm:$0xf0] }
  0xca   :  { %v15012_v38 = vadd.f32 %v384_v36, %v14984_v21  ;;  %v9447_v36 = vld [vmem:[%s21597_s5 + $0x30] sm:$0xf] }
  0xcb   :  { %877 = vmatpush.bf16.msra.mxu1 %v9460_v34  ;;  %v9448_v45 = vor.u32 %v13281_v40, %v9447_v36  ;;  %v9436_v36 = vor.u32 %v13276_v3, %v9433_v24  ;;  %v9425_v40 = vld [vmem:[%s21597_s5 + $0x8] sm:$0xf0]  ;;  %v13353_v3 = vld [vmem:[%s21598_s8 + $0xf4] sm:$0xf0] }
  0xcc   :  { %v9608_v24 = vor.u32 %v13353_v3, %v9607_v8  ;;  %v13345_v8 = vld [vmem:[%s21598_s8 + $0xb4] sm:$0xf0] }
  0xcd   :  { %865 = vmatpush.bf16.msra.mxu0 %v9448_v45 }
  0xd0   :  { %v15025_v43 = vpop.f32.mrf.mxu2  ;;  %v302_v47 = vpop.f32.mrf.mxu0 }
  0xd1   :  { %v15030_v46 = vpop.f32.mrf.mxu3  ;;  %v15033_v49 = vadd.f32 %v302_v47, %v14968_v12  ;;  %v331_v50 = vpop.f32.mrf.mxu1  ;;  %v9449_v47 = vld [vmem:[%s21597_s5 + $0x38] sm:$0xf0]  ;;  %866 = vmatpush.bf16.msra.mxu0 %v9440_v59 }
  0xd2   :  { %v15036_v51 = vadd.f32 %v331_v50, %v14972_v14  ;;  %v9452_v53 = vor.u32 %v13280_v41, %v9449_v47 }
  0xd4   :  { %878 = vmatpush.bf16.msra.mxu1 %v9452_v53  ;;  %v9428_v53 = vor.u32 %v13274_v7, %v9425_v40 }
  0xd8   :  { %v360_v61 = vpop.f32.mrf.mxu2  ;;  %v15065_v2 = vpop.f32.mrf.mxu0  ;;  %879 = vmatpush.bf16.msra.mxu1 %v9444_v62  ;;  %v9601_v62 = vld [vmem:[%s21598_s8 + $0xf0] sm:$0xf0] }
  0xd9   :  { %v15063_v0 = vadd.f32 %v360_v61, %v14982_v20  ;;  %v389_v1 = vpop.f32.mrf.mxu3  ;;  %v15070_v16 = vpop.f32.mrf.mxu1 }
  0xda   :  { %v15068_v11 = vadd.f32 %v389_v1, %v14984_v21  ;;  %21607 = vst [vmem:[#allocation3_spill] sm:$0xff] %v15070_v16  ;;  %v13277_v1 = vld [vmem:[%s21597_s5 + $0x14] sm:$0xf0] }
  0xdb   :  { %v9432_v22 = vor.u32 %v13277_v1, %v9431_v63 }
  0xdc   :  { %880 = vmatpush.bf16.msra.mxu1 %v9436_v36 }
  0xdd   :  { %867 = vmatpush.bf16.msra.mxu0 %v9432_v22 }
  0xe0   :  { %v15095_v44 = vpop.f32.mrf.mxu2  ;;  %v654_v52 = vpop.f32.mrf.mxu0  ;;  %881 = vmatpush.bf16.msra.mxu1 %v9428_v53  ;;  %v9593_v53 = vld [vmem:[%s21598_s8 + $0xd8] sm:$0xf0] }
  0xe1   :  { %21608 = vst [vmem:[#allocation4_spill] sm:$0xff] %v15095_v44  ;;  %v15102_v50 = vpop.f32.mrf.mxu3  ;;  %v697_v54 = vadd.f32 %v654_v52, %v288_v42  ;;  %v667_v55 = vpop.f32.mrf.mxu1 }
  0xe2   :  { %21609 = vst [vmem:[#allocation5_spill] sm:$0xff] %v15102_v50  ;;  %v698_v56 = vadd.f32 %v667_v55, %v317_v48  ;;  %v9424_v48 = vor.u32 %v13275_v32, %v9423_v30  ;;  %v9609_v30 = vld [vmem:[%s21598_s8 + $0xf8] sm:$0xf0]  ;;  %v13346_v32 = vld [vmem:[%s21598_s8 + $0xc4] sm:$0xf] }
  0xe3   :  { %v9418_v58 = vmul.f32 -1.442695, %v697_v54 }
  0xe4   :  { %v9419_v61 = vmul.f32 -1.442695, %v698_v56  ;;  %868 = vmatpush.bf16.msra.mxu0 %v9424_v48 }
  0xe5   :  { %14204 = vpow2.f32 %v9418_v58  ;;  %v13350_v58 = vld [vmem:[%s21598_s8 + $0xe4] sm:$0xf] }
  0xe6   :  { %14206 = vpow2.f32 %v9419_v61  ;;  %v9604_v1 = vor.u32 %v13350_v58, %v9601_v62  ;;  %v9569_v58 = vld [vmem:[%s21598_s8 + $0xb0] sm:$0xf0] }
  0xe8   :  { %v680_v34 = vpop.f32.mrf.mxu2  ;;  %v656_v45 = vpop.f32.mrf.mxu0  ;;  %1130 = vmatpush.bf16.msra.mxu3 %v9604_v1  ;;  %1143 = vmatpush.bf16.msrb.mxu0 %v9608_v24  ;;  %v13343_v1 = vld [vmem:[%s21598_s8 + $0xac] sm:$0xf] }
  0xe9   :  { %v699_v41 = vadd.f32 %v680_v34, %v346_v18  ;;  %v693_v42 = vpop.f32.mrf.mxu3  ;;  %v669_v47 = vpop.f32.mrf.mxu1  ;;  %v13351_v18 = vld [vmem:[%s21598_s8 + $0xec] sm:$0xf]  ;;  %v9585_v34 = vld [vmem:[%s21598_s8 + $0xd0] sm:$0xf0]  ;;  %v13349_v45 = vld [vmem:[%s21598_s8 + $0xd4] sm:$0xf0] }
  0xea   :  { %v700_v59 = vadd.f32 %v693_v42, %v375_v57  ;;  %v9612_v40 = vor.u32 %v13351_v18, %v9609_v30  ;;  %v9591_v42 = vld [vmem:[%s21598_s8 + $0xc8] sm:$0xf] }
  0xeb   :  { %v9420_v52 = vmul.f32 -1.442695, %v699_v41  ;;  %v14205_v54 = vpop.eup %14204  ;;  %v9588_v41 = vor.u32 %v13346_v32, %v9585_v34  ;;  %v9592_v48 = vor.u32 %v13349_v45, %v9591_v42  ;;  %v9559_v42 = vld [vmem:[%s21598_s8 + $0x88] sm:$0xf]  ;;  %v13341_v45 = vld [vmem:[%s21598_s8 + $0x94] sm:$0xf0] }
  0xec   :  { %v14207_v55 = vpop.eup %14206  ;;  %v710_v56 = vadd.f32 1.0, %v14205_v54  ;;  %v13342_v54 = vld [vmem:[%s21598_s8 + $0xa4] sm:$0xf]  ;;  %1156 = vmatpush.bf16.msrb.mxu1 %v9612_v40  ;;  %v9553_v40 = vld [vmem:[%s21598_s8 + $0x90] sm:$0xf0] }
  0xed   :  { %14208 = vpow2.f32 %v9420_v52  ;;  %v15142_v5 = vadd.f32 1.0, %v14207_v55  ;;  %v13347_v52 = vld [vmem:[%s21598_s8 + $0xcc] sm:$0xf]  ;;  %1131 = vmatpush.bf16.msra.mxu3 %v9588_v41  ;;  %v9572_v24 = vor.u32 %v13342_v54, %v9569_v58  ;;  %1144 = vmatpush.bf16.msrb.mxu0 %v9592_v48  ;;  %v9561_v54 = vld [vmem:[%s21598_s8 + $0x98] sm:$0xf0] }
  0xee   :  { %14210 = vrcp.f32 %v710_v56  ;;  %v722_v60 = vand.u32 2147483647, %v710_v56  ;;  %v724_v63 = vand.u32 2147483648, %v710_v56  ;;  %vm718_vm0 = vweird.f32 %v710_v56  ;;  %v13339_v48 = vld [vmem:[%s21598_s8 + $0x8c] sm:$0xf] }
  0xef   :  { %14212 = vrcp.f32 %v15142_v5  ;;  %v739_v36 = vand.u32 2147483648, %v15142_v5  ;;  %vm733_vm5 = vweird.f32 %v15142_v5  ;;  %v13352_v58 = vld [vmem:[%s21598_s8 + $0xec] sm:$0xf0] }
  0xf0   :  { %v682_v6 = vpop.f32.mrf.mxu2  ;;  %14214 = vtanh.f32 %v700_v59  ;;  %v9575_v59 = vld [vmem:[%s21598_s8 + $0xa8] sm:$0xf]  ;;  %vm15205_vm2 = vcmp.eq.f32.partialorder %v722_v60, 8.507059e+37  ;;  %v725_v18 = vor.u32 1.1754944e-38, %v724_v63  ;;  %v13338_v63 = vld [vmem:[%s21598_s8 + $0x84] sm:$0xf] }
  0xf1   :  { %v695_v61 = vpop.f32.mrf.mxu3  ;;  %v737_v6 = vand.u32 2147483647, %v15142_v5  ;;  %v740_v30 = vor.u32 1.1754944e-38, %v739_v36  ;;  %v9576_v34 = vor.u32 %v13345_v8, %v9575_v59  ;;  %1132 = vmatpush.bf16.msra.mxu3 %v9572_v24  ;;  %v9583_v24 = vld [vmem:[%s21598_s8 + $0xc0] sm:$0xf] }
  0xf3   :  { %v14209_v22 = vpop.eup %14208  ;;  %vm15259_vm7 = vcmp.eq.f32.partialorder %v737_v6, 8.507059e+37  ;;  %1145 = vmatpush.bf16.msrb.mxu0 %v9576_v34  ;;  %v9537_v6 = vld [vmem:[%s21598_s8 + $0x70] sm:$0xf0]  ;;  %v9543_v34 = vld [vmem:[%s21598_s8 + $0x68] sm:$0xf] }
  0xf4   :  { %v15172_v7 = vadd.f32 1.0, %v14209_v22  ;;  %v15180_v47 = vpop.eup %14210  ;;  %v9596_v22 = vor.u32 %v13347_v52, %v9593_v53 }
  0xf5   :  { %v15191_v55 = vpop.eup %14212  ;;  %v714_v57 = vmul.f32 %v15180_v47, %v710_v56  ;;  %vm719_vm1 = vweird.f32 %v15180_v47  ;;  %v9577_v56 = vld [vmem:[%s21598_s8 + $0xb8] sm:$0xf0] }
  0xf6   :  { %14216 = vrcp.f32 %v15172_v7  ;;  %v729_v61 = vmul.f32 %v15191_v55, %v15142_v5  ;;  %vm15218_vm3 = vmor %vm718_vm0, %vm719_vm1  ;;  %vm734_vm4 = vweird.f32 %v15191_v55  ;;  %1157 = vmatpush.bf16.msrb.mxu1 %v9596_v22  ;;  %v9580_v36 = vor.u32 %v13343_v1, %v9577_v56  ;;  %v14215_v52 = vpop.eup %14214 }
  0xf7   :  { %v715_v3 = vsub.f32 1.0, %v714_v57  ;;  %v9599_v57 = vld [vmem:[%s21598_s8 + $0xe0] sm:$0xf]  ;;  %vm15255_vm6 = vmor %vm733_vm5, %vm734_vm4  ;;  %v9556_v1 = vor.u32 %v13338_v63, %v9553_v40  ;;  %v9564_v40 = vor.u32 %v13339_v48, %v9561_v54  ;;  %v9545_v48 = vld [vmem:[%s21598_s8 + $0x78] sm:$0xf0]  ;;  %vm748_vm9 = vweird.f32 %v15172_v7 }
  0xf8   :  { %v730_v60 = vsub.f32 1.0, %v729_v61 }
  0xf9   :  { %v716_v41 = vmul.f32 %v15180_v47, %v715_v3  ;;  %v9600_v3 = vor.u32 %v13352_v58, %v9599_v57  ;;  %1133 = vmatpush.bf16.msra.mxu3 %v9556_v1  ;;  %v9527_v1 = vld [vmem:[%s21598_s8 + $0x48] sm:$0xf] }
  0xfa   :  { %v731_v53 = vmul.f32 %v15191_v55, %v730_v60  ;;  %v9560_v60 = vor.u32 %v13341_v45, %v9559_v42  ;;  %1158 = vmatpush.bf16.msrb.mxu1 %v9580_v36  ;;  %v13337_v42 = vld [vmem:[%s21598_s8 + $0x74] sm:$0xf0]  ;;  %v13348_v45 = vld [vmem:[%s21598_s8 + $0xcc] sm:$0xf0]  ;;  %v13335_v36 = vld [vmem:[%s21598_s8 + $0x6c] sm:$0xf] }
  0xfb   :  { %v717_v61 = vadd.f32 %v15180_v47, %v716_v41  ;;  %v13334_v41 = vld [vmem:[%s21598_s8 + $0x64] sm:$0xf]  ;;  %1117 = vmatpush.bf16.msra.mxu2 %v9600_v3  ;;  %v9584_v54 = vor.u32 %v13348_v45, %v9583_v24  ;;  %v9544_v3 = vor.u32 %v13337_v42, %v9543_v34  ;;  %v9548_v8 = vor.u32 %v13335_v36, %v9545_v48  ;;  %v9529_v24 = vld [vmem:[%s21598_s8 + $0x58] sm:$0xf0]  ;;  %v9551_v42 = vld [vmem:[%s21598_s8 + $0x80] sm:$0xf] }
  0xfc   :  { %v15250_v59 = vpop.eup %14216  ;;  %v732_v56 = vadd.f32 %v15191_v55, %v731_v53  ;;  %v9540_v62 = vor.u32 %v13334_v41, %v9537_v6  ;;  %1146 = vmatpush.bf16.msrb.mxu0 %v9560_v60  ;;  %v752_v60 = vand.u32 2147483647, %v15172_v7  ;;  %v13331_v6 = vld [vmem:[%s21598_s8 + $0x4c] sm:$0xf]  ;;  %v13340_v45 = vld [vmem:[%s21598_s8 + $0x8c] sm:$0xf0] }
  0xfd   :  { %v744_v22 = vmul.f32 %v15250_v59, %v15172_v7  ;;  %v721_v63 = vsel %vm15218_vm3, %v15180_v47, %v717_v61  ;;  %vm749_vm8 = vweird.f32 %v15250_v59  ;;  %v9532_v36 = vor.u32 %v13331_v6, %v9529_v24  ;;  %v9511_v48 = vld [vmem:[%s21598_s8 + $0x28] sm:$0xf]  ;;  %v9497_v6 = vld [vmem:[%s21598_s8 + $0x18] sm:$0xf0] }
  0xfe   :  { %v726_v32 = vsel %vm15205_vm2, %v725_v18, %v721_v63  ;;  %v736_v47 = vsel %vm15255_vm6, %v15191_v55, %v732_v56  ;;  %v13330_v18 = vld [vmem:[%s21598_s8 + $0x44] sm:$0xf]  ;;  %v9521_v55 = vld [vmem:[%s21598_s8 + $0x50] sm:$0xf0]  ;;  %1159 = vmatpush.bf16.msrb.mxu1 %v9564_v40  ;;  %v754_v40 = vand.u32 2147483648, %v15172_v7  ;;  %1134 = vmatpush.bf16.msra.mxu3 %v9540_v62  ;;  %vm15340_vm10 = vmor %vm748_vm9, %vm749_vm8  ;;  %vm15372_vm11 = vcmp.eq.f32.partialorder %v752_v60, 8.507059e+37 }
  0xff   :  { %v745_v53 = vsub.f32 1.0, %v744_v22  ;;  %v741_v57 = vsel %vm15259_vm7, %v740_v30, %v736_v47  ;;  %v760_v58 = vmul.f32 %v14215_v52, %v726_v32  ;;  %v9567_v30 = vld [vmem:[%s21598_s8 + $0xa0] sm:$0xf]  ;;  %v13344_v52 = vld [vmem:[%s21598_s8 + $0xac] sm:$0xf0]  ;;  %1118 = vmatpush.bf16.msra.mxu2 %v9584_v54  ;;  %v9524_v34 = vor.u32 %v13330_v18, %v9521_v55 }
 0x100   :  { %v759_v5 = vmul.f32 0.0, %v741_v57  ;;  %v13333_v22 = vld [vmem:[%s21598_s8 + $0x54] sm:$0xf0]  ;;  %v9568_v56 = vor.u32 %v13344_v52, %v9567_v30  ;;  %1147 = vmatpush.bf16.msrb.mxu0 %v9544_v3  ;;  %v13326_v32 = vld [vmem:[%s21598_s8 + $0x24] sm:$0xf]  ;;  %v755_v3 = vor.u32 1.1754944e-38, %v754_v40 }
 0x101   :  { %v746_v61 = vmul.f32 %v15250_v59, %v745_v53  ;;  %v9528_v7 = vor.u32 %v13333_v22, %v9527_v1  ;;  %v9505_v47 = vld [vmem:[%s21598_s8 + $0x30] sm:$0xf0]  ;;  %v13329_v54 = vld [vmem:[%s21598_s8 + $0x34] sm:$0xf0]  ;;  %v13327_v57 = vld [vmem:[%s21598_s8 + $0x2c] sm:$0xf] }
 0x102   :  { %v15321_v41 = vadd.f32 %v760_v58, %v759_v5  ;;  %1160 = vmatpush.bf16.msrb.mxu1 %v9548_v8  ;;  %v9552_v58 = vor.u32 %v13340_v45, %v9551_v42  ;;  %v9513_v62 = vld [vmem:[%s21598_s8 + $0x38] sm:$0xf0]  ;;  %v9535_v18 = vld [vmem:[%s21598_s8 + $0x60] sm:$0xf]  ;;  %v13336_v55 = vld [vmem:[%s21598_s8 + $0x6c] sm:$0xf0]  ;;  %1135 = vmatpush.bf16.msra.mxu3 %v9524_v34  ;;  %v9508_v30 = vor.u32 %v13326_v32, %v9505_v47 }
 0x103   :  { %v747_v63 = vadd.f32 %v15250_v59, %v746_v61  ;;  %1119 = vmatpush.bf16.msra.mxu2 %v9568_v56  ;;  %v9512_v52 = vor.u32 %v13329_v54, %v9511_v48  ;;  %v13322_v8 = vld [vmem:[%s21598_s8 + $0x4] sm:$0xf]  ;;  %v9489_v1 = vld [vmem:[%s21598_s8 + $0x10] sm:$0xf0]  ;;  %v9516_v22 = vor.u32 %v13327_v57, %v9513_v62  ;;  %v13325_v56 = vld [vmem:[%s21598_s8 + $0x14] sm:$0xf0]  ;;  %v9536_v24 = vor.u32 %v13336_v55, %v9535_v18 }
 0x104   :  { %14218 = vtanh.f32 %v15321_v41  ;;  %1148 = vmatpush.bf16.msrb.mxu0 %v9528_v7  ;;  %v13323_v60 = vld [vmem:[%s21598_s8 + $0xc] sm:$0xf]  ;;  %v13318_v34 = vld [vmem:[%s21599_s7 + $0xe4] sm:$0xf]  ;;  %v9729_v42 = vld [vmem:[%s21599_s7 + $0xf0] sm:$0xf0] }
 0x105   :  { %v751_v61 = vsel %vm15340_vm10, %v15250_v59, %v747_v63  ;;  %v9495_v59 = vld [vmem:[%s21598_s8 + $0x8] sm:$0xf]  ;;  %v13321_v7 = vld [vmem:[%s21599_s7 + $0xf4] sm:$0xf0]  ;;  %v13319_v32 = vld [vmem:[%s21599_s7 + $0xec] sm:$0xf]  ;;  %v9500_v62 = vor.u32 %v13323_v60, %v9497_v6  ;;  %v9732_v18 = vor.u32 %v13318_v34, %v9729_v42 }
 0x106   :  { %1161 = vmatpush.bf16.msrb.mxu1 %v9532_v36  ;;  %v756_v40 = vsel %vm15372_vm11, %v755_v3, %v751_v61  ;;  %v9735_v45 = vld [vmem:[%s21599_s7 + $0xe8] sm:$0xf]  ;;  %1136 = vmatpush.bf16.msra.mxu3 %v9508_v30  ;;  %v9737_v47 = vld [vmem:[%s21599_s7 + $0xf8] sm:$0xf0]  ;;  %v9492_v36 = vor.u32 %v13322_v8, %v9489_v1  ;;  %v9496_v48 = vor.u32 %v13325_v56, %v9495_v59  ;;  %v9519_v54 = vld [vmem:[%s21598_s8 + $0x40] sm:$0xf] }
 0x107   :  { %1120 = vmatpush.bf16.msra.mxu2 %v9552_v58  ;;  %v13332_v57 = vld [vmem:[%s21598_s8 + $0x4c] sm:$0xf0]  ;;  %v9736_v55 = vor.u32 %v13321_v7, %v9735_v45  ;;  %v9740_v61 = vor.u32 %v13319_v32, %v9737_v47  ;;  %v13314_v5 = vld [vmem:[%s21599_s7 + $0xc4] sm:$0xf]  ;;  %v9713_v3 = vld [vmem:[%s21599_s7 + $0xd0] sm:$0xf0] }
 0x108   :  { %1149 = vmatpush.bf16.msrb.mxu0 %v9512_v52  ;;  %v9719_v30 = vld [vmem:[%s21599_s7 + $0xc8] sm:$0xf]  ;;  %v9520_v52 = vor.u32 %v13332_v57, %v9519_v54  ;;  %v13317_v8 = vld [vmem:[%s21599_s7 + $0xd4] sm:$0xf0]  ;;  %v13315_v1 = vld [vmem:[%s21599_s7 + $0xcc] sm:$0xf]  ;;  %v9716_v60 = vor.u32 %v13314_v5, %v9713_v3 }
 0x109   :  { %v9721_v59 = vld [vmem:[%s21599_s7 + $0xd8] sm:$0xf0]  ;;  %v13328_v56 = vld [vmem:[%s21598_s8 + $0x2c] sm:$0xf0]  ;;  %v9720_v6 = vor.u32 %v13317_v8, %v9719_v30  ;;  %v9703_v34 = vld [vmem:[%s21599_s7 + $0xa8] sm:$0xf] }
 0x10a   :  { %v14219_v63 = vpop.eup %14218  ;;  %1162 = vmatpush.bf16.msrb.mxu1 %v9516_v22  ;;  %1137 = vmatpush.bf16.msra.mxu3 %v9492_v36  ;;  %v9503_v22 = vld [vmem:[%s21598_s8 + $0x20] sm:$0xf]  ;;  %v13313_v45 = vld [vmem:[%s21599_s7 + $0xb4] sm:$0xf0]  ;;  %v9705_v7 = vld [vmem:[%s21599_s7 + $0xb8] sm:$0xf0] }
 0x10b   :  { %v763_v53 = vmul.f32 %v14219_v63, %v756_v40  ;;  %1121 = vmatpush.bf16.msra.mxu2 %v9536_v24  ;;  %v9724_v24 = vor.u32 %v13315_v1, %v9721_v59  ;;  %v13310_v63 = vld [vmem:[%s21599_s7 + $0xa4] sm:$0xf]  ;;  %v9697_v40 = vld [vmem:[%s21599_s7 + $0xb0] sm:$0xf0]  ;;  %v9504_v42 = vor.u32 %v13328_v56, %v9503_v22  ;;  %v9487_v32 = vld [vmem:[%s21598_s8] sm:$0xf]  ;;  %v9704_v57 = vor.u32 %v13313_v45, %v9703_v34 }
 0x10c   :  { %1150 = vmatpush.bf16.msrb.mxu0 %v9496_v48  ;;  %v13324_v47 = vld [vmem:[%s21598_s8 + $0xc] sm:$0xf0]  ;;  %v9700_v36 = vor.u32 %v13310_v63, %v9697_v40  ;;  %v9727_v48 = vld [vmem:[%s21599_s7 + $0xe0] sm:$0xf]  ;;  %v13309_v3 = vld [vmem:[%s21599_s7 + $0x94] sm:$0xf0] }
 0x10d   :  { %v15420_v58 = vpack.c.bf16 %v763_v53, %v763_v53  ;;  %v13311_v53 = vld [vmem:[%s21599_s7 + $0xac] sm:$0xf]  ;;  %1138 = vmatmul.bf16.vlgmr.msra.gmra.mxu3 %v14482_v4  ;;  %v13320_v54 = vld [vmem:[%s21599_s7 + $0xec] sm:$0xf0]  ;;  %v9488_v5 = vor.u32 %v13324_v47, %v9487_v32  ;;  %v9711_v59 = vld [vmem:[%s21599_s7 + $0xc0] sm:$0xf] }
 0x10e   :  { %1163 = vmatpush.bf16.msrb.mxu1 %v9500_v62  ;;  %1342 = vmatpush.bf16.msrb.mxu3 %v9732_v18  ;;  %v9708_v62 = vor.u32 %v13311_v53, %v9705_v7  ;;  %v13306_v18 = vld [vmem:[%s21599_s7 + $0x84] sm:$0xf]  ;;  %v13307_v30 = vld [vmem:[%s21599_s7 + $0x8c] sm:$0xf]  ;;  %v9728_v8 = vor.u32 %v13320_v54, %v9727_v48  ;;  %v13316_v22 = vld [vmem:[%s21599_s7 + $0xcc] sm:$0xf0] }
 0x10f   :  { %869 = vmatmul.bf16.vlgmr.msra.gmra.mxu0 %v15420_v58  ;;  %882 = vmatmul.bf16.vlgmr.msra.gmra.mxu1 %v15420_v58  ;;  %v9671_v63 = vld [vmem:[%s21599_s7 + $0x68] sm:$0xf]  ;;  %v13305_v40 = vld [vmem:[%s21599_s7 + $0x74] sm:$0xf0]  ;;  %v13303_v34 = vld [vmem:[%s21599_s7 + $0x6c] sm:$0xf]  ;;  %v9712_v45 = vor.u32 %v13316_v22, %v9711_v59 }
 0x110   :  { %1355 = vmatpush.bf16.msra.mxu0 %v9736_v55  ;;  %1122 = vmatpush.bf16.msra.mxu2 %v9520_v52  ;;  %v9681_v55 = vld [vmem:[%s21599_s7 + $0x90] sm:$0xf0]  ;;  %v9689_v52 = vld [vmem:[%s21599_s7 + $0x98] sm:$0xf0]  ;;  %v9695_v7 = vld [vmem:[%s21599_s7 + $0xa0] sm:$0xf]  ;;  %v9672_v47 = vor.u32 %v13305_v40, %v9671_v63 }
 0x111   :  { %v9684_v1 = vor.u32 %v13306_v18, %v9681_v55  ;;  %v13312_v32 = vld [vmem:[%s21599_s7 + $0xac] sm:$0xf0]  ;;  %v13298_v48 = vld [vmem:[%s21599_s7 + $0x44] sm:$0xf]  ;;  %v9649_v54 = vld [vmem:[%s21599_s7 + $0x50] sm:$0xf0] }
 0x112   :  { %1368 = vmatpush.bf16.msra.mxu1 %v9740_v61  ;;  %1343 = vmatpush.bf16.msrb.mxu3 %v9716_v60  ;;  %v9687_v61 = vld [vmem:[%s21599_s7 + $0x88] sm:$0xf]  ;;  %v9692_v60 = vor.u32 %v13307_v30, %v9689_v52  ;;  %v13299_v18 = vld [vmem:[%s21599_s7 + $0x4c] sm:$0xf]  ;;  %v9657_v55 = vld [vmem:[%s21599_s7 + $0x58] sm:$0xf0] }
 0x113   :  { %v9688_v56 = vor.u32 %v13309_v3, %v9687_v61  ;;  %v9696_v61 = vor.u32 %v13312_v32, %v9695_v7  ;;  %v9679_v3 = vld [vmem:[%s21599_s7 + $0x80] sm:$0xf]  ;;  %v13308_v30 = vld [vmem:[%s21599_s7 + $0x8c] sm:$0xf0]  ;;  %v9639_v59 = vld [vmem:[%s21599_s7 + $0x28] sm:$0xf] }
 0x114   :  { %1356 = vmatpush.bf16.msra.mxu0 %v9720_v6  ;;  %1123 = vmatpush.bf16.msra.mxu2 %v9504_v42  ;;  %v13302_v6 = vld [vmem:[%s21599_s7 + $0x64] sm:$0xf]  ;;  %v9673_v42 = vld [vmem:[%s21599_s7 + $0x78] sm:$0xf0]  ;;  %v13297_v22 = vld [vmem:[%s21599_s7 + $0x34] sm:$0xf0] }
 0x115   :  { %v9640_v63 = vor.u32 %v13297_v22, %v9639_v59  ;;  %v13293_v7 = vld [vmem:[%s21599_s7 + $0x14] sm:$0xf0]  ;;  %v13291_v32 = vld [vmem:[%s21599_s7 + $0xc] sm:$0xf]  ;;  %v13300_v59 = vld [vmem:[%s21599_s7 + $0x4c] sm:$0xf0] }
 0x116   :  { %1369 = vmatpush.bf16.msra.mxu1 %v9724_v24  ;;  %1344 = vmatpush.bf16.msrb.mxu3 %v9700_v36  ;;  %v9665_v24 = vld [vmem:[%s21599_s7 + $0x70] sm:$0xf0]  ;;  %v9676_v36 = vor.u32 %v13303_v34, %v9673_v42  ;;  %v13290_v34 = vld [vmem:[%s21599_s7 + $0x4] sm:$0xf]  ;;  %v9874_v22 = vld [vmem:[%s21594_s3 + $0xc0] sm:$0xf] }
 0x117   :  { %v9668_v53 = vor.u32 %v13302_v6, %v9665_v24  ;;  %v9680_v6 = vor.u32 %v13308_v30, %v9679_v3  ;;  %v9617_v42 = vld [vmem:[%s21599_s7 + $0x10] sm:$0xf0]  ;;  %v9898_v30 = vld [vmem:[%s21594_s3 + $0xe8] sm:$0xf] }
 0x118   :  { %1357 = vmatpush.bf16.msra.mxu0 %v9704_v57  ;;  %1124 = vmatpush.bf16.msra.mxu2 %v9488_v5  ;;  %v9655_v57 = vld [vmem:[%s21599_s7 + $0x48] sm:$0xf]  ;;  %v9652_v5 = vor.u32 %v13298_v48, %v9649_v54  ;;  %v9663_v48 = vld [vmem:[%s21599_s7 + $0x60] sm:$0xf]  ;;  %v13304_v54 = vld [vmem:[%s21599_s7 + $0x6c] sm:$0xf0] }
 0x119   :  { %v9892_v3 = vld [vmem:[%s21594_s3 + $0xf0] sm:$0xf0] }
 0x11a   :  { %1370 = vmatpush.bf16.msra.mxu1 %v9708_v62  ;;  %1345 = vmatpush.bf16.msrb.mxu3 %v9684_v1  ;;  %v13301_v62 = vld [vmem:[%s21599_s7 + $0x54] sm:$0xf0]  ;;  %v13294_v1 = vld [vmem:[%s21599_s7 + $0x24] sm:$0xf] }
 0x11b   :  { %1125 = vmatmul.bf16.vlgmr.msra.gmra.mxu2 %v14482_v4  ;;  %v9656_v52 = vor.u32 %v13301_v62, %v9655_v57  ;;  %v9664_v62 = vor.u32 %v13304_v54, %v9663_v48  ;;  %v13382_v48 = vld [vmem:[%s21594_s3 + $0xa4] sm:$0xf]  ;;  %v9860_v54 = vld [vmem:[%s21594_s3 + $0xb0] sm:$0xf0] }
 0x11c   :  { %1329 = vmatpush.bf16.msrb.mxu2 %v9728_v8  ;;  %1358 = vmatpush.bf16.msra.mxu0 %v9688_v56  ;;  %v9660_v8 = vor.u32 %v13299_v18, %v9657_v55  ;;  %v13295_v56 = vld [vmem:[%s21599_s7 + $0x2c] sm:$0xf]  ;;  %v9890_v18 = vld [vmem:[%s21594_s3 + $0xe0] sm:$0xf]  ;;  %v13392_v55 = vld [vmem:[%s21594_s3 + $0xec] sm:$0xf0] }
 0x11e   :  { %1371 = vmatpush.bf16.msra.mxu1 %v9692_v60  ;;  %1346 = vmatpush.bf16.msrb.mxu3 %v9668_v53  ;;  %v9641_v60 = vld [vmem:[%s21599_s7 + $0x38] sm:$0xf0]  ;;  %v9623_v53 = vld [vmem:[%s21599_s7 + $0x8] sm:$0xf] }
 0x11f   :  { %1151 = vmatmul.bf16.vlgmr.msrb.gmra.mxu0 %v14482_v4  ;;  %1164 = vmatmul.bf16.vlgmr.msrb.gmra.mxu1 %v14482_v4  ;;  %v9633_v4 = vld [vmem:[%s21599_s7 + $0x30] sm:$0xf0]  ;;  %v9644_v40 = vor.u32 %v13295_v56, %v9641_v60  ;;  %v13388_v60 = vld [vmem:[%s21594_s3 + $0xcc] sm:$0xf0] }
 0x120   :  { %1330 = vmatpush.bf16.msrb.mxu2 %v9712_v45  ;;  %1359 = vmatpush.bf16.msra.mxu0 %v9672_v47  ;;  %v9636_v24 = vor.u32 %v13294_v1, %v9633_v4  ;;  %v9620_v45 = vor.u32 %v13290_v34, %v9617_v42  ;;  %v9624_v47 = vor.u32 %v13293_v7, %v9623_v53  ;;  %v9647_v4 = vld [vmem:[%s21599_s7 + $0x40] sm:$0xf]  ;;  %v9882_v34 = vld [vmem:[%s21594_s3 + $0xc8] sm:$0xf]  ;;  %v13389_v42 = vld [vmem:[%s21594_s3 + $0xd4] sm:$0xf0] }
 0x121   :  { %v9648_v56 = vor.u32 %v13300_v59, %v9647_v4  ;;  %v9631_v53 = vld [vmem:[%s21599_s7 + $0x20] sm:$0xf]  ;;  %v13296_v7 = vld [vmem:[%s21599_s7 + $0x2c] sm:$0xf0]  ;;  %v9850_v4 = vld [vmem:[%s21594_s3 + $0x88] sm:$0xf] }
 0x122   :  { %1372 = vmatpush.bf16.msra.mxu1 %v9676_v36  ;;  %1347 = vmatpush.bf16.msrb.mxu3 %v9652_v5  ;;  %v9625_v36 = vld [vmem:[%s21599_s7 + $0x18] sm:$0xf0]  ;;  %v9891_v5 = vor.u32 %v13392_v55, %v9890_v18  ;;  %v13385_v18 = vld [vmem:[%s21594_s3 + $0xb4] sm:$0xf0]  ;;  %v9615_v55 = vld [vmem:[%s21599_s7] sm:$0xf] }
 0x123   :  { %v9628_v57 = vor.u32 %v13291_v32, %v9625_v36  ;;  %v9858_v32 = vld [vmem:[%s21594_s3 + $0xa0] sm:$0xf]  ;;  %v13384_v36 = vld [vmem:[%s21594_s3 + $0xac] sm:$0xf0] }
 0x124   :  { %1331 = vmatpush.bf16.msrb.mxu2 %v9696_v61  ;;  %1360 = vmatpush.bf16.msra.mxu0 %v9656_v52  ;;  %v13390_v61 = vld [vmem:[%s21594_s3 + $0xe4] sm:$0xf]  ;;  %v13393_v52 = vld [vmem:[%s21594_s3 + $0xf4] sm:$0xf0] }
 0x125   :  { %v9899_v1 = vor.u32 %v13393_v52, %v9898_v30  ;;  %v9842_v30 = vld [vmem:[%s21594_s3 + $0x80] sm:$0xf]  ;;  %v13380_v52 = vld [vmem:[%s21594_s3 + $0x8c] sm:$0xf0] }
 0x126   :  { %1373 = vmatpush.bf16.msra.mxu1 %v9660_v8  ;;  %1348 = vmatpush.bf16.msrb.mxu3 %v9636_v24  ;;  %v9895_v8 = vor.u32 %v13390_v61, %v9892_v3  ;;  %v9876_v24 = vld [vmem:[%s21594_s3 + $0xd0] sm:$0xf0]  ;;  %v9863_v61 = vor.u32 %v13382_v48, %v9860_v54  ;;  %v13292_v3 = vld [vmem:[%s21599_s7 + $0xc] sm:$0xf0]  ;;  %v13370_v48 = vld [vmem:[%s21594_s3 + $0x44] sm:$0xf] }
 0x127   :  { %v9616_v59 = vor.u32 %v13292_v3, %v9615_v55  ;;  %v9812_v54 = vld [vmem:[%s21594_s3 + $0x50] sm:$0xf0]  ;;  %v13368_v3 = vld [vmem:[%s21594_s3 + $0x2c] sm:$0xf0] }
 0x128   :  { %1332 = vmatpush.bf16.msrb.mxu2 %v9680_v6  ;;  %1361 = vmatpush.bf16.msra.mxu0 %v9640_v63  ;;  %v13386_v6 = vld [vmem:[%s21594_s3 + $0xc4] sm:$0xf]  ;;  %v9875_v63 = vor.u32 %v13388_v60, %v9874_v22  ;;  %v13381_v22 = vld [vmem:[%s21594_s3 + $0x94] sm:$0xf0]  ;;  %v9815_v55 = vor.u32 %v13370_v48, %v9812_v54 }
 0x12a   :  { %1374 = vmatpush.bf16.msra.mxu1 %v9644_v40  ;;  %1349 = vmatpush.bf16.msrb.mxu3 %v9620_v45  ;;  %v9879_v40 = vor.u32 %v13386_v6, %v9876_v24  ;;  %v9883_v45 = vor.u32 %v13389_v42, %v9882_v34  ;;  %v9851_v6 = vor.u32 %v13381_v22, %v9850_v4  ;;  %v9826_v24 = vld [vmem:[%s21594_s3 + $0x60] sm:$0xf]  ;;  %v9828_v42 = vld [vmem:[%s21594_s3 + $0x70] sm:$0xf0] }
 0x12b   :  { %v426_v4 = vld [vmem:[%s21600_s6] sm:$0x3] }
 0x12c   :  { %1362 = vmatpush.bf16.msra.mxu0 %v9624_v47  ;;  %1333 = vmatpush.bf16.msrb.mxu2 %v9664_v62  ;;  %v9632_v47 = vor.u32 %v13296_v7, %v9631_v53  ;;  %v9866_v62 = vld [vmem:[%s21594_s3 + $0xa8] sm:$0xf]  ;;  %v13377_v53 = vld [vmem:[%s21594_s3 + $0x74] sm:$0xf0] }
 0x12e   :  { %1375 = vmatpush.bf16.msra.mxu1 %v9628_v57  ;;  %1728 = vmatpush.bf16.msra.mxu3 %v9891_v5  ;;  %v9859_v57 = vor.u32 %v13384_v36, %v9858_v32  ;;  %v9867_v5 = vor.u32 %v13385_v18, %v9866_v62  ;;  %v13372_v36 = vld [vmem:[%s21594_s3 + $0x4c] sm:$0xf0]  ;;  %v13373_v62 = vld [vmem:[%s21594_s3 + $0x54] sm:$0xf0] }
 0x130   :  { %1741 = vmatpush.bf16.msrb.mxu0 %v9895_v8  ;;  %1334 = vmatpush.bf16.msrb.mxu2 %v9648_v56  ;;  %v13378_v8 = vld [vmem:[%s21594_s3 + $0x84] sm:$0xf]  ;;  %v9843_v56 = vor.u32 %v13380_v52, %v9842_v30  ;;  %v9796_v52 = vld [vmem:[%s21594_s3 + $0x30] sm:$0xf0] }
 0x131   :  { %v13366_v30 = vld [vmem:[%s21594_s3 + $0x24] sm:$0xf] }
 0x132   :  { %1754 = vmatpush.bf16.msrb.mxu1 %v9899_v1  ;;  %1729 = vmatpush.bf16.msra.mxu3 %v9875_v63  ;;  %v9844_v1 = vld [vmem:[%s21594_s3 + $0x90] sm:$0xf0]  ;;  %v13376_v63 = vld [vmem:[%s21594_s3 + $0x6c] sm:$0xf0]  ;;  %v9799_v22 = vor.u32 %v13366_v30, %v9796_v52 }
 0x133   :  { %v9847_v60 = vor.u32 %v13378_v8, %v9844_v1  ;;  %v9827_v34 = vor.u32 %v13376_v63, %v9826_v24  ;;  %v9802_v8 = vld [vmem:[%s21594_s3 + $0x28] sm:$0xf]  ;;  %v13369_v1 = vld [vmem:[%s21594_s3 + $0x34] sm:$0xf0]  ;;  %v13362_v24 = vld [vmem:[%s21594_s3 + $0x4] sm:$0xf] }
 0x134   :  { %1742 = vmatpush.bf16.msrb.mxu0 %v9879_v40  ;;  %1335 = vmatpush.bf16.msrb.mxu2 %v9632_v47  ;;  %v13374_v40 = vld [vmem:[%s21594_s3 + $0x64] sm:$0xf]  ;;  %v9810_v47 = vld [vmem:[%s21594_s3 + $0x40] sm:$0xf]  ;;  %v9780_v63 = vld [vmem:[%s21594_s3 + $0x10] sm:$0xf0] }
 0x135   :  { %v9831_v7 = vor.u32 %v13374_v40, %v9828_v42  ;;  %v9811_v18 = vor.u32 %v13372_v36, %v9810_v47  ;;  %v9786_v40 = vld [vmem:[%s21594_s3 + $0x8] sm:$0xf]  ;;  %v15761_v42 = vperm.slane %v426_v4, 0 }
 0x136   :  { %1755 = vmatpush.bf16.msrb.mxu1 %v9883_v45  ;;  %1730 = vmatpush.bf16.msra.mxu3 %v9859_v57  ;;  %v9834_v45 = vld [vmem:[%s21594_s3 + $0x68] sm:$0xf] }
 0x137   :  { %v9835_v32 = vor.u32 %v13377_v53, %v9834_v45  ;;  %v9818_v57 = vld [vmem:[%s21594_s3 + $0x48] sm:$0xf]  ;;  %v15763_v45 = vperm.slane %v426_v4, 1 }
 0x138   :  { %1743 = vmatpush.bf16.msrb.mxu0 %v9863_v61  ;;  %1336 = vmatpush.bf16.msrb.mxu2 %v9616_v59  ;;  %v9819_v61 = vor.u32 %v13373_v62, %v9818_v57  ;;  %v13361_v62 = vld [vmem:[%s21602_s10 + $0x38] sm:$0xff] }
 0x13a   :  { %1756 = vmatpush.bf16.msrb.mxu1 %v9867_v5  ;;  %1731 = vmatpush.bf16.msra.mxu3 %v9843_v56  ;;  %v9794_v5 = vld [vmem:[%s21594_s3 + $0x20] sm:$0xf]  ;;  %v9803_v56 = vor.u32 %v13369_v1, %v9802_v8 }
 0x13b   :  { %v9795_v59 = vor.u32 %v13368_v3, %v9794_v5 }
 0x13c   :  { %1744 = vmatpush.bf16.msrb.mxu0 %v9847_v60  ;;  %v9778_v60 = vld [vmem:[%s21594_s3] sm:$0xf]  ;;  %1513 = vmatpush.bf16.msra.mxu2 %v13361_v62 }
 0x13d   :  { %v15822_v62 = vld [vmem:[%s21604_s9] sm:$0xf] }
 0x13e   :  { %1757 = vmatpush.bf16.msrb.mxu1 %v9851_v6  ;;  %1732 = vmatpush.bf16.msra.mxu3 %v9827_v34  ;;  %v13364_v6 = vld [vmem:[%s21594_s3 + $0xc] sm:$0xf0]  ;;  %v13365_v34 = vld [vmem:[%s21594_s3 + $0x14] sm:$0xf0] }
 0x13f   :  { %v9779_v53 = vor.u32 %v13364_v6, %v9778_v60 }
 0x140   :  { %1745 = vmatpush.bf16.msrb.mxu0 %v9831_v7  ;;  %v9783_v7 = vor.u32 %v13362_v24, %v9780_v63  ;;  %v13360_v24 = vld [vmem:[%s21602_s10 + $0x30] sm:$0xff]  ;;  %v13359_v63 = vld [vmem:[%s21602_s10 + $0x28] sm:$0xff] }
 0x141   :  { %1514 = vmatpush.bf16.msra.mxu2 %v13360_v24  ;;  %v13464_v24 = vld [vmem:[%s21598_s8 + $0xac] sm:$0xf0] }
 0x142   :  { %1758 = vmatpush.bf16.msrb.mxu1 %v9835_v32  ;;  %1733 = vmatpush.bf16.msra.mxu3 %v9811_v18  ;;  %v9787_v32 = vor.u32 %v13365_v34, %v9786_v40  ;;  %v13358_v40 = vld [vmem:[%s21602_s10 + $0x20] sm:$0xff]  ;;  %v13357_v34 = vld [vmem:[%s21602_s10 + $0x18] sm:$0xff] }
 0x144   :  { %1746 = vmatpush.bf16.msrb.mxu0 %v9815_v55 }
 0x145   :  { %1515 = vmatpush.bf16.msra.mxu2 %v13359_v63 }
 0x146   :  { %1759 = vmatpush.bf16.msrb.mxu1 %v9819_v61  ;;  %1734 = vmatpush.bf16.msra.mxu3 %v9795_v59  ;;  %v889_v61 = vld [vmem:[%s21603_s1] sm:$0xff] }
 0x148   :  { %1747 = vmatpush.bf16.msrb.mxu0 %v9799_v22 }
 0x149   :  { %1516 = vmatpush.bf16.msra.mxu2 %v13358_v40 }
 0x14a   :  { %1760 = vmatpush.bf16.msrb.mxu1 %v9803_v56  ;;  %1735 = vmatpush.bf16.msra.mxu3 %v9779_v53  ;;  %v13356_v53 = vld [vmem:[%s21602_s10 + $0x10] sm:$0xff] }
 0x14c   :  { %1748 = vmatpush.bf16.msrb.mxu0 %v9783_v7  ;;  %v13355_v7 = vld [vmem:[%s21602_s10 + $0x8] sm:$0xff] }
 0x14d   :  { %1517 = vmatpush.bf16.msra.mxu2 %v13357_v34 }
 0x14e   :  { %1761 = vmatpush.bf16.msrb.mxu1 %v9787_v32  ;;  %v10086_v32 = vld [vmem:[%s21598_s8 + $0xe0] sm:$0xf] }
 0x151   :  { %1518 = vmatpush.bf16.msra.mxu2 %v13356_v53  ;;  %v13383_v53 = vld [vmem:[%s21594_s3 + $0xac] sm:$0xf] }
 0x155   :  { %1519 = vmatpush.bf16.msra.mxu2 %v13355_v7  ;;  %v9868_v7 = vld [vmem:[%s21594_s3 + $0xb8] sm:$0xf0] }
 0x18c   :  { %v870_v47 = vpop.f32.mrf.mxu0  ;;  %v883_v36 = vpop.f32.mrf.mxu1 }
 0x18d   :  { %v871_v48 = vadd.f32 %v870_v47, %v15761_v42  ;;  %v884_v54 = vadd.f32 %v883_v36, %v15763_v45  ;;  %v13472_v47 = vld [vmem:[%s21598_s8 + $0xec] sm:$0xf0] }
 0x18e   :  { %v10087_v36 = vor.u32 %v13472_v47, %v10086_v32  ;;  %v15855_v32 = vperm.slane %v15822_v62, 0  ;;  %v15858_v47 = vperm.slane %v15822_v62, 1 }
 0x18f   :  { %1526 = vst [vmem:[%s21601_s12] sm:$0xff] %v871_v48  ;;  %v887_v57 = vmul.f32 1.442695, %v884_v54 }
 0x190   :  { %1527 = vst [vmem:[%s21601_s12 + $0x8] sm:$0xff] %v884_v54  ;;  %v15779_v5 = vpop.f32.mrf.mxu3  ;;  %v13391_v54 = vld [vmem:[%s21594_s3 + $0xec] sm:$0xf] }
 0x191   :  { %14220 = vpow2.f32 %v887_v57  ;;  %v9900_v57 = vld [vmem:[%s21594_s3 + $0xf8] sm:$0xf0] }
 0x194   :  { %v872_v18 = vpop.f32.mrf.mxu0  ;;  %v885_v55 = vpop.f32.mrf.mxu1 }
 0x195   :  { %v9903_v18 = vor.u32 %v13391_v54, %v9900_v57  ;;  %v10070_v55 = vld [vmem:[%s21598_s8 + $0xc0] sm:$0xf] }
 0x197   :  { %v14221_v3 = vpop.eup %14220 }
 0x198   :  { %v890_v30 = vmul.f32 %v14221_v3, %v889_v61  ;;  %v1141_v59 = vpop.f32.mrf.mxu3  ;;  %v13468_v61 = vld [vmem:[%s21598_s8 + $0xcc] sm:$0xf0] }
 0x199   :  { %v10071_v3 = vor.u32 %v13468_v61, %v10070_v55 }
 0x19a   :  { %v891_v52 = vadd.f32 %v890_v30, %v871_v48  ;;  %v13354_v48 = vld [vmem:[%s21602_s10] sm:$0xff]  ;;  %v15831_v30 = vperm.slane %v15822_v62, 2 }
 0x19b   :  { %1520 = vmatpush.bf16.msra.mxu2 %v13354_v48  ;;  %v13460_v48 = vld [vmem:[%s21598_s8 + $0x8c] sm:$0xf0] }
 0x19c   :  { %v892_v8 = vpack.c.bf16 %v891_v52, %v891_v52  ;;  %v1152_v1 = vpop.f32.mrf.mxu0  ;;  %v15781_v4 = vpop.f32.mrf.mxu1  ;;  %v13387_v52 = vld [vmem:[%s21594_s3 + $0xcc] sm:$0xf] }
 0x19e   :  { %1337 = vmatmul.bf16.vlgmr.msrb.gmra.mxu2 %v892_v8  ;;  %1350 = vmatmul.bf16.vlgmr.msrb.gmra.mxu3 %v892_v8  ;;  %v1126_v22 = vpop.f32.mrf.mxu2 }
 0x19f   :  { %1363 = vmatmul.bf16.vlgmr.msra.gmra.mxu0 %v892_v8  ;;  %1376 = vmatmul.bf16.vlgmr.msra.gmra.mxu1 %v892_v8  ;;  %v9884_v8 = vld [vmem:[%s21594_s3 + $0xd8] sm:$0xf0] }
 0x1a0   :  { %2201 = vmatpush.bf16.msra.mxu1 %v10087_v36  ;;  %1767 = vmatpush.bf16.msrb.mxu2 %v9903_v18  ;;  %v10038_v36 = vld [vmem:[%s21598_s8 + $0x80] sm:$0xf] }
 0x1a1   :  { %v10039_v55 = vor.u32 %v13460_v48, %v10038_v36  ;;  %v10006_v48 = vld [vmem:[%s21598_s8 + $0x40] sm:$0xf] }
 0x1a4   :  { %v1154_v56 = vpop.f32.mrf.mxu0  ;;  %v1167_v60 = vpop.f32.mrf.mxu1  ;;  %2202 = vmatpush.bf16.msra.mxu1 %v10071_v3 }
 0x1a5   :  { %v9887_v60 = vor.u32 %v13387_v52, %v9884_v8  ;;  %v13379_v52 = vld [vmem:[%s21594_s3 + $0x8c] sm:$0xf]  ;;  %v9852_v8 = vld [vmem:[%s21594_s3 + $0x98] sm:$0xf0] }
 0x1a6   :  { %v1128_v6 = vpop.f32.mrf.mxu2 }
 0x1a7   :  { %v10054_v6 = vld [vmem:[%s21598_s8 + $0xa0] sm:$0xf]  ;;  %1768 = vmatpush.bf16.msrb.mxu2 %v9887_v60 }
 0x1a8   :  { %v10055_v40 = vor.u32 %v13464_v24, %v10054_v6 }
 0x1aa   :  { %2203 = vmatpush.bf16.msra.mxu1 %v10055_v40 }
 0x1ae   :  { %1736 = vmatmul.bf16.vlgmr.msra.gmra.mxu3 %v15420_v58  ;;  %2204 = vmatpush.bf16.msra.mxu1 %v10039_v55 }
 0x1af   :  { %1749 = vmatmul.bf16.vlgmr.msrb.gmra.mxu0 %v15420_v58  ;;  %1762 = vmatmul.bf16.vlgmr.msrb.gmra.mxu1 %v15420_v58 }
 0x21c   :  { %v1364_v59 = vpop.f32.mrf.mxu0  ;;  %v15839_v56 = vpop.f32.mrf.mxu1 }
 0x21d   :  { %v1365_v63 = vadd.f32 %v1364_v59, %v1152_v1  ;;  %v9871_v1 = vor.u32 %v13383_v53, %v9868_v7  ;;  %v13375_v7 = vld [vmem:[%s21594_s3 + $0x6c] sm:$0xf] }
 0x21f   :  { %v1383_v34 = vadd.f32 %v1365_v63, %v15831_v30  ;;  %1769 = vmatpush.bf16.msrb.mxu2 %v9871_v1  ;;  %v13456_v63 = vld [vmem:[%s21598_s8 + $0x6c] sm:$0xf0]  ;;  %v9836_v1 = vld [vmem:[%s21594_s3 + $0x78] sm:$0xf0] }
 0x220   :  { %v9839_v36 = vor.u32 %v13375_v7, %v9836_v1  ;;  %v9974_v7 = vld [vmem:[%s21598_s8] sm:$0xf] }
 0x221   :  { %v9743_v54 = vmul.f32 -1.442695, %v1383_v34  ;;  %v1338_v57 = vpop.f32.mrf.mxu2  ;;  %v1351_v18 = vpop.f32.mrf.mxu3 }
 0x222   :  { %v1339_v61 = vadd.f32 %v1338_v57, %v1126_v22  ;;  %v1352_v3 = vadd.f32 %v1351_v18, %v15779_v5  ;;  %v9855_v22 = vor.u32 %v13379_v52, %v9852_v8  ;;  %v10022_v5 = vld [vmem:[%s21598_s8 + $0x60] sm:$0xf]  ;;  %v348_v52 = vadd.f32 %v14970_v13, %v14982_v20  ;;  %v13371_v8 = vld [vmem:[%s21594_s3 + $0x4c] sm:$0xf]  ;;  %v13448_v13 = vld [vmem:[%s21598_s8 + $0x2c] sm:$0xf0] }
 0x223   :  { %14222 = vpow2.f32 %v9743_v54  ;;  %v10023_v40 = vor.u32 %v13456_v63, %v10022_v5  ;;  %v13452_v54 = vld [vmem:[%s21598_s8 + $0x4c] sm:$0xf0] }
 0x224   :  { %v1381_v59 = vadd.f32 %v1339_v61, %v15855_v32  ;;  %v1382_v60 = vadd.f32 %v1352_v3, %v15858_v47  ;;  %v1366_v6 = vpop.f32.mrf.mxu0  ;;  %v1379_v24 = vpop.f32.mrf.mxu1  ;;  %1770 = vmatpush.bf16.msrb.mxu2 %v9855_v22  ;;  %v10007_v61 = vor.u32 %v13452_v54, %v10006_v48  ;;  %v319_v3 = vadd.f32 %v14963_v10, %v14972_v14  ;;  %v9990_v10 = vld [vmem:[%s21598_s8 + $0x20] sm:$0xf]  ;;  %v13444_v48 = vld [vmem:[%s21598_s8 + $0xc] sm:$0xf0] }
 0x225   :  { %2205 = vmatpush.bf16.msra.mxu1 %v10023_v40  ;;  %v9991_v40 = vor.u32 %v13448_v13, %v9990_v10 }
 0x226   :  { %v9741_v34 = vmul.f32 -1.442695, %v1381_v59  ;;  %v9742_v53 = vmul.f32 -1.442695, %v1382_v60  ;;  %v9820_v59 = vld [vmem:[%s21594_s3 + $0x58] sm:$0xf0] }
 0x227   :  { %v9823_v22 = vor.u32 %v13371_v8, %v9820_v59  ;;  %v15934_v8 = vperm.slane %v15822_v62, 3  ;;  %v1378_v59 = vadd.f32 %v15839_v56, %v15781_v4 }
 0x228   :  { %14224 = vpow2.f32 %v9741_v34  ;;  %1771 = vmatpush.bf16.msrb.mxu2 %v9839_v36  ;;  %v13367_v34 = vld [vmem:[%s21594_s3 + $0x2c] sm:$0xf] }
 0x229   :  { %v14223_v57 = vpop.eup %14222  ;;  %14226 = vpow2.f32 %v9742_v53  ;;  %v1340_v18 = vpop.f32.mrf.mxu2  ;;  %2206 = vmatpush.bf16.msra.mxu1 %v10007_v61  ;;  %v9804_v53 = vld [vmem:[%s21594_s3 + $0x38] sm:$0xf0] }
 0x22a   :  { %v1353_v55 = vpop.f32.mrf.mxu3  ;;  %v15903_v60 = vadd.f32 1.0, %v14223_v57  ;;  %v9807_v36 = vor.u32 %v13367_v34, %v9804_v53  ;;  %v9975_v18 = vor.u32 %v13444_v48, %v9974_v7  ;;  %v1384_v34 = vadd.f32 %v1378_v59, %v15934_v8 }
 0x22c   :  { %v1750_v6 = vpop.f32.mrf.mxu0  ;;  %v1763_v24 = vpop.f32.mrf.mxu1  ;;  %1772 = vmatpush.bf16.msrb.mxu2 %v9823_v22  ;;  %14228 = vrcp.f32 %v15903_v60  ;;  %vm1432_vm5 = vweird.f32 %v15903_v60 }
 0x22d   :  { %v15911_v5 = vadd.f32 %v1750_v6, %v319_v3  ;;  %v15913_v63 = vadd.f32 %v1763_v24, %v348_v52  ;;  %2207 = vmatpush.bf16.msra.mxu1 %v9991_v40  ;;  %v290_v3 = vadd.f32 %v14961_v9, %v14968_v12  ;;  %v13363_v52 = vld [vmem:[%s21594_s3 + $0xc] sm:$0xf]  ;;  %v9788_v6 = vld [vmem:[%s21594_s3 + $0x18] sm:$0xf0] }
 0x22e   :  { %v14225_v1 = vpop.eup %14224  ;;  %v9791_v10 = vor.u32 %v13363_v52, %v9788_v6 }
 0x22f   :  { %v14227_v54 = vpop.eup %14226  ;;  %v1394_v57 = vadd.f32 1.0, %v14225_v1 }
 0x230   :  { %v1395_v55 = vadd.f32 1.0, %v14227_v54  ;;  %1773 = vmatpush.bf16.msrb.mxu2 %v9807_v36 }
 0x231   :  { %14230 = vrcp.f32 %v1394_v57  ;;  %2208 = vmatpush.bf16.msra.mxu1 %v9975_v18  ;;  %v1408_v36 = vand.u32 2147483648, %v1394_v57  ;;  %v1406_v18 = vand.u32 2147483647, %v1394_v57  ;;  %vm1402_vm14 = vweird.f32 %v1394_v57 }
 0x232   :  { %v1737_v61 = vpop.f32.mrf.mxu3  ;;  %14232 = vrcp.f32 %v1395_v55  ;;  %v14229_v13 = vpop.eup %14228  ;;  %v1421_v52 = vand.u32 2147483647, %v1395_v55  ;;  %vm1417_vm0 = vweird.f32 %v1395_v55 }
 0x233   :  { %v15941_v24 = vadd.f32 %v1737_v61, %v290_v3  ;;  %v1428_v4 = vmul.f32 %v14229_v13, %v15903_v60  ;;  %14234 = vtanh.f32 %v1384_v34  ;;  %v1423_v61 = vand.u32 2147483648, %v1395_v55 }
 0x234   :  { %v1752_v9 = vpop.f32.mrf.mxu0  ;;  %v1765_v22 = vpop.f32.mrf.mxu1  ;;  %1774 = vmatpush.bf16.msrb.mxu2 %v9791_v10  ;;  %vm1407_vm1 = vcmp.eq.f32.partialorder %v1406_v18, 8.507059e+37  ;;  %vm1422_vm3 = vcmp.eq.f32.partialorder %v1421_v52, 8.507059e+37  ;;  %vm1433_vm4 = vweird.f32 %v14229_v13 }
 0x235   :  { %v1429_v6 = vsub.f32 1.0, %v1428_v4  ;;  %v1409_v9 = vor.u32 1.1754944e-38, %v1408_v36  ;;  %v1424_v34 = vor.u32 1.1754944e-38, %v1423_v61  ;;  %vm1434_vm6 = vmor %vm1432_vm5, %vm1433_vm4  ;;  %v13470_v36 = vld [vmem:[%s21598_s8 + $0xe4] sm:$0xf] }
 0x237   :  { %v14231_v40 = vpop.eup %14230 }
 0x238   :  { %v14233_v62 = vpop.eup %14232  ;;  %v1398_v53 = vmul.f32 %v14231_v40, %v1394_v57  ;;  %vm1403_vm12 = vweird.f32 %v14231_v40  ;;  %v1438_v57 = vand.u32 2147483648, %v15903_v60 }
 0x239   :  { %v1413_v7 = vmul.f32 %v14233_v62, %v1395_v55  ;;  %vm1418_vm13 = vweird.f32 %v14233_v62  ;;  %vm1404_vm15 = vmor %vm1402_vm14, %vm1403_vm12  ;;  %v1436_v55 = vand.u32 2147483647, %v15903_v60  ;;  %v13466_v60 = vld [vmem:[%s21598_s8 + $0xc4] sm:$0xf] }
 0x23a   :  { %v1739_v1 = vpop.f32.mrf.mxu3  ;;  %v1399_v56 = vsub.f32 1.0, %v1398_v53  ;;  %vm1419_vm2 = vmor %vm1417_vm0, %vm1418_vm13  ;;  %v14235_v53 = vpop.eup %14234 }
 0x23b   :  { %v1414_v48 = vsub.f32 1.0, %v1413_v7  ;;  %vm1437_vm7 = vcmp.eq.f32.partialorder %v1436_v55, 8.507059e+37  ;;  %v9992_v55 = vld [vmem:[%s21598_s8 + $0x30] sm:$0xf0] }
 0x23c   :  { %v1400_v54 = vmul.f32 %v14231_v40, %v1399_v56  ;;  %v1430_v56 = vmul.f32 %v14229_v13, %v1429_v6  ;;  %v13462_v6 = vld [vmem:[%s21598_s8 + $0xa4] sm:$0xf] }
 0x23d   :  { %v1415_v3 = vmul.f32 %v14233_v62, %v1414_v48 }
 0x23e   :  { %v1401_v59 = vadd.f32 %v14231_v40, %v1400_v54  ;;  %v1431_v4 = vadd.f32 %v14229_v13, %v1430_v56  ;;  %v13450_v56 = vld [vmem:[%s21598_s8 + $0x44] sm:$0xf] }
 0x23f   :  { %v1416_v22 = vadd.f32 %v14233_v62, %v1415_v3 }
 0x240   :  { %v1405_v10 = vsel %vm1404_vm15, %v14231_v40, %v1401_v59  ;;  %v1435_v40 = vsel %vm1434_vm6, %v14229_v13, %v1431_v4  ;;  %v10072_v13 = vld [vmem:[%s21598_s8 + $0xd0] sm:$0xf0] }
 0x241   :  { %v1410_v7 = vsel %vm1407_vm1, %v1409_v9, %v1405_v10  ;;  %v1420_v1 = vsel %vm1419_vm2, %v14233_v62, %v1416_v22  ;;  %v1439_v62 = vor.u32 1.1754944e-38, %v1438_v57  ;;  %v10075_v52 = vor.u32 %v13466_v60, %v10072_v13  ;;  %v10056_v59 = vld [vmem:[%s21598_s8 + $0xb0] sm:$0xf0]  ;;  %v13458_v22 = vld [vmem:[%s21598_s8 + $0x84] sm:$0xf] }
 0x242   :  { %v1444_v50 = vmul.f32 %v14235_v53, %v1410_v7  ;;  %v1425_v48 = vsel %vm1422_vm3, %v1424_v34, %v1420_v1  ;;  %v10059_v9 = vor.u32 %v13462_v6, %v10056_v59  ;;  %v10040_v10 = vld [vmem:[%s21598_s8 + $0x90] sm:$0xf0]  ;;  %v13454_v53 = vld [vmem:[%s21598_s8 + $0x64] sm:$0xf]  ;;  %v9957_v13 = vld [vmem:[%s21597_s5 + $0x60] sm:$0xf] }
 0x243   :  { %v1443_v44 = vmul.f32 0.0, %v1425_v48  ;;  %v1440_v54 = vsel %vm1437_vm7, %v1439_v62, %v1435_v40  ;;  %v10043_v34 = vor.u32 %v13458_v22, %v10040_v10  ;;  %v10024_v7 = vld [vmem:[%s21598_s8 + $0x70] sm:$0xf0]  ;;  %v13446_v57 = vld [vmem:[%s21598_s8 + $0x24] sm:$0xf] }
 0x244   :  { %v10027_v1 = vor.u32 %v13454_v53, %v10024_v7  ;;  %v10008_v48 = vld [vmem:[%s21598_s8 + $0x50] sm:$0xf0]  ;;  %v9995_v40 = vor.u32 %v13446_v57, %v9992_v55  ;;  %v13442_v62 = vld [vmem:[%s21598_s8 + $0x4] sm:$0xf]  ;;  %v9949_v22 = vld [vmem:[%s21597_s5 + $0x50] sm:$0xf] }
 0x245   :  { %v15945_v16 = vadd.f32 %v1444_v50, %v1443_v44  ;;  %v10088_v44 = vld [vmem:[%s21598_s8 + $0xf0] sm:$0xf0]  ;;  %v10011_v4 = vor.u32 %v13450_v56, %v10008_v48  ;;  %v13406_v6 = vld [vmem:[%s21597_s5 + $0x64] sm:$0xf]  ;;  %v13405_v10 = vld [vmem:[%s21597_s5 + $0x54] sm:$0xf0] }
 0x246   :  { %v10091_v61 = vor.u32 %v13470_v36, %v10088_v44  ;;  %v9965_v44 = vld [vmem:[%s21597_s5 + $0x70] sm:$0xf]  ;;  %v13404_v53 = vld [vmem:[%s21597_s5 + $0x54] sm:$0xf]  ;;  %v9951_v7 = vld [vmem:[%s21597_s5 + $0x58] sm:$0xf0] }
 0x247   :  { %14236 = vtanh.f32 %v15945_v16  ;;  %v9954_v56 = vor.u32 %v13404_v53, %v9951_v7  ;;  %v9941_v48 = vld [vmem:[%s21597_s5 + $0x40] sm:$0xf]  ;;  %v13402_v57 = vld [vmem:[%s21597_s5 + $0x44] sm:$0xf]  ;;  %v9905_v55 = vmul.f32 -1.442695, %v15911_v5 }
 0x248   :  { %v13400_v5 = vld [vmem:[%s21597_s5 + $0x34] sm:$0xf]  ;;  %v9917_v7 = vld [vmem:[%s21597_s5 + $0x10] sm:$0xf] }
 0x249   :  { %14238 = vpow2.f32 %v9905_v55 }
 0x24d   :  { %v14237_v50 = vpop.eup %14236 }
 0x24e   :  { %v1447_v18 = vmul.f32 %v14237_v50, %v1440_v54  ;;  %v13409_v50 = vld [vmem:[%s21597_s5 + $0x74] sm:$0xf0]  ;;  %v13408_v54 = vld [vmem:[%s21597_s5 + $0x74] sm:$0xf] }
 0x250   :  { %v15957_v3 = vpack.c.bf16 %v1447_v18, %v1447_v18  ;;  %v9966_v18 = vor.u32 %v13409_v50, %v9965_v44  ;;  %v13401_v44 = vld [vmem:[%s21597_s5 + $0x34] sm:$0xf0]  ;;  %v9935_v50 = vld [vmem:[%s21597_s5 + $0x38] sm:$0xf0] }
 0x252   :  { %1521 = vmatmul.bf16.vlgmr.msra.gmra.mxu2 %v15957_v3  ;;  %2209 = vmatmul.bf16.vlgmr.msra.gmra.mxu1 %v15957_v3 }
 0x253   :  { %2214 = vmatpush.bf16.msra.mxu2 %v10091_v61  ;;  %v9967_v61 = vld [vmem:[%s21597_s5 + $0x78] sm:$0xf0]  ;;  %1944 = vmatpush.bf16.msrb.mxu3 %v9966_v18 }
 0x254   :  { %v9970_v60 = vor.u32 %v13408_v54, %v9967_v61  ;;  %v9904_v54 = vmul.f32 -1.442695, %v15941_v24  ;;  %v9938_v61 = vor.u32 %v13400_v5, %v9935_v50  ;;  %v13399_v24 = vld [vmem:[%s21597_s5 + $0x24] sm:$0xf0]  ;;  %v13473_v50 = vld [vmem:[%s21598_s8 + $0xf4] sm:$0xf0] }
 0x255   :  { %v10094_v5 = vld [vmem:[%s21598_s8 + $0xe8] sm:$0xf] }
 0x256   :  { %1957 = vmatpush.bf16.msra.mxu0 %v9970_v60  ;;  %14240 = vpow2.f32 %v9904_v54  ;;  %v14239_v60 = vpop.eup %14238 }
 0x257   :  { %2215 = vmatpush.bf16.msra.mxu2 %v10075_v52  ;;  %v13407_v52 = vld [vmem:[%s21597_s5 + $0x64] sm:$0xf0] }
 0x258   :  { %v9958_v59 = vor.u32 %v13407_v52, %v9957_v13  ;;  %v16067_v52 = vadd.f32 1.0, %v14239_v60  ;;  %v10095_v60 = vor.u32 %v13473_v50, %v10094_v5 }
 0x25a   :  { %1945 = vmatpush.bf16.msrb.mxu3 %v9958_v59  ;;  %v9925_v59 = vld [vmem:[%s21597_s5 + $0x20] sm:$0xf]  ;;  %vm1816_vm9 = vweird.f32 %v16067_v52 }
 0x25b   :  { %2216 = vmatpush.bf16.msra.mxu2 %v10059_v9  ;;  %v9959_v9 = vld [vmem:[%s21597_s5 + $0x68] sm:$0xf0] }
 0x25c   :  { %v14241_v13 = vpop.eup %14240 }
 0x25f   :  { %2217 = vmatpush.bf16.msra.mxu2 %v10043_v34  ;;  %v9962_v34 = vor.u32 %v13406_v6, %v9959_v9  ;;  %v9906_v6 = vmul.f32 -1.442695, %v15913_v63  ;;  %v13398_v9 = vld [vmem:[%s21597_s5 + $0x24] sm:$0xf] }
 0x261   :  { %1958 = vmatpush.bf16.msra.mxu0 %v9962_v34  ;;  %v16082_v34 = vadd.f32 1.0, %v14241_v13  ;;  %14242 = vpow2.f32 %v9906_v6  ;;  %v13471_v13 = vld [vmem:[%s21598_s8 + $0xec] sm:$0xf]  ;;  %v10096_v6 = vld [vmem:[%s21598_s8 + $0xf8] sm:$0xf0] }
 0x262   :  { %1775 = vmatmul.bf16.vlgmr.msrb.gmra.mxu2 %v15420_v58  ;;  %v9976_v58 = vld [vmem:[%s21598_s8 + $0x10] sm:$0xf0]  ;;  %14244 = vrcp.f32 %v16067_v52 }
 0x263   :  { %2218 = vmatpush.bf16.msra.mxu2 %v10027_v1  ;;  %v9979_v36 = vor.u32 %v13442_v62, %v9976_v58  ;;  %v9950_v1 = vor.u32 %v13405_v10, %v9949_v22  ;;  %v9943_v62 = vld [vmem:[%s21597_s5 + $0x48] sm:$0xf0]  ;;  %v9926_v22 = vor.u32 %v13399_v24, %v9925_v59  ;;  %14246 = vrcp.f32 %v16082_v34  ;;  %v10078_v59 = vld [vmem:[%s21598_s8 + $0xc8] sm:$0xf] }
 0x264   :  { %v9946_v58 = vor.u32 %v13402_v57, %v9943_v62  ;;  %v9927_v10 = vld [vmem:[%s21597_s5 + $0x28] sm:$0xf0]  ;;  %v14203_v57 = vld [vmem:[%s21605_s11] ss:$0 sm:$0xff]  ;;  %v13395_v62 = vld [vmem:[%s21597_s5 + $0x4] sm:$0xf0]  ;;  %vm1801_vm12 = vweird.f32 %v16082_v34 }
 0x265   :  { %1946 = vmatpush.bf16.msrb.mxu3 %v9950_v1  ;;  %1959 = vmatpush.bf16.msra.mxu0 %v9954_v56  ;;  %v9930_v63 = vor.u32 %v13398_v9, %v9927_v10  ;;  %v13397_v1 = vld [vmem:[%s21597_s5 + $0x14] sm:$0xf0]  ;;  %v13396_v56 = vld [vmem:[%s21597_s5 + $0x14] sm:$0xf] }
 0x266   :  { %v13469_v10 = vld [vmem:[%s21598_s8 + $0xd4] sm:$0xf0] }
 0x267   :  { %2219 = vmatpush.bf16.msra.mxu2 %v10011_v4  ;;  %v13403_v4 = vld [vmem:[%s21597_s5 + $0x44] sm:$0xf0]  ;;  %v14243_v54 = vpop.eup %14242 }
 0x268   :  { %v16130_v24 = vpop.eup %14244 }
 0x269   :  { %1960 = vmatpush.bf16.msra.mxu0 %v9946_v58  ;;  %v13394_v58 = vld [vmem:[%s21597_s5 + $0x4] sm:$0xf]  ;;  %vm1817_vm8 = vweird.f32 %v16130_v24 }
 0x26a   :  { %vm16218_vm11 = vmor %vm1816_vm9, %vm1817_vm8 }
 0x26b   :  { %2220 = vmatpush.bf16.msra.mxu2 %v9995_v40  ;;  %v9942_v40 = vor.u32 %v13403_v4, %v9941_v48  ;;  %v9918_v48 = vor.u32 %v13397_v1, %v9917_v7  ;;  %v9919_v4 = vld [vmem:[%s21597_s5 + $0x18] sm:$0xf0] }
 0x26c   :  { %v9922_v55 = vor.u32 %v13396_v56, %v9919_v4  ;;  %v10080_v7 = vld [vmem:[%s21598_s8 + $0xd8] sm:$0xf0]  ;;  %v16141_v56 = vpop.eup %14246  ;;  %v1812_v4 = vmul.f32 %v16130_v24, %v16067_v52 }
 0x26d   :  { %1947 = vmatpush.bf16.msrb.mxu3 %v9942_v40  ;;  %1961 = vmatpush.bf16.msra.mxu0 %v9938_v61  ;;  %v9909_v40 = vld [vmem:[%s21597_s5] sm:$0xf]  ;;  %vm1802_vm10 = vweird.f32 %v16141_v56 }
 0x26e   :  { %v1813_v50 = vsub.f32 1.0, %v1812_v4  ;;  %vm16236_vm13 = vmor %vm1801_vm12, %vm1802_vm10 }
 0x26f   :  { %2221 = vmatpush.bf16.msra.mxu2 %v9979_v36  ;;  %v9933_v36 = vld [vmem:[%s21597_s5 + $0x30] sm:$0xf] }
 0x270   :  { %v9934_v18 = vor.u32 %v13401_v44, %v9933_v36  ;;  %v9910_v36 = vor.u32 %v13395_v62, %v9909_v40  ;;  %v9911_v44 = vld [vmem:[%s21597_s5 + $0x8] sm:$0xf0]  ;;  %v10062_v40 = vld [vmem:[%s21598_s8 + $0xa8] sm:$0xf]  ;;  %v13465_v62 = vld [vmem:[%s21598_s8 + $0xb4] sm:$0xf0] }
 0x271   :  { %1962 = vmatpush.bf16.msra.mxu0 %v9930_v63  ;;  %v9914_v61 = vor.u32 %v13394_v58, %v9911_v44  ;;  %v13467_v63 = vld [vmem:[%s21598_s8 + $0xcc] sm:$0xf]  ;;  %v1797_v44 = vmul.f32 %v16141_v56, %v16082_v34  ;;  %v10063_v5 = vor.u32 %v13465_v62, %v10062_v40  ;;  %v377_v40 = vadd.f32 %v14974_v15, %v14984_v21 }
 0x272   :  { %2222 = vmatmul.bf16.vlgmr.msra.gmra.mxu2 %v15957_v3  ;;  %1948 = vmatpush.bf16.msrb.mxu3 %v9934_v18  ;;  %v13463_v58 = vld [vmem:[%s21598_s8 + $0xac] sm:$0xf] }
 0x275   :  { %1963 = vmatpush.bf16.msra.mxu0 %v9922_v55  ;;  %v10083_v55 = vor.u32 %v13467_v63, %v10080_v7  ;;  %v10030_v63 = vld [vmem:[%s21598_s8 + $0x68] sm:$0xf]  ;;  %v13457_v7 = vld [vmem:[%s21598_s8 + $0x74] sm:$0xf0] }
 0x276   :  { %1949 = vmatpush.bf16.msrb.mxu3 %v9926_v22  ;;  %v10099_v22 = vor.u32 %v13471_v13, %v10096_v6  ;;  %v13459_v13 = vld [vmem:[%s21598_s8 + $0x8c] sm:$0xf]  ;;  %v10048_v6 = vld [vmem:[%s21598_s8 + $0x98] sm:$0xf0]  ;;  %v10031_v62 = vor.u32 %v13457_v7, %v10030_v63  ;;  %v9998_v7 = vld [vmem:[%s21598_s8 + $0x28] sm:$0xf] }
 0x279   :  { %1964 = vmatpush.bf16.msra.mxu0 %v9914_v61  ;;  %v10046_v61 = vld [vmem:[%s21598_s8 + $0x88] sm:$0xf] }
 0x27a   :  { %1950 = vmatpush.bf16.msrb.mxu3 %v9918_v48  ;;  %v10079_v48 = vor.u32 %v13469_v10, %v10078_v59  ;;  %v1798_v59 = vsub.f32 1.0, %v1797_v44  ;;  %v10051_v10 = vor.u32 %v13459_v13, %v10048_v6  ;;  %v1820_v6 = vand.u32 2147483647, %v16067_v52 }
 0x27c   :  { %vm1821_vm14 = vcmp.eq.f32.partialorder %v1820_v6, 8.507059e+37  ;;  %v13438_v6 = vld [vmem:[%s21599_s7 + $0xe4] sm:$0xf] }
 0x27d   :  { %2240 = vmatpush.bf16.msrb.mxu0 %v10099_v22  ;;  %v1814_v22 = vmul.f32 %v16130_v24, %v1813_v50  ;;  %v13453_v50 = vld [vmem:[%s21598_s8 + $0x54] sm:$0xf0] }
 0x27e   :  { %1951 = vmatpush.bf16.msrb.mxu3 %v9910_v36  ;;  %v10064_v36 = vld [vmem:[%s21598_s8 + $0xb8] sm:$0xf0] }
 0x281   :  { %2241 = vmatpush.bf16.msrb.mxu0 %v10083_v55  ;;  %v1799_v55 = vmul.f32 %v16141_v56, %v1798_v59  ;;  %v10216_v59 = vld [vmem:[%s21599_s7 + $0xf0] sm:$0xf0] }
 0x282   :  { %2227 = vmatpush.bf16.msra.mxu3 %v10095_v60  ;;  %v13461_v60 = vld [vmem:[%s21598_s8 + $0x94] sm:$0xf0] }
 0x283   :  { %v1800_v13 = vadd.f32 %v16141_v56, %v1799_v55 }
 0x286   :  { %2228 = vmatpush.bf16.msra.mxu3 %v10079_v48  ;;  %v10032_v48 = vld [vmem:[%s21598_s8 + $0x78] sm:$0xf0] }
 0x28a   :  { %2229 = vmatpush.bf16.msra.mxu3 %v10063_v5  ;;  %v10014_v5 = vld [vmem:[%s21598_s8 + $0x48] sm:$0xf] }
 0x2cf   :  { %v16084_v53 = vpop.f32.mrf.mxu1 }
 0x2d5   :  { %v1522_v18 = vpop.f32.mrf.mxu2 }
 0x2d6   :  { %v1523_v9 = vadd.f32 %v14203_v57, %v1522_v18  ;;  %v16148_v57 = vadd.f32 1.0, %v14243_v54  ;;  %v10067_v18 = vor.u32 %v13463_v58, %v10064_v36  ;;  %v1815_v36 = vadd.f32 %v16130_v24, %v1814_v22 }
 0x2d7   :  { %v2212_v1 = vpop.f32.mrf.mxu1  ;;  %v1807_v22 = vand.u32 2147483648, %v16082_v34 }
 0x2d8   :  { %1528 = vst [vmem:[%s21606_s13] sm:$0xff] %v1523_v9  ;;  %14248 = vrcp.f32 %v16148_v57  ;;  %v10047_v9 = vor.u32 %v13461_v60, %v10046_v61  ;;  %2242 = vmatpush.bf16.msrb.mxu0 %v10067_v18  ;;  %v13455_v1 = vld [vmem:[%s21598_s8 + $0x6c] sm:$0xf]  ;;  %v10016_v60 = vld [vmem:[%s21598_s8 + $0x58] sm:$0xf0]  ;;  %v1819_v63 = vsel %vm16218_vm11, %v16130_v24, %v1815_v36  ;;  %vm1831_vm1 = vweird.f32 %v16148_v57 }
 0x2d9   :  { %v10035_v44 = vor.u32 %v13455_v1, %v10032_v48  ;;  %v13451_v61 = vld [vmem:[%s21598_s8 + $0x4c] sm:$0xf]  ;;  %v13449_v1 = vld [vmem:[%s21598_s8 + $0x34] sm:$0xf0] }
 0x2da   :  { %2230 = vmatpush.bf16.msra.mxu3 %v10047_v9  ;;  %v1805_v9 = vand.u32 2147483647, %v16082_v34  ;;  %v13447_v24 = vld [vmem:[%s21598_s8 + $0x2c] sm:$0xf]  ;;  %v13430_v34 = vld [vmem:[%s21599_s7 + $0xa4] sm:$0xf] }
 0x2dc   :  { %2243 = vmatpush.bf16.msrb.mxu0 %v10051_v10  ;;  %v10015_v10 = vor.u32 %v13453_v50, %v10014_v5  ;;  %vm1806_vm15 = vcmp.eq.f32.partialorder %v1805_v9, 8.507059e+37 }
 0x2dd   :  { %v1524_v54 = vpop.f32.mrf.mxu2 }
 0x2de   :  { %v16190_v4 = vpop.eup %14248  ;;  %v1822_v54 = vand.u32 2147483648, %v16067_v52  ;;  %2231 = vmatpush.bf16.msra.mxu3 %v10031_v62  ;;  %v10019_v52 = vor.u32 %v13451_v61, %v10016_v60  ;;  %v1804_v62 = vsel %vm16236_vm13, %v16141_v56, %v1800_v13  ;;  %v13443_v56 = vld [vmem:[%s21598_s8 + $0xc] sm:$0xf]  ;;  %v9984_v13 = vld [vmem:[%s21598_s8 + $0x18] sm:$0xf0] }
 0x2df   :  { %v1827_v15 = vmul.f32 %v16190_v4, %v16148_v57  ;;  %vm1832_vm0 = vweird.f32 %v16190_v4 }
 0x2e0   :  { %2244 = vmatpush.bf16.msrb.mxu0 %v10035_v44  ;;  %v1823_v48 = vor.u32 1.1754944e-38, %v1822_v54  ;;  %v9999_v44 = vor.u32 %v13449_v1, %v9998_v7  ;;  %v9982_v54 = vld [vmem:[%s21598_s8 + $0x8] sm:$0xf]  ;;  %v10200_v7 = vld [vmem:[%s21599_s7 + $0xd0] sm:$0xf0]  ;;  %vm16289_vm2 = vmor %vm1831_vm1, %vm1832_vm0 }
 0x2e1   :  { %v1828_v55 = vsub.f32 1.0, %v1827_v15  ;;  %v13445_v15 = vld [vmem:[%s21598_s8 + $0x14] sm:$0xf0] }
 0x2e2   :  { %v1824_v36 = vsel %vm1821_vm14, %v1823_v48, %v1819_v63  ;;  %2232 = vmatpush.bf16.msra.mxu3 %v10015_v10  ;;  %v10219_v10 = vor.u32 %v13438_v6, %v10216_v59  ;;  %v9983_v63 = vor.u32 %v13445_v15, %v9982_v54  ;;  %v9987_v48 = vor.u32 %v13443_v56, %v9984_v13  ;;  %v10214_v54 = vld [vmem:[%s21599_s7 + $0xe0] sm:$0xf]  ;;  %v13440_v15 = vld [vmem:[%s21599_s7 + $0xec] sm:$0xf0]  ;;  %v10224_v13 = vld [vmem:[%s21599_s7 + $0xf8] sm:$0xf0] }
 0x2e3   :  { %v1829_v61 = vmul.f32 %v16190_v4, %v1828_v55  ;;  %v1842_v9 = vmul.f32 %v1824_v36, %v15321_v41  ;;  %v10198_v6 = vld [vmem:[%s21599_s7 + $0xc0] sm:$0xf] }
 0x2e4   :  { %2245 = vmatpush.bf16.msrb.mxu0 %v10019_v52  ;;  %v13434_v52 = vld [vmem:[%s21599_s7 + $0xc4] sm:$0xf]  ;;  %2426 = vmatpush.bf16.msrb.mxu2 %v10219_v10  ;;  %v13436_v10 = vld [vmem:[%s21599_s7 + $0xcc] sm:$0xf0] }
 0x2e5   :  { %v1776_v58 = vpop.f32.mrf.mxu2  ;;  %v10203_v55 = vor.u32 %v13434_v52, %v10200_v7  ;;  %v1830_v41 = vadd.f32 %v16190_v4, %v1829_v61  ;;  %v10215_v61 = vor.u32 %v13440_v15, %v10214_v54  ;;  %v13422_v52 = vld [vmem:[%s21599_s7 + $0x64] sm:$0xf]  ;;  %v10152_v7 = vld [vmem:[%s21599_s7 + $0x70] sm:$0xf0] }
 0x2e6   :  { %v1783_v18 = vadd.f32 %v1776_v58, %v377_v40  ;;  %v10000_v40 = vld [vmem:[%s21598_s8 + $0x38] sm:$0xf0]  ;;  %v1808_v58 = vor.u32 1.1754944e-38, %v1807_v22  ;;  %2233 = vmatpush.bf16.msra.mxu3 %v9999_v44  ;;  %v13418_v54 = vld [vmem:[%s21599_s7 + $0x44] sm:$0xf] }
 0x2e7   :  { %v10003_v50 = vor.u32 %v13447_v24, %v10000_v40  ;;  %v10184_v24 = vld [vmem:[%s21599_s7 + $0xb0] sm:$0xf0]  ;;  %v1835_v40 = vand.u32 2147483647, %v16148_v57  ;;  %2413 = vmatpush.bf16.msrb.mxu1 %v10215_v61 }
 0x2e8   :  { %14250 = vtanh.f32 %v1783_v18  ;;  %v1809_v60 = vsel %vm1806_vm15, %v1808_v58, %v1804_v62  ;;  %v1837_v62 = vand.u32 2147483648, %v16148_v57  ;;  %2427 = vmatpush.bf16.msrb.mxu2 %v10203_v55  ;;  %v10187_v44 = vor.u32 %v13430_v34, %v10184_v24  ;;  %v10168_v57 = vld [vmem:[%s21599_s7 + $0x90] sm:$0xf0]  ;;  %v10206_v34 = vld [vmem:[%s21599_s7 + $0xc8] sm:$0xf] }
 0x2e9   :  { %2246 = vmatpush.bf16.msrb.mxu0 %v10003_v50  ;;  %v1834_v50 = vsel %vm16289_vm2, %v16190_v4, %v1830_v41  ;;  %vm1836_vm3 = vcmp.eq.f32.partialorder %v1835_v40, 8.507059e+37  ;;  %v13441_v4 = vld [vmem:[%s21599_s7 + $0xf4] sm:$0xf0]  ;;  %v10182_v24 = vld [vmem:[%s21599_s7 + $0xa0] sm:$0xf] }
 0x2ea   :  { %2234 = vmatpush.bf16.msra.mxu3 %v9983_v63  ;;  %v1838_v56 = vor.u32 1.1754944e-38, %v1837_v62  ;;  %v13432_v40 = vld [vmem:[%s21599_s7 + $0xac] sm:$0xf0]  ;;  %v13437_v58 = vld [vmem:[%s21599_s7 + $0xd4] sm:$0xf0] }
 0x2eb   :  { %v10183_v15 = vor.u32 %v13432_v40, %v10182_v24  ;;  %v10207_v61 = vor.u32 %v13437_v58, %v10206_v34  ;;  %v13427_v34 = vld [vmem:[%s21599_s7 + $0x8c] sm:$0xf]  ;;  %v10176_v24 = vld [vmem:[%s21599_s7 + $0x98] sm:$0xf0] }
 0x2ec   :  { %2428 = vmatpush.bf16.msrb.mxu2 %v10187_v44  ;;  %v13435_v44 = vld [vmem:[%s21599_s7 + $0xcc] sm:$0xf] }
 0x2ed   :  { %v1778_v5 = vpop.f32.mrf.mxu2  ;;  %2247 = vmatpush.bf16.msrb.mxu0 %v9987_v48  ;;  %v10199_v48 = vor.u32 %v13436_v10, %v10198_v6  ;;  %v13433_v6 = vld [vmem:[%s21599_s7 + $0xb4] sm:$0xf0] }
 0x2ee   :  { %v14251_v18 = vpop.eup %14250  ;;  %v13426_v5 = vld [vmem:[%s21599_s7 + $0x84] sm:$0xf] }
 0x2ef   :  { %v1843_v22 = vmul.f32 %v14251_v18, %v1809_v60  ;;  %v10222_v18 = vld [vmem:[%s21599_s7 + $0xe8] sm:$0xf]  ;;  %v13439_v60 = vld [vmem:[%s21599_s7 + $0xec] sm:$0xf]  ;;  %2414 = vmatpush.bf16.msrb.mxu1 %v10199_v48 }
 0x2f0   :  { %v10223_v55 = vor.u32 %v13441_v4, %v10222_v18  ;;  %v10227_v41 = vor.u32 %v13439_v60, %v10224_v13  ;;  %v10166_v18 = vld [vmem:[%s21599_s7 + $0x80] sm:$0xf]  ;;  %v13428_v4 = vld [vmem:[%s21599_s7 + $0x8c] sm:$0xf0]  ;;  %v10190_v13 = vld [vmem:[%s21599_s7 + $0xa8] sm:$0xf] }
 0x2f1   :  { %v16275_v1 = vadd.f32 %v1843_v22, %v1842_v9  ;;  %v1839_v9 = vsel %vm1836_vm3, %v1838_v56, %v1834_v50  ;;  %v10171_v22 = vor.u32 %v13426_v5, %v10168_v57  ;;  %v10208_v5 = vld [vmem:[%s21599_s7 + $0xd8] sm:$0xf0]  ;;  %v10155_v57 = vor.u32 %v13422_v52, %v10152_v7  ;;  %v10136_v56 = vld [vmem:[%s21599_s7 + $0x50] sm:$0xf0] }
 0x2f2   :  { %v10211_v60 = vor.u32 %v13435_v44, %v10208_v5  ;;  %v10167_v10 = vor.u32 %v13428_v4, %v10166_v18  ;;  %v10120_v52 = vld [vmem:[%s21599_s7 + $0x30] sm:$0xf0]  ;;  %v10191_v7 = vor.u32 %v13433_v6, %v10190_v13  ;;  %v10179_v44 = vor.u32 %v13427_v34, %v10176_v24  ;;  %v10158_v5 = vld [vmem:[%s21599_s7 + $0x68] sm:$0xf]  ;;  %v13421_v4 = vld [vmem:[%s21599_s7 + $0x54] sm:$0xf0] }
 0x2f3   :  { %14252 = vtanh.f32 %v16275_v1  ;;  %2429 = vmatpush.bf16.msrb.mxu2 %v10171_v22  ;;  %v10139_v22 = vor.u32 %v13418_v54, %v10136_v56  ;;  %2415 = vmatpush.bf16.msrb.mxu1 %v10183_v15  ;;  %v10160_v54 = vld [vmem:[%s21599_s7 + $0x78] sm:$0xf0]  ;;  %v10142_v18 = vld [vmem:[%s21599_s7 + $0x48] sm:$0xf]  ;;  %v13411_v34 = vld [vmem:[%s21599_s7 + $0xc] sm:$0xf] }
 0x2f4   :  { %v10143_v13 = vor.u32 %v13421_v4, %v10142_v18  ;;  %v10112_v24 = vld [vmem:[%s21599_s7 + $0x18] sm:$0xf0] }
 0x2f5   :  { %v16293_v36 = vpop.f32.mrf.mxu2 }
 0x2f7   :  { %2430 = vmatpush.bf16.msrb.mxu2 %v10155_v57  ;;  %2416 = vmatpush.bf16.msrb.mxu1 %v10167_v10  ;;  %v13423_v57 = vld [vmem:[%s21599_s7 + $0x6c] sm:$0xf] }
 0x2f8   :  { %v10163_v56 = vor.u32 %v13423_v57, %v10160_v54  ;;  %v13512_v54 = vld [vmem:[%s21594_s3 + $0xec] sm:$0xf0] }
 0x2f9   :  { %v14253_v59 = vpop.eup %14252 }
 0x2fa   :  { %v1846_v63 = vmul.f32 %v14253_v59, %v1839_v9  ;;  %v13431_v59 = vld [vmem:[%s21599_s7 + $0xac] sm:$0xf]  ;;  %v10192_v9 = vld [vmem:[%s21599_s7 + $0xb8] sm:$0xf0] }
 0x2fb   :  { %v10195_v48 = vor.u32 %v13431_v59, %v10192_v9  ;;  %2431 = vmatpush.bf16.msrb.mxu2 %v10139_v22  ;;  %v10126_v59 = vld [vmem:[%s21599_s7 + $0x28] sm:$0xf]  ;;  %v13417_v9 = vld [vmem:[%s21599_s7 + $0x34] sm:$0xf0]  ;;  %v13415_v22 = vld [vmem:[%s21599_s7 + $0x2c] sm:$0xf] }
 0x2fc   :  { %v16343_v62 = vpack.c.bf16 %v1846_v63, %v1846_v63  ;;  %v13414_v63 = vld [vmem:[%s21599_s7 + $0x24] sm:$0xf]  ;;  %v10127_v10 = vor.u32 %v13417_v9, %v10126_v59  ;;  %v13420_v59 = vld [vmem:[%s21599_s7 + $0x4c] sm:$0xf0]  ;;  %v10364_v9 = vld [vmem:[%s21594_s3 + $0xc0] sm:$0xf] }
 0x2fd   :  { %v2225_v50 = vpop.f32.mrf.mxu2  ;;  %v10123_v40 = vor.u32 %v13414_v63, %v10120_v52  ;;  %v13410_v52 = vld [vmem:[%s21599_s7 + $0x4] sm:$0xf] }
 0x2fe   :  { %1952 = vmatmul.bf16.vlgmr.msrb.gmra.mxu3 %v16343_v62  ;;  %1965 = vmatmul.bf16.vlgmr.msra.gmra.mxu0 %v16343_v62  ;;  %v13425_v50 = vld [vmem:[%s21599_s7 + $0x74] sm:$0xf0] }
 0x2ff   :  { %2439 = vmatpush.bf16.msrb.mxu3 %v10223_v55  ;;  %2452 = vmatpush.bf16.msra.mxu0 %v10227_v41  ;;  %v10174_v55 = vld [vmem:[%s21599_s7 + $0x88] sm:$0xf]  ;;  %v13429_v41 = vld [vmem:[%s21599_s7 + $0x94] sm:$0xf0]  ;;  %v10159_v15 = vor.u32 %v13425_v50, %v10158_v5  ;;  %v13424_v5 = vld [vmem:[%s21599_s7 + $0x6c] sm:$0xf0] }
 0x300   :  { %v10175_v58 = vor.u32 %v13429_v41, %v10174_v55  ;;  %2432 = vmatpush.bf16.msrb.mxu2 %v10123_v40  ;;  %v13413_v41 = vld [vmem:[%s21599_s7 + $0x14] sm:$0xf0]  ;;  %v10380_v50 = vld [vmem:[%s21594_s3 + $0xe0] sm:$0xf] }
 0x301   :  { %v10381_v18 = vor.u32 %v13512_v54, %v10380_v50  ;;  %v10350_v50 = vld [vmem:[%s21594_s3 + $0xb0] sm:$0xf0] }
 0x303   :  { %2440 = vmatpush.bf16.msrb.mxu3 %v10207_v61  ;;  %2453 = vmatpush.bf16.msra.mxu0 %v10211_v60  ;;  %v13419_v61 = vld [vmem:[%s21599_s7 + $0x4c] sm:$0xf]  ;;  %v10144_v60 = vld [vmem:[%s21599_s7 + $0x58] sm:$0xf0] }
 0x304   :  { %v10147_v6 = vor.u32 %v13419_v61, %v10144_v60  ;;  %v10388_v61 = vld [vmem:[%s21594_s3 + $0xe8] sm:$0xf]  ;;  %v13513_v60 = vld [vmem:[%s21594_s3 + $0xf4] sm:$0xf0] }
 0x307   :  { %2441 = vmatpush.bf16.msrb.mxu3 %v10191_v7  ;;  %2454 = vmatpush.bf16.msra.mxu0 %v10195_v48  ;;  %v10104_v7 = vld [vmem:[%s21599_s7 + $0x10] sm:$0xf0]  ;;  %v10110_v48 = vld [vmem:[%s21599_s7 + $0x8] sm:$0xf] }
 0x308   :  { %v10107_v55 = vor.u32 %v13410_v52, %v10104_v7  ;;  %v10111_v40 = vor.u32 %v13413_v41, %v10110_v48  ;;  %v10372_v48 = vld [vmem:[%s21594_s3 + $0xc8] sm:$0xf] }
 0x30a   :  { %2433 = vmatpush.bf16.msrb.mxu2 %v10107_v55  ;;  %v13509_v55 = vld [vmem:[%s21594_s3 + $0xd4] sm:$0xf0] }
 0x30b   :  { %2442 = vmatpush.bf16.msrb.mxu3 %v10175_v58  ;;  %2455 = vmatpush.bf16.msra.mxu0 %v10179_v44  ;;  %v10115_v58 = vor.u32 %v13411_v34, %v10112_v24  ;;  %v10150_v44 = vld [vmem:[%s21599_s7 + $0x60] sm:$0xf]  ;;  %v10373_v41 = vor.u32 %v13509_v55, %v10372_v48  ;;  %v13416_v24 = vld [vmem:[%s21599_s7 + $0x2c] sm:$0xf0]  ;;  %v13494_v55 = vld [vmem:[%s21594_s3 + $0x64] sm:$0xf] }
 0x30c   :  { %v10151_v57 = vor.u32 %v13424_v5, %v10150_v44  ;;  %v10118_v34 = vld [vmem:[%s21599_s7 + $0x20] sm:$0xf]  ;;  %v13504_v44 = vld [vmem:[%s21594_s3 + $0xac] sm:$0xf0]  ;;  %v13502_v5 = vld [vmem:[%s21594_s3 + $0xa4] sm:$0xf] }
 0x30d   :  { %v10353_v54 = vor.u32 %v13502_v5, %v10350_v50  ;;  %v13496_v48 = vld [vmem:[%s21594_s3 + $0x6c] sm:$0xf0] }
 0x30e   :  { %2235 = vmatmul.bf16.vlgmr.msra.gmra.mxu3 %v15957_v3  ;;  %2248 = vmatmul.bf16.vlgmr.msrb.gmra.mxu0 %v15957_v3  ;;  %v10128_v3 = vld [vmem:[%s21599_s7 + $0x38] sm:$0xf0]  ;;  %v13492_v50 = vld [vmem:[%s21594_s3 + $0x4c] sm:$0xf0] }
 0x30f   :  { %2443 = vmatpush.bf16.msrb.mxu3 %v10159_v15  ;;  %2456 = vmatpush.bf16.msra.mxu0 %v10163_v56  ;;  %v10131_v63 = vor.u32 %v13415_v22, %v10128_v3  ;;  %v13510_v15 = vld [vmem:[%s21594_s3 + $0xe4] sm:$0xf]  ;;  %v10382_v56 = vld [vmem:[%s21594_s3 + $0xf0] sm:$0xf0]  ;;  %v13508_v3 = vld [vmem:[%s21594_s3 + $0xcc] sm:$0xf0] }
 0x310   :  { %v10385_v4 = vor.u32 %v13510_v15, %v10382_v56  ;;  %2417 = vmatpush.bf16.msrb.mxu1 %v10151_v57  ;;  %2814 = vmatpush.bf16.msra.mxu2 %v10381_v18  ;;  %v10365_v52 = vor.u32 %v13508_v3, %v10364_v9  ;;  %v10356_v15 = vld [vmem:[%s21594_s3 + $0xa8] sm:$0xf]  ;;  %v13505_v56 = vld [vmem:[%s21594_s3 + $0xb4] sm:$0xf0]  ;;  %v10102_v18 = vld [vmem:[%s21599_s7] sm:$0xf] }
 0x311   :  { %v10334_v9 = vld [vmem:[%s21594_s3 + $0x90] sm:$0xf0] }
 0x313   :  { %2444 = vmatpush.bf16.msrb.mxu3 %v10143_v13  ;;  %2457 = vmatpush.bf16.msra.mxu0 %v10147_v6  ;;  %v10389_v13 = vor.u32 %v13513_v60, %v10388_v61  ;;  %v10134_v6 = vld [vmem:[%s21599_s7 + $0x40] sm:$0xf]  ;;  %v13412_v61 = vld [vmem:[%s21599_s7 + $0xc] sm:$0xf0] }
 0x314   :  { %v10135_v22 = vor.u32 %v13420_v59, %v10134_v6  ;;  %2815 = vmatpush.bf16.msra.mxu2 %v10365_v52  ;;  %v10332_v60 = vld [vmem:[%s21594_s3 + $0x80] sm:$0xf]  ;;  %v10103_v6 = vor.u32 %v13412_v61, %v10102_v18  ;;  %v13498_v59 = vld [vmem:[%s21594_s3 + $0x84] sm:$0xf] }
 0x315   :  { %v10316_v52 = vld [vmem:[%s21594_s3 + $0x60] sm:$0xf] }
 0x316   :  { %2418 = vmatpush.bf16.msrb.mxu1 %v10135_v22  ;;  %v10340_v22 = vld [vmem:[%s21594_s3 + $0x88] sm:$0xf]  ;;  %v10284_v61 = vld [vmem:[%s21594_s3 + $0x20] sm:$0xf] }
 0x317   :  { %2445 = vmatpush.bf16.msrb.mxu3 %v10127_v10  ;;  %2458 = vmatpush.bf16.msra.mxu0 %v10131_v63  ;;  %v13506_v10 = vld [vmem:[%s21594_s3 + $0xc4] sm:$0xf]  ;;  %v10366_v63 = vld [vmem:[%s21594_s3 + $0xd0] sm:$0xf0] }
 0x318   :  { %v10369_v7 = vor.u32 %v13506_v10, %v10366_v63  ;;  %v10337_v10 = vor.u32 %v13498_v59, %v10334_v9  ;;  %v13501_v63 = vld [vmem:[%s21594_s3 + $0x94] sm:$0xf0]  ;;  %v10286_v59 = vld [vmem:[%s21594_s3 + $0x30] sm:$0xf0]  ;;  %v10292_v9 = vld [vmem:[%s21594_s3 + $0x28] sm:$0xf] }
 0x31b   :  { %2446 = vmatpush.bf16.msrb.mxu3 %v10111_v40  ;;  %2459 = vmatpush.bf16.msra.mxu0 %v10115_v58  ;;  %v10348_v40 = vld [vmem:[%s21594_s3 + $0xa0] sm:$0xf]  ;;  %v10119_v58 = vor.u32 %v13416_v24, %v10118_v34  ;;  %v10324_v34 = vld [vmem:[%s21594_s3 + $0x68] sm:$0xf]  ;;  %v13497_v24 = vld [vmem:[%s21594_s3 + $0x74] sm:$0xf0] }
 0x31c   :  { %v10349_v57 = vor.u32 %v13504_v44, %v10348_v40  ;;  %v10317_v40 = vor.u32 %v13496_v48, %v10316_v52  ;;  %v10300_v44 = vld [vmem:[%s21594_s3 + $0x40] sm:$0xf]  ;;  %v10325_v5 = vor.u32 %v13497_v24, %v10324_v34  ;;  %v13484_v48 = vld [vmem:[%s21594_s3 + $0xc] sm:$0xf0]  ;;  %v10270_v34 = vld [vmem:[%s21594_s3 + $0x10] sm:$0xf0] }
 0x31d   :  { %2419 = vmatpush.bf16.msrb.mxu1 %v10119_v58  ;;  %v10301_v18 = vor.u32 %v13492_v50, %v10300_v44  ;;  %v10276_v24 = vld [vmem:[%s21594_s3 + $0x8] sm:$0xf]  ;;  %v13481_v44 = vld [vmem:[%s21602_s10 + $0x38] sm:$0xff] }
 0x31e   :  { %2816 = vmatpush.bf16.msra.mxu2 %v10349_v57  ;;  %v13490_v57 = vld [vmem:[%s21594_s3 + $0x44] sm:$0xf] }
 0x31f   :  { %2827 = vmatpush.bf16.msra.mxu3 %v10385_v4  ;;  %2840 = vmatpush.bf16.msrb.mxu0 %v10389_v13  ;;  %v10357_v4 = vor.u32 %v13505_v56, %v10356_v15  ;;  %v13500_v13 = vld [vmem:[%s21594_s3 + $0x8c] sm:$0xf0]  ;;  %v10308_v15 = vld [vmem:[%s21594_s3 + $0x48] sm:$0xf]  ;;  %v13493_v56 = vld [vmem:[%s21594_s3 + $0x54] sm:$0xf0] }
 0x320   :  { %v10333_v3 = vor.u32 %v13500_v13, %v10332_v60  ;;  %v10309_v60 = vor.u32 %v13493_v56, %v10308_v15  ;;  %v13488_v13 = vld [vmem:[%s21594_s3 + $0x2c] sm:$0xf0] }
 0x321   :  { %2420 = vmatpush.bf16.msrb.mxu1 %v10103_v6  ;;  %v13486_v6 = vld [vmem:[%s21594_s3 + $0x24] sm:$0xf] }
 0x322   :  { %2817 = vmatpush.bf16.msra.mxu2 %v10333_v3  ;;  %v10289_v52 = vor.u32 %v13486_v6, %v10286_v59 }
 0x323   :  { %2828 = vmatpush.bf16.msra.mxu3 %v10369_v7  ;;  %2841 = vmatpush.bf16.msrb.mxu0 %v10373_v41  ;;  %v10341_v7 = vor.u32 %v13501_v63, %v10340_v22  ;;  %v10318_v41 = vld [vmem:[%s21594_s3 + $0x70] sm:$0xf0]  ;;  %v13489_v22 = vld [vmem:[%s21594_s3 + $0x34] sm:$0xf0]  ;;  %v10285_v63 = vor.u32 %v13488_v13, %v10284_v61 }
 0x324   :  { %v10321_v58 = vor.u32 %v13494_v55, %v10318_v41  ;;  %v10293_v55 = vor.u32 %v13489_v22, %v10292_v9  ;;  %v13482_v41 = vld [vmem:[%s21594_s3 + $0x4] sm:$0xf] }
 0x325   :  { %v10273_v50 = vor.u32 %v13482_v41, %v10270_v34  ;;  %2597 = vmatpush.bf16.msra.mxu1 %v13481_v44  ;;  %v10576_v41 = vld [vmem:[%s21598_s8 + $0xe0] sm:$0xf]  ;;  %v13592_v34 = vld [vmem:[%s21598_s8 + $0xec] sm:$0xf0]  ;;  %v13511_v44 = vld [vmem:[%s21594_s3 + $0xec] sm:$0xf] }
 0x326   :  { %2818 = vmatpush.bf16.msra.mxu2 %v10317_v40 }
 0x327   :  { %2829 = vmatpush.bf16.msra.mxu3 %v10353_v54  ;;  %2842 = vmatpush.bf16.msrb.mxu0 %v10357_v4  ;;  %v10302_v54 = vld [vmem:[%s21594_s3 + $0x50] sm:$0xf0] }
 0x328   :  { %v10305_v4 = vor.u32 %v13490_v57, %v10302_v54 }
 0x32a   :  { %2819 = vmatpush.bf16.msra.mxu2 %v10301_v18  ;;  %v9971_v18 = vld [vmem:[%s21603_s1 + $0x8] sm:$0xff] }
 0x32b   :  { %2830 = vmatpush.bf16.msra.mxu3 %v10337_v10  ;;  %2843 = vmatpush.bf16.msrb.mxu0 %v10341_v7  ;;  %v10268_v7 = vld [vmem:[%s21594_s3] sm:$0xf] }
 0x32e   :  { %2820 = vmatpush.bf16.msra.mxu2 %v10285_v63  ;;  %v13479_v63 = vld [vmem:[%s21602_s10 + $0x28] sm:$0xff] }
 0x32f   :  { %2831 = vmatpush.bf16.msra.mxu3 %v10321_v58  ;;  %2844 = vmatpush.bf16.msrb.mxu0 %v10325_v5  ;;  %v13485_v58 = vld [vmem:[%s21594_s3 + $0x14] sm:$0xf0]  ;;  %v10269_v5 = vor.u32 %v13484_v48, %v10268_v7  ;;  %v13476_v48 = vld [vmem:[%s21602_s10 + $0x10] sm:$0xff] }
 0x330   :  { %v10277_v54 = vor.u32 %v13485_v58, %v10276_v24  ;;  %v13477_v7 = vld [vmem:[%s21602_s10 + $0x18] sm:$0xff]  ;;  %v10577_v24 = vor.u32 %v13592_v34, %v10576_v41  ;;  %v13474_v58 = vld [vmem:[%s21602_s10] sm:$0xff] }
 0x331   :  { %v10358_v41 = vld [vmem:[%s21594_s3 + $0xb8] sm:$0xf0] }
 0x332   :  { %2821 = vmatpush.bf16.msra.mxu2 %v10269_v5  ;;  %v10390_v5 = vld [vmem:[%s21594_s3 + $0xf8] sm:$0xf0] }
 0x333   :  { %2832 = vmatpush.bf16.msra.mxu3 %v10305_v4  ;;  %2845 = vmatpush.bf16.msrb.mxu0 %v10309_v60 }
 0x337   :  { %2833 = vmatpush.bf16.msra.mxu3 %v10289_v52  ;;  %2846 = vmatpush.bf16.msrb.mxu0 %v10293_v55  ;;  %v13478_v52 = vld [vmem:[%s21602_s10 + $0x20] sm:$0xff]  ;;  %v13475_v55 = vld [vmem:[%s21602_s10 + $0x8] sm:$0xff] }
 0x33b   :  { %2834 = vmatpush.bf16.msra.mxu3 %v10273_v50  ;;  %2847 = vmatpush.bf16.msrb.mxu0 %v10277_v54  ;;  %v10393_v54 = vor.u32 %v13511_v44, %v10390_v5 }
 0x37b   :  { %v1966_v3 = vpop.f32.mrf.mxu0 }
 0x37c   :  { %v1967_v10 = vadd.f32 %v1966_v3, %v15763_v45 }
 0x37e   :  { %v1970_v40 = vmul.f32 1.442695, %v1967_v10  ;;  %10264 = vst [vmem:[%s21601_s12 + $0x18] sm:$0xff] %v1967_v10  ;;  %v13480_v10 = vld [vmem:[%s21602_s10 + $0x30] sm:$0xff] }
 0x37f   :  { %2598 = vmatpush.bf16.msra.mxu1 %v13480_v10 }
 0x380   :  { %14254 = vpow2.f32 %v1970_v40 }
 0x381   :  { %v1953_v57 = vpop.f32.mrf.mxu3 }
 0x382   :  { %v1954_v15 = vadd.f32 %v1953_v57, %v15761_v42 }
 0x383   :  { %v1968_v56 = vpop.f32.mrf.mxu0  ;;  %2599 = vmatpush.bf16.msra.mxu1 %v13479_v63 }
 0x384   :  { %10263 = vst [vmem:[%s21601_s12 + $0x10] sm:$0xff] %v1954_v15  ;;  %v13588_v56 = vld [vmem:[%s21598_s8 + $0xcc] sm:$0xf0] }
 0x386   :  { %v14255_v4 = vpop.eup %14254 }
 0x387   :  { %v1974_v61 = vmul.f32 %v14255_v4, %v9971_v18  ;;  %2600 = vmatpush.bf16.msra.mxu1 %v13478_v52 }
 0x389   :  { %v1975_v60 = vadd.f32 %v1974_v61, %v1954_v15  ;;  %v1955_v13 = vpop.f32.mrf.mxu3  ;;  %v10560_v15 = vld [vmem:[%s21598_s8 + $0xc0] sm:$0xf]  ;;  %v10374_v61 = vld [vmem:[%s21594_s3 + $0xd8] sm:$0xf0] }
 0x38a   :  { %v10561_v18 = vor.u32 %v13588_v56, %v10560_v15  ;;  %v10342_v15 = vld [vmem:[%s21594_s3 + $0x98] sm:$0xf0] }
 0x38b   :  { %v1976_v6 = vpack.c.bf16 %v1975_v60, %v1975_v60  ;;  %v16636_v59 = vpop.f32.mrf.mxu0  ;;  %2601 = vmatpush.bf16.msra.mxu1 %v13477_v7 }
 0x38d   :  { %2421 = vmatmul.bf16.vlgmr.msrb.gmra.mxu1 %v1976_v6  ;;  %2434 = vmatmul.bf16.vlgmr.msrb.gmra.mxu2 %v1976_v6 }
 0x38e   :  { %2447 = vmatmul.bf16.vlgmr.msrb.gmra.mxu3 %v1976_v6  ;;  %2460 = vmatmul.bf16.vlgmr.msra.gmra.mxu0 %v1976_v6  ;;  %v10544_v6 = vld [vmem:[%s21598_s8 + $0xa0] sm:$0xf] }
 0x38f   :  { %2602 = vmatpush.bf16.msra.mxu1 %v13476_v48  ;;  %3287 = vmatpush.bf16.msra.mxu0 %v10577_v24 }
 0x391   :  { %v2236_v9 = vpop.f32.mrf.mxu3 }
 0x393   :  { %v2251_v22 = vpop.f32.mrf.mxu0  ;;  %2603 = vmatpush.bf16.msra.mxu1 %v13475_v55  ;;  %3288 = vmatpush.bf16.msra.mxu0 %v10561_v18  ;;  %v13503_v55 = vld [vmem:[%s21594_s3 + $0xac] sm:$0xf] }
 0x394   :  { %v13584_v22 = vld [vmem:[%s21598_s8 + $0xac] sm:$0xf0] }
 0x395   :  { %v10545_v10 = vor.u32 %v13584_v22, %v10544_v6  ;;  %v13495_v22 = vld [vmem:[%s21594_s3 + $0x6c] sm:$0xf] }
 0x397   :  { %2604 = vmatpush.bf16.msra.mxu1 %v13474_v58  ;;  %3289 = vmatpush.bf16.msra.mxu0 %v10545_v10  ;;  %v10326_v10 = vld [vmem:[%s21594_s3 + $0x78] sm:$0xf0] }
 0x399   :  { %v2238_v3 = vpop.f32.mrf.mxu3 }
 0x39b   :  { %2853 = vmatpush.bf16.msrb.mxu1 %v10393_v54  ;;  %v13499_v54 = vld [vmem:[%s21594_s3 + $0x8c] sm:$0xf] }
 0x39c   :  { %v10345_v18 = vor.u32 %v13499_v54, %v10342_v15  ;;  %v10294_v54 = vld [vmem:[%s21594_s3 + $0x38] sm:$0xf0] }
 0x39d   :  { %2822 = vmatmul.bf16.vlgmr.msra.gmra.mxu2 %v16343_v62 }
 0x39e   :  { %2835 = vmatmul.bf16.vlgmr.msra.gmra.mxu3 %v16343_v62  ;;  %2848 = vmatmul.bf16.vlgmr.msrb.gmra.mxu0 %v16343_v62 }
 0x40a   :  { %v2422_v40 = vpop.f32.mrf.mxu1 }
 0x40b   :  { %v2423_v50 = vadd.f32 %v2422_v40, %v16084_v53  ;;  %v16675_v57 = vpop.f32.mrf.mxu0  ;;  %v13507_v53 = vld [vmem:[%s21594_s3 + $0xcc] sm:$0xf]  ;;  %v10361_v40 = vor.u32 %v13503_v55, %v10358_v41  ;;  %v10310_v41 = vld [vmem:[%s21594_s3 + $0x58] sm:$0xf0] }
 0x40c   :  { %v10377_v13 = vor.u32 %v13507_v53, %v10374_v61  ;;  %v13576_v53 = vld [vmem:[%s21598_s8 + $0x6c] sm:$0xf0]  ;;  %v13491_v55 = vld [vmem:[%s21594_s3 + $0x4c] sm:$0xf] }
 0x40d   :  { %v2465_v4 = vadd.f32 %v2423_v50, %v15855_v32 }
 0x40e   :  { %2854 = vmatpush.bf16.msrb.mxu1 %v10377_v13 }
 0x40f   :  { %v10228_v60 = vmul.f32 -1.442695, %v2465_v4  ;;  %v10512_v4 = vld [vmem:[%s21598_s8 + $0x60] sm:$0xf] }
 0x410   :  { %v2435_v3 = vpop.f32.mrf.mxu2  ;;  %v10513_v13 = vor.u32 %v13576_v53, %v10512_v4  ;;  %v13564_v4 = vld [vmem:[%s21598_s8 + $0xc] sm:$0xf0] }
 0x411   :  { %14256 = vpow2.f32 %v10228_v60  ;;  %v2436_v63 = vadd.f32 %v2435_v3, %v16293_v36  ;;  %v2448_v52 = vpop.f32.mrf.mxu3  ;;  %v10528_v36 = vld [vmem:[%s21598_s8 + $0x80] sm:$0xf] }
 0x412   :  { %v2449_v7 = vadd.f32 %v2448_v52, %v2236_v9  ;;  %v2424_v48 = vpop.f32.mrf.mxu1  ;;  %v13580_v9 = vld [vmem:[%s21598_s8 + $0x8c] sm:$0xf0]  ;;  %2855 = vmatpush.bf16.msrb.mxu1 %v10361_v40  ;;  %v10480_v40 = vld [vmem:[%s21598_s8 + $0x20] sm:$0xf] }
 0x413   :  { %v2466_v34 = vadd.f32 %v2436_v63, %v15858_v47  ;;  %v2463_v24 = vpop.f32.mrf.mxu0  ;;  %v10529_v44 = vor.u32 %v13580_v9, %v10528_v36  ;;  %v10496_v63 = vld [vmem:[%s21598_s8 + $0x40] sm:$0xf]  ;;  %v13572_v52 = vld [vmem:[%s21598_s8 + $0x4c] sm:$0xf0]  ;;  %v10329_v48 = vor.u32 %v13495_v22, %v10326_v10 }
 0x414   :  { %v2467_v58 = vadd.f32 %v2449_v7, %v15831_v30  ;;  %v10497_v24 = vor.u32 %v13572_v52, %v10496_v63 }
 0x415   :  { %v10229_v5 = vmul.f32 -1.442695, %v2466_v34  ;;  %3290 = vmatpush.bf16.msra.mxu0 %v10529_v44 }
 0x416   :  { %v10230_v50 = vmul.f32 -1.442695, %v2467_v58  ;;  %2856 = vmatpush.bf16.msrb.mxu1 %v10345_v18  ;;  %v10313_v58 = vor.u32 %v13491_v55, %v10310_v41  ;;  %v10464_v18 = vld [vmem:[%s21598_s8] sm:$0xf] }
 0x417   :  { %v14257_v56 = vpop.eup %14256  ;;  %14258 = vpow2.f32 %v10229_v5  ;;  %v10465_v52 = vor.u32 %v13564_v4, %v10464_v18 }
 0x418   :  { %v16723_v61 = vadd.f32 1.0, %v14257_v56  ;;  %14260 = vpow2.f32 %v10230_v50  ;;  %v2437_v60 = vpop.f32.mrf.mxu2  ;;  %v13487_v50 = vld [vmem:[%s21594_s3 + $0x2c] sm:$0xf] }
 0x419   :  { %v2450_v6 = vpop.f32.mrf.mxu3  ;;  %3291 = vmatpush.bf16.msra.mxu0 %v10513_v13  ;;  %v2462_v13 = vadd.f32 %v16675_v57, %v16636_v59  ;;  %v10278_v59 = vld [vmem:[%s21594_s3 + $0x18] sm:$0xf0] }
 0x41a   :  { %14262 = vrcp.f32 %v16723_v61  ;;  %2857 = vmatpush.bf16.msrb.mxu1 %v10329_v48  ;;  %v10297_v6 = vor.u32 %v13487_v50, %v10294_v54  ;;  %v13483_v48 = vld [vmem:[%s21594_s3 + $0xc] sm:$0xf]  ;;  %vm2486_vm5 = vweird.f32 %v16723_v61 }
 0x41b   :  { %v2849_v3 = vpop.f32.mrf.mxu0  ;;  %v2468_v41 = vadd.f32 %v2462_v13, %v15934_v8 }
 0x41c   :  { %v16739_v7 = vadd.f32 %v2849_v3, %v14987_v23  ;;  %v13568_v23 = vld [vmem:[%s21598_s8 + $0x2c] sm:$0xf0] }
 0x41d   :  { %v14259_v34 = vpop.eup %14258  ;;  %3292 = vmatpush.bf16.msra.mxu0 %v10497_v24  ;;  %v10481_v5 = vor.u32 %v13568_v23, %v10480_v40  ;;  %v2492_v40 = vand.u32 2147483648, %v16723_v61 }
 0x41e   :  { %v14261_v36 = vpop.eup %14260  ;;  %v2479_v9 = vadd.f32 1.0, %v14259_v34  ;;  %2858 = vmatpush.bf16.msrb.mxu1 %v10313_v58  ;;  %v2490_v58 = vand.u32 2147483647, %v16723_v61 }
 0x41f   :  { %v16753_v44 = vadd.f32 1.0, %v14261_v36 }
 0x420   :  { %v14263_v15 = vpop.eup %14262  ;;  %14264 = vrcp.f32 %v2479_v9  ;;  %v2823_v56 = vpop.f32.mrf.mxu2  ;;  %v2507_v54 = vand.u32 2147483648, %v2479_v9  ;;  %v2505_v4 = vand.u32 2147483647, %v2479_v9  ;;  %vm2491_vm8 = vcmp.eq.f32.partialorder %v2490_v58, 8.507059e+37 }
 0x421   :  { %v2482_v53 = vmul.f32 %v14263_v15, %v16723_v61  ;;  %14266 = vrcp.f32 %v16753_v44  ;;  %v2836_v60 = vpop.f32.mrf.mxu3  ;;  %v16772_v3 = vadd.f32 %v2823_v56, %v14977_v17  ;;  %3293 = vmatpush.bf16.msra.mxu0 %v10481_v5  ;;  %v10281_v17 = vor.u32 %v13483_v48, %v10278_v59 }
 0x422   :  { %v16775_v10 = vadd.f32 %v2836_v60, %v14980_v19  ;;  %2859 = vmatpush.bf16.msrb.mxu1 %v10297_v6  ;;  %vm2487_vm4 = vweird.f32 %v14263_v15  ;;  %14268 = vtanh.f32 %v2468_v41  ;;  %vm2501_vm9 = vweird.f32 %v2479_v9 }
 0x423   :  { %v2483_v22 = vsub.f32 1.0, %v2482_v53  ;;  %v2851_v63 = vpop.f32.mrf.mxu0  ;;  %vm2488_vm6 = vmor %vm2486_vm5, %vm2487_vm4  ;;  %v2493_v53 = vor.u32 1.1754944e-38, %v2492_v40  ;;  %vm2506_vm11 = vcmp.eq.f32.partialorder %v2505_v4, 8.507059e+37  ;;  %vm2516_vm13 = vweird.f32 %v16753_v44 }
 0x425   :  { %v2484_v57 = vmul.f32 %v14263_v15, %v2483_v22  ;;  %3294 = vmatpush.bf16.msra.mxu0 %v10465_v52  ;;  %v2508_v22 = vor.u32 1.1754944e-38, %v2507_v54  ;;  %v13529_v54 = vld [vmem:[%s21597_s5 + $0x74] sm:$0xf0] }
 0x426   :  { %v14265_v55 = vpop.eup %14264  ;;  %2860 = vmatpush.bf16.msrb.mxu1 %v10281_v17  ;;  %v2522_v17 = vand.u32 2147483648, %v16753_v44 }
 0x427   :  { %v14267_v34 = vpop.eup %14266  ;;  %v2485_v19 = vadd.f32 %v14263_v15, %v2484_v57  ;;  %v2497_v24 = vmul.f32 %v14265_v55, %v2479_v9  ;;  %vm2502_vm7 = vweird.f32 %v14265_v55  ;;  %v2520_v9 = vand.u32 2147483647, %v16753_v44 }
 0x428   :  { %v2512_v23 = vmul.f32 %v14267_v34, %v16753_v44  ;;  %v2825_v36 = vpop.f32.mrf.mxu2  ;;  %vm2503_vm10 = vmor %vm2501_vm9, %vm2502_vm7  ;;  %v14269_v61 = vpop.eup %14268  ;;  %vm2517_vm12 = vweird.f32 %v14267_v34  ;;  %v13586_v44 = vld [vmem:[%s21598_s8 + $0xc4] sm:$0xf] }
 0x429   :  { %v2498_v5 = vsub.f32 1.0, %v2497_v24  ;;  %v2838_v50 = vpop.f32.mrf.mxu3  ;;  %v2489_v56 = vsel %vm2488_vm6, %v14263_v15, %v2485_v19  ;;  %vm2518_vm14 = vmor %vm2516_vm13, %vm2517_vm12  ;;  %v2523_v19 = vor.u32 1.1754944e-38, %v2522_v17  ;;  %vm2521_vm15 = vcmp.eq.f32.partialorder %v2520_v9, 8.507059e+37  ;;  %v10578_v24 = vld [vmem:[%s21598_s8 + $0xf0] sm:$0xf0] }
 0x42a   :  { %v2513_v60 = vsub.f32 1.0, %v2512_v23  ;;  %v2494_v6 = vsel %vm2491_vm8, %v2493_v53, %v2489_v56  ;;  %v10455_v50 = vld [vmem:[%s21597_s5 + $0x70] sm:$0xf]  ;;  %v13528_v56 = vld [vmem:[%s21597_s5 + $0x74] sm:$0xf] }
 0x42b   :  { %v2499_v18 = vmul.f32 %v14265_v55, %v2498_v5  ;;  %v2528_v59 = vmul.f32 %v14269_v61, %v2494_v6  ;;  %v10456_v4 = vor.u32 %v13529_v54, %v10455_v50  ;;  %v10457_v53 = vld [vmem:[%s21597_s5 + $0x78] sm:$0xf0]  ;;  %v10530_v61 = vld [vmem:[%s21598_s8 + $0x90] sm:$0xf0]  ;;  %v10439_v50 = vld [vmem:[%s21597_s5 + $0x50] sm:$0xf] }
 0x42c   :  { %v2514_v48 = vmul.f32 %v14267_v34, %v2513_v60  ;;  %v13582_v60 = vld [vmem:[%s21598_s8 + $0xa4] sm:$0xf]  ;;  %v10460_v6 = vor.u32 %v13528_v56, %v10457_v53  ;;  %v10498_v17 = vld [vmem:[%s21598_s8 + $0x50] sm:$0xf0]  ;;  %v13525_v54 = vld [vmem:[%s21597_s5 + $0x54] sm:$0xf0] }
 0x42d   :  { %v2500_v13 = vadd.f32 %v14265_v55, %v2499_v18  ;;  %3030 = vmatpush.bf16.msrb.mxu2 %v10456_v4  ;;  %v10441_v4 = vld [vmem:[%s21597_s5 + $0x58] sm:$0xf0]  ;;  %v10440_v53 = vor.u32 %v13525_v54, %v10439_v50  ;;  %v13517_v50 = vld [vmem:[%s21597_s5 + $0x14] sm:$0xf0]  ;;  %v13516_v54 = vld [vmem:[%s21597_s5 + $0x14] sm:$0xf] }
 0x42e   :  { %v2515_v41 = vadd.f32 %v14267_v34, %v2514_v48  ;;  %3043 = vmatpush.bf16.msrb.mxu3 %v10460_v6  ;;  %v13574_v48 = vld [vmem:[%s21598_s8 + $0x64] sm:$0xf]  ;;  %v13523_v6 = vld [vmem:[%s21597_s5 + $0x44] sm:$0xf0] }
 0x42f   :  { %v2504_v63 = vsel %vm2503_vm10, %v14265_v55, %v2500_v13  ;;  %v10546_v13 = vld [vmem:[%s21598_s8 + $0xb0] sm:$0xf0] }
 0x430   :  { %v2509_v52 = vsel %vm2506_vm11, %v2508_v22, %v2504_v63  ;;  %v2519_v55 = vsel %vm2518_vm14, %v14267_v34, %v2515_v41  ;;  %v10562_v34 = vld [vmem:[%s21598_s8 + $0xd0] sm:$0xf0]  ;;  %v10549_v22 = vor.u32 %v13582_v60, %v10546_v13  ;;  %v13578_v63 = vld [vmem:[%s21598_s8 + $0x84] sm:$0xf]  ;;  %v10431_v13 = vld [vmem:[%s21597_s5 + $0x40] sm:$0xf] }
 0x431   :  { %v2527_v57 = vmul.f32 %v2509_v52, %v15945_v16  ;;  %v13590_v16 = vld [vmem:[%s21598_s8 + $0xe4] sm:$0xf]  ;;  %v2524_v23 = vsel %vm2521_vm15, %v2523_v19, %v2519_v55  ;;  %v10565_v18 = vor.u32 %v13586_v44, %v10562_v34  ;;  %v10533_v52 = vor.u32 %v13578_v63, %v10530_v61  ;;  %v10482_v19 = vld [vmem:[%s21598_s8 + $0x30] sm:$0xf0]  ;;  %v10449_v34 = vld [vmem:[%s21597_s5 + $0x68] sm:$0xf0] }
 0x432   :  { %v10581_v58 = vor.u32 %v13590_v16, %v10578_v24  ;;  %v13570_v41 = vld [vmem:[%s21598_s8 + $0x44] sm:$0xf]  ;;  %v10395_v63 = vmul.f32 -1.442695, %v16775_v10  ;;  %v10433_v61 = vld [vmem:[%s21597_s5 + $0x48] sm:$0xf0] }
 0x433   :  { %v16789_v15 = vadd.f32 %v2528_v59, %v2527_v57  ;;  %v10514_v59 = vld [vmem:[%s21598_s8 + $0x70] sm:$0xf0]  ;;  %v10501_v9 = vor.u32 %v13570_v41, %v10498_v17  ;;  %v13566_v55 = vld [vmem:[%s21598_s8 + $0x24] sm:$0xf]  ;;  %v10394_v41 = vmul.f32 -1.442695, %v16772_v3 }
 0x434   :  { %v10517_v57 = vor.u32 %v13574_v48, %v10514_v59  ;;  %v10485_v16 = vor.u32 %v13566_v55, %v10482_v19  ;;  %v13562_v24 = vld [vmem:[%s21598_s8 + $0x4] sm:$0xf]  ;;  %v10423_v59 = vld [vmem:[%s21597_s5 + $0x30] sm:$0xf]  ;;  %v13520_v10 = vld [vmem:[%s21597_s5 + $0x34] sm:$0xf] }
 0x435   :  { %14270 = vtanh.f32 %v16789_v15  ;;  %v10425_v17 = vld [vmem:[%s21597_s5 + $0x38] sm:$0xf0]  ;;  %v10396_v3 = vmul.f32 -1.442695, %v16739_v7 }
 0x436   :  { %14272 = vpow2.f32 %v10395_v63  ;;  %v10428_v55 = vor.u32 %v13520_v10, %v10425_v17  ;;  %v10584_v63 = vld [vmem:[%s21598_s8 + $0xe8] sm:$0xf]  ;;  %v13591_v10 = vld [vmem:[%s21598_s8 + $0xec] sm:$0xf]  ;;  %v10586_v17 = vld [vmem:[%s21598_s8 + $0xf8] sm:$0xf0] }
 0x437   :  { %14274 = vpow2.f32 %v10394_v41 }
 0x438   :  { %14276 = vpow2.f32 %v10396_v3  ;;  %v10589_v3 = vor.u32 %v13591_v10, %v10586_v17 }
 0x43b   :  { %v14271_v40 = vpop.eup %14270 }
 0x43c   :  { %v2531_v36 = vmul.f32 %v14271_v40, %v2524_v23  ;;  %v10447_v23 = vld [vmem:[%s21597_s5 + $0x60] sm:$0xf]  ;;  %v14273_v19 = vpop.eup %14272 }
 0x43e   :  { %v16801_v5 = vpack.c.bf16 %v2531_v36, %v2531_v36  ;;  %v13527_v36 = vld [vmem:[%s21597_s5 + $0x64] sm:$0xf0] }
 0x43f   :  { %v10448_v44 = vor.u32 %v13527_v36, %v10447_v23  ;;  %v13518_v23 = vld [vmem:[%s21597_s5 + $0x24] sm:$0xf] }
 0x440   :  { %2605 = vmatmul.bf16.vlgmr.msra.gmra.mxu1 %v16801_v5  ;;  %3295 = vmatmul.bf16.vlgmr.msra.gmra.mxu0 %v16801_v5 }
 0x441   :  { %3300 = vmatpush.bf16.msra.mxu1 %v10581_v58  ;;  %v13526_v58 = vld [vmem:[%s21597_s5 + $0x64] sm:$0xf]  ;;  %3031 = vmatpush.bf16.msrb.mxu2 %v10448_v44 }
 0x442   :  { %v10452_v56 = vor.u32 %v13526_v58, %v10449_v34  ;;  %v10417_v58 = vld [vmem:[%s21597_s5 + $0x28] sm:$0xf0]  ;;  %v10407_v34 = vld [vmem:[%s21597_s5 + $0x10] sm:$0xf] }
 0x443   :  { %v10420_v44 = vor.u32 %v13518_v23, %v10417_v58  ;;  %v10570_v23 = vld [vmem:[%s21598_s8 + $0xd8] sm:$0xf0] }
 0x444   :  { %3044 = vmatpush.bf16.msrb.mxu3 %v10452_v56  ;;  %v10408_v56 = vor.u32 %v13517_v50, %v10407_v34 }
 0x445   :  { %3301 = vmatpush.bf16.msra.mxu1 %v10565_v18  ;;  %v13524_v18 = vld [vmem:[%s21597_s5 + $0x54] sm:$0xf]  ;;  %3032 = vmatpush.bf16.msrb.mxu2 %v10440_v53  ;;  %v10399_v53 = vld [vmem:[%s21597_s5] sm:$0xf] }
 0x446   :  { %v10444_v60 = vor.u32 %v13524_v18, %v10441_v4  ;;  %v10409_v18 = vld [vmem:[%s21597_s5 + $0x18] sm:$0xf0] }
 0x447   :  { %v10412_v4 = vor.u32 %v13516_v54, %v10409_v18  ;;  %v10552_v54 = vld [vmem:[%s21598_s8 + $0xa8] sm:$0xf]  ;;  %v13583_v18 = vld [vmem:[%s21598_s8 + $0xac] sm:$0xf] }
 0x448   :  { %3045 = vmatpush.bf16.msrb.mxu3 %v10444_v60  ;;  %v13515_v60 = vld [vmem:[%s21597_s5 + $0x4] sm:$0xf0] }
 0x449   :  { %3302 = vmatpush.bf16.msra.mxu1 %v10549_v22  ;;  %v13522_v22 = vld [vmem:[%s21597_s5 + $0x44] sm:$0xf] }
 0x44a   :  { %v10436_v48 = vor.u32 %v13522_v22, %v10433_v61  ;;  %v10401_v22 = vld [vmem:[%s21597_s5 + $0x8] sm:$0xf0]  ;;  %v13593_v61 = vld [vmem:[%s21598_s8 + $0xf4] sm:$0xf0] }
 0x44b   :  { %v10585_v41 = vor.u32 %v13593_v61, %v10584_v63  ;;  %v10536_v61 = vld [vmem:[%s21598_s8 + $0x88] sm:$0xf] }
 0x44c   :  { %3046 = vmatpush.bf16.msrb.mxu3 %v10436_v48 }
 0x44d   :  { %3303 = vmatpush.bf16.msra.mxu1 %v10533_v52  ;;  %v10432_v52 = vor.u32 %v13523_v6, %v10431_v13  ;;  %v13514_v13 = vld [vmem:[%s21597_s5 + $0x4] sm:$0xf]  ;;  %v10400_v6 = vor.u32 %v13515_v60, %v10399_v53 }
 0x44f   :  { %3033 = vmatpush.bf16.msrb.mxu2 %v10432_v52 }
 0x450   :  { %2861 = vmatmul.bf16.vlgmr.msrb.gmra.mxu1 %v16343_v62  ;;  %v10466_v62 = vld [vmem:[%s21598_s8 + $0x10] sm:$0xf0]  ;;  %3047 = vmatpush.bf16.msrb.mxu3 %v10428_v55 }
 0x451   :  { %3304 = vmatpush.bf16.msra.mxu1 %v10517_v57  ;;  %v10469_v40 = vor.u32 %v13562_v24, %v10466_v62  ;;  %v13521_v57 = vld [vmem:[%s21597_s5 + $0x34] sm:$0xf0]  ;;  %v16912_v24 = vadd.f32 1.0, %v14273_v19  ;;  %v10415_v62 = vld [vmem:[%s21597_s5 + $0x20] sm:$0xf] }
 0x452   :  { %v14476_v19 = vld [vmem:[%s21605_s11] ss:$0 sm:$0xff] }
 0x453   :  { %14278 = vrcp.f32 %v16912_v24  ;;  %vm2902_vm1 = vweird.f32 %v16912_v24 }
 0x454   :  { %3048 = vmatpush.bf16.msrb.mxu3 %v10420_v44 }
 0x455   :  { %3305 = vmatpush.bf16.msra.mxu1 %v10501_v9  ;;  %v10424_v9 = vor.u32 %v13521_v57, %v10423_v59  ;;  %v10404_v57 = vor.u32 %v13514_v13, %v10401_v22 }
 0x457   :  { %3034 = vmatpush.bf16.msrb.mxu2 %v10424_v9  ;;  %v10568_v9 = vld [vmem:[%s21598_s8 + $0xc8] sm:$0xf] }
 0x458   :  { %3049 = vmatpush.bf16.msrb.mxu3 %v10412_v4  ;;  %v10554_v4 = vld [vmem:[%s21598_s8 + $0xb8] sm:$0xf0] }
 0x459   :  { %3306 = vmatpush.bf16.msra.mxu1 %v10485_v16  ;;  %v14275_v16 = vpop.eup %14274  ;;  %v10557_v63 = vor.u32 %v13583_v18, %v10554_v4  ;;  %v13573_v18 = vld [vmem:[%s21598_s8 + $0x54] sm:$0xf0] }
 0x45a   :  { %v16926_v7 = vadd.f32 1.0, %v14275_v16  ;;  %v14277_v52 = vpop.eup %14276 }
 0x45b   :  { %v16971_v55 = vpop.eup %14278  ;;  %v16990_v44 = vadd.f32 1.0, %v14277_v52  ;;  %v13581_v52 = vld [vmem:[%s21598_s8 + $0x94] sm:$0xf0] }
 0x45c   :  { %14280 = vrcp.f32 %v16926_v7  ;;  %3050 = vmatpush.bf16.msrb.mxu3 %v10404_v57  ;;  %v2898_v34 = vmul.f32 %v16971_v55, %v16912_v24  ;;  %v10538_v57 = vld [vmem:[%s21598_s8 + $0x98] sm:$0xf0]  ;;  %v10537_v10 = vor.u32 %v13581_v52, %v10536_v61  ;;  %vm2903_vm0 = vweird.f32 %v16971_v55 }
 0x45d   :  { %3307 = vmatpush.bf16.msra.mxu1 %v10469_v40  ;;  %v13519_v40 = vld [vmem:[%s21597_s5 + $0x24] sm:$0xf0]  ;;  %14282 = vrcp.f32 %v16990_v44  ;;  %vm17061_vm3 = vmor %vm2902_vm1, %vm2903_vm0  ;;  %v2891_v61 = vand.u32 2147483647, %v16926_v7  ;;  %v2893_v52 = vand.u32 2147483648, %v16926_v7  ;;  %vm2887_vm4 = vweird.f32 %v16926_v7 }
 0x45e   :  { %v10416_v36 = vor.u32 %v13519_v40, %v10415_v62  ;;  %v13589_v62 = vld [vmem:[%s21598_s8 + $0xd4] sm:$0xf0]  ;;  %v13587_v40 = vld [vmem:[%s21598_s8 + $0xcc] sm:$0xf]  ;;  %v2899_v13 = vsub.f32 1.0, %v2898_v34  ;;  %vm2917_vm9 = vweird.f32 %v16990_v44 }
 0x45f   :  { %v10569_v58 = vor.u32 %v13589_v62, %v10568_v9  ;;  %v10573_v50 = vor.u32 %v13587_v40, %v10570_v23  ;;  %v10522_v62 = vld [vmem:[%s21598_s8 + $0x78] sm:$0xf0]  ;;  %vm2892_vm7 = vcmp.eq.f32.partialorder %v2891_v61, 8.507059e+37  ;;  %v13554_v61 = vld [vmem:[%s21599_s7 + $0xc4] sm:$0xf] }
 0x460   :  { %3308 = vmatmul.bf16.vlgmr.msra.gmra.mxu1 %v16801_v5  ;;  %3035 = vmatpush.bf16.msrb.mxu2 %v10416_v36  ;;  %v2900_v17 = vmul.f32 %v16971_v55, %v2899_v13  ;;  %v13571_v13 = vld [vmem:[%s21598_s8 + $0x4c] sm:$0xf] }
 0x461   :  { %3326 = vmatpush.bf16.msra.mxu3 %v10589_v3  ;;  %v13575_v3 = vld [vmem:[%s21598_s8 + $0x6c] sm:$0xf] }
 0x462   :  { %v16985_v36 = vpop.eup %14280 }
 0x463   :  { %v2883_v53 = vmul.f32 %v16985_v36, %v16926_v7  ;;  %v17034_v40 = vpop.eup %14282  ;;  %vm2888_vm2 = vweird.f32 %v16985_v36 }
 0x464   :  { %3036 = vmatpush.bf16.msrb.mxu2 %v10408_v56  ;;  %v13585_v56 = vld [vmem:[%s21598_s8 + $0xb4] sm:$0xf0]  ;;  %v2913_v4 = vmul.f32 %v17034_v40, %v16990_v44  ;;  %vm17079_vm5 = vmor %vm2887_vm4, %vm2888_vm2  ;;  %vm2918_vm8 = vweird.f32 %v17034_v40 }
 0x465   :  { %v10553_v60 = vor.u32 %v13585_v56, %v10552_v54  ;;  %3327 = vmatpush.bf16.msra.mxu3 %v10573_v50  ;;  %v2901_v50 = vadd.f32 %v16971_v55, %v2900_v17  ;;  %v10525_v54 = vor.u32 %v13575_v3, %v10522_v62  ;;  %v10504_v56 = vld [vmem:[%s21598_s8 + $0x48] sm:$0xf]  ;;  %v2894_v3 = vor.u32 1.1754944e-38, %v2893_v52  ;;  %v10690_v52 = vld [vmem:[%s21599_s7 + $0xd0] sm:$0xf0]  ;;  %vm17132_vm10 = vmor %vm2917_vm9, %vm2918_vm8 }
 0x466   :  { %v2914_v17 = vsub.f32 1.0, %v2913_v4 }
 0x468   :  { %3037 = vmatpush.bf16.msrb.mxu2 %v10400_v6 }
 0x469   :  { %3328 = vmatpush.bf16.msra.mxu3 %v10557_v63  ;;  %v2906_v63 = vand.u32 2147483647, %v16912_v24 }
 0x46b   :  { %vm2907_vm6 = vcmp.eq.f32.partialorder %v2906_v63, 8.507059e+37 }
 0x46c   :  { %3313 = vmatpush.bf16.msra.mxu2 %v10585_v41  ;;  %v2884_v41 = vsub.f32 1.0, %v2883_v53  ;;  %v2908_v53 = vand.u32 2147483648, %v16912_v24 }
 0x46e   :  { %v2885_v23 = vmul.f32 %v16985_v36, %v2884_v41  ;;  %v10488_v41 = vld [vmem:[%s21598_s8 + $0x28] sm:$0xf] }
 0x470   :  { %3314 = vmatpush.bf16.msra.mxu2 %v10569_v58 }
 0x474   :  { %3315 = vmatpush.bf16.msra.mxu2 %v10553_v60 }
 0x478   :  { %3316 = vmatpush.bf16.msra.mxu2 %v10537_v10  ;;  %v13569_v10 = vld [vmem:[%s21598_s8 + $0x34] sm:$0xf0] }
 0x4bd   :  { %v2606_v48 = vpop.f32.mrf.mxu1  ;;  %v16960_v59 = vpop.f32.mrf.mxu0 }
 0x4be   :  { %v2607_v16 = vadd.f32 %v14476_v19, %v2606_v48  ;;  %v13579_v48 = vld [vmem:[%s21598_s8 + $0x8c] sm:$0xf]  ;;  %v10520_v19 = vld [vmem:[%s21598_s8 + $0x68] sm:$0xf] }
 0x4bf   :  { %v10541_v9 = vor.u32 %v13579_v48, %v10538_v57  ;;  %v10505_v48 = vor.u32 %v13573_v18, %v10504_v56  ;;  %v2905_v57 = vsel %vm17061_vm3, %v16971_v55, %v2901_v50  ;;  %v13567_v55 = vld [vmem:[%s21598_s8 + $0x2c] sm:$0xf]  ;;  %v10472_v50 = vld [vmem:[%s21598_s8 + $0x8] sm:$0xf]  ;;  %v2915_v18 = vmul.f32 %v17034_v40, %v2914_v17 }
 0x4c0   :  { %10265 = vst [vmem:[%s21606_s13 + $0x8] sm:$0xff] %v2607_v16  ;;  %v13577_v16 = vld [vmem:[%s21598_s8 + $0x74] sm:$0xf0]  ;;  %v2921_v17 = vand.u32 2147483647, %v16990_v44 }
 0x4c1   :  { %v10521_v58 = vor.u32 %v13577_v16, %v10520_v19  ;;  %3329 = vmatpush.bf16.msra.mxu3 %v10541_v9  ;;  %v2909_v9 = vor.u32 1.1754944e-38, %v2908_v53  ;;  %v10490_v19 = vld [vmem:[%s21598_s8 + $0x38] sm:$0xf0] }
 0x4c2   :  { %v10474_v53 = vld [vmem:[%s21598_s8 + $0x18] sm:$0xf0]  ;;  %vm2922_vm11 = vcmp.eq.f32.partialorder %v2921_v17, 8.507059e+37 }
 0x4c3   :  { %3317 = vmatpush.bf16.msra.mxu2 %v10521_v58  ;;  %v2910_v62 = vsel %vm2907_vm6, %v2909_v9, %v2905_v57  ;;  %v2923_v9 = vand.u32 2147483648, %v16990_v44  ;;  %v10658_v44 = vld [vmem:[%s21599_s7 + $0x90] sm:$0xf0]  ;;  %v10698_v17 = vld [vmem:[%s21599_s7 + $0xd8] sm:$0xf0] }
 0x4c5   :  { %v2608_v6 = vpop.f32.mrf.mxu1  ;;  %v3298_v22 = vpop.f32.mrf.mxu0  ;;  %3330 = vmatpush.bf16.msra.mxu3 %v10525_v54  ;;  %v13565_v54 = vld [vmem:[%s21598_s8 + $0x14] sm:$0xf0] }
 0x4c6   :  { %v10506_v6 = vld [vmem:[%s21598_s8 + $0x58] sm:$0xf0]  ;;  %v2886_v22 = vadd.f32 %v16985_v36, %v2885_v23  ;;  %v10489_v23 = vor.u32 %v13569_v10, %v10488_v41  ;;  %v13550_v41 = vld [vmem:[%s21599_s7 + $0xa4] sm:$0xf]  ;;  %v10674_v10 = vld [vmem:[%s21599_s7 + $0xb0] sm:$0xf0] }
 0x4c7   :  { %v10509_v24 = vor.u32 %v13571_v13, %v10506_v6  ;;  %3318 = vmatpush.bf16.msra.mxu2 %v10505_v48  ;;  %v10706_v13 = vld [vmem:[%s21599_s7 + $0xf0] sm:$0xf0]  ;;  %v2928_v6 = vmul.f32 %v2910_v62, %v16275_v1  ;;  %v2916_v1 = vadd.f32 %v17034_v40, %v2915_v18  ;;  %v10704_v62 = vld [vmem:[%s21599_s7 + $0xe0] sm:$0xf] }
 0x4c8   :  { %v2890_v16 = vsel %vm17079_vm5, %v16985_v36, %v2886_v22  ;;  %v13563_v36 = vld [vmem:[%s21598_s8 + $0xc] sm:$0xf] }
 0x4c9   :  { %3331 = vmatpush.bf16.msra.mxu3 %v10509_v24  ;;  %v2895_v4 = vsel %vm2892_vm7, %v2894_v3, %v2890_v16  ;;  %v10477_v57 = vor.u32 %v13563_v36, %v10474_v53  ;;  %v10693_v24 = vor.u32 %v13554_v61, %v10690_v52  ;;  %v13546_v16 = vld [vmem:[%s21599_s7 + $0x84] sm:$0xf]  ;;  %v2920_v3 = vsel %vm17132_vm10, %v17034_v40, %v2916_v1  ;;  %v13561_v40 = vld [vmem:[%s21599_s7 + $0xf4] sm:$0xf0]  ;;  %v10714_v36 = vld [vmem:[%s21599_s7 + $0xf8] sm:$0xf0] }
 0x4ca   :  { %v10661_v53 = vor.u32 %v13546_v16, %v10658_v44  ;;  %v10696_v52 = vld [vmem:[%s21599_s7 + $0xc8] sm:$0xf]  ;;  %v10656_v44 = vld [vmem:[%s21599_s7 + $0x80] sm:$0xf] }
 0x4cb   :  { %3319 = vmatpush.bf16.msra.mxu2 %v10489_v23  ;;  %v13560_v23 = vld [vmem:[%s21599_s7 + $0xec] sm:$0xf0] }
 0x4cd   :  { %v2862_v34 = vpop.f32.mrf.mxu1 }
 0x4ce   :  { %v2869_v60 = vadd.f32 %v2862_v34, %v14992_v26  ;;  %v10493_v34 = vor.u32 %v13567_v55, %v10490_v19  ;;  %v10473_v26 = vor.u32 %v13565_v54, %v10472_v50  ;;  %v10677_v19 = vor.u32 %v13550_v41, %v10674_v10  ;;  %v13559_v54 = vld [vmem:[%s21599_s7 + $0xec] sm:$0xf]  ;;  %v13557_v41 = vld [vmem:[%s21599_s7 + $0xd4] sm:$0xf0] }
 0x4cf   :  { %v10705_v50 = vor.u32 %v13560_v23, %v10704_v62  ;;  %v10717_v61 = vor.u32 %v13559_v54, %v10714_v36  ;;  %v13555_v10 = vld [vmem:[%s21599_s7 + $0xcc] sm:$0xf]  ;;  %v13548_v62 = vld [vmem:[%s21599_s7 + $0x8c] sm:$0xf0]  ;;  %v10697_v23 = vor.u32 %v13557_v41, %v10696_v52  ;;  %v10682_v54 = vld [vmem:[%s21599_s7 + $0xb8] sm:$0xf0] }
 0x4d0   :  { %14284 = vtanh.f32 %v2869_v60  ;;  %v13558_v60 = vld [vmem:[%s21599_s7 + $0xe4] sm:$0xf]  ;;  %3332 = vmatpush.bf16.msra.mxu3 %v10493_v34  ;;  %3320 = vmatpush.bf16.msra.mxu2 %v10473_v26  ;;  %v10712_v34 = vld [vmem:[%s21599_s7 + $0xe8] sm:$0xf]  ;;  %v13543_v41 = vld [vmem:[%s21599_s7 + $0x6c] sm:$0xf] }
 0x4d1   :  { %v10709_v63 = vor.u32 %v13558_v60, %v10706_v13  ;;  %3499 = vmatpush.bf16.msrb.mxu0 %v10705_v50  ;;  %v13556_v60 = vld [vmem:[%s21599_s7 + $0xcc] sm:$0xf0]  ;;  %v10713_v26 = vor.u32 %v13561_v40, %v10712_v34  ;;  %v10680_v34 = vld [vmem:[%s21599_s7 + $0xa8] sm:$0xf]  ;;  %v13553_v40 = vld [vmem:[%s21599_s7 + $0xb4] sm:$0xf0] }
 0x4d2   :  { %v13551_v50 = vld [vmem:[%s21599_s7 + $0xac] sm:$0xf] }
 0x4d3   :  { %3512 = vmatpush.bf16.msrb.mxu1 %v10709_v63 }
 0x4d4   :  { %3333 = vmatpush.bf16.msra.mxu3 %v10477_v57  ;;  %v10672_v57 = vld [vmem:[%s21599_s7 + $0xa0] sm:$0xf] }
 0x4d5   :  { %v2864_v58 = vpop.f32.mrf.mxu1 }
 0x4d6   :  { %v14285_v56 = vpop.eup %14284  ;;  %v2924_v58 = vor.u32 1.1754944e-38, %v2923_v9 }
 0x4d7   :  { %v2929_v22 = vmul.f32 %v14285_v56, %v2895_v4  ;;  %3513 = vmatpush.bf16.msrb.mxu1 %v10693_v24  ;;  %v10688_v56 = vld [vmem:[%s21599_s7 + $0xc0] sm:$0xf]  ;;  %v13552_v24 = vld [vmem:[%s21599_s7 + $0xac] sm:$0xf0] }
 0x4d8   :  { %v2925_v4 = vsel %vm2922_vm11, %v2924_v58, %v2920_v3  ;;  %v10689_v63 = vor.u32 %v13556_v60, %v10688_v56  ;;  %v10673_v16 = vor.u32 %v13552_v24, %v10672_v57  ;;  %v10626_v3 = vld [vmem:[%s21599_s7 + $0x50] sm:$0xf0]  ;;  %v10701_v58 = vor.u32 %v13555_v10, %v10698_v17  ;;  %v10648_v57 = vld [vmem:[%s21599_s7 + $0x68] sm:$0xf]  ;;  %v13545_v24 = vld [vmem:[%s21599_s7 + $0x74] sm:$0xf0] }
 0x4d9   :  { %v17118_v48 = vadd.f32 %v2929_v22, %v2928_v6  ;;  %v13542_v6 = vld [vmem:[%s21599_s7 + $0x64] sm:$0xf]  ;;  %v10642_v22 = vld [vmem:[%s21599_s7 + $0x70] sm:$0xf0]  ;;  %v10657_v56 = vor.u32 %v13548_v62, %v10656_v44  ;;  %v10685_v60 = vor.u32 %v13551_v50, %v10682_v54  ;;  %v10650_v10 = vld [vmem:[%s21599_s7 + $0x78] sm:$0xf0]  ;;  %v10649_v17 = vor.u32 %v13545_v24, %v10648_v57 }
 0x4da   :  { %v10645_v7 = vor.u32 %v13542_v6, %v10642_v22  ;;  %3500 = vmatpush.bf16.msrb.mxu0 %v10689_v63  ;;  %v13549_v6 = vld [vmem:[%s21599_s7 + $0x94] sm:$0xf0]  ;;  %v13547_v22 = vld [vmem:[%s21599_s7 + $0x8c] sm:$0xf]  ;;  %v10666_v63 = vld [vmem:[%s21599_s7 + $0x98] sm:$0xf0] }
 0x4db   :  { %14286 = vtanh.f32 %v17118_v48  ;;  %3514 = vmatpush.bf16.msrb.mxu1 %v10677_v19  ;;  %v13538_v19 = vld [vmem:[%s21599_s7 + $0x44] sm:$0xf]  ;;  %v10669_v52 = vor.u32 %v13547_v22, %v10666_v63  ;;  %v10640_v22 = vld [vmem:[%s21599_s7 + $0x60] sm:$0xf]  ;;  %v13544_v63 = vld [vmem:[%s21599_s7 + $0x6c] sm:$0xf0] }
 0x4dc   :  { %v10629_v36 = vor.u32 %v13538_v19, %v10626_v3  ;;  %v13541_v19 = vld [vmem:[%s21599_s7 + $0x54] sm:$0xf0]  ;;  %v10634_v3 = vld [vmem:[%s21599_s7 + $0x58] sm:$0xf0]  ;;  %v13530_v54 = vld [vmem:[%s21599_s7 + $0x4] sm:$0xf] }
 0x4dd   :  { %v17136_v55 = vpop.f32.mrf.mxu1  ;;  %v13630_v57 = vld [vmem:[%s21594_s3 + $0xe4] sm:$0xf]  ;;  %v10872_v24 = vld [vmem:[%s21594_s3 + $0xf0] sm:$0xf0] }
 0x4de   :  { %3501 = vmatpush.bf16.msrb.mxu0 %v10673_v16  ;;  %v13539_v16 = vld [vmem:[%s21599_s7 + $0x4c] sm:$0xf] }
 0x4df   :  { %3515 = vmatpush.bf16.msrb.mxu1 %v10661_v53  ;;  %v10681_v53 = vor.u32 %v13553_v40, %v10680_v34  ;;  %v10637_v62 = vor.u32 %v13539_v16, %v10634_v3  ;;  %v13535_v34 = vld [vmem:[%s21599_s7 + $0x2c] sm:$0xf]  ;;  %v13540_v16 = vld [vmem:[%s21599_s7 + $0x4c] sm:$0xf0]  ;;  %v10854_v3 = vld [vmem:[%s21594_s3 + $0xc0] sm:$0xf] }
 0x4e1   :  { %v14287_v18 = vpop.eup %14286 }
 0x4e2   :  { %v2932_v13 = vmul.f32 %v14287_v18, %v2925_v4  ;;  %v13534_v18 = vld [vmem:[%s21599_s7 + $0x24] sm:$0xf]  ;;  %v10610_v4 = vld [vmem:[%s21599_s7 + $0x30] sm:$0xf0]  ;;  %3502 = vmatpush.bf16.msrb.mxu0 %v10657_v56  ;;  %v10600_v56 = vld [vmem:[%s21599_s7 + $0x8] sm:$0xf] }
 0x4e3   :  { %3516 = vmatpush.bf16.msrb.mxu1 %v10645_v7  ;;  %v10632_v7 = vld [vmem:[%s21599_s7 + $0x48] sm:$0xf] }
 0x4e4   :  { %v17186_v1 = vpack.c.bf16 %v2932_v13, %v2932_v13  ;;  %v10664_v13 = vld [vmem:[%s21599_s7 + $0x88] sm:$0xf]  ;;  %v10633_v44 = vor.u32 %v13541_v19, %v10632_v7  ;;  %v10624_v19 = vld [vmem:[%s21599_s7 + $0x40] sm:$0xf] }
 0x4e5   :  { %v3311_v9 = vpop.f32.mrf.mxu1 }
 0x4e6   :  { %3038 = vmatmul.bf16.vlgmr.msrb.gmra.mxu2 %v17186_v1  ;;  %3051 = vmatmul.bf16.vlgmr.msrb.gmra.mxu3 %v17186_v1  ;;  %v10653_v9 = vor.u32 %v13543_v41, %v10650_v10  ;;  %v10875_v10 = vor.u32 %v13630_v57, %v10872_v24  ;;  %v10822_v24 = vld [vmem:[%s21594_s3 + $0x80] sm:$0xf] }
 0x4e7   :  { %3525 = vmatpush.bf16.msrb.mxu2 %v10713_v26  ;;  %3538 = vmatpush.bf16.msrb.mxu3 %v10717_v61  ;;  %v10613_v26 = vor.u32 %v13534_v18, %v10610_v4  ;;  %v10665_v61 = vor.u32 %v13549_v6, %v10664_v13  ;;  %v13533_v4 = vld [vmem:[%s21599_s7 + $0x14] sm:$0xf0] }
 0x4e8   :  { %3517 = vmatpush.bf16.msrb.mxu1 %v10629_v36  ;;  %v10594_v36 = vld [vmem:[%s21599_s7 + $0x10] sm:$0xf0]  ;;  %v10601_v13 = vor.u32 %v13533_v4, %v10600_v56  ;;  %v13536_v56 = vld [vmem:[%s21599_s7 + $0x2c] sm:$0xf0] }
 0x4e9   :  { %v10597_v18 = vor.u32 %v13530_v54, %v10594_v36  ;;  %v10608_v54 = vld [vmem:[%s21599_s7 + $0x20] sm:$0xf]  ;;  %v13624_v4 = vld [vmem:[%s21594_s3 + $0xac] sm:$0xf0] }
 0x4eb   :  { %3526 = vmatpush.bf16.msrb.mxu2 %v10697_v23  ;;  %3539 = vmatpush.bf16.msrb.mxu3 %v10701_v58  ;;  %v10616_v23 = vld [vmem:[%s21599_s7 + $0x28] sm:$0xf]  ;;  %v13537_v58 = vld [vmem:[%s21599_s7 + $0x34] sm:$0xf0] }
 0x4ec   :  { %3518 = vmatpush.bf16.msrb.mxu1 %v10613_v26  ;;  %v10617_v40 = vor.u32 %v13537_v58, %v10616_v23  ;;  %v10870_v26 = vld [vmem:[%s21594_s3 + $0xe0] sm:$0xf]  ;;  %v13626_v23 = vld [vmem:[%s21594_s3 + $0xc4] sm:$0xf]  ;;  %v10856_v58 = vld [vmem:[%s21594_s3 + $0xd0] sm:$0xf0] }
 0x4ef   :  { %3527 = vmatpush.bf16.msrb.mxu2 %v10681_v53  ;;  %3540 = vmatpush.bf16.msrb.mxu3 %v10685_v60  ;;  %v13531_v53 = vld [vmem:[%s21599_s7 + $0xc] sm:$0xf]  ;;  %v10602_v60 = vld [vmem:[%s21599_s7 + $0x18] sm:$0xf0] }
 0x4f0   :  { %v10605_v6 = vor.u32 %v13531_v53, %v10602_v60  ;;  %3519 = vmatpush.bf16.msrb.mxu1 %v10597_v18  ;;  %v10838_v18 = vld [vmem:[%s21594_s3 + $0xa0] sm:$0xf]  ;;  %v10609_v53 = vor.u32 %v13536_v56, %v10608_v54  ;;  %v13622_v60 = vld [vmem:[%s21594_s3 + $0xa4] sm:$0xf] }
 0x4f3   :  { %3528 = vmatpush.bf16.msrb.mxu2 %v10665_v61  ;;  %3541 = vmatpush.bf16.msrb.mxu3 %v10669_v52  ;;  %v10641_v61 = vor.u32 %v13544_v63, %v10640_v22  ;;  %v13632_v52 = vld [vmem:[%s21594_s3 + $0xec] sm:$0xf0]  ;;  %v10839_v22 = vor.u32 %v13624_v4, %v10838_v18  ;;  %v13610_v4 = vld [vmem:[%s21594_s3 + $0x44] sm:$0xf] }
 0x4f4   :  { %v10871_v41 = vor.u32 %v13632_v52, %v10870_v26  ;;  %v13625_v26 = vld [vmem:[%s21594_s3 + $0xb4] sm:$0xf0]  ;;  %v13532_v52 = vld [vmem:[%s21599_s7 + $0xc] sm:$0xf0] }
 0x4f5   :  { %3503 = vmatpush.bf16.msrb.mxu0 %v10641_v61  ;;  %v10592_v61 = vld [vmem:[%s21599_s7] sm:$0xf]  ;;  %v13612_v18 = vld [vmem:[%s21594_s3 + $0x4c] sm:$0xf0] }
 0x4f6   :  { %3321 = vmatmul.bf16.vlgmr.msra.gmra.mxu2 %v16801_v5  ;;  %3334 = vmatmul.bf16.vlgmr.msra.gmra.mxu3 %v16801_v5  ;;  %v10618_v5 = vld [vmem:[%s21599_s7 + $0x38] sm:$0xf0] }
 0x4f7   :  { %3529 = vmatpush.bf16.msrb.mxu2 %v10649_v17  ;;  %3542 = vmatpush.bf16.msrb.mxu3 %v10653_v9  ;;  %v10621_v50 = vor.u32 %v13535_v34, %v10618_v5  ;;  %v10878_v17 = vld [vmem:[%s21594_s3 + $0xe8] sm:$0xf]  ;;  %v13633_v9 = vld [vmem:[%s21594_s3 + $0xf4] sm:$0xf0]  ;;  %v10859_v5 = vor.u32 %v13626_v23, %v10856_v58  ;;  %v13616_v23 = vld [vmem:[%s21594_s3 + $0x6c] sm:$0xf0] }
 0x4f8   :  { %v10879_v7 = vor.u32 %v13633_v9, %v10878_v17  ;;  %3900 = vmatpush.bf16.msra.mxu1 %v10871_v41  ;;  %v13620_v41 = vld [vmem:[%s21594_s3 + $0x8c] sm:$0xf0]  ;;  %v10824_v17 = vld [vmem:[%s21594_s3 + $0x90] sm:$0xf0]  ;;  %v10830_v9 = vld [vmem:[%s21594_s3 + $0x88] sm:$0xf] }
 0x4f9   :  { %v13614_v58 = vld [vmem:[%s21594_s3 + $0x64] sm:$0xf] }
 0x4fb   :  { %3530 = vmatpush.bf16.msrb.mxu2 %v10633_v44  ;;  %3543 = vmatpush.bf16.msrb.mxu3 %v10637_v62  ;;  %v10625_v44 = vor.u32 %v13540_v16, %v10624_v19  ;;  %v13628_v62 = vld [vmem:[%s21594_s3 + $0xcc] sm:$0xf0]  ;;  %v10593_v19 = vor.u32 %v13532_v52, %v10592_v61  ;;  %v10823_v16 = vor.u32 %v13620_v41, %v10822_v24  ;;  %v13606_v52 = vld [vmem:[%s21594_s3 + $0x24] sm:$0xf] }
 0x4fc   :  { %v10855_v34 = vor.u32 %v13628_v62, %v10854_v3  ;;  %v13608_v61 = vld [vmem:[%s21594_s3 + $0x2c] sm:$0xf0] }
 0x4fd   :  { %3504 = vmatpush.bf16.msrb.mxu0 %v10625_v44  ;;  %v10806_v44 = vld [vmem:[%s21594_s3 + $0x60] sm:$0xf] }
 0x4fe   :  { %3901 = vmatpush.bf16.msra.mxu1 %v10855_v34  ;;  %v10808_v34 = vld [vmem:[%s21594_s3 + $0x70] sm:$0xf0] }
 0x4ff   :  { %3531 = vmatpush.bf16.msrb.mxu2 %v10617_v40  ;;  %3544 = vmatpush.bf16.msrb.mxu3 %v10621_v50  ;;  %v10862_v40 = vld [vmem:[%s21594_s3 + $0xc8] sm:$0xf]  ;;  %v13629_v50 = vld [vmem:[%s21594_s3 + $0xd4] sm:$0xf0]  ;;  %v10811_v54 = vor.u32 %v13614_v58, %v10808_v34  ;;  %v10760_v34 = vld [vmem:[%s21594_s3 + $0x10] sm:$0xf0] }
 0x500   :  { %v10863_v36 = vor.u32 %v13629_v50, %v10862_v40  ;;  %v13617_v40 = vld [vmem:[%s21594_s3 + $0x74] sm:$0xf0]  ;;  %v10807_v50 = vor.u32 %v13616_v23, %v10806_v44  ;;  %v13604_v44 = vld [vmem:[%s21594_s3 + $0xc] sm:$0xf0] }
 0x501   :  { %3505 = vmatpush.bf16.msrb.mxu0 %v10609_v53  ;;  %v10792_v53 = vld [vmem:[%s21594_s3 + $0x50] sm:$0xf0] }
 0x502   :  { %3902 = vmatpush.bf16.msra.mxu1 %v10839_v22  ;;  %v10795_v22 = vor.u32 %v13610_v4, %v10792_v53 }
 0x503   :  { %3532 = vmatpush.bf16.msrb.mxu2 %v10601_v13  ;;  %3545 = vmatpush.bf16.msrb.mxu3 %v10605_v6  ;;  %v10840_v13 = vld [vmem:[%s21594_s3 + $0xb0] sm:$0xf0]  ;;  %v10846_v6 = vld [vmem:[%s21594_s3 + $0xa8] sm:$0xf] }
 0x504   :  { %v10843_v63 = vor.u32 %v13622_v60, %v10840_v13  ;;  %v10847_v57 = vor.u32 %v13625_v26, %v10846_v6  ;;  %v10798_v60 = vld [vmem:[%s21594_s3 + $0x48] sm:$0xf]  ;;  %v13613_v13 = vld [vmem:[%s21594_s3 + $0x54] sm:$0xf0] }
 0x505   :  { %3506 = vmatpush.bf16.msrb.mxu0 %v10593_v19  ;;  %v10799_v26 = vor.u32 %v13613_v13, %v10798_v60  ;;  %v10461_v60 = vld [vmem:[%s21603_s1 + $0x10] sm:$0xff]  ;;  %v13599_v13 = vld [vmem:[%s21602_s10 + $0x28] sm:$0xff] }
 0x506   :  { %3903 = vmatpush.bf16.msra.mxu1 %v10823_v16 }
 0x507   :  { %3913 = vmatpush.bf16.msra.mxu2 %v10875_v10  ;;  %3926 = vmatpush.bf16.msra.mxu3 %v10879_v7  ;;  %v13618_v10 = vld [vmem:[%s21594_s3 + $0x84] sm:$0xf]  ;;  %v13621_v7 = vld [vmem:[%s21594_s3 + $0x94] sm:$0xf0] }
 0x508   :  { %v10827_v3 = vor.u32 %v13618_v10, %v10824_v17  ;;  %v10831_v62 = vor.u32 %v13621_v7, %v10830_v9  ;;  %v10782_v10 = vld [vmem:[%s21594_s3 + $0x28] sm:$0xf]  ;;  %v13609_v17 = vld [vmem:[%s21594_s3 + $0x34] sm:$0xf0] }
 0x509   :  { %v10783_v58 = vor.u32 %v13609_v17, %v10782_v10  ;;  %v13597_v10 = vld [vmem:[%s21602_s10 + $0x18] sm:$0xff]  ;;  %v13596_v17 = vld [vmem:[%s21602_s10 + $0x10] sm:$0xff] }
 0x50a   :  { %3904 = vmatpush.bf16.msra.mxu1 %v10807_v50  ;;  %v13605_v50 = vld [vmem:[%s21594_s3 + $0x14] sm:$0xf0] }
 0x50b   :  { %3914 = vmatpush.bf16.msra.mxu2 %v10859_v5  ;;  %3927 = vmatpush.bf16.msra.mxu3 %v10863_v36  ;;  %v10814_v5 = vld [vmem:[%s21594_s3 + $0x68] sm:$0xf]  ;;  %v10790_v36 = vld [vmem:[%s21594_s3 + $0x40] sm:$0xf] }
 0x50c   :  { %v10815_v56 = vor.u32 %v13617_v40, %v10814_v5  ;;  %v10791_v6 = vor.u32 %v13612_v18, %v10790_v36  ;;  %v13601_v5 = vld [vmem:[%s21602_s10 + $0x38] sm:$0xff]  ;;  %v10766_v40 = vld [vmem:[%s21594_s3 + $0x8] sm:$0xf] }
 0x50d   :  { %3683 = vmatpush.bf16.msra.mxu0 %v13601_v5  ;;  %v10767_v18 = vor.u32 %v13605_v50, %v10766_v40  ;;  %v13627_v40 = vld [vmem:[%s21594_s3 + $0xcc] sm:$0xf]  ;;  %v10864_v50 = vld [vmem:[%s21594_s3 + $0xd8] sm:$0xf0] }
 0x50e   :  { %3905 = vmatpush.bf16.msra.mxu1 %v10791_v6 }
 0x50f   :  { %3915 = vmatpush.bf16.msra.mxu2 %v10843_v63  ;;  %3928 = vmatpush.bf16.msra.mxu3 %v10847_v57  ;;  %v10774_v63 = vld [vmem:[%s21594_s3 + $0x20] sm:$0xf]  ;;  %v10776_v57 = vld [vmem:[%s21594_s3 + $0x30] sm:$0xf0] }
 0x510   :  { %v10775_v19 = vor.u32 %v13608_v61, %v10774_v63  ;;  %v10779_v16 = vor.u32 %v13606_v52, %v10776_v57 }
 0x512   :  { %3906 = vmatpush.bf16.msra.mxu1 %v10775_v19  ;;  %v13712_v19 = vld [vmem:[%s21598_s8 + $0xec] sm:$0xf0] }
 0x513   :  { %3916 = vmatpush.bf16.msra.mxu2 %v10827_v3  ;;  %3929 = vmatpush.bf16.msra.mxu3 %v10831_v62  ;;  %v10758_v3 = vld [vmem:[%s21594_s3] sm:$0xf]  ;;  %v13602_v62 = vld [vmem:[%s21594_s3 + $0x4] sm:$0xf] }
 0x514   :  { %v10759_v36 = vor.u32 %v13604_v44, %v10758_v3  ;;  %v13594_v3 = vld [vmem:[%s21602_s10] sm:$0xff]  ;;  %v13631_v44 = vld [vmem:[%s21594_s3 + $0xec] sm:$0xf] }
 0x516   :  { %3907 = vmatpush.bf16.msra.mxu1 %v10759_v36  ;;  %v11034_v36 = vld [vmem:[%s21598_s8 + $0xa0] sm:$0xf] }
 0x517   :  { %3917 = vmatpush.bf16.msra.mxu2 %v10811_v54  ;;  %3930 = vmatpush.bf16.msra.mxu3 %v10815_v56  ;;  %v13600_v54 = vld [vmem:[%s21602_s10 + $0x30] sm:$0xff]  ;;  %v10763_v56 = vor.u32 %v13602_v62, %v10760_v34  ;;  %v10880_v62 = vld [vmem:[%s21594_s3 + $0xf8] sm:$0xf0] }
 0x518   :  { %3684 = vmatpush.bf16.msra.mxu0 %v13600_v54  ;;  %v13708_v34 = vld [vmem:[%s21598_s8 + $0xcc] sm:$0xf0]  ;;  %v10867_v54 = vor.u32 %v13627_v40, %v10864_v50  ;;  %v13615_v40 = vld [vmem:[%s21594_s3 + $0x6c] sm:$0xf]  ;;  %v10816_v50 = vld [vmem:[%s21594_s3 + $0x78] sm:$0xf0] }
 0x51b   :  { %3918 = vmatpush.bf16.msra.mxu2 %v10795_v22  ;;  %3931 = vmatpush.bf16.msra.mxu3 %v10799_v26 }
 0x51c   :  { %3685 = vmatpush.bf16.msra.mxu0 %v13599_v13 }
 0x51f   :  { %3919 = vmatpush.bf16.msra.mxu2 %v10779_v16  ;;  %3932 = vmatpush.bf16.msra.mxu3 %v10783_v58  ;;  %v11050_v58 = vld [vmem:[%s21598_s8 + $0xc0] sm:$0xf] }
 0x520   :  { %v11051_v5 = vor.u32 %v13708_v34, %v11050_v58 }
 0x523   :  { %3920 = vmatpush.bf16.msra.mxu2 %v10763_v56  ;;  %3933 = vmatpush.bf16.msra.mxu3 %v10767_v18  ;;  %v13704_v56 = vld [vmem:[%s21598_s8 + $0xac] sm:$0xf0] }
 0x569   :  { %v3039_v24 = vpop.f32.mrf.mxu2  ;;  %v3052_v41 = vpop.f32.mrf.mxu3 }
 0x56a   :  { %v3040_v9 = vadd.f32 %v3039_v24, %v15761_v42  ;;  %v3053_v7 = vadd.f32 %v3052_v41, %v15763_v45  ;;  %v13598_v41 = vld [vmem:[%s21602_s10 + $0x20] sm:$0xff] }
 0x56b   :  { %3686 = vmatpush.bf16.msra.mxu0 %v13598_v41 }
 0x56c   :  { %10753 = vst [vmem:[%s21601_s12 + $0x20] sm:$0xff] %v3040_v9  ;;  %v3056_v23 = vmul.f32 1.442695, %v3053_v7 }
 0x56d   :  { %10754 = vst [vmem:[%s21601_s12 + $0x28] sm:$0xff] %v3053_v7  ;;  %v11066_v7 = vld [vmem:[%s21598_s8 + $0xe0] sm:$0xf] }
 0x56e   :  { %14288 = vpow2.f32 %v3056_v23  ;;  %v11067_v16 = vor.u32 %v13712_v19, %v11066_v7  ;;  %v10883_v23 = vor.u32 %v13631_v44, %v10880_v62  ;;  %v13696_v44 = vld [vmem:[%s21598_s8 + $0x6c] sm:$0xf0] }
 0x56f   :  { %3687 = vmatpush.bf16.msra.mxu0 %v13597_v10 }
 0x571   :  { %v3041_v4 = vpop.f32.mrf.mxu2  ;;  %v3054_v53 = vpop.f32.mrf.mxu3 }
 0x572   :  { %v11035_v53 = vor.u32 %v13704_v56, %v11034_v36  ;;  %v13692_v36 = vld [vmem:[%s21598_s8 + $0x4c] sm:$0xf0] }
 0x573   :  { %3688 = vmatpush.bf16.msra.mxu0 %v13596_v17  ;;  %v13619_v17 = vld [vmem:[%s21594_s3 + $0x8c] sm:$0xf] }
 0x574   :  { %v14289_v6 = vpop.eup %14288 }
 0x575   :  { %v3060_v22 = vmul.f32 %v14289_v6, %v10461_v60  ;;  %v13623_v6 = vld [vmem:[%s21594_s3 + $0xac] sm:$0xf] }
 0x577   :  { %v3061_v63 = vadd.f32 %v3060_v22, %v3040_v9  ;;  %v13595_v9 = vld [vmem:[%s21602_s10 + $0x8] sm:$0xff]  ;;  %v10848_v22 = vld [vmem:[%s21594_s3 + $0xb8] sm:$0xf0] }
 0x578   :  { %3689 = vmatpush.bf16.msra.mxu0 %v13595_v9  ;;  %v10832_v9 = vld [vmem:[%s21594_s3 + $0x98] sm:$0xf0] }
 0x579   :  { %v17485_v26 = vpop.f32.mrf.mxu2  ;;  %v17487_v61 = vpop.f32.mrf.mxu3  ;;  %v3062_v52 = vpack.c.bf16 %v3061_v63, %v3061_v63 }
 0x57b   :  { %3507 = vmatmul.bf16.vlgmr.msrb.gmra.mxu0 %v3062_v52  ;;  %3520 = vmatmul.bf16.vlgmr.msrb.gmra.mxu1 %v3062_v52 }
 0x57c   :  { %3533 = vmatmul.bf16.vlgmr.msrb.gmra.mxu2 %v3062_v52  ;;  %3546 = vmatmul.bf16.vlgmr.msrb.gmra.mxu3 %v3062_v52 }
 0x57d   :  { %4373 = vmatpush.bf16.msrb.mxu3 %v11067_v16  ;;  %3690 = vmatpush.bf16.msra.mxu0 %v13594_v3  ;;  %v10835_v16 = vor.u32 %v13619_v17, %v10832_v9  ;;  %v11002_v3 = vld [vmem:[%s21598_s8 + $0x60] sm:$0xf] }
 0x57e   :  { %v11003_v34 = vor.u32 %v13696_v44, %v11002_v3  ;;  %v10954_v3 = vld [vmem:[%s21598_s8] sm:$0xf] }
 0x581   :  { %v3324_v57 = vpop.f32.mrf.mxu2  ;;  %v3337_v24 = vpop.f32.mrf.mxu3  ;;  %3939 = vmatpush.bf16.msrb.mxu0 %v10883_v23  ;;  %4374 = vmatpush.bf16.msrb.mxu3 %v11051_v5 }
 0x582   :  { %v10851_v57 = vor.u32 %v13623_v6, %v10848_v22  ;;  %v10800_v6 = vld [vmem:[%s21594_s3 + $0x58] sm:$0xf0] }
 0x585   :  { %3940 = vmatpush.bf16.msrb.mxu0 %v10867_v54  ;;  %4375 = vmatpush.bf16.msrb.mxu3 %v11035_v53  ;;  %v10819_v54 = vor.u32 %v13615_v40, %v10816_v50  ;;  %v353_v40 = vadd.f32 %v14996_v28, %v14982_v20 }
 0x589   :  { %3941 = vmatpush.bf16.msrb.mxu0 %v10851_v57 }
 0x58b   :  { %3908 = vmatmul.bf16.vlgmr.msra.gmra.mxu1 %v17186_v1 }
 0x58c   :  { %3921 = vmatmul.bf16.vlgmr.msra.gmra.mxu2 %v17186_v1  ;;  %3934 = vmatmul.bf16.vlgmr.msra.gmra.mxu3 %v17186_v1 }
 0x58d   :  { %3942 = vmatpush.bf16.msrb.mxu0 %v10835_v16  ;;  %v10784_v16 = vld [vmem:[%s21594_s3 + $0x38] sm:$0xf0] }
 0x591   :  { %3943 = vmatpush.bf16.msrb.mxu0 %v10819_v54 }
 0x5f8   :  { %v3508_v18 = vpop.f32.mrf.mxu0  ;;  %v3521_v4 = vpop.f32.mrf.mxu1 }
 0x5f9   :  { %v3509_v60 = vadd.f32 %v3508_v18, %v16960_v59  ;;  %v3522_v13 = vadd.f32 %v3521_v4, %v17136_v55  ;;  %v11018_v59 = vld [vmem:[%s21598_s8 + $0x80] sm:$0xf]  ;;  %v13700_v55 = vld [vmem:[%s21598_s8 + $0x8c] sm:$0xf0] }
 0x5fa   :  { %v11019_v24 = vor.u32 %v13700_v55, %v11018_v59  ;;  %v10970_v59 = vld [vmem:[%s21598_s8 + $0x20] sm:$0xf]  ;;  %v13688_v55 = vld [vmem:[%s21598_s8 + $0x2c] sm:$0xf0] }
 0x5fb   :  { %v3551_v63 = vadd.f32 %v3509_v60, %v15855_v32  ;;  %v3552_v52 = vadd.f32 %v3522_v13, %v15858_v47  ;;  %v13611_v13 = vld [vmem:[%s21594_s3 + $0x4c] sm:$0xf]  ;;  %v10971_v9 = vor.u32 %v13688_v55, %v10970_v59 }
 0x5fc   :  { %4376 = vmatpush.bf16.msrb.mxu3 %v11019_v24  ;;  %v10803_v57 = vor.u32 %v13611_v13, %v10800_v6  ;;  %v295_v24 = vadd.f32 %v14989_v25, %v14968_v12 }
 0x5fd   :  { %v10718_v41 = vmul.f32 -1.442695, %v3551_v63  ;;  %v10719_v10 = vmul.f32 -1.442695, %v3552_v52 }
 0x5fe   :  { %3944 = vmatpush.bf16.msrb.mxu0 %v10803_v57 }
 0x5ff   :  { %14290 = vpow2.f32 %v10718_v41  ;;  %v3534_v7 = vpop.f32.mrf.mxu2  ;;  %v3547_v19 = vpop.f32.mrf.mxu3 }
 0x600   :  { %14292 = vpow2.f32 %v10719_v10  ;;  %v3535_v62 = vadd.f32 %v3534_v7, %v17485_v26  ;;  %v3510_v23 = vpop.f32.mrf.mxu0  ;;  %v3523_v58 = vpop.f32.mrf.mxu1  ;;  %4377 = vmatpush.bf16.msrb.mxu3 %v11003_v34  ;;  %v10986_v26 = vld [vmem:[%s21598_s8 + $0x40] sm:$0xf]  ;;  %v3548_v10 = vadd.f32 %v3547_v19, %v17487_v61  ;;  %v13607_v7 = vld [vmem:[%s21594_s3 + $0x2c] sm:$0xf]  ;;  %v13684_v61 = vld [vmem:[%s21598_s8 + $0xc] sm:$0xf0] }
 0x601   :  { %v10987_v18 = vor.u32 %v13692_v36, %v10986_v26  ;;  %v10787_v25 = vor.u32 %v13607_v7, %v10784_v16  ;;  %v10955_v44 = vor.u32 %v13684_v61, %v10954_v3  ;;  %v324_v58 = vadd.f32 %v14994_v27, %v14972_v14  ;;  %v13603_v36 = vld [vmem:[%s21594_s3 + $0xc] sm:$0xf]  ;;  %v10768_v27 = vld [vmem:[%s21594_s3 + $0x18] sm:$0xf0] }
 0x602   :  { %v3553_v5 = vadd.f32 %v3535_v62, %v15831_v30  ;;  %v3554_v34 = vadd.f32 %v3548_v10, %v15934_v8 }
 0x603   :  { %3945 = vmatpush.bf16.msrb.mxu0 %v10787_v25 }
 0x604   :  { %v10720_v56 = vmul.f32 -1.442695, %v3553_v5  ;;  %4378 = vmatpush.bf16.msrb.mxu3 %v10987_v18 }
 0x605   :  { %v14291_v4 = vpop.eup %14290 }
 0x606   :  { %v14293_v53 = vpop.eup %14292  ;;  %v17579_v60 = vadd.f32 1.0, %v14291_v4  ;;  %14294 = vpow2.f32 %v10720_v56 }
 0x607   :  { %v17587_v22 = vadd.f32 1.0, %v14293_v53  ;;  %v3536_v63 = vpop.f32.mrf.mxu2  ;;  %v3549_v52 = vpop.f32.mrf.mxu3 }
 0x608   :  { %14296 = vrcp.f32 %v17579_v60  ;;  %v3909_v41 = vpop.f32.mrf.mxu1  ;;  %4379 = vmatpush.bf16.msrb.mxu3 %v10971_v9  ;;  %v3578_v6 = vand.u32 2147483648, %v17579_v60  ;;  %v10771_v63 = vor.u32 %v13603_v36, %v10768_v27  ;;  %v3576_v59 = vand.u32 2147483647, %v17579_v60 }
 0x609   :  { %14298 = vrcp.f32 %v17587_v22  ;;  %v17600_v17 = vadd.f32 %v3909_v41, %v295_v24  ;;  %v3593_v52 = vand.u32 2147483648, %v17587_v22  ;;  %v3591_v24 = vand.u32 2147483647, %v17587_v22 }
 0x60a   :  { %3946 = vmatpush.bf16.msrb.mxu0 %v10771_v63  ;;  %vm3572_vm14 = vweird.f32 %v17579_v60  ;;  %vm3587_vm15 = vweird.f32 %v17587_v22  ;;  %v3579_v7 = vor.u32 1.1754944e-38, %v3578_v6  ;;  %vm3577_vm2 = vcmp.eq.f32.partialorder %v3576_v59, 8.507059e+37  ;;  %v10945_v59 = vld [vmem:[%s21597_s5 + $0x70] sm:$0xf] }
 0x60b   :  { %v3594_v25 = vor.u32 1.1754944e-38, %v3593_v52  ;;  %vm3592_vm3 = vcmp.eq.f32.partialorder %v3591_v24, 8.507059e+37  ;;  %v13648_v24 = vld [vmem:[%s21597_s5 + $0x74] sm:$0xf] }
 0x60c   :  { %v14295_v19 = vpop.eup %14294  ;;  %4380 = vmatpush.bf16.msrb.mxu3 %v10955_v44 }
 0x60d   :  { %v17614_v62 = vadd.f32 1.0, %v14295_v19 }
 0x60e   :  { %v14297_v23 = vpop.eup %14296 }
 0x60f   :  { %v14299_v5 = vpop.eup %14298  ;;  %v3568_v50 = vmul.f32 %v14297_v23, %v17579_v60  ;;  %14300 = vrcp.f32 %v17614_v62  ;;  %v3922_v54 = vpop.f32.mrf.mxu2  ;;  %vm3573_vm12 = vweird.f32 %v14297_v23  ;;  %v3608_v27 = vand.u32 2147483648, %v17614_v62 }
 0x610   :  { %v3935_v26 = vpop.f32.mrf.mxu3  ;;  %v3583_v56 = vmul.f32 %v14299_v5, %v17587_v22  ;;  %v17630_v18 = vadd.f32 %v3922_v54, %v324_v58  ;;  %v3911_v4 = vpop.f32.mrf.mxu1  ;;  %14302 = vtanh.f32 %v3554_v34  ;;  %vm3588_vm13 = vweird.f32 %v14299_v5  ;;  %vm3574_vm0 = vmor %vm3572_vm14, %vm3573_vm12 }
 0x611   :  { %v3569_v28 = vsub.f32 1.0, %v3568_v50  ;;  %v17632_v53 = vadd.f32 %v3935_v26, %v353_v40  ;;  %vm3589_vm1 = vmor %vm3587_vm15, %vm3588_vm13  ;;  %vm3602_vm5 = vweird.f32 %v17614_v62  ;;  %v11068_v4 = vld [vmem:[%s21598_s8 + $0xf0] sm:$0xf0] }
 0x612   :  { %v3584_v13 = vsub.f32 1.0, %v3583_v56  ;;  %v3609_v56 = vor.u32 1.1754944e-38, %v3608_v27 }
 0x613   :  { %v3570_v57 = vmul.f32 %v14297_v23, %v3569_v28 }
 0x614   :  { %v3585_v55 = vmul.f32 %v14299_v5, %v3584_v13 }
 0x615   :  { %v14301_v41 = vpop.eup %14300  ;;  %v3571_v10 = vadd.f32 %v14297_v23, %v3570_v57  ;;  %v11052_v57 = vld [vmem:[%s21598_s8 + $0xd0] sm:$0xf0] }
 0x616   :  { %v3598_v9 = vmul.f32 %v14301_v41, %v17614_v62  ;;  %v3586_v16 = vadd.f32 %v14299_v5, %v3585_v55  ;;  %v14303_v44 = vpop.eup %14302  ;;  %vm3603_vm4 = vweird.f32 %v14301_v41  ;;  %v13649_v55 = vld [vmem:[%s21597_s5 + $0x74] sm:$0xf0] }
 0x617   :  { %v3575_v3 = vsel %vm3574_vm0, %v14297_v23, %v3571_v10  ;;  %v3924_v61 = vpop.f32.mrf.mxu2  ;;  %v3606_v23 = vand.u32 2147483647, %v17614_v62  ;;  %vm3604_vm6 = vmor %vm3602_vm5, %vm3603_vm4  ;;  %v13706_v62 = vld [vmem:[%s21598_s8 + $0xc4] sm:$0xf]  ;;  %v10946_v10 = vor.u32 %v13649_v55, %v10945_v59  ;;  %v10931_v59 = vld [vmem:[%s21597_s5 + $0x58] sm:$0xf0] }
 0x618   :  { %v3937_v19 = vpop.f32.mrf.mxu3  ;;  %v3599_v58 = vsub.f32 1.0, %v3598_v9  ;;  %v3580_v34 = vsel %vm3577_vm2, %v3579_v7, %v3575_v3  ;;  %v3590_v40 = vsel %vm3589_vm1, %v14299_v5, %v3586_v16  ;;  %v10947_v9 = vld [vmem:[%s21597_s5 + $0x78] sm:$0xf0]  ;;  %v13702_v7 = vld [vmem:[%s21598_s8 + $0xa4] sm:$0xf] }
 0x619   :  { %v3595_v50 = vsel %vm3592_vm3, %v3594_v25, %v3590_v40  ;;  %v3614_v60 = vmul.f32 %v14303_v44, %v3580_v34  ;;  %vm3607_vm7 = vcmp.eq.f32.partialorder %v3606_v23, 8.507059e+37  ;;  %v11036_v16 = vld [vmem:[%s21598_s8 + $0xb0] sm:$0xf0]  ;;  %v10950_v25 = vor.u32 %v13648_v24, %v10947_v9  ;;  %4116 = vmatpush.bf16.msrb.mxu1 %v10946_v10  ;;  %v13698_v61 = vld [vmem:[%s21598_s8 + $0x84] sm:$0xf] }
 0x61a   :  { %v3600_v54 = vmul.f32 %v14301_v41, %v3599_v58  ;;  %v3613_v22 = vmul.f32 %v3595_v50, %v16789_v15  ;;  %v13710_v15 = vld [vmem:[%s21598_s8 + $0xe4] sm:$0xf]  ;;  %v11039_v3 = vor.u32 %v13702_v7, %v11036_v16  ;;  %v11020_v19 = vld [vmem:[%s21598_s8 + $0x90] sm:$0xf0]  ;;  %v13643_v10 = vld [vmem:[%s21597_s5 + $0x44] sm:$0xf0] }
 0x61b   :  { %v11071_v63 = vor.u32 %v13710_v15, %v11068_v4  ;;  %4129 = vmatpush.bf16.msrb.mxu2 %v10950_v25  ;;  %v11023_v44 = vor.u32 %v13698_v61, %v11020_v19  ;;  %v13694_v58 = vld [vmem:[%s21598_s8 + $0x64] sm:$0xf]  ;;  %v11004_v34 = vld [vmem:[%s21598_s8 + $0x70] sm:$0xf0]  ;;  %v13647_v15 = vld [vmem:[%s21597_s5 + $0x64] sm:$0xf0] }
 0x61c   :  { %v17642_v26 = vadd.f32 %v3614_v60, %v3613_v22  ;;  %v3601_v36 = vadd.f32 %v14301_v41, %v3600_v54  ;;  %v11007_v40 = vor.u32 %v13694_v58, %v11004_v34  ;;  %v13690_v50 = vld [vmem:[%s21598_s8 + $0x44] sm:$0xf]  ;;  %v10988_v60 = vld [vmem:[%s21598_s8 + $0x50] sm:$0xf0]  ;;  %v10923_v7 = vld [vmem:[%s21597_s5 + $0x48] sm:$0xf0] }
 0x61d   :  { %v10991_v54 = vor.u32 %v13690_v50, %v10988_v60  ;;  %v13686_v22 = vld [vmem:[%s21598_s8 + $0x24] sm:$0xf]  ;;  %v10885_v16 = vmul.f32 -1.442695, %v17630_v18  ;;  %v10913_v61 = vld [vmem:[%s21597_s5 + $0x30] sm:$0xf] }
 0x61e   :  { %14304 = vtanh.f32 %v17642_v26  ;;  %v3605_v5 = vsel %vm3604_vm6, %v14301_v41, %v3601_v36  ;;  %v11055_v41 = vor.u32 %v13706_v62, %v11052_v57  ;;  %v10972_v36 = vld [vmem:[%s21598_s8 + $0x30] sm:$0xf0]  ;;  %v13682_v23 = vld [vmem:[%s21598_s8 + $0x4] sm:$0xf]  ;;  %v13641_v19 = vld [vmem:[%s21597_s5 + $0x34] sm:$0xf0] }
 0x61f   :  { %v3610_v13 = vsel %vm3607_vm7, %v3609_v56, %v3605_v5  ;;  %v10975_v27 = vor.u32 %v13686_v22, %v10972_v36  ;;  %v10937_v56 = vld [vmem:[%s21597_s5 + $0x60] sm:$0xf]  ;;  %v13646_v4 = vld [vmem:[%s21597_s5 + $0x64] sm:$0xf]  ;;  %v13644_v57 = vld [vmem:[%s21597_s5 + $0x54] sm:$0xf]  ;;  %14306 = vpow2.f32 %v10885_v16  ;;  %v10914_v34 = vor.u32 %v13641_v19, %v10913_v61 }
 0x620   :  { %v10934_v24 = vor.u32 %v13644_v57, %v10931_v59  ;;  %v13642_v9 = vld [vmem:[%s21597_s5 + $0x44] sm:$0xf]  ;;  %v13640_v58 = vld [vmem:[%s21597_s5 + $0x34] sm:$0xf]  ;;  %v10915_v18 = vld [vmem:[%s21597_s5 + $0x38] sm:$0xf0] }
 0x621   :  { %v10886_v60 = vmul.f32 -1.442695, %v17632_v53  ;;  %v13639_v22 = vld [vmem:[%s21597_s5 + $0x24] sm:$0xf0]  ;;  %v13638_v36 = vld [vmem:[%s21597_s5 + $0x24] sm:$0xf] }
 0x622   :  { %v10907_v53 = vld [vmem:[%s21597_s5 + $0x28] sm:$0xf0]  ;;  %v13634_v57 = vld [vmem:[%s21597_s5 + $0x4] sm:$0xf]  ;;  %v11058_v61 = vld [vmem:[%s21598_s8 + $0xc8] sm:$0xf] }
 0x624   :  { %v14305_v28 = vpop.eup %14304 }
 0x625   :  { %v3617_v6 = vmul.f32 %v14305_v28, %v3610_v13  ;;  %v10938_v28 = vor.u32 %v13647_v15, %v10937_v56  ;;  %v10939_v13 = vld [vmem:[%s21597_s5 + $0x68] sm:$0xf0]  ;;  %v14307_v50 = vpop.eup %14306  ;;  %v10897_v56 = vld [vmem:[%s21597_s5 + $0x10] sm:$0xf]  ;;  %v13637_v15 = vld [vmem:[%s21597_s5 + $0x14] sm:$0xf0] }
 0x626   :  { %v10942_v62 = vor.u32 %v13646_v4, %v10939_v13  ;;  %v13636_v4 = vld [vmem:[%s21597_s5 + $0x14] sm:$0xf]  ;;  %v10899_v13 = vld [vmem:[%s21597_s5 + $0x18] sm:$0xf0] }
 0x627   :  { %v17654_v52 = vpack.c.bf16 %v3617_v6, %v3617_v6  ;;  %v10929_v6 = vld [vmem:[%s21597_s5 + $0x50] sm:$0xf]  ;;  %4117 = vmatpush.bf16.msrb.mxu1 %v10938_v28  ;;  %v10898_v28 = vor.u32 %v13637_v15, %v10897_v56  ;;  %v11044_v56 = vld [vmem:[%s21598_s8 + $0xb8] sm:$0xf0] }
 0x628   :  { %4130 = vmatpush.bf16.msrb.mxu2 %v10942_v62  ;;  %v13635_v62 = vld [vmem:[%s21597_s5 + $0x4] sm:$0xf0] }
 0x629   :  { %3691 = vmatmul.bf16.vlgmr.msra.gmra.mxu0 %v17654_v52  ;;  %4381 = vmatmul.bf16.vlgmr.msrb.gmra.mxu3 %v17654_v52 }
 0x62a   :  { %4386 = vmatpush.bf16.msra.mxu0 %v11071_v63  ;;  %v13645_v63 = vld [vmem:[%s21597_s5 + $0x54] sm:$0xf0] }
 0x62b   :  { %v10930_v55 = vor.u32 %v13645_v63, %v10929_v6  ;;  %v10902_v6 = vor.u32 %v13636_v4, %v10899_v13  ;;  %v10889_v63 = vld [vmem:[%s21597_s5] sm:$0xf] }
 0x62c   :  { %4131 = vmatpush.bf16.msrb.mxu2 %v10934_v24  ;;  %v10890_v59 = vor.u32 %v13635_v62, %v10889_v63  ;;  %v11074_v24 = vld [vmem:[%s21598_s8 + $0xe8] sm:$0xf]  ;;  %v13701_v63 = vld [vmem:[%s21598_s8 + $0x94] sm:$0xf0] }
 0x62d   :  { %4118 = vmatpush.bf16.msrb.mxu1 %v10930_v55  ;;  %v10891_v55 = vld [vmem:[%s21597_s5 + $0x8] sm:$0xf0] }
 0x62e   :  { %4387 = vmatpush.bf16.msra.mxu0 %v11055_v41  ;;  %v10921_v41 = vld [vmem:[%s21597_s5 + $0x40] sm:$0xf] }
 0x62f   :  { %v10922_v25 = vor.u32 %v13643_v10, %v10921_v41  ;;  %v13713_v41 = vld [vmem:[%s21598_s8 + $0xf4] sm:$0xf0] }
 0x630   :  { %v11075_v16 = vor.u32 %v13713_v41, %v11074_v24 }
 0x631   :  { %4119 = vmatpush.bf16.msrb.mxu1 %v10922_v25  ;;  %v13711_v25 = vld [vmem:[%s21598_s8 + $0xec] sm:$0xf] }
 0x632   :  { %4388 = vmatpush.bf16.msra.mxu0 %v11039_v3  ;;  %v10926_v3 = vor.u32 %v13642_v9, %v10923_v7  ;;  %v10894_v7 = vor.u32 %v13634_v57, %v10891_v55  ;;  %v11028_v55 = vld [vmem:[%s21598_s8 + $0x98] sm:$0xf0] }
 0x634   :  { %4132 = vmatpush.bf16.msrb.mxu2 %v10926_v3  ;;  %v11076_v3 = vld [vmem:[%s21598_s8 + $0xf8] sm:$0xf0] }
 0x635   :  { %4120 = vmatpush.bf16.msrb.mxu1 %v10914_v34  ;;  %v13709_v34 = vld [vmem:[%s21598_s8 + $0xd4] sm:$0xf0] }
 0x636   :  { %4389 = vmatpush.bf16.msra.mxu0 %v11023_v44  ;;  %v10884_v44 = vmul.f32 -1.442695, %v17600_v17 }
 0x638   :  { %14308 = vpow2.f32 %v10884_v44  ;;  %v14477_v44 = vld [vmem:[%s21605_s11] ss:$0 sm:$0xff] }
 0x639   :  { %3947 = vmatmul.bf16.vlgmr.msrb.gmra.mxu0 %v17186_v1  ;;  %v10956_v1 = vld [vmem:[%s21598_s8 + $0x10] sm:$0xf0]  ;;  %14310 = vpow2.f32 %v10886_v60  ;;  %v11059_v60 = vor.u32 %v13709_v34, %v11058_v61  ;;  %v382_v34 = vadd.f32 %v14998_v29, %v14984_v21  ;;  %v10996_v29 = vld [vmem:[%s21598_s8 + $0x58] sm:$0xf0] }
 0x63a   :  { %4390 = vmatpush.bf16.msra.mxu0 %v11007_v40  ;;  %v10959_v5 = vor.u32 %v13682_v23, %v10956_v1  ;;  %v10918_v40 = vor.u32 %v13640_v58, %v10915_v18  ;;  %v10910_v1 = vor.u32 %v13638_v36, %v10907_v53  ;;  %v11079_v18 = vor.u32 %v13711_v25, %v11076_v3  ;;  %v13705_v36 = vld [vmem:[%s21598_s8 + $0xb4] sm:$0xf0]  ;;  %v13695_v25 = vld [vmem:[%s21598_s8 + $0x6c] sm:$0xf]  ;;  %v11012_v3 = vld [vmem:[%s21598_s8 + $0x78] sm:$0xf0] }
 0x63c   :  { %4133 = vmatpush.bf16.msrb.mxu2 %v10918_v40  ;;  %v13707_v40 = vld [vmem:[%s21598_s8 + $0xcc] sm:$0xf] }
 0x63e   :  { %4391 = vmatpush.bf16.msra.mxu0 %v10991_v54  ;;  %v14309_v17 = vpop.eup %14308  ;;  %v10905_v54 = vld [vmem:[%s21597_s5 + $0x20] sm:$0xf] }
 0x63f   :  { %v10906_v23 = vor.u32 %v13639_v22, %v10905_v54  ;;  %v14311_v10 = vpop.eup %14310  ;;  %v11042_v22 = vld [vmem:[%s21598_s8 + $0xa8] sm:$0xf] }
 0x640   :  { %4134 = vmatpush.bf16.msrb.mxu2 %v10910_v1  ;;  %v17849_v53 = vadd.f32 1.0, %v14311_v10  ;;  %v13703_v1 = vld [vmem:[%s21598_s8 + $0xac] sm:$0xf] }
 0x641   :  { %4121 = vmatpush.bf16.msrb.mxu1 %v10906_v23  ;;  %v11047_v13 = vor.u32 %v13703_v1, %v11044_v56 }
 0x642   :  { %4392 = vmatpush.bf16.msra.mxu0 %v10975_v27  ;;  %v17774_v27 = vadd.f32 1.0, %v14307_v50  ;;  %v11060_v50 = vld [vmem:[%s21598_s8 + $0xd8] sm:$0xf0]  ;;  %vm4003_vm1 = vweird.f32 %v17849_v53 }
 0x643   :  { %v11063_v54 = vor.u32 %v13707_v40, %v11060_v50  ;;  %v11015_v40 = vor.u32 %v13695_v25, %v11012_v3  ;;  %v10994_v50 = vld [vmem:[%s21598_s8 + $0x48] sm:$0xf] }
 0x644   :  { %14312 = vrcp.f32 %v17774_v27  ;;  %4135 = vmatpush.bf16.msrb.mxu2 %v10902_v6  ;;  %v11026_v6 = vld [vmem:[%s21598_s8 + $0x88] sm:$0xf]  ;;  %vm3988_vm9 = vweird.f32 %v17774_v27 }
 0x645   :  { %4122 = vmatpush.bf16.msrb.mxu1 %v10898_v28  ;;  %v11043_v28 = vor.u32 %v13705_v36, %v11042_v22  ;;  %v11027_v41 = vor.u32 %v13701_v63, %v11026_v6  ;;  %v13691_v36 = vld [vmem:[%s21598_s8 + $0x4c] sm:$0xf] }
 0x646   :  { %4393 = vmatpush.bf16.msra.mxu0 %v10959_v5  ;;  %v17779_v5 = vadd.f32 1.0, %v14309_v17 }
 0x648   :  { %14314 = vrcp.f32 %v17779_v5  ;;  %4136 = vmatpush.bf16.msrb.mxu2 %v10894_v7  ;;  %v13697_v7 = vld [vmem:[%s21598_s8 + $0x74] sm:$0xf0]  ;;  %v3979_v63 = vand.u32 2147483648, %v17779_v5  ;;  %vm3973_vm12 = vweird.f32 %v17779_v5 }
 0x649   :  { %4394 = vmatmul.bf16.vlgmr.msra.gmra.mxu0 %v17654_v52  ;;  %4123 = vmatpush.bf16.msrb.mxu1 %v10890_v59  ;;  %14316 = vrcp.f32 %v17849_v53  ;;  %v13699_v59 = vld [vmem:[%s21598_s8 + $0x8c] sm:$0xf] }
 0x64a   :  { %v17822_v19 = vpop.eup %14312  ;;  %v11031_v10 = vor.u32 %v13699_v59, %v11028_v55  ;;  %v13689_v59 = vld [vmem:[%s21598_s8 + $0x34] sm:$0xf0] }
 0x64b   :  { %v3984_v23 = vmul.f32 %v17822_v19, %v17774_v27  ;;  %vm3989_vm8 = vweird.f32 %v17822_v19 }
 0x64c   :  { %4412 = vmatpush.bf16.msra.mxu2 %v11079_v18  ;;  %vm17913_vm11 = vmor %vm3988_vm9, %vm3989_vm8 }
 0x64d   :  { %4399 = vmatpush.bf16.msra.mxu1 %v11075_v16  ;;  %v3985_v62 = vsub.f32 1.0, %v3984_v23  ;;  %v3994_v23 = vand.u32 2147483648, %v17774_v27 }
 0x64e   :  { %v17836_v17 = vpop.eup %14314 }
 0x64f   :  { %v3969_v15 = vmul.f32 %v17836_v17, %v17779_v5  ;;  %v3986_v16 = vmul.f32 %v17822_v19, %v3985_v62  ;;  %v17887_v61 = vpop.eup %14316  ;;  %vm3974_vm10 = vweird.f32 %v17836_v17  ;;  %v10999_v62 = vor.u32 %v13691_v36, %v10996_v29 }
 0x650   :  { %4413 = vmatpush.bf16.msra.mxu2 %v11063_v54  ;;  %v3999_v1 = vmul.f32 %v17887_v61, %v17849_v53  ;;  %vm17937_vm13 = vmor %vm3973_vm12, %vm3974_vm10  ;;  %vm4004_vm0 = vweird.f32 %v17887_v61 }
 0x651   :  { %4400 = vmatpush.bf16.msra.mxu1 %v11059_v60  ;;  %v3970_v24 = vsub.f32 1.0, %v3969_v15  ;;  %v13693_v60 = vld [vmem:[%s21598_s8 + $0x54] sm:$0xf0]  ;;  %v3987_v22 = vadd.f32 %v17822_v19, %v3986_v16  ;;  %v3980_v16 = vor.u32 1.1754944e-38, %v3979_v63  ;;  %v13670_v63 = vld [vmem:[%s21599_s7 + $0xa4] sm:$0xf]  ;;  %vm17984_vm2 = vmor %vm4003_vm1, %vm4004_vm0 }
 0x653   :  { %v3991_v55 = vsel %vm17913_vm11, %v17822_v19, %v3987_v22  ;;  %v11196_v22 = vld [vmem:[%s21599_s7 + $0xf0] sm:$0xf0] }
 0x654   :  { %4414 = vmatpush.bf16.msra.mxu2 %v11047_v13  ;;  %v10995_v13 = vor.u32 %v13693_v60, %v10994_v50 }
 0x655   :  { %4401 = vmatpush.bf16.msra.mxu1 %v11043_v28  ;;  %v3992_v28 = vand.u32 2147483647, %v17774_v27  ;;  %v3977_v27 = vand.u32 2147483647, %v17779_v5 }
 0x657   :  { %vm3993_vm14 = vcmp.eq.f32.partialorder %v3992_v28, 8.507059e+37  ;;  %vm3978_vm15 = vcmp.eq.f32.partialorder %v3977_v27, 8.507059e+37  ;;  %v11180_v28 = vld [vmem:[%s21599_s7 + $0xd0] sm:$0xf0]  ;;  %v11172_v27 = vld [vmem:[%s21599_s7 + $0xb8] sm:$0xf0] }
 0x658   :  { %4415 = vmatpush.bf16.msra.mxu2 %v11031_v10  ;;  %v3995_v10 = vor.u32 1.1754944e-38, %v3994_v23 }
 0x659   :  { %4402 = vmatpush.bf16.msra.mxu1 %v11027_v41  ;;  %v10980_v41 = vld [vmem:[%s21598_s8 + $0x38] sm:$0xf0] }
 0x65a   :  { %v3996_v25 = vsel %vm3993_vm14, %v3995_v10, %v3991_v55 }
 0x65b   :  { %v4014_v36 = vmul.f32 %v3996_v25, %v17118_v48  ;;  %v13679_v25 = vld [vmem:[%s21599_s7 + $0xec] sm:$0xf] }
 0x65c   :  { %4416 = vmatpush.bf16.msra.mxu2 %v11015_v40 }
 0x660   :  { %4417 = vmatpush.bf16.msra.mxu2 %v10999_v62  ;;  %v11164_v62 = vld [vmem:[%s21599_s7 + $0xb0] sm:$0xf0] }
 0x6a6   :  { %v3692_v9 = vpop.f32.mrf.mxu0 }
 0x6a7   :  { %v3693_v58 = vadd.f32 %v14477_v44, %v3692_v9  ;;  %v11010_v9 = vld [vmem:[%s21598_s8 + $0x68] sm:$0xf] }
 0x6a8   :  { %v11011_v18 = vor.u32 %v13697_v7, %v11010_v9  ;;  %v4000_v9 = vsub.f32 1.0, %v3999_v1  ;;  %v13680_v7 = vld [vmem:[%s21599_s7 + $0xec] sm:$0xf0] }
 0x6a9   :  { %10755 = vst [vmem:[%s21606_s13 + $0x10] sm:$0xff] %v3693_v58  ;;  %v3971_v58 = vmul.f32 %v17836_v17, %v3970_v24  ;;  %v13687_v24 = vld [vmem:[%s21598_s8 + $0x2c] sm:$0xf] }
 0x6aa   :  { %4403 = vmatpush.bf16.msra.mxu1 %v11011_v18  ;;  %v10983_v3 = vor.u32 %v13687_v24, %v10980_v41  ;;  %v4001_v50 = vmul.f32 %v17887_v61, %v4000_v9  ;;  %v11167_v24 = vor.u32 %v13670_v63, %v11164_v62  ;;  %v13666_v41 = vld [vmem:[%s21599_s7 + $0x84] sm:$0xf]  ;;  %v11194_v9 = vld [vmem:[%s21599_s7 + $0xe0] sm:$0xf]  ;;  %v11170_v62 = vld [vmem:[%s21599_s7 + $0xa8] sm:$0xf] }
 0x6ab   :  { %v3972_v15 = vadd.f32 %v17836_v17, %v3971_v58  ;;  %v13685_v58 = vld [vmem:[%s21598_s8 + $0x14] sm:$0xf0] }
 0x6ac   :  { %v17859_v4 = vpop.f32.mrf.mxu3  ;;  %4418 = vmatpush.bf16.msra.mxu2 %v10983_v3  ;;  %v4002_v48 = vadd.f32 %v17887_v61, %v4001_v50  ;;  %v11204_v3 = vld [vmem:[%s21599_s7 + $0xf8] sm:$0xf0]  ;;  %v13662_v50 = vld [vmem:[%s21599_s7 + $0x64] sm:$0xf] }
 0x6ad   :  { %v3976_v5 = vsel %vm17937_vm13, %v17836_v17, %v3972_v15  ;;  %v13683_v17 = vld [vmem:[%s21598_s8 + $0xc] sm:$0xf]  ;;  %v13674_v15 = vld [vmem:[%s21599_s7 + $0xc4] sm:$0xf] }
 0x6ae   :  { %v3694_v57 = vpop.f32.mrf.mxu0  ;;  %4404 = vmatpush.bf16.msra.mxu1 %v10995_v13  ;;  %v3981_v60 = vsel %vm3978_vm15, %v3980_v16, %v3976_v5  ;;  %v11183_v6 = vor.u32 %v13674_v15, %v11180_v28  ;;  %v4006_v10 = vsel %vm17984_vm2, %v17887_v61, %v4002_v48  ;;  %v13681_v61 = vld [vmem:[%s21599_s7 + $0xf4] sm:$0xf0]  ;;  %v11195_v16 = vor.u32 %v13680_v7, %v11194_v9  ;;  %v11188_v15 = vld [vmem:[%s21599_s7 + $0xd8] sm:$0xf0]  ;;  %v13667_v9 = vld [vmem:[%s21599_s7 + $0x8c] sm:$0xf] }
 0x6af   :  { %v10978_v57 = vld [vmem:[%s21598_s8 + $0x28] sm:$0xf]  ;;  %v11156_v7 = vld [vmem:[%s21599_s7 + $0x98] sm:$0xf0] }
 0x6b0   :  { %v10979_v19 = vor.u32 %v13689_v59, %v10978_v57  ;;  %v4007_v57 = vand.u32 2147483647, %v17849_v53  ;;  %v4009_v59 = vand.u32 2147483648, %v17849_v53  ;;  %v11148_v53 = vld [vmem:[%s21599_s7 + $0x90] sm:$0xf0]  ;;  %4585 = vmatpush.bf16.msra.mxu3 %v11195_v16 }
 0x6b1   :  { %v13665_v16 = vld [vmem:[%s21599_s7 + $0x74] sm:$0xf0] }
 0x6b2   :  { %4405 = vmatpush.bf16.msra.mxu1 %v10979_v19  ;;  %vm4008_vm3 = vcmp.eq.f32.partialorder %v4007_v57, 8.507059e+37  ;;  %v4010_v5 = vor.u32 1.1754944e-38, %v4009_v59  ;;  %v11202_v19 = vld [vmem:[%s21599_s7 + $0xe8] sm:$0xf]  ;;  %v13673_v57 = vld [vmem:[%s21599_s7 + $0xb4] sm:$0xf0] }
 0x6b3   :  { %v13671_v59 = vld [vmem:[%s21599_s7 + $0xac] sm:$0xf] }
 0x6b4   :  { %v4384_v44 = vpop.f32.mrf.mxu3 }
 0x6b5   :  { %v10962_v44 = vld [vmem:[%s21598_s8 + $0x8] sm:$0xf] }
 0x6b6   :  { %v3948_v54 = vpop.f32.mrf.mxu0  ;;  %v10963_v23 = vor.u32 %v13685_v58, %v10962_v44  ;;  %v11178_v44 = vld [vmem:[%s21599_s7 + $0xc0] sm:$0xf] }
 0x6b7   :  { %v3955_v56 = vadd.f32 %v3948_v54, %v382_v34  ;;  %v10964_v34 = vld [vmem:[%s21598_s8 + $0x18] sm:$0xf0]  ;;  %v13678_v54 = vld [vmem:[%s21599_s7 + $0xe4] sm:$0xf] }
 0x6b8   :  { %v11199_v1 = vor.u32 %v13678_v54, %v11196_v22  ;;  %4406 = vmatpush.bf16.msra.mxu1 %v10963_v23  ;;  %v11203_v22 = vor.u32 %v13681_v61, %v11202_v19  ;;  %v11159_v19 = vor.u32 %v13667_v9, %v11156_v7  ;;  %v11138_v61 = vld [vmem:[%s21599_s7 + $0x68] sm:$0xf] }
 0x6b9   :  { %14318 = vtanh.f32 %v3955_v56  ;;  %v10967_v56 = vor.u32 %v13683_v17, %v10964_v34  ;;  %v11151_v17 = vor.u32 %v13666_v41, %v11148_v53  ;;  %v13676_v34 = vld [vmem:[%s21599_s7 + $0xcc] sm:$0xf0]  ;;  %v11175_v41 = vor.u32 %v13671_v59, %v11172_v27  ;;  %v13669_v53 = vld [vmem:[%s21599_s7 + $0x94] sm:$0xf0]  ;;  %v11146_v59 = vld [vmem:[%s21599_s7 + $0x80] sm:$0xf] }
 0x6ba   :  { %4598 = vmatpush.bf16.msrb.mxu0 %v11199_v1  ;;  %v11179_v54 = vor.u32 %v13676_v34, %v11178_v44  ;;  %v13677_v1 = vld [vmem:[%s21599_s7 + $0xd4] sm:$0xf0]  ;;  %v11139_v44 = vor.u32 %v13665_v16, %v11138_v61  ;;  %v11122_v34 = vld [vmem:[%s21599_s7 + $0x48] sm:$0xf]  ;;  %v11092_v61 = vld [vmem:[%s21599_s7 + $0x18] sm:$0xf0] }
 0x6bb   :  { %4419 = vmatpush.bf16.msra.mxu2 %v10967_v56  ;;  %v13675_v56 = vld [vmem:[%s21599_s7 + $0xcc] sm:$0xf]  ;;  %v11090_v9 = vld [vmem:[%s21599_s7 + $0x8] sm:$0xf] }
 0x6bc   :  { %4586 = vmatpush.bf16.msra.mxu3 %v11179_v54  ;;  %v11191_v63 = vor.u32 %v13675_v56, %v11188_v15  ;;  %v11100_v15 = vld [vmem:[%s21599_s7 + $0x30] sm:$0xf0] }
 0x6be   :  { %v3950_v18 = vpop.f32.mrf.mxu0  ;;  %4599 = vmatpush.bf16.msrb.mxu0 %v11183_v6 }
 0x6bf   :  { %v14319_v40 = vpop.eup %14318  ;;  %v4011_v18 = vsel %vm4008_vm3, %v4010_v5, %v4006_v10  ;;  %v11154_v10 = vld [vmem:[%s21599_s7 + $0x88] sm:$0xf] }
 0x6c0   :  { %v4015_v29 = vmul.f32 %v14319_v40, %v3981_v60  ;;  %v11132_v60 = vld [vmem:[%s21599_s7 + $0x70] sm:$0xf0]  ;;  %v11155_v5 = vor.u32 %v13669_v53, %v11154_v10  ;;  %v13650_v10 = vld [vmem:[%s21599_s7 + $0x4] sm:$0xf] }
 0x6c1   :  { %v11135_v6 = vor.u32 %v13662_v50, %v11132_v60  ;;  %v13661_v50 = vld [vmem:[%s21599_s7 + $0x54] sm:$0xf0]  ;;  %v11124_v60 = vld [vmem:[%s21599_s7 + $0x58] sm:$0xf0]  ;;  %v11084_v53 = vld [vmem:[%s21599_s7 + $0x10] sm:$0xf0] }
 0x6c2   :  { %v17970_v13 = vadd.f32 %v4015_v29, %v4014_v36  ;;  %4600 = vmatpush.bf16.msrb.mxu0 %v11167_v24  ;;  %v11207_v36 = vor.u32 %v13679_v25, %v11204_v3  ;;  %v11186_v29 = vld [vmem:[%s21599_s7 + $0xc8] sm:$0xf]  ;;  %v11171_v24 = vor.u32 %v13673_v57, %v11170_v62  ;;  %v13663_v25 = vld [vmem:[%s21599_s7 + $0x6c] sm:$0xf]  ;;  %v11140_v3 = vld [vmem:[%s21599_s7 + $0x78] sm:$0xf0]  ;;  %v11123_v54 = vor.u32 %v13661_v50, %v11122_v34 }
 0x6c3   :  { %v11187_v48 = vor.u32 %v13677_v1, %v11186_v29  ;;  %v13672_v29 = vld [vmem:[%s21599_s7 + $0xac] sm:$0xf0]  ;;  %v13654_v1 = vld [vmem:[%s21599_s7 + $0x24] sm:$0xf]  ;;  %v13655_v62 = vld [vmem:[%s21599_s7 + $0x2c] sm:$0xf]  ;;  %v11087_v7 = vor.u32 %v13650_v10, %v11084_v53 }
 0x6c4   :  { %14320 = vtanh.f32 %v17970_v13  ;;  %v11108_v57 = vld [vmem:[%s21599_s7 + $0x38] sm:$0xf0]  ;;  %v13750_v34 = vld [vmem:[%s21594_s3 + $0xe4] sm:$0xf]  ;;  %v13744_v10 = vld [vmem:[%s21594_s3 + $0xac] sm:$0xf0] }
 0x6c5   :  { %v11111_v27 = vor.u32 %v13655_v62, %v11108_v57  ;;  %v11352_v62 = vld [vmem:[%s21594_s3 + $0xc8] sm:$0xf]  ;;  %v13749_v57 = vld [vmem:[%s21594_s3 + $0xd4] sm:$0xf0] }
 0x6c6   :  { %v17988_v55 = vpop.f32.mrf.mxu0  ;;  %4601 = vmatpush.bf16.msrb.mxu0 %v11151_v17  ;;  %v11116_v17 = vld [vmem:[%s21599_s7 + $0x50] sm:$0xf0] }
 0x6ca   :  { %v14321_v58 = vpop.eup %14320  ;;  %4602 = vmatpush.bf16.msrb.mxu0 %v11135_v6  ;;  %v13657_v6 = vld [vmem:[%s21599_s7 + $0x34] sm:$0xf0] }
 0x6cb   :  { %v4018_v40 = vmul.f32 %v14321_v58, %v4011_v18  ;;  %v11143_v58 = vor.u32 %v13663_v25, %v11140_v3  ;;  %v13658_v18 = vld [vmem:[%s21599_s7 + $0x44] sm:$0xf]  ;;  %v11130_v3 = vld [vmem:[%s21599_s7 + $0x60] sm:$0xf] }
 0x6cd   :  { %v18032_v23 = vpack.c.bf16 %v4018_v40, %v4018_v40  ;;  %v11119_v40 = vor.u32 %v13658_v18, %v11116_v17  ;;  %v13752_v17 = vld [vmem:[%s21594_s3 + $0xec] sm:$0xf0] }
 0x6ce   :  { %v4397_v28 = vpop.f32.mrf.mxu0 }
 0x6cf   :  { %4124 = vmatmul.bf16.vlgmr.msrb.gmra.mxu1 %v18032_v23  ;;  %4137 = vmatmul.bf16.vlgmr.msrb.gmra.mxu2 %v18032_v23  ;;  %v11106_v28 = vld [vmem:[%s21599_s7 + $0x28] sm:$0xf] }
 0x6d0   :  { %4611 = vmatpush.bf16.msrb.mxu1 %v11203_v22  ;;  %4624 = vmatpush.bf16.msrb.mxu2 %v11207_v36  ;;  %v11162_v36 = vld [vmem:[%s21599_s7 + $0xa0] sm:$0xf] }
 0x6d1   :  { %4603 = vmatpush.bf16.msrb.mxu0 %v11119_v40  ;;  %v11163_v56 = vor.u32 %v13672_v29, %v11162_v36  ;;  %v11362_v40 = vld [vmem:[%s21594_s3 + $0xf0] sm:$0xf0]  ;;  %v11114_v36 = vld [vmem:[%s21599_s7 + $0x40] sm:$0xf]  ;;  %v13660_v29 = vld [vmem:[%s21599_s7 + $0x4c] sm:$0xf0] }
 0x6d3   :  { %4587 = vmatpush.bf16.msra.mxu3 %v11163_v56  ;;  %v11115_v56 = vor.u32 %v13660_v29, %v11114_v36  ;;  %v13736_v29 = vld [vmem:[%s21594_s3 + $0x6c] sm:$0xf0] }
 0x6d4   :  { %4612 = vmatpush.bf16.msrb.mxu1 %v11187_v48  ;;  %4625 = vmatpush.bf16.msrb.mxu2 %v11191_v63  ;;  %v11103_v48 = vor.u32 %v13654_v1, %v11100_v15  ;;  %v11107_v63 = vor.u32 %v13657_v6, %v11106_v28  ;;  %v11344_v1 = vld [vmem:[%s21594_s3 + $0xc0] sm:$0xf]  ;;  %v13748_v15 = vld [vmem:[%s21594_s3 + $0xcc] sm:$0xf0]  ;;  %v13746_v28 = vld [vmem:[%s21594_s3 + $0xc4] sm:$0xf] }
 0x6d5   :  { %v11346_v6 = vld [vmem:[%s21594_s3 + $0xd0] sm:$0xf0] }
 0x6d6   :  { %4604 = vmatpush.bf16.msrb.mxu0 %v11103_v48  ;;  %v11345_v48 = vor.u32 %v13748_v15, %v11344_v1  ;;  %v13734_v1 = vld [vmem:[%s21594_s3 + $0x64] sm:$0xf]  ;;  %v11304_v15 = vld [vmem:[%s21594_s3 + $0x68] sm:$0xf] }
 0x6d8   :  { %4613 = vmatpush.bf16.msrb.mxu1 %v11171_v24  ;;  %4626 = vmatpush.bf16.msrb.mxu2 %v11175_v41  ;;  %v13668_v24 = vld [vmem:[%s21599_s7 + $0x8c] sm:$0xf0] }
 0x6d9   :  { %v11147_v41 = vor.u32 %v13668_v24, %v11146_v59  ;;  %v11098_v59 = vld [vmem:[%s21599_s7 + $0x20] sm:$0xf]  ;;  %v13656_v24 = vld [vmem:[%s21599_s7 + $0x2c] sm:$0xf0] }
 0x6da   :  { %4605 = vmatpush.bf16.msrb.mxu0 %v11087_v7  ;;  %v11099_v53 = vor.u32 %v13656_v24, %v11098_v59  ;;  %v11330_v7 = vld [vmem:[%s21594_s3 + $0xb0] sm:$0xf0]  ;;  %v13732_v59 = vld [vmem:[%s21594_s3 + $0x4c] sm:$0xf0] }
 0x6db   :  { %4588 = vmatpush.bf16.msra.mxu3 %v11147_v41  ;;  %v11328_v41 = vld [vmem:[%s21594_s3 + $0xa0] sm:$0xf]  ;;  %v11282_v24 = vld [vmem:[%s21594_s3 + $0x50] sm:$0xf0] }
 0x6dc   :  { %4614 = vmatpush.bf16.msrb.mxu1 %v11155_v5  ;;  %4627 = vmatpush.bf16.msrb.mxu2 %v11159_v19  ;;  %v13653_v5 = vld [vmem:[%s21599_s7 + $0x14] sm:$0xf0]  ;;  %v13651_v19 = vld [vmem:[%s21599_s7 + $0xc] sm:$0xf] }
 0x6dd   :  { %v11091_v16 = vor.u32 %v13653_v5, %v11090_v9  ;;  %v11095_v25 = vor.u32 %v13651_v19, %v11092_v61  ;;  %v13742_v9 = vld [vmem:[%s21594_s3 + $0xa4] sm:$0xf]  ;;  %v11336_v5 = vld [vmem:[%s21594_s3 + $0xa8] sm:$0xf]  ;;  %v11329_v19 = vor.u32 %v13744_v10, %v11328_v41 }
 0x6de   :  { %v11333_v61 = vor.u32 %v13742_v9, %v11330_v7  ;;  %v11288_v10 = vld [vmem:[%s21594_s3 + $0x48] sm:$0xf] }
 0x6df   :  { %4407 = vmatmul.bf16.vlgmr.msra.gmra.mxu1 %v17654_v52  ;;  %4420 = vmatmul.bf16.vlgmr.msra.gmra.mxu2 %v17654_v52  ;;  %v13659_v52 = vld [vmem:[%s21599_s7 + $0x4c] sm:$0xf] }
 0x6e0   :  { %4615 = vmatpush.bf16.msrb.mxu1 %v11139_v44  ;;  %4628 = vmatpush.bf16.msrb.mxu2 %v11143_v58  ;;  %v11127_v22 = vor.u32 %v13659_v52, %v11124_v60  ;;  %v13664_v44 = vld [vmem:[%s21599_s7 + $0x6c] sm:$0xf0]  ;;  %v11360_v58 = vld [vmem:[%s21594_s3 + $0xe0] sm:$0xf]  ;;  %v11365_v52 = vor.u32 %v13750_v34, %v11362_v40  ;;  %v11368_v60 = vld [vmem:[%s21594_s3 + $0xe8] sm:$0xf] }
 0x6e1   :  { %v11131_v18 = vor.u32 %v13664_v44, %v11130_v3  ;;  %v11361_v50 = vor.u32 %v13752_v17, %v11360_v58  ;;  %v13652_v3 = vld [vmem:[%s21599_s7 + $0xc] sm:$0xf0]  ;;  %v11312_v58 = vld [vmem:[%s21594_s3 + $0x80] sm:$0xf]  ;;  %v13738_v17 = vld [vmem:[%s21594_s3 + $0x84] sm:$0xf] }
 0x6e2   :  { %v11314_v34 = vld [vmem:[%s21594_s3 + $0x90] sm:$0xf0]  ;;  %v11320_v40 = vld [vmem:[%s21594_s3 + $0x88] sm:$0xf] }
 0x6e3   :  { %4589 = vmatpush.bf16.msra.mxu3 %v11131_v18  ;;  %4986 = vmatpush.bf16.msra.mxu0 %v11361_v50  ;;  %v13740_v18 = vld [vmem:[%s21594_s3 + $0x8c] sm:$0xf0]  ;;  %v13741_v50 = vld [vmem:[%s21594_s3 + $0x94] sm:$0xf0] }
 0x6e4   :  { %4616 = vmatpush.bf16.msrb.mxu1 %v11123_v54  ;;  %4629 = vmatpush.bf16.msrb.mxu2 %v11127_v22  ;;  %v13753_v54 = vld [vmem:[%s21594_s3 + $0xf4] sm:$0xf0]  ;;  %v11321_v36 = vor.u32 %v13741_v50, %v11320_v40  ;;  %v11248_v40 = vld [vmem:[%s21594_s3] sm:$0xf]  ;;  %v13724_v50 = vld [vmem:[%s21594_s3 + $0xc] sm:$0xf0] }
 0x6e5   :  { %v11369_v22 = vor.u32 %v13753_v54, %v11368_v60  ;;  %v11313_v60 = vor.u32 %v13740_v18, %v11312_v58  ;;  %v11317_v54 = vor.u32 %v13738_v17, %v11314_v34 }
 0x6e7   :  { %4590 = vmatpush.bf16.msra.mxu3 %v11115_v56  ;;  %4987 = vmatpush.bf16.msra.mxu0 %v11345_v48  ;;  %v11298_v56 = vld [vmem:[%s21594_s3 + $0x70] sm:$0xf0] }
 0x6e8   :  { %4617 = vmatpush.bf16.msrb.mxu1 %v11107_v63  ;;  %4630 = vmatpush.bf16.msrb.mxu2 %v11111_v27  ;;  %v11349_v63 = vor.u32 %v13746_v28, %v11346_v6  ;;  %v11353_v27 = vor.u32 %v13749_v57, %v11352_v62  ;;  %v13737_v28 = vld [vmem:[%s21594_s3 + $0x74] sm:$0xf0]  ;;  %v11301_v48 = vor.u32 %v13734_v1, %v11298_v56 }
 0x6e9   :  { %v11305_v57 = vor.u32 %v13737_v28, %v11304_v15  ;;  %v13725_v1 = vld [vmem:[%s21594_s3 + $0x14] sm:$0xf0]  ;;  %v11249_v15 = vor.u32 %v13724_v50, %v11248_v40  ;;  %v11540_v50 = vld [vmem:[%s21598_s8 + $0xc0] sm:$0xf] }
 0x6ea   :  { %v13721_v56 = vld [vmem:[%s21602_s10 + $0x38] sm:$0xff] }
 0x6eb   :  { %4591 = vmatpush.bf16.msra.mxu3 %v11099_v53  ;;  %4988 = vmatpush.bf16.msra.mxu0 %v11329_v19  ;;  %v13733_v53 = vld [vmem:[%s21594_s3 + $0x54] sm:$0xf0] }
 0x6ec   :  { %4618 = vmatpush.bf16.msrb.mxu1 %v11091_v16  ;;  %4631 = vmatpush.bf16.msrb.mxu2 %v11095_v25  ;;  %v13745_v16 = vld [vmem:[%s21594_s3 + $0xb4] sm:$0xf0]  ;;  %v11082_v25 = vld [vmem:[%s21599_s7] sm:$0xf]  ;;  %v11289_v19 = vor.u32 %v13733_v53, %v11288_v10 }
 0x6ed   :  { %v11337_v44 = vor.u32 %v13745_v16, %v11336_v5  ;;  %v11264_v5 = vld [vmem:[%s21594_s3 + $0x20] sm:$0xf]  ;;  %v13726_v16 = vld [vmem:[%s21594_s3 + $0x24] sm:$0xf] }
 0x6ef   :  { %4989 = vmatpush.bf16.msra.mxu0 %v11313_v60 }
 0x6f0   :  { %4999 = vmatpush.bf16.msra.mxu1 %v11365_v52  ;;  %5012 = vmatpush.bf16.msra.mxu2 %v11369_v22  ;;  %v11083_v52 = vor.u32 %v13652_v3, %v11082_v25  ;;  %v11296_v22 = vld [vmem:[%s21594_s3 + $0x60] sm:$0xf]  ;;  %v11266_v25 = vld [vmem:[%s21594_s3 + $0x30] sm:$0xf0]  ;;  %v11272_v3 = vld [vmem:[%s21594_s3 + $0x28] sm:$0xf] }
 0x6f1   :  { %v11297_v6 = vor.u32 %v13736_v29, %v11296_v22  ;;  %v11269_v34 = vor.u32 %v13726_v16, %v11266_v25  ;;  %v11250_v22 = vld [vmem:[%s21594_s3 + $0x10] sm:$0xf0]  ;;  %v13715_v16 = vld [vmem:[%s21602_s10 + $0x8] sm:$0xff]  ;;  %v11556_v25 = vld [vmem:[%s21598_s8 + $0xe0] sm:$0xf] }
 0x6f2   :  { %4592 = vmatpush.bf16.msra.mxu3 %v11083_v52 }
 0x6f3   :  { %4990 = vmatpush.bf16.msra.mxu0 %v11297_v6 }
 0x6f4   :  { %5000 = vmatpush.bf16.msra.mxu1 %v11349_v63  ;;  %5013 = vmatpush.bf16.msra.mxu2 %v11353_v27  ;;  %v11280_v63 = vld [vmem:[%s21594_s3 + $0x40] sm:$0xf]  ;;  %v13730_v27 = vld [vmem:[%s21594_s3 + $0x44] sm:$0xf] }
 0x6f5   :  { %v11281_v9 = vor.u32 %v13732_v59, %v11280_v63  ;;  %v11285_v7 = vor.u32 %v13730_v27, %v11282_v24  ;;  %v10951_v63 = vld [vmem:[%s21603_s1 + $0x18] sm:$0xff] }
 0x6f6   :  { %4769 = vmatpush.bf16.msrb.mxu3 %v13721_v56  ;;  %v11354_v56 = vld [vmem:[%s21594_s3 + $0xd8] sm:$0xf0] }
 0x6f7   :  { %4991 = vmatpush.bf16.msra.mxu0 %v11281_v9 }
 0x6f8   :  { %5001 = vmatpush.bf16.msra.mxu1 %v11333_v61  ;;  %5014 = vmatpush.bf16.msra.mxu2 %v11337_v44  ;;  %v13728_v61 = vld [vmem:[%s21594_s3 + $0x2c] sm:$0xf0]  ;;  %v13729_v44 = vld [vmem:[%s21594_s3 + $0x34] sm:$0xf0] }
 0x6f9   :  { %v11265_v17 = vor.u32 %v13728_v61, %v11264_v5  ;;  %v11273_v60 = vor.u32 %v13729_v44, %v11272_v3  ;;  %v13718_v5 = vld [vmem:[%s21602_s10 + $0x20] sm:$0xff]  ;;  %v13716_v61 = vld [vmem:[%s21602_s10 + $0x10] sm:$0xff] }
 0x6fa   :  { %v13832_v3 = vld [vmem:[%s21598_s8 + $0xec] sm:$0xf0] }
 0x6fb   :  { %4992 = vmatpush.bf16.msra.mxu0 %v11265_v17  ;;  %v11557_v44 = vor.u32 %v13832_v3, %v11556_v25  ;;  %v11370_v17 = vld [vmem:[%s21594_s3 + $0xf8] sm:$0xf0]  ;;  %v13739_v25 = vld [vmem:[%s21594_s3 + $0x8c] sm:$0xf] }
 0x6fc   :  { %5002 = vmatpush.bf16.msra.mxu1 %v11317_v54  ;;  %5015 = vmatpush.bf16.msra.mxu2 %v11321_v36  ;;  %v13722_v54 = vld [vmem:[%s21594_s3 + $0x4] sm:$0xf]  ;;  %v11256_v36 = vld [vmem:[%s21594_s3 + $0x8] sm:$0xf]  ;;  %v11322_v3 = vld [vmem:[%s21594_s3 + $0x98] sm:$0xf0] }
 0x6fd   :  { %v11253_v28 = vor.u32 %v13722_v54, %v11250_v22  ;;  %v11257_v6 = vor.u32 %v13725_v1, %v11256_v36  ;;  %v13747_v1 = vld [vmem:[%s21594_s3 + $0xcc] sm:$0xf] }
 0x6ff   :  { %4993 = vmatpush.bf16.msra.mxu0 %v11249_v15 }
 0x700   :  { %5003 = vmatpush.bf16.msra.mxu1 %v11301_v48  ;;  %5016 = vmatpush.bf16.msra.mxu2 %v11305_v57 }
 0x704   :  { %5004 = vmatpush.bf16.msra.mxu1 %v11285_v7  ;;  %5017 = vmatpush.bf16.msra.mxu2 %v11289_v19  ;;  %v13720_v7 = vld [vmem:[%s21602_s10 + $0x30] sm:$0xff]  ;;  %v13717_v19 = vld [vmem:[%s21602_s10 + $0x18] sm:$0xff] }
 0x705   :  { %4770 = vmatpush.bf16.msrb.mxu3 %v13720_v7 }
 0x708   :  { %5005 = vmatpush.bf16.msra.mxu1 %v11269_v34  ;;  %5018 = vmatpush.bf16.msra.mxu2 %v11273_v60 }
 0x70c   :  { %5006 = vmatpush.bf16.msra.mxu1 %v11253_v28  ;;  %5019 = vmatpush.bf16.msra.mxu2 %v11257_v6  ;;  %v11357_v28 = vor.u32 %v13747_v1, %v11354_v56  ;;  %v13824_v6 = vld [vmem:[%s21598_s8 + $0xac] sm:$0xf0] }
 0x74c   :  { %v4125_v62 = vpop.f32.mrf.mxu1 }
 0x74d   :  { %v4126_v41 = vadd.f32 %v4125_v62, %v15761_v42 }
 0x74f   :  { %11243 = vst [vmem:[%s21601_s12 + $0x30] sm:$0xff] %v4126_v41 }
 0x752   :  { %v4138_v58 = vpop.f32.mrf.mxu2 }
 0x753   :  { %v4139_v18 = vadd.f32 %v4138_v58, %v15763_v45  ;;  %v13714_v58 = vld [vmem:[%s21602_s10] sm:$0xff] }
 0x754   :  { %v4127_v52 = vpop.f32.mrf.mxu1 }
 0x755   :  { %v4142_v29 = vmul.f32 1.442695, %v4139_v18  ;;  %11244 = vst [vmem:[%s21601_s12 + $0x38] sm:$0xff] %v4139_v18  ;;  %v13751_v18 = vld [vmem:[%s21594_s3 + $0xec] sm:$0xf] }
 0x756   :  { %v11373_v40 = vor.u32 %v13751_v18, %v11370_v17  ;;  %v13828_v52 = vld [vmem:[%s21598_s8 + $0xcc] sm:$0xf0] }
 0x757   :  { %14322 = vpow2.f32 %v4142_v29  ;;  %v11541_v22 = vor.u32 %v13828_v52, %v11540_v50  ;;  %v13816_v18 = vld [vmem:[%s21598_s8 + $0x6c] sm:$0xf0] }
 0x75a   :  { %v4140_v48 = vpop.f32.mrf.mxu2 }
 0x75c   :  { %v4408_v62 = vpop.f32.mrf.mxu1 }
 0x75d   :  { %v14323_v57 = vpop.eup %14322 }
 0x75e   :  { %v4146_v59 = vmul.f32 %v14323_v57, %v10951_v63 }
 0x760   :  { %v4147_v27 = vadd.f32 %v4146_v59, %v4126_v41  ;;  %v13719_v41 = vld [vmem:[%s21602_s10 + $0x28] sm:$0xff] }
 0x761   :  { %4771 = vmatpush.bf16.msrb.mxu3 %v13719_v41  ;;  %v11508_v41 = vld [vmem:[%s21598_s8 + $0x80] sm:$0xf] }
 0x762   :  { %v18331_v24 = vpop.f32.mrf.mxu2  ;;  %v4148_v10 = vpack.c.bf16 %v4147_v27, %v4147_v27 }
 0x764   :  { %v4410_v53 = vpop.f32.mrf.mxu1  ;;  %4593 = vmatmul.bf16.vlgmr.msra.gmra.mxu3 %v4148_v10  ;;  %4606 = vmatmul.bf16.vlgmr.msrb.gmra.mxu0 %v4148_v10 }
 0x765   :  { %4619 = vmatmul.bf16.vlgmr.msrb.gmra.mxu1 %v4148_v10  ;;  %4632 = vmatmul.bf16.vlgmr.msrb.gmra.mxu2 %v4148_v10  ;;  %v13743_v10 = vld [vmem:[%s21594_s3 + $0xac] sm:$0xf]  ;;  %v11338_v53 = vld [vmem:[%s21594_s3 + $0xb8] sm:$0xf0] }
 0x766   :  { %4772 = vmatpush.bf16.msrb.mxu3 %v13718_v5  ;;  %5459 = vmatpush.bf16.msrb.mxu2 %v11557_v44  ;;  %v11341_v7 = vor.u32 %v13743_v10, %v11338_v53  ;;  %v11325_v44 = vor.u32 %v13739_v25, %v11322_v3  ;;  %v11460_v10 = vld [vmem:[%s21598_s8 + $0x20] sm:$0xf] }
 0x76a   :  { %v4423_v9 = vpop.f32.mrf.mxu2  ;;  %4773 = vmatpush.bf16.msrb.mxu3 %v13717_v19  ;;  %5460 = vmatpush.bf16.msrb.mxu2 %v11541_v22  ;;  %v11306_v22 = vld [vmem:[%s21594_s3 + $0x78] sm:$0xf0] }
 0x76e   :  { %4774 = vmatpush.bf16.msrb.mxu3 %v13716_v61 }
 0x772   :  { %4775 = vmatpush.bf16.msrb.mxu3 %v13715_v16 }
 0x774   :  { %4994 = vmatmul.bf16.vlgmr.msra.gmra.mxu0 %v18032_v23 }
 0x775   :  { %5007 = vmatmul.bf16.vlgmr.msra.gmra.mxu1 %v18032_v23  ;;  %5020 = vmatmul.bf16.vlgmr.msra.gmra.mxu2 %v18032_v23 }
 0x776   :  { %4776 = vmatpush.bf16.msrb.mxu3 %v13714_v58  ;;  %v11492_v58 = vld [vmem:[%s21598_s8 + $0x60] sm:$0xf] }
 0x77a   :  { %5025 = vmatpush.bf16.msra.mxu3 %v11373_v40 }
 0x77e   :  { %5026 = vmatpush.bf16.msra.mxu3 %v11357_v28  ;;  %v13812_v28 = vld [vmem:[%s21598_s8 + $0x4c] sm:$0xf0] }
 0x782   :  { %5027 = vmatpush.bf16.msra.mxu3 %v11341_v7  ;;  %v11274_v7 = vld [vmem:[%s21594_s3 + $0x38] sm:$0xf0] }
 0x786   :  { %5028 = vmatpush.bf16.msra.mxu3 %v11325_v44 }
 0x7e1   :  { %v4607_v34 = vpop.f32.mrf.mxu0 }
 0x7e2   :  { %v4608_v60 = vadd.f32 %v4607_v34, %v17988_v55  ;;  %v4620_v54 = vpop.f32.mrf.mxu1  ;;  %v11524_v55 = vld [vmem:[%s21598_s8 + $0xa0] sm:$0xf]  ;;  %v11493_v34 = vor.u32 %v13816_v18, %v11492_v58 }
 0x7e3   :  { %v4621_v36 = vadd.f32 %v4620_v54, %v4408_v62  ;;  %v11525_v63 = vor.u32 %v13824_v6, %v11524_v55  ;;  %v13735_v54 = vld [vmem:[%s21594_s3 + $0x6c] sm:$0xf] }
 0x7e4   :  { %v4638_v29 = vadd.f32 %v4608_v60, %v15858_v47  ;;  %v11309_v6 = vor.u32 %v13735_v54, %v11306_v22 }
 0x7e5   :  { %v4639_v15 = vadd.f32 %v4621_v36, %v15831_v30  ;;  %5461 = vmatpush.bf16.msrb.mxu2 %v11525_v63 }
 0x7e6   :  { %v11209_v48 = vmul.f32 -1.442695, %v4638_v29  ;;  %v11476_v29 = vld [vmem:[%s21598_s8 + $0x40] sm:$0xf]  ;;  %5029 = vmatpush.bf16.msra.mxu3 %v11309_v6 }
 0x7e7   :  { %v11210_v62 = vmul.f32 -1.442695, %v4639_v15  ;;  %v4594_v57 = vpop.f32.mrf.mxu3  ;;  %v11477_v63 = vor.u32 %v13812_v28, %v11476_v29 }
 0x7e8   :  { %14324 = vpow2.f32 %v11209_v48  ;;  %v4595_v59 = vadd.f32 %v4594_v57, %v17859_v4  ;;  %v4633_v27 = vpop.f32.mrf.mxu2  ;;  %v13820_v4 = vld [vmem:[%s21598_s8 + $0x8c] sm:$0xf0] }
 0x7e9   :  { %14326 = vpow2.f32 %v11210_v62  ;;  %v4609_v9 = vpop.f32.mrf.mxu0  ;;  %v11509_v61 = vor.u32 %v13820_v4, %v11508_v41  ;;  %v13731_v62 = vld [vmem:[%s21594_s3 + $0x4c] sm:$0xf]  ;;  %v11444_v41 = vld [vmem:[%s21598_s8] sm:$0xf] }
 0x7ea   :  { %v4637_v5 = vadd.f32 %v4595_v59, %v15855_v32  ;;  %v4622_v19 = vpop.f32.mrf.mxu1  ;;  %v13727_v9 = vld [vmem:[%s21594_s3 + $0x2c] sm:$0xf] }
 0x7eb   :  { %5462 = vmatpush.bf16.msrb.mxu2 %v11509_v61  ;;  %v13804_v61 = vld [vmem:[%s21598_s8 + $0xc] sm:$0xf0]  ;;  %v11277_v18 = vor.u32 %v13727_v9, %v11274_v7 }
 0x7ec   :  { %v11208_v16 = vmul.f32 -1.442695, %v4637_v5 }
 0x7ee   :  { %v14325_v17 = vpop.eup %14324  ;;  %14328 = vpow2.f32 %v11208_v16  ;;  %v4634_v16 = vadd.f32 %v4633_v27, %v18331_v24 }
 0x7ef   :  { %v14327_v40 = vpop.eup %14326  ;;  %v18416_v50 = vadd.f32 1.0, %v14325_v17  ;;  %v4596_v52 = vpop.f32.mrf.mxu3  ;;  %5463 = vmatpush.bf16.msrb.mxu2 %v11493_v34  ;;  %v11445_v17 = vor.u32 %v13804_v61, %v11444_v41  ;;  %v13723_v34 = vld [vmem:[%s21594_s3 + $0xc] sm:$0xf] }
 0x7f0   :  { %v4635_v60 = vpop.f32.mrf.mxu2  ;;  %v18428_v1 = vadd.f32 1.0, %v14327_v40  ;;  %v11258_v40 = vld [vmem:[%s21594_s3 + $0x18] sm:$0xf0] }
 0x7f1   :  { %14330 = vrcp.f32 %v18416_v50  ;;  %v4995_v36 = vpop.f32.mrf.mxu0  ;;  %v11261_v60 = vor.u32 %v13723_v34, %v11258_v40  ;;  %vm4673_vm5 = vweird.f32 %v18416_v50  ;;  %v4677_v28 = vand.u32 2147483647, %v18416_v50 }
 0x7f2   :  { %v18431_v56 = vadd.f32 %v4995_v36, %v15001_v31  ;;  %v5008_v15 = vpop.f32.mrf.mxu1  ;;  %v11290_v31 = vld [vmem:[%s21594_s3 + $0x58] sm:$0xf0]  ;;  %14332 = vrcp.f32 %v18428_v1  ;;  %v4679_v36 = vand.u32 2147483648, %v18416_v50  ;;  %vm4688_vm13 = vweird.f32 %v18428_v1 }
 0x7f3   :  { %v18437_v55 = vadd.f32 %v5008_v15, %v15004_v33  ;;  %v11293_v59 = vor.u32 %v13731_v62, %v11290_v31  ;;  %5464 = vmatpush.bf16.msrb.mxu2 %v11477_v63  ;;  %v13808_v33 = vld [vmem:[%s21598_s8 + $0x2c] sm:$0xf0]  ;;  %vm4678_vm9 = vcmp.eq.f32.partialorder %v4677_v28, 8.507059e+37  ;;  %v13822_v28 = vld [vmem:[%s21598_s8 + $0xa4] sm:$0xf] }
 0x7f4   :  { %v14329_v48 = vpop.eup %14328  ;;  %v11461_v19 = vor.u32 %v13808_v33, %v11460_v10  ;;  %v4680_v10 = vor.u32 1.1754944e-38, %v4679_v36 }
 0x7f5   :  { %v4650_v57 = vadd.f32 1.0, %v14329_v48  ;;  %5030 = vmatpush.bf16.msra.mxu3 %v11293_v59 }
 0x7f7   :  { %v14331_v53 = vpop.eup %14330  ;;  %14334 = vrcp.f32 %v4650_v57  ;;  %5465 = vmatpush.bf16.msrb.mxu2 %v11461_v19  ;;  %v4664_v63 = vand.u32 2147483648, %v4650_v57  ;;  %v4662_v31 = vand.u32 2147483647, %v4650_v57  ;;  %vm4658_vm8 = vweird.f32 %v4650_v57 }
 0x7f8   :  { %v4669_v4 = vmul.f32 %v14331_v53, %v18416_v50  ;;  %v5021_v5 = vpop.f32.mrf.mxu2  ;;  %v14333_v52 = vpop.eup %14332  ;;  %vm4674_vm4 = vweird.f32 %v14331_v53 }
 0x7f9   :  { %v18467_v25 = vadd.f32 %v5021_v5, %v15007_v35  ;;  %v4997_v3 = vpop.f32.mrf.mxu0  ;;  %v4640_v35 = vadd.f32 %v4634_v16, %v15934_v8  ;;  %5031 = vmatpush.bf16.msra.mxu3 %v11277_v18  ;;  %v4684_v29 = vmul.f32 %v14333_v52, %v18428_v1  ;;  %vm18480_vm6 = vmor %vm4673_vm5, %vm4674_vm4  ;;  %v4665_v50 = vor.u32 1.1754944e-38, %v4664_v63 }
 0x7fa   :  { %v4670_v44 = vsub.f32 1.0, %v4669_v4  ;;  %v5010_v58 = vpop.f32.mrf.mxu1  ;;  %vm4663_vm11 = vcmp.eq.f32.partialorder %v4662_v31, 8.507059e+37  ;;  %vm4689_vm12 = vweird.f32 %v14333_v52  ;;  %v11510_v31 = vld [vmem:[%s21598_s8 + $0x90] sm:$0xf0] }
 0x7fb   :  { %5466 = vmatpush.bf16.msrb.mxu2 %v11445_v17  ;;  %14336 = vtanh.f32 %v4640_v35  ;;  %v4685_v33 = vsub.f32 1.0, %v4684_v29  ;;  %vm4690_vm14 = vmor %vm4688_vm13, %vm4689_vm12  ;;  %v11558_v17 = vld [vmem:[%s21598_s8 + $0xf0] sm:$0xf0] }
 0x7fc   :  { %v4671_v24 = vmul.f32 %v14331_v53, %v4670_v44 }
 0x7fd   :  { %v14335_v27 = vpop.eup %14334  ;;  %5032 = vmatpush.bf16.msra.mxu3 %v11261_v60  ;;  %v4686_v5 = vmul.f32 %v14333_v52, %v4685_v33  ;;  %v11435_v60 = vld [vmem:[%s21597_s5 + $0x70] sm:$0xf]  ;;  %v11494_v33 = vld [vmem:[%s21598_s8 + $0x70] sm:$0xf0] }
 0x7fe   :  { %v4654_v54 = vmul.f32 %v14335_v27, %v4650_v57  ;;  %v4672_v22 = vadd.f32 %v14331_v53, %v4671_v24  ;;  %vm4659_vm7 = vweird.f32 %v14335_v27  ;;  %v4692_v57 = vand.u32 2147483647, %v18428_v1 }
 0x7ff   :  { %vm4660_vm10 = vmor %vm4658_vm8, %vm4659_vm7  ;;  %v4687_v44 = vadd.f32 %v14333_v52, %v4686_v5  ;;  %v11462_v5 = vld [vmem:[%s21598_s8 + $0x30] sm:$0xf0] }
 0x800   :  { %v4655_v15 = vsub.f32 1.0, %v4654_v54  ;;  %v5023_v6 = vpop.f32.mrf.mxu2  ;;  %v4676_v59 = vsel %vm18480_vm6, %v14331_v53, %v4672_v22  ;;  %v4694_v53 = vand.u32 2147483648, %v18428_v1  ;;  %vm4693_vm15 = vcmp.eq.f32.partialorder %v4692_v57, 8.507059e+37  ;;  %v13826_v1 = vld [vmem:[%s21598_s8 + $0xc4] sm:$0xf] }
 0x801   :  { %v4681_v7 = vsel %vm4678_vm9, %v4680_v10, %v4676_v59  ;;  %v14337_v4 = vpop.eup %14336  ;;  %v4691_v58 = vsel %vm4690_vm14, %v14333_v52, %v4687_v44  ;;  %v11542_v52 = vld [vmem:[%s21598_s8 + $0xd0] sm:$0xf0]  ;;  %v13769_v54 = vld [vmem:[%s21597_s5 + $0x74] sm:$0xf0]  ;;  %v13814_v10 = vld [vmem:[%s21598_s8 + $0x64] sm:$0xf] }
 0x802   :  { %v4656_v62 = vmul.f32 %v14335_v27, %v4655_v15  ;;  %v4699_v61 = vmul.f32 %v4681_v7, %v17642_v26  ;;  %v4695_v18 = vor.u32 1.1754944e-38, %v4694_v53  ;;  %v13830_v26 = vld [vmem:[%s21598_s8 + $0xe4] sm:$0xf]  ;;  %v13768_v22 = vld [vmem:[%s21597_s5 + $0x74] sm:$0xf]  ;;  %v11545_v36 = vor.u32 %v13826_v1, %v11542_v52 }
 0x803   :  { %v11436_v29 = vor.u32 %v13769_v54, %v11435_v60  ;;  %v11437_v15 = vld [vmem:[%s21597_s5 + $0x78] sm:$0xf0]  ;;  %v11526_v6 = vld [vmem:[%s21598_s8 + $0xb0] sm:$0xf0]  ;;  %v11427_v44 = vld [vmem:[%s21597_s5 + $0x60] sm:$0xf] }
 0x804   :  { %v4657_v9 = vadd.f32 %v14335_v27, %v4656_v62  ;;  %v4696_v40 = vsel %vm4693_vm15, %v4695_v18, %v4691_v58  ;;  %v11440_v48 = vor.u32 %v13768_v22, %v11437_v15  ;;  %v11529_v63 = vor.u32 %v13822_v28, %v11526_v6  ;;  %v13818_v62 = vld [vmem:[%s21598_s8 + $0x84] sm:$0xf]  ;;  %v11478_v7 = vld [vmem:[%s21598_s8 + $0x50] sm:$0xf0]  ;;  %v13767_v53 = vld [vmem:[%s21597_s5 + $0x64] sm:$0xf0] }
 0x805   :  { %5202 = vmatpush.bf16.msrb.mxu0 %v11436_v29  ;;  %v11513_v59 = vor.u32 %v13818_v62, %v11510_v31  ;;  %v13766_v57 = vld [vmem:[%s21597_s5 + $0x64] sm:$0xf]  ;;  %v11428_v58 = vor.u32 %v13767_v53, %v11427_v44  ;;  %v11429_v18 = vld [vmem:[%s21597_s5 + $0x68] sm:$0xf0]  ;;  %v11411_v52 = vld [vmem:[%s21597_s5 + $0x40] sm:$0xf] }
 0x806   :  { %v4661_v41 = vsel %vm4660_vm10, %v14335_v27, %v4657_v9  ;;  %v11561_v27 = vor.u32 %v13830_v26, %v11558_v17  ;;  %5215 = vmatpush.bf16.msrb.mxu1 %v11440_v48  ;;  %v11497_v9 = vor.u32 %v13814_v10, %v11494_v33  ;;  %v11419_v26 = vld [vmem:[%s21597_s5 + $0x50] sm:$0xf]  ;;  %v13765_v17 = vld [vmem:[%s21597_s5 + $0x54] sm:$0xf0]  ;;  %v13763_v60 = vld [vmem:[%s21597_s5 + $0x44] sm:$0xf0] }
 0x807   :  { %v4666_v19 = vsel %vm4663_vm11, %v4665_v50, %v4661_v41  ;;  %v13810_v50 = vld [vmem:[%s21598_s8 + $0x44] sm:$0xf]  ;;  %v11413_v22 = vld [vmem:[%s21597_s5 + $0x48] sm:$0xf0]  ;;  %v11412_v29 = vor.u32 %v13763_v60, %v11411_v52  ;;  %v11403_v28 = vld [vmem:[%s21597_s5 + $0x30] sm:$0xf] }
 0x808   :  { %v4700_v16 = vmul.f32 %v14337_v4, %v4666_v19  ;;  %v11481_v41 = vor.u32 %v13810_v50, %v11478_v7  ;;  %v13806_v4 = vld [vmem:[%s21598_s8 + $0x24] sm:$0xf]  ;;  %v13761_v6 = vld [vmem:[%s21597_s5 + $0x34] sm:$0xf0]  ;;  %v11374_v48 = vmul.f32 -1.442695, %v18431_v56 }
 0x809   :  { %v11465_v19 = vor.u32 %v13806_v4, %v11462_v5  ;;  %5203 = vmatpush.bf16.msrb.mxu0 %v11428_v58  ;;  %v13762_v54 = vld [vmem:[%s21597_s5 + $0x44] sm:$0xf]  ;;  %v11404_v62 = vor.u32 %v13761_v6, %v11403_v28  ;;  %v11376_v56 = vmul.f32 -1.442695, %v18467_v25  ;;  %v13759_v50 = vld [vmem:[%s21597_s5 + $0x24] sm:$0xf0] }
 0x80a   :  { %v18487_v3 = vadd.f32 %v4700_v16, %v4699_v61  ;;  %v13802_v61 = vld [vmem:[%s21598_s8 + $0x4] sm:$0xf]  ;;  %v11416_v15 = vor.u32 %v13762_v54, %v11413_v22  ;;  %v11397_v25 = vld [vmem:[%s21597_s5 + $0x28] sm:$0xf0]  ;;  %v11389_v44 = vld [vmem:[%s21597_s5 + $0x18] sm:$0xf0] }
 0x80b   :  { %v13758_v7 = vld [vmem:[%s21597_s5 + $0x24] sm:$0xf]  ;;  %v13755_v58 = vld [vmem:[%s21597_s5 + $0x4] sm:$0xf0]  ;;  %v13831_v54 = vld [vmem:[%s21598_s8 + $0xec] sm:$0xf] }
 0x80c   :  { %14338 = vtanh.f32 %v18487_v3  ;;  %v11400_v5 = vor.u32 %v13758_v7, %v11397_v25  ;;  %v11566_v22 = vld [vmem:[%s21598_s8 + $0xf8] sm:$0xf0]  ;;  %v11548_v6 = vld [vmem:[%s21598_s8 + $0xc8] sm:$0xf] }
 0x80d   :  { %v11569_v28 = vor.u32 %v13831_v54, %v11566_v22  ;;  %v11534_v25 = vld [vmem:[%s21598_s8 + $0xb8] sm:$0xf0] }
 0x80e   :  { %v11502_v54 = vld [vmem:[%s21598_s8 + $0x78] sm:$0xf0] }
 0x812   :  { %v14339_v34 = vpop.eup %14338 }
 0x813   :  { %v4703_v24 = vmul.f32 %v14339_v34, %v4696_v40  ;;  %v11432_v34 = vor.u32 %v13766_v57, %v11429_v18  ;;  %v13764_v40 = vld [vmem:[%s21597_s5 + $0x54] sm:$0xf]  ;;  %v11379_v57 = vld [vmem:[%s21597_s5] sm:$0xf]  ;;  %v13754_v18 = vld [vmem:[%s21597_s5 + $0x4] sm:$0xf] }
 0x815   :  { %v18499_v35 = vpack.c.bf16 %v4703_v24, %v4703_v24  ;;  %v11421_v24 = vld [vmem:[%s21597_s5 + $0x58] sm:$0xf0]  ;;  %5216 = vmatpush.bf16.msrb.mxu1 %v11432_v34  ;;  %v11564_v34 = vld [vmem:[%s21598_s8 + $0xe8] sm:$0xf] }
 0x816   :  { %v11424_v1 = vor.u32 %v13764_v40, %v11421_v24  ;;  %v13833_v40 = vld [vmem:[%s21598_s8 + $0xf4] sm:$0xf0] }
 0x817   :  { %4777 = vmatmul.bf16.vlgmr.msrb.gmra.mxu3 %v18499_v35  ;;  %5467 = vmatmul.bf16.vlgmr.msrb.gmra.mxu2 %v18499_v35  ;;  %v11565_v60 = vor.u32 %v13833_v40, %v11564_v34  ;;  %v11500_v40 = vld [vmem:[%s21598_s8 + $0x68] sm:$0xf] }
 0x818   :  { %5472 = vmatpush.bf16.msrb.mxu3 %v11561_v27  ;;  %v11420_v27 = vor.u32 %v13765_v17, %v11419_v26  ;;  %v11380_v26 = vor.u32 %v13755_v58, %v11379_v57  ;;  %v11381_v17 = vld [vmem:[%s21597_s5 + $0x8] sm:$0xf0] }
 0x819   :  { %5217 = vmatpush.bf16.msrb.mxu1 %v11424_v1  ;;  %v11384_v52 = vor.u32 %v13754_v18, %v11381_v17  ;;  %v13819_v58 = vld [vmem:[%s21598_s8 + $0x8c] sm:$0xf]  ;;  %v11518_v18 = vld [vmem:[%s21598_s8 + $0x98] sm:$0xf0] }
 0x81a   :  { %5204 = vmatpush.bf16.msrb.mxu0 %v11420_v27  ;;  %v11521_v34 = vor.u32 %v13819_v58, %v11518_v18 }
 0x81c   :  { %5473 = vmatpush.bf16.msrb.mxu3 %v11545_v36  ;;  %v11375_v36 = vmul.f32 -1.442695, %v18437_v55  ;;  %v11405_v55 = vld [vmem:[%s21597_s5 + $0x38] sm:$0xf0] }
 0x81d   :  { %5218 = vmatpush.bf16.msrb.mxu1 %v11416_v15 }
 0x81e   :  { %14340 = vpow2.f32 %v11375_v36  ;;  %5205 = vmatpush.bf16.msrb.mxu0 %v11412_v29  ;;  %v14478_v29 = vld [vmem:[%s21605_s11] ss:$0 sm:$0xff] }
 0x81f   :  { %14342 = vpow2.f32 %v11374_v48  ;;  %v13829_v48 = vld [vmem:[%s21598_s8 + $0xd4] sm:$0xf0] }
 0x820   :  { %5474 = vmatpush.bf16.msrb.mxu3 %v11529_v63  ;;  %v13760_v63 = vld [vmem:[%s21597_s5 + $0x34] sm:$0xf]  ;;  %14344 = vpow2.f32 %v11376_v56 }
 0x821   :  { %v11408_v31 = vor.u32 %v13760_v63, %v11405_v55  ;;  %v13827_v63 = vld [vmem:[%s21598_s8 + $0xcc] sm:$0xf]  ;;  %v11550_v55 = vld [vmem:[%s21598_s8 + $0xd8] sm:$0xf0] }
 0x822   :  { %5206 = vmatpush.bf16.msrb.mxu0 %v11404_v62  ;;  %v11553_v56 = vor.u32 %v13827_v63, %v11550_v55  ;;  %v11484_v55 = vld [vmem:[%s21598_s8 + $0x48] sm:$0xf] }
 0x823   :  { %5219 = vmatpush.bf16.msrb.mxu1 %v11408_v31 }
 0x824   :  { %5475 = vmatpush.bf16.msrb.mxu3 %v11513_v59  ;;  %v14341_v59 = vpop.eup %14340 }
 0x825   :  { %v14343_v10 = vpop.eup %14342  ;;  %v18610_v33 = vadd.f32 1.0, %v14341_v59 }
 0x826   :  { %v14345_v24 = vpop.eup %14344 }
 0x827   :  { %5033 = vmatmul.bf16.vlgmr.msra.gmra.mxu3 %v18032_v23  ;;  %v11446_v23 = vld [vmem:[%s21598_s8 + $0x10] sm:$0xf0]  ;;  %14346 = vrcp.f32 %v18610_v33  ;;  %5220 = vmatpush.bf16.msrb.mxu1 %v11400_v5  ;;  %v18690_v59 = vadd.f32 1.0, %v14345_v24  ;;  %v13817_v24 = vld [vmem:[%s21598_s8 + $0x74] sm:$0xf0]  ;;  %vm5074_vm1 = vweird.f32 %v18610_v33 }
 0x828   :  { %5476 = vmatpush.bf16.msrb.mxu3 %v11497_v9  ;;  %v11449_v16 = vor.u32 %v13802_v61, %v11446_v23  ;;  %v11395_v9 = vld [vmem:[%s21597_s5 + $0x20] sm:$0xf]  ;;  %v13757_v61 = vld [vmem:[%s21597_s5 + $0x14] sm:$0xf0]  ;;  %v13756_v23 = vld [vmem:[%s21597_s5 + $0x14] sm:$0xf] }
 0x829   :  { %v11396_v4 = vor.u32 %v13759_v50, %v11395_v9  ;;  %v11392_v53 = vor.u32 %v13756_v23, %v11389_v44  ;;  %v11532_v9 = vld [vmem:[%s21598_s8 + $0xa8] sm:$0xf]  ;;  %v13825_v50 = vld [vmem:[%s21598_s8 + $0xb4] sm:$0xf0]  ;;  %vm5089_vm9 = vweird.f32 %v18690_v59 }
 0x82a   :  { %v11533_v23 = vor.u32 %v13825_v50, %v11532_v9  ;;  %v11516_v44 = vld [vmem:[%s21598_s8 + $0x88] sm:$0xf]  ;;  %v11486_v9 = vld [vmem:[%s21598_s8 + $0x58] sm:$0xf0]  ;;  %v5093_v50 = vand.u32 2147483647, %v18690_v59 }
 0x82b   :  { %5207 = vmatpush.bf16.msrb.mxu0 %v11396_v4  ;;  %5221 = vmatpush.bf16.msrb.mxu1 %v11392_v53  ;;  %v13823_v4 = vld [vmem:[%s21598_s8 + $0xac] sm:$0xf]  ;;  %v13821_v53 = vld [vmem:[%s21598_s8 + $0x94] sm:$0xf0] }
 0x82c   :  { %5477 = vmatpush.bf16.msrb.mxu3 %v11481_v41  ;;  %v18621_v41 = vadd.f32 1.0, %v14343_v10  ;;  %v11549_v10 = vor.u32 %v13829_v48, %v11548_v6  ;;  %v11517_v17 = vor.u32 %v13821_v53, %v11516_v44  ;;  %v13807_v44 = vld [vmem:[%s21598_s8 + $0x2c] sm:$0xf]  ;;  %v11470_v53 = vld [vmem:[%s21598_s8 + $0x38] sm:$0xf0]  ;;  %vm5094_vm11 = vcmp.eq.f32.partialorder %v5093_v50, 8.507059e+37 }
 0x82d   :  { %v18666_v36 = vpop.eup %14346 }
 0x82e   :  { %14348 = vrcp.f32 %v18621_v41  ;;  %v5070_v31 = vmul.f32 %v18666_v36, %v18610_v33  ;;  %vm5075_vm0 = vweird.f32 %v18666_v36  ;;  %vm5059_vm4 = vweird.f32 %v18621_v41 }
 0x82f   :  { %5222 = vmatpush.bf16.msrb.mxu1 %v11384_v52  ;;  %14350 = vrcp.f32 %v18690_v59  ;;  %vm18759_vm3 = vmor %vm5074_vm1, %vm5075_vm0 }
 0x830   :  { %5478 = vmatpush.bf16.msrb.mxu3 %v11465_v19  ;;  %v11387_v19 = vld [vmem:[%s21597_s5 + $0x10] sm:$0xf]  ;;  %v5071_v5 = vsub.f32 1.0, %v5070_v31  ;;  %v13813_v31 = vld [vmem:[%s21598_s8 + $0x54] sm:$0xf0] }
 0x833   :  { %5498 = vmatpush.bf16.msra.mxu1 %v11569_v28  ;;  %v5080_v28 = vand.u32 2147483648, %v18610_v33 }
 0x834   :  { %5479 = vmatpush.bf16.msrb.mxu3 %v11449_v16  ;;  %v11388_v16 = vor.u32 %v13757_v61, %v11387_v19  ;;  %v18683_v62 = vpop.eup %14348 }
 0x835   :  { %v5055_v7 = vmul.f32 %v18683_v62, %v18621_v41  ;;  %vm5060_vm2 = vweird.f32 %v18683_v62 }
 0x836   :  { %5208 = vmatpush.bf16.msrb.mxu0 %v11388_v16  ;;  %v11537_v16 = vor.u32 %v13823_v4, %v11534_v25  ;;  %v11485_v25 = vor.u32 %v13813_v31, %v11484_v55  ;;  %vm18769_vm5 = vmor %vm5059_vm4, %vm5060_vm2 }
 0x837   :  { %5480 = vmatmul.bf16.vlgmr.msrb.gmra.mxu3 %v18499_v35  ;;  %5499 = vmatpush.bf16.msra.mxu1 %v11553_v56  ;;  %v5056_v57 = vsub.f32 1.0, %v5055_v7  ;;  %v5078_v56 = vand.u32 2147483647, %v18610_v33  ;;  %v5065_v7 = vand.u32 2147483648, %v18621_v41  ;;  %v5063_v33 = vand.u32 2147483647, %v18621_v41 }
 0x838   :  { %v13809_v41 = vld [vmem:[%s21598_s8 + $0x34] sm:$0xf0] }
 0x839   :  { %v5057_v52 = vmul.f32 %v18683_v62, %v5056_v57  ;;  %vm5079_vm6 = vcmp.eq.f32.partialorder %v5078_v56, 8.507059e+37  ;;  %v5066_v57 = vor.u32 1.1754944e-38, %v5065_v7  ;;  %vm5064_vm7 = vcmp.eq.f32.partialorder %v5063_v33, 8.507059e+37  ;;  %v11660_v33 = vld [vmem:[%s21599_s7 + $0xa8] sm:$0xf] }
 0x83a   :  { %5209 = vmatpush.bf16.msrb.mxu0 %v11380_v26  ;;  %v5072_v26 = vmul.f32 %v18666_v36, %v5071_v5  ;;  %v5081_v5 = vor.u32 1.1754944e-38, %v5080_v28  ;;  %v11454_v28 = vld [vmem:[%s21598_s8 + $0x18] sm:$0xf0]  ;;  %v5095_v7 = vand.u32 2147483648, %v18690_v59 }
 0x83b   :  { %5500 = vmatpush.bf16.msra.mxu1 %v11537_v16  ;;  %v11468_v16 = vld [vmem:[%s21598_s8 + $0x28] sm:$0xf] }
 0x83e   :  { %5485 = vmatpush.bf16.msra.mxu0 %v11565_v60  ;;  %v13815_v60 = vld [vmem:[%s21598_s8 + $0x6c] sm:$0xf] }
 0x83f   :  { %5501 = vmatpush.bf16.msra.mxu1 %v11521_v34  ;;  %v11505_v63 = vor.u32 %v13815_v60, %v11502_v54  ;;  %v13798_v60 = vld [vmem:[%s21599_s7 + $0xe4] sm:$0xf]  ;;  %v11686_v54 = vld [vmem:[%s21599_s7 + $0xf0] sm:$0xf0] }
 0x842   :  { %5486 = vmatpush.bf16.msra.mxu0 %v11549_v10  ;;  %v5058_v10 = vadd.f32 %v18683_v62, %v5057_v52  ;;  %v13805_v52 = vld [vmem:[%s21598_s8 + $0x14] sm:$0xf0] }
 0x843   :  { %5502 = vmatpush.bf16.msra.mxu1 %v11505_v63  ;;  %v11670_v63 = vld [vmem:[%s21599_s7 + $0xd0] sm:$0xf0] }
 0x846   :  { %5487 = vmatpush.bf16.msra.mxu0 %v11533_v23 }
 0x84a   :  { %5488 = vmatpush.bf16.msra.mxu0 %v11517_v17  ;;  %v11452_v17 = vld [vmem:[%s21598_s8 + $0x8] sm:$0xf] }
 0x89a   :  { %v4778_v27 = vpop.f32.mrf.mxu3  ;;  %v18658_v1 = vpop.f32.mrf.mxu2 }
 0x89b   :  { %v4779_v15 = vadd.f32 %v14478_v29, %v4778_v27  ;;  %v18726_v27 = vpop.eup %14350  ;;  %v5073_v29 = vadd.f32 %v18666_v36, %v5072_v26  ;;  %v11469_v26 = vor.u32 %v13809_v41, %v11468_v16  ;;  %v5096_v16 = vor.u32 1.1754944e-38, %v5095_v7  ;;  %v11692_v41 = vld [vmem:[%s21599_s7 + $0xe8] sm:$0xf] }
 0x89c   :  { %v5085_v6 = vmul.f32 %v18726_v27, %v18690_v59  ;;  %vm5090_vm8 = vweird.f32 %v18726_v27  ;;  %v11638_v59 = vld [vmem:[%s21599_s7 + $0x90] sm:$0xf0] }
 0x89d   :  { %11245 = vst [vmem:[%s21606_s13 + $0x18] sm:$0xff] %v4779_v15  ;;  %v11501_v15 = vor.u32 %v13817_v24, %v11500_v40  ;;  %v5077_v4 = vsel %vm18759_vm3, %v18666_v36, %v5073_v29  ;;  %v5062_v36 = vsel %vm18769_vm5, %v18683_v62, %v5058_v10  ;;  %v11473_v24 = vor.u32 %v13807_v44, %v11470_v53  ;;  %vm18828_vm10 = vmor %vm5089_vm9, %vm5090_vm8  ;;  %v13799_v44 = vld [vmem:[%s21599_s7 + $0xec] sm:$0xf]  ;;  %v11694_v53 = vld [vmem:[%s21599_s7 + $0xf8] sm:$0xf0] }
 0x89e   :  { %v5082_v58 = vsel %vm5079_vm6, %v5081_v5, %v5077_v4  ;;  %v5067_v40 = vsel %vm5064_vm7, %v5066_v57, %v5062_v36  ;;  %v13786_v5 = vld [vmem:[%s21599_s7 + $0x84] sm:$0xf]  ;;  %v11668_v57 = vld [vmem:[%s21599_s7 + $0xc0] sm:$0xf] }
 0x89f   :  { %5489 = vmatpush.bf16.msra.mxu0 %v11501_v15  ;;  %v13803_v15 = vld [vmem:[%s21598_s8 + $0xc] sm:$0xf] }
 0x8a0   :  { %v11457_v56 = vor.u32 %v13803_v15, %v11454_v28  ;;  %v13797_v28 = vld [vmem:[%s21599_s7 + $0xd4] sm:$0xf0] }
 0x8a2   :  { %v4780_v19 = vpop.f32.mrf.mxu3  ;;  %v5470_v61 = vpop.f32.mrf.mxu2 }
 0x8a3   :  { %v5086_v19 = vsub.f32 1.0, %v5085_v6  ;;  %5490 = vmatpush.bf16.msra.mxu0 %v11485_v25  ;;  %v11689_v6 = vor.u32 %v13798_v60, %v11686_v54  ;;  %v11684_v61 = vld [vmem:[%s21599_s7 + $0xe0] sm:$0xf]  ;;  %v11697_v60 = vor.u32 %v13799_v44, %v11694_v53  ;;  %v11676_v54 = vld [vmem:[%s21599_s7 + $0xc8] sm:$0xf] }
 0x8a4   :  { %v11677_v50 = vor.u32 %v13797_v28, %v11676_v54  ;;  %v13789_v44 = vld [vmem:[%s21599_s7 + $0x94] sm:$0xf0]  ;;  %v13787_v53 = vld [vmem:[%s21599_s7 + $0x8c] sm:$0xf] }
 0x8a5   :  { %v5087_v34 = vmul.f32 %v18726_v27, %v5086_v19  ;;  %5684 = vmatpush.bf16.msra.mxu3 %v11689_v6  ;;  %v13795_v6 = vld [vmem:[%s21599_s7 + $0xcc] sm:$0xf]  ;;  %v13781_v54 = vld [vmem:[%s21599_s7 + $0x54] sm:$0xf0] }
 0x8a7   :  { %5491 = vmatpush.bf16.msra.mxu0 %v11469_v26  ;;  %v5088_v10 = vadd.f32 %v18726_v27, %v5087_v34  ;;  %v11641_v26 = vor.u32 %v13786_v5, %v11638_v59  ;;  %v13782_v34 = vld [vmem:[%s21599_s7 + $0x64] sm:$0xf]  ;;  %v13791_v5 = vld [vmem:[%s21599_s7 + $0xac] sm:$0xf] }
 0x8a9   :  { %v5092_v19 = vsel %vm18828_vm10, %v18726_v27, %v5088_v10  ;;  %v13801_v27 = vld [vmem:[%s21599_s7 + $0xf4] sm:$0xf0] }
 0x8aa   :  { %v5034_v22 = vpop.f32.mrf.mxu3 }
 0x8ab   :  { %v5041_v48 = vadd.f32 %v5034_v22, %v15012_v38  ;;  %v13811_v38 = vld [vmem:[%s21598_s8 + $0x4c] sm:$0xf]  ;;  %v5100_v22 = vmul.f32 %v5082_v58, %v17970_v13  ;;  %v11453_v13 = vor.u32 %v13805_v52, %v11452_v17  ;;  %v13796_v17 = vld [vmem:[%s21599_s7 + $0xcc] sm:$0xf0]  ;;  %v11693_v52 = vor.u32 %v13801_v27, %v11692_v41 }
 0x8ac   :  { %v11489_v23 = vor.u32 %v13811_v38, %v11486_v9  ;;  %v13790_v38 = vld [vmem:[%s21599_s7 + $0xa4] sm:$0xf]  ;;  %v11654_v9 = vld [vmem:[%s21599_s7 + $0xb0] sm:$0xf0] }
 0x8ad   :  { %14352 = vtanh.f32 %v5041_v48  ;;  %v13794_v48 = vld [vmem:[%s21599_s7 + $0xc4] sm:$0xf]  ;;  %5492 = vmatpush.bf16.msra.mxu0 %v11453_v13  ;;  %v11657_v25 = vor.u32 %v13790_v38, %v11654_v9  ;;  %v11636_v38 = vld [vmem:[%s21599_s7 + $0x80] sm:$0xf]  ;;  %v13788_v9 = vld [vmem:[%s21599_s7 + $0x8c] sm:$0xf0] }
 0x8ae   :  { %5503 = vmatpush.bf16.msra.mxu1 %v11489_v23  ;;  %v11673_v31 = vor.u32 %v13794_v48, %v11670_v63  ;;  %v13800_v23 = vld [vmem:[%s21599_s7 + $0xec] sm:$0xf0]  ;;  %v11678_v48 = vld [vmem:[%s21599_s7 + $0xd8] sm:$0xf0] }
 0x8af   :  { %v11685_v36 = vor.u32 %v13800_v23, %v11684_v61  ;;  %v11681_v7 = vor.u32 %v13795_v6, %v11678_v48  ;;  %v11637_v61 = vor.u32 %v13788_v9, %v11636_v38  ;;  %v13774_v23 = vld [vmem:[%s21599_s7 + $0x24] sm:$0xf]  ;;  %v11596_v48 = vld [vmem:[%s21599_s7 + $0x28] sm:$0xf]  ;;  %v11574_v38 = vld [vmem:[%s21599_s7 + $0x10] sm:$0xf0] }
 0x8b0   :  { %5685 = vmatpush.bf16.msra.mxu3 %v11673_v31  ;;  %v13778_v31 = vld [vmem:[%s21599_s7 + $0x44] sm:$0xf]  ;;  %v11580_v9 = vld [vmem:[%s21599_s7 + $0x8] sm:$0xf] }
 0x8b1   :  { %5671 = vmatpush.bf16.msra.mxu2 %v11685_v36  ;;  %v11644_v36 = vld [vmem:[%s21599_s7 + $0x88] sm:$0xf] }
 0x8b2   :  { %v5036_v18 = vpop.f32.mrf.mxu3  ;;  %5504 = vmatpush.bf16.msra.mxu1 %v11473_v24  ;;  %v11669_v24 = vor.u32 %v13796_v17, %v11668_v57  ;;  %v11646_v57 = vld [vmem:[%s21599_s7 + $0x98] sm:$0xf0]  ;;  %v11628_v17 = vld [vmem:[%s21599_s7 + $0x68] sm:$0xf] }
 0x8b3   :  { %v14353_v62 = vpop.eup %14352  ;;  %v5097_v18 = vsel %vm5094_vm11, %v5096_v16, %v5092_v19  ;;  %v11662_v19 = vld [vmem:[%s21599_s7 + $0xb8] sm:$0xf0]  ;;  %v11590_v16 = vld [vmem:[%s21599_s7 + $0x30] sm:$0xf0] }
 0x8b4   :  { %v5101_v29 = vmul.f32 %v14353_v62, %v5067_v40  ;;  %5686 = vmatpush.bf16.msra.mxu3 %v11657_v25  ;;  %v11622_v40 = vld [vmem:[%s21599_s7 + $0x70] sm:$0xf0]  ;;  %v13793_v25 = vld [vmem:[%s21599_s7 + $0xb4] sm:$0xf0]  ;;  %v11665_v27 = vor.u32 %v13791_v5, %v11662_v19 }
 0x8b5   :  { %v11625_v13 = vor.u32 %v13782_v34, %v11622_v40  ;;  %5672 = vmatpush.bf16.msra.mxu2 %v11669_v24  ;;  %v11661_v41 = vor.u32 %v13793_v25, %v11660_v33  ;;  %v13783_v34 = vld [vmem:[%s21599_s7 + $0x6c] sm:$0xf]  ;;  %v11630_v40 = vld [vmem:[%s21599_s7 + $0x78] sm:$0xf0] }
 0x8b6   :  { %v18814_v55 = vadd.f32 %v5101_v29, %v5100_v22  ;;  %5505 = vmatpush.bf16.msra.mxu1 %v11457_v56  ;;  %v11652_v22 = vld [vmem:[%s21599_s7 + $0xa0] sm:$0xf]  ;;  %v13792_v29 = vld [vmem:[%s21599_s7 + $0xac] sm:$0xf0]  ;;  %v11606_v56 = vld [vmem:[%s21599_s7 + $0x50] sm:$0xf0] }
 0x8b7   :  { %v11653_v10 = vor.u32 %v13792_v29, %v11652_v22  ;;  %v11609_v59 = vor.u32 %v13778_v31, %v11606_v56  ;;  %v13779_v22 = vld [vmem:[%s21599_s7 + $0x4c] sm:$0xf]  ;;  %v11614_v29 = vld [vmem:[%s21599_s7 + $0x58] sm:$0xf0]  ;;  %v13770_v56 = vld [vmem:[%s21599_s7 + $0x4] sm:$0xf] }
 0x8b8   :  { %14354 = vtanh.f32 %v18814_v55  ;;  %5687 = vmatpush.bf16.msra.mxu3 %v11641_v26  ;;  %v11649_v26 = vor.u32 %v13787_v53, %v11646_v57  ;;  %v11617_v6 = vor.u32 %v13779_v22, %v11614_v29  ;;  %v13771_v33 = vld [vmem:[%s21599_s7 + $0xc] sm:$0xf]  ;;  %v11582_v25 = vld [vmem:[%s21599_s7 + $0x18] sm:$0xf0]  ;;  %v11858_v57 = vld [vmem:[%s21594_s3 + $0xe8] sm:$0xf] }
 0x8b9   :  { %5673 = vmatpush.bf16.msra.mxu2 %v11653_v10  ;;  %v11585_v19 = vor.u32 %v13771_v33, %v11582_v25  ;;  %v11842_v22 = vld [vmem:[%s21594_s3 + $0xc8] sm:$0xf]  ;;  %v13869_v29 = vld [vmem:[%s21594_s3 + $0xd4] sm:$0xf0]  ;;  %v13772_v33 = vld [vmem:[%s21599_s7 + $0xc] sm:$0xf0] }
 0x8ba   :  { %v18832_v4 = vpop.f32.mrf.mxu3 }
 0x8bc   :  { %5688 = vmatpush.bf16.msra.mxu3 %v11625_v13  ;;  %v13775_v13 = vld [vmem:[%s21599_s7 + $0x2c] sm:$0xf] }
 0x8bd   :  { %5674 = vmatpush.bf16.msra.mxu2 %v11637_v61  ;;  %v13784_v61 = vld [vmem:[%s21599_s7 + $0x6c] sm:$0xf0] }
 0x8be   :  { %v14355_v58 = vpop.eup %14354 }
 0x8bf   :  { %v5104_v62 = vmul.f32 %v14355_v58, %v5097_v18  ;;  %v11593_v58 = vor.u32 %v13774_v23, %v11590_v16  ;;  %v11645_v18 = vor.u32 %v13789_v44, %v11644_v36  ;;  %v11850_v23 = vld [vmem:[%s21594_s3 + $0xe0] sm:$0xf]  ;;  %v11852_v36 = vld [vmem:[%s21594_s3 + $0xf0] sm:$0xf0] }
 0x8c0   :  { %5689 = vmatpush.bf16.msra.mxu3 %v11609_v59  ;;  %v11620_v59 = vld [vmem:[%s21599_s7 + $0x60] sm:$0xf] }
 0x8c1   :  { %v18882_v15 = vpack.c.bf16 %v5104_v62, %v5104_v62  ;;  %v13785_v62 = vld [vmem:[%s21599_s7 + $0x74] sm:$0xf0]  ;;  %v11621_v16 = vor.u32 %v13784_v61, %v11620_v59  ;;  %v13858_v59 = vld [vmem:[%s21594_s3 + $0x84] sm:$0xf]  ;;  %v11804_v61 = vld [vmem:[%s21594_s3 + $0x90] sm:$0xf0] }
 0x8c2   :  { %v5483_v63 = vpop.f32.mrf.mxu3  ;;  %v11629_v24 = vor.u32 %v13785_v62, %v11628_v17  ;;  %v13780_v17 = vld [vmem:[%s21599_s7 + $0x4c] sm:$0xf0]  ;;  %v11834_v62 = vld [vmem:[%s21594_s3 + $0xc0] sm:$0xf] }
 0x8c3   :  { %5210 = vmatmul.bf16.vlgmr.msrb.gmra.mxu0 %v18882_v15  ;;  %5223 = vmatmul.bf16.vlgmr.msrb.gmra.mxu1 %v18882_v15  ;;  %v13777_v63 = vld [vmem:[%s21599_s7 + $0x34] sm:$0xf0] }
 0x8c4   :  { %5697 = vmatpush.bf16.msrb.mxu0 %v11693_v52  ;;  %5710 = vmatpush.bf16.msrb.mxu1 %v11697_v60  ;;  %v11633_v52 = vor.u32 %v13783_v34, %v11630_v40  ;;  %v11612_v60 = vld [vmem:[%s21599_s7 + $0x48] sm:$0xf]  ;;  %v11597_v31 = vor.u32 %v13777_v63, %v11596_v48  ;;  %v13868_v40 = vld [vmem:[%s21594_s3 + $0xcc] sm:$0xf0]  ;;  %v11818_v63 = vld [vmem:[%s21594_s3 + $0xa0] sm:$0xf] }
 0x8c5   :  { %5690 = vmatpush.bf16.msra.mxu3 %v11593_v58  ;;  %v11613_v28 = vor.u32 %v13781_v54, %v11612_v60  ;;  %v13873_v58 = vld [vmem:[%s21594_s3 + $0xf4] sm:$0xf0]  ;;  %5675 = vmatpush.bf16.msra.mxu2 %v11621_v16  ;;  %v11835_v60 = vor.u32 %v13868_v40, %v11834_v62  ;;  %v13776_v48 = vld [vmem:[%s21599_s7 + $0x2c] sm:$0xf0]  ;;  %v11770_v40 = vld [vmem:[%s21594_s3 + $0x40] sm:$0xf] }
 0x8c6   :  { %v13861_v16 = vld [vmem:[%s21594_s3 + $0x94] sm:$0xf0] }
 0x8c8   :  { %5698 = vmatpush.bf16.msrb.mxu0 %v11677_v50  ;;  %5711 = vmatpush.bf16.msrb.mxu1 %v11681_v7  ;;  %v11577_v50 = vor.u32 %v13770_v56, %v11574_v38  ;;  %v13773_v7 = vld [vmem:[%s21599_s7 + $0x14] sm:$0xf0]  ;;  %v11826_v56 = vld [vmem:[%s21594_s3 + $0xa8] sm:$0xf] }
 0x8c9   :  { %v11581_v5 = vor.u32 %v13773_v7, %v11580_v9  ;;  %v11572_v7 = vld [vmem:[%s21599_s7] sm:$0xf] }
 0x8ca   :  { %5691 = vmatpush.bf16.msra.mxu3 %v11577_v50  ;;  %v13865_v50 = vld [vmem:[%s21594_s3 + $0xb4] sm:$0xf0] }
 0x8cb   :  { %v11827_v25 = vor.u32 %v13865_v50, %v11826_v56  ;;  %v11756_v56 = vld [vmem:[%s21594_s3 + $0x30] sm:$0xf0]  ;;  %v11762_v50 = vld [vmem:[%s21594_s3 + $0x28] sm:$0xf] }
 0x8cc   :  { %5699 = vmatpush.bf16.msrb.mxu0 %v11661_v41  ;;  %5712 = vmatpush.bf16.msrb.mxu1 %v11665_v27  ;;  %v13872_v41 = vld [vmem:[%s21594_s3 + $0xec] sm:$0xf0]  ;;  %v13870_v27 = vld [vmem:[%s21594_s3 + $0xe4] sm:$0xf] }
 0x8cd   :  { %v11851_v44 = vor.u32 %v13872_v41, %v11850_v23  ;;  %v11855_v53 = vor.u32 %v13870_v27, %v11852_v36  ;;  %v11810_v23 = vld [vmem:[%s21594_s3 + $0x88] sm:$0xf]  ;;  %v11573_v41 = vor.u32 %v13772_v33, %v11572_v7  ;;  %v11807_v36 = vor.u32 %v13858_v59, %v11804_v61  ;;  %v13849_v7 = vld [vmem:[%s21594_s3 + $0x34] sm:$0xf0]  ;;  %v11738_v33 = vld [vmem:[%s21594_s3] sm:$0xf] }
 0x8ce   :  { %v13844_v59 = vld [vmem:[%s21594_s3 + $0xc] sm:$0xf0]  ;;  %v13841_v61 = vld [vmem:[%s21602_s10 + $0x38] sm:$0xff] }
 0x8cf   :  { %6072 = vmatpush.bf16.msrb.mxu3 %v11851_v44  ;;  %v11786_v44 = vld [vmem:[%s21594_s3 + $0x60] sm:$0xf] }
 0x8d0   :  { %5700 = vmatpush.bf16.msrb.mxu0 %v11645_v18  ;;  %5713 = vmatpush.bf16.msrb.mxu1 %v11649_v26  ;;  %v11859_v18 = vor.u32 %v13873_v58, %v11858_v57  ;;  %v11604_v26 = vld [vmem:[%s21599_s7 + $0x40] sm:$0xf]  ;;  %v13856_v57 = vld [vmem:[%s21594_s3 + $0x6c] sm:$0xf0]  ;;  %v13854_v58 = vld [vmem:[%s21594_s3 + $0x64] sm:$0xf] }
 0x8d1   :  { %v11605_v34 = vor.u32 %v13780_v17, %v11604_v26  ;;  %v11794_v26 = vld [vmem:[%s21594_s3 + $0x68] sm:$0xf]  ;;  %v13857_v17 = vld [vmem:[%s21594_s3 + $0x74] sm:$0xf0]  ;;  %v11787_v62 = vor.u32 %v13856_v57, %v11786_v44  ;;  %v11739_v44 = vor.u32 %v13844_v59, %v11738_v33 }
 0x8d3   :  { %5493 = vmatmul.bf16.vlgmr.msra.gmra.mxu0 %v18499_v35  ;;  %5506 = vmatmul.bf16.vlgmr.msra.gmra.mxu1 %v18499_v35  ;;  %v11598_v35 = vld [vmem:[%s21599_s7 + $0x38] sm:$0xf0] }
 0x8d4   :  { %5701 = vmatpush.bf16.msrb.mxu0 %v11629_v24  ;;  %5714 = vmatpush.bf16.msrb.mxu1 %v11633_v52  ;;  %v11601_v10 = vor.u32 %v13775_v13, %v11598_v35  ;;  %v13866_v24 = vld [vmem:[%s21594_s3 + $0xc4] sm:$0xf]  ;;  %v11836_v52 = vld [vmem:[%s21594_s3 + $0xd0] sm:$0xf0]  ;;  %v13864_v13 = vld [vmem:[%s21594_s3 + $0xac] sm:$0xf0] }
 0x8d5   :  { %v11839_v54 = vor.u32 %v13866_v24, %v11836_v52  ;;  %5676 = vmatpush.bf16.msra.mxu2 %v11605_v34  ;;  %6073 = vmatpush.bf16.msrb.mxu3 %v11835_v60  ;;  %v11819_v38 = vor.u32 %v13864_v13, %v11818_v63  ;;  %v11795_v24 = vor.u32 %v13857_v17, %v11794_v26  ;;  %v13852_v52 = vld [vmem:[%s21594_s3 + $0x4c] sm:$0xf0]  ;;  %v13850_v60 = vld [vmem:[%s21594_s3 + $0x44] sm:$0xf] }
 0x8d6   :  { %v11441_v26 = vld [vmem:[%s21603_s1 + $0x20] sm:$0xff] }
 0x8d8   :  { %5702 = vmatpush.bf16.msrb.mxu0 %v11613_v28  ;;  %5715 = vmatpush.bf16.msrb.mxu1 %v11617_v6  ;;  %v11588_v28 = vld [vmem:[%s21599_s7 + $0x20] sm:$0xf]  ;;  %v11843_v6 = vor.u32 %v13869_v29, %v11842_v22  ;;  %v11778_v22 = vld [vmem:[%s21594_s3 + $0x48] sm:$0xf]  ;;  %v13853_v29 = vld [vmem:[%s21594_s3 + $0x54] sm:$0xf0] }
 0x8d9   :  { %v11589_v35 = vor.u32 %v13776_v48, %v11588_v28  ;;  %6074 = vmatpush.bf16.msrb.mxu3 %v11819_v38  ;;  %v11771_v28 = vor.u32 %v13852_v52, %v11770_v40  ;;  %v11754_v48 = vld [vmem:[%s21594_s3 + $0x20] sm:$0xf] }
 0x8db   :  { %5677 = vmatpush.bf16.msra.mxu2 %v11589_v35  ;;  %v11779_v35 = vor.u32 %v13853_v29, %v11778_v22  ;;  %v13840_v22 = vld [vmem:[%s21602_s10 + $0x30] sm:$0xff]  ;;  %v13839_v29 = vld [vmem:[%s21602_s10 + $0x28] sm:$0xff] }
 0x8dc   :  { %5703 = vmatpush.bf16.msrb.mxu0 %v11597_v31  ;;  %5716 = vmatpush.bf16.msrb.mxu1 %v11601_v10  ;;  %v13862_v31 = vld [vmem:[%s21594_s3 + $0xa4] sm:$0xf]  ;;  %v11820_v10 = vld [vmem:[%s21594_s3 + $0xb0] sm:$0xf0] }
 0x8dd   :  { %v11823_v9 = vor.u32 %v13862_v31, %v11820_v10  ;;  %v13848_v31 = vld [vmem:[%s21594_s3 + $0x2c] sm:$0xf0]  ;;  %v13846_v10 = vld [vmem:[%s21594_s3 + $0x24] sm:$0xf] }
 0x8df   :  { %5678 = vmatpush.bf16.msra.mxu2 %v11573_v41  ;;  %v11740_v41 = vld [vmem:[%s21594_s3 + $0x10] sm:$0xf0] }
 0x8e0   :  { %5704 = vmatpush.bf16.msrb.mxu0 %v11581_v5  ;;  %5717 = vmatpush.bf16.msrb.mxu1 %v11585_v19  ;;  %v11802_v5 = vld [vmem:[%s21594_s3 + $0x80] sm:$0xf]  ;;  %v13860_v19 = vld [vmem:[%s21594_s3 + $0x8c] sm:$0xf0] }
 0x8e1   :  { %v11803_v27 = vor.u32 %v13860_v19, %v11802_v5  ;;  %v11755_v5 = vor.u32 %v13848_v31, %v11754_v48  ;;  %v11759_v19 = vor.u32 %v13846_v10, %v11756_v56  ;;  %v13836_v48 = vld [vmem:[%s21602_s10 + $0x10] sm:$0xff] }
 0x8e3   :  { %6075 = vmatpush.bf16.msrb.mxu3 %v11803_v27  ;;  %v11746_v27 = vld [vmem:[%s21594_s3 + $0x8] sm:$0xf]  ;;  %5855 = vmatpush.bf16.msrb.mxu2 %v13841_v61  ;;  %v13867_v61 = vld [vmem:[%s21594_s3 + $0xcc] sm:$0xf] }
 0x8e4   :  { %6085 = vmatpush.bf16.msra.mxu0 %v11855_v53  ;;  %6098 = vmatpush.bf16.msra.mxu1 %v11859_v18  ;;  %v11811_v53 = vor.u32 %v13861_v16, %v11810_v23  ;;  %v11788_v18 = vld [vmem:[%s21594_s3 + $0x70] sm:$0xf0]  ;;  %v11763_v23 = vor.u32 %v13849_v7, %v11762_v50  ;;  %v13842_v16 = vld [vmem:[%s21594_s3 + $0x4] sm:$0xf]  ;;  %v11860_v50 = vld [vmem:[%s21594_s3 + $0xf8] sm:$0xf0] }
 0x8e5   :  { %v11791_v34 = vor.u32 %v13854_v58, %v11788_v18 }
 0x8e7   :  { %6076 = vmatpush.bf16.msrb.mxu3 %v11787_v62  ;;  %5856 = vmatpush.bf16.msrb.mxu2 %v13840_v22 }
 0x8e8   :  { %6086 = vmatpush.bf16.msra.mxu0 %v11839_v54  ;;  %6099 = vmatpush.bf16.msra.mxu1 %v11843_v6  ;;  %v11772_v54 = vld [vmem:[%s21594_s3 + $0x50] sm:$0xf0] }
 0x8e9   :  { %v11775_v6 = vor.u32 %v13850_v60, %v11772_v54 }
 0x8eb   :  { %6077 = vmatpush.bf16.msrb.mxu3 %v11771_v28  ;;  %5857 = vmatpush.bf16.msrb.mxu2 %v13839_v29  ;;  %v13838_v28 = vld [vmem:[%s21602_s10 + $0x20] sm:$0xff] }
 0x8ec   :  { %6087 = vmatpush.bf16.msra.mxu0 %v11823_v9  ;;  %6100 = vmatpush.bf16.msra.mxu1 %v11827_v25 }
 0x8ef   :  { %6078 = vmatpush.bf16.msrb.mxu3 %v11755_v5  ;;  %5858 = vmatpush.bf16.msrb.mxu2 %v13838_v28  ;;  %v13948_v5 = vld [vmem:[%s21598_s8 + $0xcc] sm:$0xf0]  ;;  %v13859_v28 = vld [vmem:[%s21594_s3 + $0x8c] sm:$0xf] }
 0x8f0   :  { %6088 = vmatpush.bf16.msra.mxu0 %v11807_v36  ;;  %6101 = vmatpush.bf16.msra.mxu1 %v11811_v53  ;;  %v13845_v36 = vld [vmem:[%s21594_s3 + $0x14] sm:$0xf0]  ;;  %v11743_v53 = vor.u32 %v13842_v16, %v11740_v41 }
 0x8f1   :  { %v11747_v18 = vor.u32 %v13845_v36, %v11746_v27 }
 0x8f3   :  { %6079 = vmatpush.bf16.msrb.mxu3 %v11739_v44  ;;  %v12014_v44 = vld [vmem:[%s21598_s8 + $0xa0] sm:$0xf] }
 0x8f4   :  { %6089 = vmatpush.bf16.msra.mxu0 %v11791_v34  ;;  %6102 = vmatpush.bf16.msra.mxu1 %v11795_v24 }
 0x8f8   :  { %6090 = vmatpush.bf16.msra.mxu0 %v11775_v6  ;;  %6103 = vmatpush.bf16.msra.mxu1 %v11779_v35  ;;  %v13837_v6 = vld [vmem:[%s21602_s10 + $0x18] sm:$0xff]  ;;  %v13952_v35 = vld [vmem:[%s21598_s8 + $0xec] sm:$0xf0] }
 0x8f9   :  { %5859 = vmatpush.bf16.msrb.mxu2 %v13837_v6  ;;  %v11812_v6 = vld [vmem:[%s21594_s3 + $0x98] sm:$0xf0] }
 0x8fc   :  { %6091 = vmatpush.bf16.msra.mxu0 %v11759_v19  ;;  %6104 = vmatpush.bf16.msra.mxu1 %v11763_v23  ;;  %v11844_v23 = vld [vmem:[%s21594_s3 + $0xd8] sm:$0xf0] }
 0x8fd   :  { %5860 = vmatpush.bf16.msrb.mxu2 %v13836_v48  ;;  %v11847_v36 = vor.u32 %v13867_v61, %v11844_v23  ;;  %v13932_v23 = vld [vmem:[%s21598_s8 + $0x4c] sm:$0xf0] }
 0x900   :  { %6092 = vmatpush.bf16.msra.mxu0 %v11743_v53  ;;  %6105 = vmatpush.bf16.msra.mxu1 %v11747_v18  ;;  %v13944_v53 = vld [vmem:[%s21598_s8 + $0xac] sm:$0xf0] }
 0x901   :  { %v12015_v18 = vor.u32 %v13944_v53, %v12014_v44  ;;  %v11950_v44 = vld [vmem:[%s21598_s8 + $0x20] sm:$0xf]  ;;  %v13928_v53 = vld [vmem:[%s21598_s8 + $0x2c] sm:$0xf0] }
 0x940   :  { %v5211_v63 = vpop.f32.mrf.mxu0  ;;  %v5224_v13 = vpop.f32.mrf.mxu1 }
 0x941   :  { %v5212_v38 = vadd.f32 %v5211_v63, %v15761_v42  ;;  %v5225_v9 = vadd.f32 %v5224_v13, %v15763_v45  ;;  %v13835_v63 = vld [vmem:[%s21602_s10 + $0x8] sm:$0xff]  ;;  %v12046_v13 = vld [vmem:[%s21598_s8 + $0xe0] sm:$0xf] }
 0x942   :  { %5861 = vmatpush.bf16.msrb.mxu2 %v13835_v63  ;;  %v12047_v31 = vor.u32 %v13952_v35, %v12046_v13  ;;  %v11815_v35 = vor.u32 %v13859_v28, %v11812_v6  ;;  %v11748_v28 = vld [vmem:[%s21594_s3 + $0x18] sm:$0xf0] }
 0x943   :  { %11733 = vst [vmem:[%s21601_s12 + $0x40] sm:$0xff] %v5212_v38  ;;  %v5228_v25 = vmul.f32 1.442695, %v5225_v9 }
 0x944   :  { %11734 = vst [vmem:[%s21601_s12 + $0x48] sm:$0xff] %v5225_v9  ;;  %v13871_v9 = vld [vmem:[%s21594_s3 + $0xec] sm:$0xf] }
 0x945   :  { %14356 = vpow2.f32 %v5228_v25  ;;  %v11863_v33 = vor.u32 %v13871_v9, %v11860_v50  ;;  %v12030_v25 = vld [vmem:[%s21598_s8 + $0xc0] sm:$0xf]  ;;  %v329_v9 = vadd.f32 %v15014_v39, %v14972_v14  ;;  %v358_v50 = vadd.f32 %v15025_v43, %v14982_v20 }
 0x946   :  { %v12031_v19 = vor.u32 %v13948_v5, %v12030_v25  ;;  %v13855_v5 = vld [vmem:[%s21594_s3 + $0x6c] sm:$0xf]  ;;  %v11966_v43 = vld [vmem:[%s21598_s8 + $0x40] sm:$0xf] }
 0x948   :  { %v5213_v57 = vpop.f32.mrf.mxu0  ;;  %v5226_v58 = vpop.f32.mrf.mxu1 }
 0x94b   :  { %v14357_v17 = vpop.eup %14356 }
 0x94c   :  { %v5232_v62 = vmul.f32 %v14357_v17, %v11441_v26 }
 0x94e   :  { %v5233_v34 = vadd.f32 %v5232_v62, %v5212_v38  ;;  %v13834_v38 = vld [vmem:[%s21602_s10] sm:$0xff] }
 0x94f   :  { %5862 = vmatpush.bf16.msrb.mxu2 %v13834_v38 }
 0x950   :  { %v5494_v40 = vpop.f32.mrf.mxu0  ;;  %v19175_v24 = vpop.f32.mrf.mxu1  ;;  %v5234_v52 = vpack.c.bf16 %v5233_v34, %v5233_v34 }
 0x952   :  { %5679 = vmatmul.bf16.vlgmr.msra.gmra.mxu2 %v5234_v52  ;;  %5692 = vmatmul.bf16.vlgmr.msra.gmra.mxu3 %v5234_v52 }
 0x953   :  { %5705 = vmatmul.bf16.vlgmr.msrb.gmra.mxu0 %v5234_v52  ;;  %5718 = vmatmul.bf16.vlgmr.msrb.gmra.mxu1 %v5234_v52 }
 0x954   :  { %6545 = vmatpush.bf16.msrb.mxu1 %v12047_v31  ;;  %6111 = vmatpush.bf16.msra.mxu2 %v11863_v33  ;;  %v11982_v31 = vld [vmem:[%s21598_s8 + $0x60] sm:$0xf] }
 0x958   :  { %v5496_v60 = vpop.f32.mrf.mxu0  ;;  %v5509_v54 = vpop.f32.mrf.mxu1  ;;  %6546 = vmatpush.bf16.msrb.mxu1 %v12031_v19  ;;  %6112 = vmatpush.bf16.msra.mxu2 %v11847_v36  ;;  %v11796_v19 = vld [vmem:[%s21594_s3 + $0x78] sm:$0xf0] }
 0x959   :  { %v13940_v60 = vld [vmem:[%s21598_s8 + $0x8c] sm:$0xf0]  ;;  %v11799_v61 = vor.u32 %v13855_v5, %v11796_v19  ;;  %v11780_v36 = vld [vmem:[%s21594_s3 + $0x58] sm:$0xf0] }
 0x95c   :  { %6547 = vmatpush.bf16.msrb.mxu1 %v12015_v18 }
 0x962   :  { %6080 = vmatmul.bf16.vlgmr.msrb.gmra.mxu3 %v18882_v15 }
 0x963   :  { %6093 = vmatmul.bf16.vlgmr.msra.gmra.mxu0 %v18882_v15  ;;  %6106 = vmatmul.bf16.vlgmr.msra.gmra.mxu1 %v18882_v15 }
 0x9d0   :  { %v5706_v10 = vpop.f32.mrf.mxu0  ;;  %v19204_v56 = vpop.f32.mrf.mxu1 }
 0x9d1   :  { %v5707_v7 = vadd.f32 %v5706_v10, %v5494_v40  ;;  %v13863_v40 = vld [vmem:[%s21594_s3 + $0xac] sm:$0xf]  ;;  %v13936_v10 = vld [vmem:[%s21598_s8 + $0x6c] sm:$0xf0] }
 0x9d2   :  { %v11983_v38 = vor.u32 %v13936_v10, %v11982_v31 }
 0x9d3   :  { %v5725_v59 = vadd.f32 %v5707_v7, %v15831_v30 }
 0x9d5   :  { %v11700_v16 = vmul.f32 -1.442695, %v5725_v59  ;;  %v5680_v41 = vpop.f32.mrf.mxu2  ;;  %v5693_v27 = vpop.f32.mrf.mxu3 }
 0x9d6   :  { %v5681_v57 = vadd.f32 %v5680_v41, %v18658_v1  ;;  %v5694_v58 = vadd.f32 %v5693_v27, %v18832_v4  ;;  %v11828_v1 = vld [vmem:[%s21594_s3 + $0xb8] sm:$0xf0]  ;;  %v11998_v4 = vld [vmem:[%s21598_s8 + $0x80] sm:$0xf]  ;;  %v11967_v27 = vor.u32 %v13932_v23, %v11966_v43 }
 0x9d7   :  { %14358 = vpow2.f32 %v11700_v16  ;;  %v11831_v52 = vor.u32 %v13863_v40, %v11828_v1  ;;  %v11999_v29 = vor.u32 %v13940_v60, %v11998_v4  ;;  %v13851_v16 = vld [vmem:[%s21594_s3 + $0x4c] sm:$0xf]  ;;  %v300_v40 = vadd.f32 %v15009_v37, %v14968_v12  ;;  %v11764_v1 = vld [vmem:[%s21594_s3 + $0x38] sm:$0xf0]  ;;  %v13924_v4 = vld [vmem:[%s21598_s8 + $0xc] sm:$0xf0] }
 0x9d8   :  { %v5723_v26 = vadd.f32 %v5681_v57, %v15855_v32  ;;  %v5724_v17 = vadd.f32 %v5694_v58, %v15858_v47  ;;  %v5708_v62 = vpop.f32.mrf.mxu0  ;;  %v5721_v34 = vpop.f32.mrf.mxu1  ;;  %v11783_v18 = vor.u32 %v13851_v16, %v11780_v36  ;;  %v5720_v60 = vadd.f32 %v19204_v56, %v19175_v24 }
 0x9d9   :  { %6113 = vmatpush.bf16.msra.mxu2 %v11831_v52  ;;  %6548 = vmatpush.bf16.msrb.mxu1 %v11999_v29  ;;  %v13847_v34 = vld [vmem:[%s21594_s3 + $0x2c] sm:$0xf]  ;;  %v11934_v52 = vld [vmem:[%s21598_s8] sm:$0xf] }
 0x9da   :  { %v11698_v54 = vmul.f32 -1.442695, %v5723_v26  ;;  %v11699_v22 = vmul.f32 -1.442695, %v5724_v17  ;;  %v11951_v17 = vor.u32 %v13928_v53, %v11950_v44  ;;  %v13843_v29 = vld [vmem:[%s21594_s3 + $0xc] sm:$0xf]  ;;  %v11767_v6 = vor.u32 %v13847_v34, %v11764_v1 }
 0x9db   :  { %v5726_v24 = vadd.f32 %v5720_v60, %v15934_v8  ;;  %v11751_v56 = vor.u32 %v13843_v29, %v11748_v28 }
 0x9dc   :  { %14360 = vpow2.f32 %v11698_v54 }
 0x9dd   :  { %v14359_v48 = vpop.eup %14358  ;;  %14362 = vpow2.f32 %v11699_v22  ;;  %v5682_v63 = vpop.f32.mrf.mxu2  ;;  %6114 = vmatpush.bf16.msra.mxu2 %v11815_v35  ;;  %6549 = vmatpush.bf16.msrb.mxu1 %v11983_v38 }
 0x9de   :  { %v5695_v13 = vpop.f32.mrf.mxu3  ;;  %v19266_v7 = vadd.f32 1.0, %v14359_v48  ;;  %v11935_v48 = vor.u32 %v13924_v4, %v11934_v52 }
 0x9e0   :  { %v6094_v33 = vpop.f32.mrf.mxu0  ;;  %v6107_v25 = vpop.f32.mrf.mxu1  ;;  %14364 = vrcp.f32 %v19266_v7  ;;  %v5780_v4 = vand.u32 2147483648, %v19266_v7  ;;  %vm5774_vm5 = vweird.f32 %v19266_v7 }
 0x9e1   :  { %v19274_v59 = vadd.f32 %v6094_v33, %v329_v9  ;;  %v19276_v39 = vadd.f32 %v6107_v25, %v358_v50  ;;  %6115 = vmatpush.bf16.msra.mxu2 %v11799_v61  ;;  %6550 = vmatpush.bf16.msrb.mxu1 %v11967_v27 }
 0x9e2   :  { %v14361_v41 = vpop.eup %14360 }
 0x9e3   :  { %v14363_v57 = vpop.eup %14362  ;;  %v5736_v58 = vadd.f32 1.0, %v14361_v41 }
 0x9e4   :  { %v5737_v26 = vadd.f32 1.0, %v14363_v57 }
 0x9e5   :  { %14366 = vrcp.f32 %v5736_v58  ;;  %6116 = vmatpush.bf16.msra.mxu2 %v11783_v18  ;;  %6551 = vmatpush.bf16.msrb.mxu1 %v11951_v17  ;;  %v5750_v33 = vand.u32 2147483648, %v5736_v58  ;;  %v5748_v19 = vand.u32 2147483647, %v5736_v58  ;;  %vm5744_vm14 = vweird.f32 %v5736_v58 }
 0x9e6   :  { %v6081_v62 = vpop.f32.mrf.mxu3  ;;  %14368 = vrcp.f32 %v5737_v26  ;;  %v14365_v63 = vpop.eup %14364  ;;  %v5765_v61 = vand.u32 2147483648, %v5737_v26  ;;  %v5763_v23 = vand.u32 2147483647, %v5737_v26  ;;  %vm5759_vm0 = vweird.f32 %v5737_v26 }
 0x9e7   :  { %v19313_v54 = vadd.f32 %v6081_v62, %v300_v40  ;;  %v5770_v9 = vmul.f32 %v14365_v63, %v19266_v7  ;;  %14370 = vtanh.f32 %v5726_v24  ;;  %v5751_v27 = vor.u32 1.1754944e-38, %v5750_v33  ;;  %v11984_v33 = vld [vmem:[%s21598_s8 + $0x70] sm:$0xf0] }
 0x9e8   :  { %v6096_v37 = vpop.f32.mrf.mxu0  ;;  %v6109_v22 = vpop.f32.mrf.mxu1  ;;  %vm5749_vm1 = vcmp.eq.f32.partialorder %v5748_v19, 8.507059e+37  ;;  %v5766_v53 = vor.u32 1.1754944e-38, %v5765_v61  ;;  %vm5764_vm3 = vcmp.eq.f32.partialorder %v5763_v23, 8.507059e+37  ;;  %vm5775_vm4 = vweird.f32 %v14365_v63  ;;  %v11968_v19 = vld [vmem:[%s21598_s8 + $0x50] sm:$0xf0] }
 0x9e9   :  { %6117 = vmatpush.bf16.msra.mxu2 %v11767_v6  ;;  %6552 = vmatpush.bf16.msrb.mxu1 %v11935_v48  ;;  %v5771_v16 = vsub.f32 1.0, %v5770_v9  ;;  %vm5776_vm6 = vmor %vm5774_vm5, %vm5775_vm4  ;;  %v5781_v37 = vor.u32 1.1754944e-38, %v5780_v4  ;;  %v12048_v22 = vld [vmem:[%s21598_s8 + $0xf0] sm:$0xf0]  ;;  %v11909_v4 = vld [vmem:[%s21597_s5 + $0x50] sm:$0xf] }
 0x9ea   :  { %v11952_v23 = vld [vmem:[%s21598_s8 + $0x30] sm:$0xf0] }
 0x9eb   :  { %v14367_v13 = vpop.eup %14366  ;;  %v5772_v62 = vmul.f32 %v14365_v63, %v5771_v16 }
 0x9ec   :  { %v14369_v35 = vpop.eup %14368  ;;  %v5740_v31 = vmul.f32 %v14367_v13, %v5736_v58  ;;  %vm5745_vm12 = vweird.f32 %v14367_v13 }
 0x9ed   :  { %v5755_v10 = vmul.f32 %v14369_v35, %v5737_v26  ;;  %6118 = vmatpush.bf16.msra.mxu2 %v11751_v56  ;;  %vm5760_vm13 = vweird.f32 %v14369_v35  ;;  %vm5746_vm15 = vmor %vm5744_vm14, %vm5745_vm12  ;;  %v14371_v57 = vpop.eup %14370  ;;  %v5773_v58 = vadd.f32 %v14365_v63, %v5772_v62  ;;  %v5778_v26 = vand.u32 2147483647, %v19266_v7  ;;  %v13946_v7 = vld [vmem:[%s21598_s8 + $0xc4] sm:$0xf]  ;;  %v11917_v62 = vld [vmem:[%s21597_s5 + $0x60] sm:$0xf] }
 0x9ee   :  { %v6083_v38 = vpop.f32.mrf.mxu3  ;;  %v5741_v50 = vsub.f32 1.0, %v5740_v31  ;;  %vm5761_vm2 = vmor %vm5759_vm0, %vm5760_vm13  ;;  %v13942_v56 = vld [vmem:[%s21598_s8 + $0xa4] sm:$0xf] }
 0x9ef   :  { %v5756_v25 = vsub.f32 1.0, %v5755_v10  ;;  %v5777_v60 = vsel %vm5776_vm6, %v14365_v63, %v5773_v58  ;;  %vm5779_vm7 = vcmp.eq.f32.partialorder %v5778_v26, 8.507059e+37  ;;  %v12032_v63 = vld [vmem:[%s21598_s8 + $0xd0] sm:$0xf0]  ;;  %v13938_v10 = vld [vmem:[%s21598_s8 + $0x84] sm:$0xf] }
 0x9f0   :  { %v5742_v5 = vmul.f32 %v14367_v13, %v5741_v50  ;;  %v5782_v28 = vsel %vm5779_vm7, %v5781_v37, %v5777_v60  ;;  %v12035_v24 = vor.u32 %v13946_v7, %v12032_v63  ;;  %v12000_v38 = vld [vmem:[%s21598_s8 + $0x90] sm:$0xf0]  ;;  %v13934_v50 = vld [vmem:[%s21598_s8 + $0x64] sm:$0xf]  ;;  %v11919_v58 = vld [vmem:[%s21597_s5 + $0x68] sm:$0xf0] }
 0x9f1   :  { %v5757_v43 = vmul.f32 %v14369_v35, %v5756_v25  ;;  %v12003_v9 = vor.u32 %v13938_v10, %v12000_v38  ;;  %v11987_v25 = vor.u32 %v13934_v50, %v11984_v33  ;;  %v13885_v26 = vld [vmem:[%s21597_s5 + $0x54] sm:$0xf0]  ;;  %v13884_v37 = vld [vmem:[%s21597_s5 + $0x54] sm:$0xf]  ;;  %v11903_v7 = vld [vmem:[%s21597_s5 + $0x48] sm:$0xf0] }
 0x9f2   :  { %v5743_v41 = vadd.f32 %v14367_v13, %v5742_v5  ;;  %v13930_v5 = vld [vmem:[%s21598_s8 + $0x44] sm:$0xf]  ;;  %v11865_v63 = vmul.f32 -1.442695, %v19274_v59  ;;  %v11864_v10 = vmul.f32 -1.442695, %v19313_v54 }
 0x9f3   :  { %v5758_v36 = vadd.f32 %v14369_v35, %v5757_v43  ;;  %v11971_v61 = vor.u32 %v13930_v5, %v11968_v19  ;;  %v13926_v43 = vld [vmem:[%s21598_s8 + $0x24] sm:$0xf]  ;;  %v13880_v38 = vld [vmem:[%s21597_s5 + $0x34] sm:$0xf]  ;;  %v11895_v59 = vld [vmem:[%s21597_s5 + $0x38] sm:$0xf0] }
 0x9f4   :  { %v5747_v44 = vsel %vm5746_vm15, %v14367_v13, %v5743_v41  ;;  %v11955_v16 = vor.u32 %v13926_v43, %v11952_v23  ;;  %v13922_v41 = vld [vmem:[%s21598_s8 + $0x4] sm:$0xf]  ;;  %v11898_v50 = vor.u32 %v13880_v38, %v11895_v59  ;;  %v11866_v54 = vmul.f32 -1.442695, %v19276_v39  ;;  %v11885_v19 = vld [vmem:[%s21597_s5 + $0x20] sm:$0xf] }
 0x9f5   :  { %v5752_v18 = vsel %vm5749_vm1, %v5751_v27, %v5747_v44  ;;  %v5762_v17 = vsel %vm5761_vm2, %v14369_v35, %v5758_v36  ;;  %v12016_v35 = vld [vmem:[%s21598_s8 + $0xb0] sm:$0xf0]  ;;  %v11925_v36 = vld [vmem:[%s21597_s5 + $0x70] sm:$0xf]  ;;  %v13889_v44 = vld [vmem:[%s21597_s5 + $0x74] sm:$0xf0] }
 0x9f6   :  { %v5786_v34 = vmul.f32 %v14371_v57, %v5752_v18  ;;  %v5767_v40 = vsel %vm5764_vm3, %v5766_v53, %v5762_v17  ;;  %v12019_v31 = vor.u32 %v13942_v56, %v12016_v35  ;;  %v13888_v53 = vld [vmem:[%s21597_s5 + $0x74] sm:$0xf]  ;;  %v11926_v57 = vor.u32 %v13889_v44, %v11925_v36  ;;  %v11927_v18 = vld [vmem:[%s21597_s5 + $0x78] sm:$0xf0]  ;;  %v11893_v35 = vld [vmem:[%s21597_s5 + $0x30] sm:$0xf] }
 0x9f7   :  { %v5785_v1 = vmul.f32 %v5767_v40, %v18487_v3  ;;  %v13950_v3 = vld [vmem:[%s21598_s8 + $0xe4] sm:$0xf]  ;;  %v11930_v17 = vor.u32 %v13888_v53, %v11927_v18  ;;  %v11887_v39 = vld [vmem:[%s21597_s5 + $0x28] sm:$0xf0]  ;;  %v13877_v36 = vld [vmem:[%s21597_s5 + $0x14] sm:$0xf0] }
 0x9f8   :  { %v12051_v48 = vor.u32 %v13950_v3, %v12048_v22  ;;  %6288 = vmatpush.bf16.msra.mxu3 %v11926_v57  ;;  %v13886_v40 = vld [vmem:[%s21597_s5 + $0x64] sm:$0xf]  ;;  %v11911_v3 = vld [vmem:[%s21597_s5 + $0x58] sm:$0xf0]  ;;  %v11910_v22 = vor.u32 %v13885_v26, %v11909_v4  ;;  %v13876_v44 = vld [vmem:[%s21597_s5 + $0x14] sm:$0xf] }
 0x9f9   :  { %v19324_v52 = vadd.f32 %v5786_v34, %v5785_v1  ;;  %6301 = vmatpush.bf16.msrb.mxu0 %v11930_v17  ;;  %v13887_v34 = vld [vmem:[%s21597_s5 + $0x64] sm:$0xf0]  ;;  %v11922_v60 = vor.u32 %v13886_v40, %v11919_v58  ;;  %v13878_v43 = vld [vmem:[%s21597_s5 + $0x24] sm:$0xf]  ;;  %v11879_v57 = vld [vmem:[%s21597_s5 + $0x18] sm:$0xf0] }
 0x9fa   :  { %v11918_v1 = vor.u32 %v13887_v34, %v11917_v62  ;;  %v11882_v18 = vor.u32 %v13876_v44, %v11879_v57  ;;  %v11869_v17 = vld [vmem:[%s21597_s5] sm:$0xf]  ;;  %v13875_v62 = vld [vmem:[%s21597_s5 + $0x4] sm:$0xf0]  ;;  %v13874_v34 = vld [vmem:[%s21597_s5 + $0x4] sm:$0xf] }
 0x9fb   :  { %14372 = vtanh.f32 %v19324_v52  ;;  %v11870_v40 = vor.u32 %v13875_v62, %v11869_v17  ;;  %v12054_v58 = vld [vmem:[%s21598_s8 + $0xe8] sm:$0xf]  ;;  %v13953_v4 = vld [vmem:[%s21598_s8 + $0xf4] sm:$0xf0]  ;;  %v12008_v57 = vld [vmem:[%s21598_s8 + $0x98] sm:$0xf0] }
 0x9fc   :  { %6289 = vmatpush.bf16.msra.mxu3 %v11918_v1  ;;  %14374 = vpow2.f32 %v11865_v63  ;;  %v11871_v1 = vld [vmem:[%s21597_s5 + $0x8] sm:$0xf0]  ;;  %v12038_v63 = vld [vmem:[%s21598_s8 + $0xc8] sm:$0xf] }
 0x9fd   :  { %6302 = vmatpush.bf16.msrb.mxu0 %v11922_v60  ;;  %14376 = vpow2.f32 %v11864_v10 }
 0x9fe   :  { %14378 = vpow2.f32 %v11866_v54 }
 0xa00   :  { %6290 = vmatpush.bf16.msra.mxu3 %v11910_v22  ;;  %v13951_v22 = vld [vmem:[%s21598_s8 + $0xec] sm:$0xf] }
 0xa01   :  { %v14373_v29 = vpop.eup %14372 }
 0xa02   :  { %v5789_v6 = vmul.f32 %v14373_v29, %v5782_v28  ;;  %v11914_v29 = vor.u32 %v13884_v37, %v11911_v3  ;;  %v11901_v28 = vld [vmem:[%s21597_s5 + $0x40] sm:$0xf]  ;;  %v14375_v33 = vpop.eup %14374  ;;  %v11874_v37 = vor.u32 %v13874_v34, %v11871_v1  ;;  %v12055_v3 = vor.u32 %v13953_v4, %v12054_v58  ;;  %v11990_v34 = vld [vmem:[%s21598_s8 + $0x68] sm:$0xf]  ;;  %v13935_v4 = vld [vmem:[%s21598_s8 + $0x6c] sm:$0xf] }
 0xa03   :  { %v19447_v5 = vadd.f32 1.0, %v14375_v33  ;;  %v12022_v33 = vld [vmem:[%s21598_s8 + $0xa8] sm:$0xf] }
 0xa04   :  { %v19336_v13 = vpack.c.bf16 %v5789_v6, %v5789_v6  ;;  %v13883_v6 = vld [vmem:[%s21597_s5 + $0x44] sm:$0xf0]  ;;  %6303 = vmatpush.bf16.msrb.mxu0 %v11914_v29  ;;  %v12056_v29 = vld [vmem:[%s21598_s8 + $0xf8] sm:$0xf0] }
 0xa05   :  { %14380 = vrcp.f32 %v19447_v5  ;;  %vm6160_vm9 = vweird.f32 %v19447_v5 }
 0xa06   :  { %5863 = vmatmul.bf16.vlgmr.msrb.gmra.mxu2 %v19336_v13  ;;  %6553 = vmatmul.bf16.vlgmr.msrb.gmra.mxu1 %v19336_v13 }
 0xa07   :  { %6558 = vmatpush.bf16.msrb.mxu2 %v12051_v48  ;;  %v13882_v48 = vld [vmem:[%s21597_s5 + $0x44] sm:$0xf] }
 0xa08   :  { %v11906_v56 = vor.u32 %v13882_v48, %v11903_v7  ;;  %v12059_v7 = vor.u32 %v13951_v22, %v12056_v29  ;;  %v6166_v29 = vand.u32 2147483648, %v19447_v5 }
 0xa0a   :  { %6304 = vmatpush.bf16.msrb.mxu0 %v11906_v56 }
 0xa0b   :  { %6559 = vmatpush.bf16.msrb.mxu2 %v12035_v24  ;;  %v11902_v24 = vor.u32 %v13883_v6, %v11901_v28  ;;  %v14479_v6 = vld [vmem:[%s21605_s11] ss:$0 sm:$0xff] }
 0xa0d   :  { %6291 = vmatpush.bf16.msra.mxu3 %v11902_v24  ;;  %v13949_v24 = vld [vmem:[%s21598_s8 + $0xd4] sm:$0xf0] }
 0xa0e   :  { %6305 = vmatpush.bf16.msrb.mxu0 %v11898_v50 }
 0xa0f   :  { %6560 = vmatpush.bf16.msrb.mxu2 %v12019_v31  ;;  %v13881_v31 = vld [vmem:[%s21597_s5 + $0x34] sm:$0xf0] }
 0xa13   :  { %6561 = vmatpush.bf16.msrb.mxu2 %v12003_v9  ;;  %v11894_v9 = vor.u32 %v13881_v31, %v11893_v35  ;;  %v13947_v35 = vld [vmem:[%s21598_s8 + $0xcc] sm:$0xf]  ;;  %v12040_v31 = vld [vmem:[%s21598_s8 + $0xd8] sm:$0xf0] }
 0xa14   :  { %v12043_v50 = vor.u32 %v13947_v35, %v12040_v31  ;;  %v13931_v35 = vld [vmem:[%s21598_s8 + $0x4c] sm:$0xf]  ;;  %v11976_v31 = vld [vmem:[%s21598_s8 + $0x58] sm:$0xf0] }
 0xa15   :  { %6292 = vmatpush.bf16.msra.mxu3 %v11894_v9  ;;  %v12039_v9 = vor.u32 %v13949_v24, %v12038_v63  ;;  %v11974_v63 = vld [vmem:[%s21598_s8 + $0x48] sm:$0xf] }
 0xa16   :  { %6119 = vmatmul.bf16.vlgmr.msra.gmra.mxu2 %v18882_v15  ;;  %v11936_v15 = vld [vmem:[%s21598_s8 + $0x10] sm:$0xf0] }
 0xa17   :  { %6562 = vmatpush.bf16.msrb.mxu2 %v11987_v25  ;;  %v11939_v27 = vor.u32 %v13922_v41, %v11936_v15  ;;  %v14377_v25 = vpop.eup %14376  ;;  %v11890_v15 = vor.u32 %v13878_v43, %v11887_v39 }
 0xa18   :  { %v19458_v23 = vadd.f32 1.0, %v14377_v25  ;;  %v14379_v26 = vpop.eup %14378  ;;  %v13945_v25 = vld [vmem:[%s21598_s8 + $0xb4] sm:$0xf0] }
 0xa19   :  { %6306 = vmatpush.bf16.msrb.mxu0 %v11890_v15  ;;  %v19503_v28 = vpop.eup %14380  ;;  %v19527_v59 = vadd.f32 1.0, %v14379_v26  ;;  %v12023_v39 = vor.u32 %v13945_v25, %v12022_v33  ;;  %v11992_v26 = vld [vmem:[%s21598_s8 + $0x78] sm:$0xf0]  ;;  %v6167_v25 = vor.u32 1.1754944e-38, %v6166_v29 }
 0xa1a   :  { %14382 = vrcp.f32 %v19458_v23  ;;  %v6156_v38 = vmul.f32 %v19503_v28, %v19447_v5  ;;  %vm6161_vm8 = vweird.f32 %v19503_v28  ;;  %vm6145_vm12 = vweird.f32 %v19458_v23 }
 0xa1b   :  { %6563 = vmatpush.bf16.msrb.mxu2 %v11971_v61  ;;  %v13879_v61 = vld [vmem:[%s21597_s5 + $0x24] sm:$0xf0]  ;;  %14384 = vrcp.f32 %v19527_v59  ;;  %vm19597_vm11 = vmor %vm6160_vm9, %vm6161_vm8  ;;  %vm6175_vm1 = vweird.f32 %v19527_v59 }
 0xa1c   :  { %v6157_v43 = vsub.f32 1.0, %v6156_v38 }
 0xa1d   :  { %6307 = vmatpush.bf16.msrb.mxu0 %v11882_v18 }
 0xa1e   :  { %v6158_v18 = vmul.f32 %v19503_v28, %v6157_v43  ;;  %v11958_v43 = vld [vmem:[%s21598_s8 + $0x28] sm:$0xf] }
 0xa1f   :  { %6564 = vmatpush.bf16.msrb.mxu2 %v11955_v16  ;;  %v11886_v16 = vor.u32 %v13879_v61, %v11885_v19  ;;  %v13943_v19 = vld [vmem:[%s21598_s8 + $0xac] sm:$0xf]  ;;  %v12024_v61 = vld [vmem:[%s21598_s8 + $0xb8] sm:$0xf0] }
 0xa20   :  { %v19520_v10 = vpop.eup %14382  ;;  %v12027_v15 = vor.u32 %v13943_v19, %v12024_v61  ;;  %v11979_v61 = vor.u32 %v13931_v35, %v11976_v31 }
 0xa21   :  { %6293 = vmatpush.bf16.msra.mxu3 %v11886_v16  ;;  %6308 = vmatpush.bf16.msrb.mxu0 %v11874_v37  ;;  %v6141_v54 = vmul.f32 %v19520_v10, %v19458_v23  ;;  %v19563_v1 = vpop.eup %14384  ;;  %vm6146_vm10 = vweird.f32 %v19520_v10 }
 0xa22   :  { %vm19607_vm13 = vmor %vm6145_vm12, %vm6146_vm10  ;;  %vm6176_vm0 = vweird.f32 %v19563_v1 }
 0xa23   :  { %6565 = vmatpush.bf16.msrb.mxu2 %v11939_v27  ;;  %v11877_v27 = vld [vmem:[%s21597_s5 + $0x10] sm:$0xf]  ;;  %v6142_v44 = vsub.f32 1.0, %v6141_v54  ;;  %vm19666_vm2 = vmor %vm6175_vm1, %vm6176_vm0 }
 0xa24   :  { %v11878_v53 = vor.u32 %v13877_v36, %v11877_v27  ;;  %v12006_v27 = vld [vmem:[%s21598_s8 + $0x88] sm:$0xf]  ;;  %v13941_v36 = vld [vmem:[%s21598_s8 + $0x94] sm:$0xf0] }
 0xa25   :  { %6584 = vmatpush.bf16.msra.mxu0 %v12059_v7  ;;  %v12007_v17 = vor.u32 %v13941_v36, %v12006_v27  ;;  %v6143_v58 = vmul.f32 %v19520_v10, %v6142_v44  ;;  %v11995_v7 = vor.u32 %v13935_v4, %v11992_v26  ;;  %v13923_v26 = vld [vmem:[%s21598_s8 + $0xc] sm:$0xf] }
 0xa26   :  { %6566 = vmatmul.bf16.vlgmr.msrb.gmra.mxu2 %v19336_v13  ;;  %6294 = vmatpush.bf16.msra.mxu3 %v11878_v53  ;;  %v13939_v53 = vld [vmem:[%s21598_s8 + $0x8c] sm:$0xf] }
 0xa27   :  { %v12011_v62 = vor.u32 %v13939_v53, %v12008_v57  ;;  %v6144_v24 = vadd.f32 %v19520_v10, %v6143_v58  ;;  %v11942_v53 = vld [vmem:[%s21598_s8 + $0x8] sm:$0xf] }
 0xa29   :  { %6585 = vmatpush.bf16.msra.mxu0 %v12043_v50 }
 0xa2a   :  { %6295 = vmatpush.bf16.msra.mxu3 %v11870_v40  ;;  %v13937_v40 = vld [vmem:[%s21598_s8 + $0x74] sm:$0xf0] }
 0xa2b   :  { %v11991_v22 = vor.u32 %v13937_v40, %v11990_v34  ;;  %v13918_v34 = vld [vmem:[%s21599_s7 + $0xe4] sm:$0xf]  ;;  %v12176_v40 = vld [vmem:[%s21599_s7 + $0xf0] sm:$0xf0] }
 0xa2d   :  { %6586 = vmatpush.bf16.msra.mxu0 %v12027_v15 }
 0xa2e   :  { %6571 = vmatpush.bf16.msrb.mxu3 %v12055_v3  ;;  %v6159_v3 = vadd.f32 %v19503_v28, %v6158_v18 }
 0xa30   :  { %v6163_v50 = vsel %vm19597_vm11, %v19503_v28, %v6159_v3  ;;  %v6148_v28 = vsel %vm19607_vm13, %v19520_v10, %v6144_v24  ;;  %v13914_v3 = vld [vmem:[%s21599_s7 + $0xc4] sm:$0xf]  ;;  %v6179_v24 = vand.u32 2147483647, %v19527_v59 }
 0xa31   :  { %6587 = vmatpush.bf16.msra.mxu0 %v12011_v62  ;;  %v13925_v62 = vld [vmem:[%s21598_s8 + $0x14] sm:$0xf0] }
 0xa32   :  { %6572 = vmatpush.bf16.msrb.mxu3 %v12039_v9  ;;  %v6151_v9 = vand.u32 2147483648, %v19458_v23  ;;  %vm6180_vm3 = vcmp.eq.f32.partialorder %v6179_v24, 8.507059e+37  ;;  %v13911_v24 = vld [vmem:[%s21599_s7 + $0xac] sm:$0xf] }
 0xa34   :  { %v6152_v15 = vor.u32 1.1754944e-38, %v6151_v9  ;;  %v13906_v9 = vld [vmem:[%s21599_s7 + $0x84] sm:$0xf] }
 0xa35   :  { %6588 = vmatpush.bf16.msra.mxu0 %v11995_v7 }
 0xa36   :  { %6573 = vmatpush.bf16.msrb.mxu3 %v12023_v39  ;;  %v11960_v39 = vld [vmem:[%s21598_s8 + $0x38] sm:$0xf0] }
 0xa39   :  { %6589 = vmatpush.bf16.msra.mxu0 %v11979_v61  ;;  %v13919_v61 = vld [vmem:[%s21599_s7 + $0xec] sm:$0xf] }
 0xa3a   :  { %6574 = vmatpush.bf16.msrb.mxu3 %v12007_v17 }
 0xa3e   :  { %6575 = vmatpush.bf16.msrb.mxu3 %v11991_v22  ;;  %v12160_v22 = vld [vmem:[%s21599_s7 + $0xd0] sm:$0xf0] }
 0xa83   :  { %v19463_v41 = vpop.f32.mrf.mxu1 }
 0xa89   :  { %v5864_v60 = vpop.f32.mrf.mxu2 }
 0xa8a   :  { %v5865_v48 = vadd.f32 %v14479_v6, %v5864_v60  ;;  %v387_v60 = vadd.f32 %v15030_v46, %v14984_v21  ;;  %v6171_v6 = vmul.f32 %v19563_v1, %v19527_v59  ;;  %v13933_v46 = vld [vmem:[%s21598_s8 + $0x54] sm:$0xf0] }
 0xa8b   :  { %v6556_v56 = vpop.f32.mrf.mxu1  ;;  %v11975_v33 = vor.u32 %v13933_v46, %v11974_v63  ;;  %v13910_v63 = vld [vmem:[%s21599_s7 + $0xa4] sm:$0xf]  ;;  %v12144_v46 = vld [vmem:[%s21599_s7 + $0xb0] sm:$0xf0] }
 0xa8c   :  { %11735 = vst [vmem:[%s21606_s13 + $0x20] sm:$0xff] %v5865_v48  ;;  %v6164_v56 = vand.u32 2147483647, %v19447_v5  ;;  %v6149_v5 = vand.u32 2147483647, %v19458_v23  ;;  %v6172_v54 = vsub.f32 1.0, %v6171_v6  ;;  %v12163_v6 = vor.u32 %v13914_v3, %v12160_v22 }
 0xa8d   :  { %v13929_v23 = vld [vmem:[%s21598_s8 + $0x34] sm:$0xf0]  ;;  %6576 = vmatpush.bf16.msrb.mxu3 %v11975_v33  ;;  %v12147_v38 = vor.u32 %v13910_v63, %v12144_v46  ;;  %v13920_v33 = vld [vmem:[%s21599_s7 + $0xec] sm:$0xf0]  ;;  %v12096_v22 = vld [vmem:[%s21599_s7 + $0x50] sm:$0xf0] }
 0xa8e   :  { %vm6165_vm14 = vcmp.eq.f32.partialorder %v6164_v56, 8.507059e+37  ;;  %vm6150_vm15 = vcmp.eq.f32.partialorder %v6149_v5, 8.507059e+37  ;;  %v11959_v44 = vor.u32 %v13929_v23, %v11958_v43  ;;  %v6173_v57 = vmul.f32 %v19563_v1, %v6172_v54  ;;  %v12182_v54 = vld [vmem:[%s21599_s7 + $0xe8] sm:$0xf]  ;;  %v12184_v43 = vld [vmem:[%s21599_s7 + $0xf8] sm:$0xf0] }
 0xa8f   :  { %v6168_v27 = vsel %vm6165_vm14, %v6167_v25, %v6163_v50  ;;  %v6153_v18 = vsel %vm6150_vm15, %v6152_v15, %v6148_v28  ;;  %v6181_v56 = vand.u32 2147483648, %v19527_v59  ;;  %v12128_v59 = vld [vmem:[%s21599_s7 + $0x90] sm:$0xf0]  ;;  %v12174_v50 = vld [vmem:[%s21599_s7 + $0xe0] sm:$0xf] }
 0xa90   :  { %v6186_v58 = vmul.f32 %v6168_v27, %v18814_v55  ;;  %v11943_v55 = vor.u32 %v13925_v62, %v11942_v53  ;;  %v12175_v19 = vor.u32 %v13920_v33, %v12174_v50  ;;  %v12158_v23 = vld [vmem:[%s21599_s7 + $0xc0] sm:$0xf]  ;;  %v13916_v15 = vld [vmem:[%s21599_s7 + $0xcc] sm:$0xf0]  ;;  %v12150_v63 = vld [vmem:[%s21599_s7 + $0xa8] sm:$0xf] }
 0xa91   :  { %v5866_v16 = vpop.f32.mrf.mxu2  ;;  %6577 = vmatpush.bf16.msrb.mxu3 %v11959_v44  ;;  %v6182_v25 = vor.u32 1.1754944e-38, %v6181_v56  ;;  %v12112_v44 = vld [vmem:[%s21599_s7 + $0x70] sm:$0xf0]  ;;  %v12159_v53 = vor.u32 %v13916_v15, %v12158_v23  ;;  %v13912_v62 = vld [vmem:[%s21599_s7 + $0xac] sm:$0xf0] }
 0xa92   :  { %v13927_v16 = vld [vmem:[%s21598_s8 + $0x2c] sm:$0xf]  ;;  %6757 = vmatpush.bf16.msra.mxu1 %v12175_v19  ;;  %v13913_v46 = vld [vmem:[%s21599_s7 + $0xb4] sm:$0xf0]  ;;  %v12152_v56 = vld [vmem:[%s21599_s7 + $0xb8] sm:$0xf0] }
 0xa93   :  { %v11963_v17 = vor.u32 %v13927_v16, %v11960_v39  ;;  %v12131_v39 = vor.u32 %v13906_v9, %v12128_v59  ;;  %v13894_v9 = vld [vmem:[%s21599_s7 + $0x24] sm:$0xf]  ;;  %v12151_v59 = vor.u32 %v13913_v46, %v12150_v63  ;;  %v12155_v50 = vor.u32 %v13911_v24, %v12152_v56  ;;  %v12134_v33 = vld [vmem:[%s21599_s7 + $0x88] sm:$0xf]  ;;  %v12110_v63 = vld [vmem:[%s21599_s7 + $0x60] sm:$0xf] }
 0xa94   :  { %v12118_v23 = vld [vmem:[%s21599_s7 + $0x68] sm:$0xf]  ;;  %v13904_v46 = vld [vmem:[%s21599_s7 + $0x6c] sm:$0xf0]  ;;  %v12340_v24 = vld [vmem:[%s21594_s3 + $0xe0] sm:$0xf] }
 0xa95   :  { %6590 = vmatpush.bf16.msra.mxu0 %v11963_v17  ;;  %6578 = vmatpush.bf16.msrb.mxu3 %v11943_v55  ;;  %v12142_v17 = vld [vmem:[%s21599_s7 + $0xa0] sm:$0xf]  ;;  %v12111_v56 = vor.u32 %v13904_v46, %v12110_v63  ;;  %v13981_v63 = vld [vmem:[%s21594_s3 + $0x94] sm:$0xf0] }
 0xa96   :  { %6758 = vmatpush.bf16.msra.mxu1 %v12159_v53  ;;  %v12143_v3 = vor.u32 %v13912_v62, %v12142_v17  ;;  %v12126_v55 = vld [vmem:[%s21599_s7 + $0x80] sm:$0xf]  ;;  %v13899_v53 = vld [vmem:[%s21599_s7 + $0x4c] sm:$0xf]  ;;  %v12086_v17 = vld [vmem:[%s21599_s7 + $0x28] sm:$0xf] }
 0xa97   :  { %v13897_v62 = vld [vmem:[%s21599_s7 + $0x34] sm:$0xf0] }
 0xa99   :  { %v6120_v37 = vpop.f32.mrf.mxu2 }
 0xa9a   :  { %v6127_v48 = vadd.f32 %v6120_v37, %v387_v60  ;;  %v11944_v60 = vld [vmem:[%s21598_s8 + $0x18] sm:$0xf0]  ;;  %v12179_v37 = vor.u32 %v13918_v34, %v12176_v40  ;;  %v13917_v40 = vld [vmem:[%s21599_s7 + $0xd4] sm:$0xf0]  ;;  %6759 = vmatpush.bf16.msra.mxu1 %v12143_v3 }
 0xa9b   :  { %v11947_v7 = vor.u32 %v13923_v26, %v11944_v60 }
 0xa9c   :  { %14386 = vtanh.f32 %v6127_v48  ;;  %6770 = vmatpush.bf16.msra.mxu2 %v12179_v37  ;;  %v6174_v48 = vadd.f32 %v19563_v1, %v6173_v57  ;;  %v12187_v57 = vor.u32 %v13919_v61, %v12184_v43  ;;  %v13898_v37 = vld [vmem:[%s21599_s7 + $0x44] sm:$0xf] }
 0xa9d   :  { %6591 = vmatpush.bf16.msra.mxu0 %v11947_v7  ;;  %v12099_v35 = vor.u32 %v13898_v37, %v12096_v22  ;;  %v12070_v37 = vld [vmem:[%s21599_s7 + $0x8] sm:$0xf]  ;;  %v13893_v22 = vld [vmem:[%s21599_s7 + $0x14] sm:$0xf0] }
 0xa9e   :  { %v6178_v5 = vsel %vm19666_vm2, %v19563_v1, %v6174_v48  ;;  %v13921_v1 = vld [vmem:[%s21599_s7 + $0xf4] sm:$0xf0] }
 0xa9f   :  { %v6183_v16 = vsel %vm6180_vm3, %v6182_v25, %v6178_v5  ;;  %v12080_v5 = vld [vmem:[%s21599_s7 + $0x30] sm:$0xf0]  ;;  %v13909_v25 = vld [vmem:[%s21599_s7 + $0x94] sm:$0xf0] }
 0xaa0   :  { %6771 = vmatpush.bf16.msra.mxu2 %v12163_v6  ;;  %v13908_v6 = vld [vmem:[%s21599_s7 + $0x8c] sm:$0xf0]  ;;  %v12083_v19 = vor.u32 %v13894_v9, %v12080_v5  ;;  %v12135_v61 = vor.u32 %v13909_v25, %v12134_v33  ;;  %v12342_v9 = vld [vmem:[%s21594_s3 + $0xf0] sm:$0xf0]  ;;  %v13993_v33 = vld [vmem:[%s21594_s3 + $0xf4] sm:$0xf0] }
 0xaa1   :  { %v6122_v36 = vpop.f32.mrf.mxu2 }
 0xaa2   :  { %v14387_v10 = vpop.eup %14386  ;;  %v13902_v36 = vld [vmem:[%s21599_s7 + $0x64] sm:$0xf] }
 0xaa3   :  { %v6187_v4 = vmul.f32 %v14387_v10, %v6153_v18  ;;  %v12183_v10 = vor.u32 %v13921_v1, %v12182_v54  ;;  %v12166_v18 = vld [vmem:[%s21599_s7 + $0xc8] sm:$0xf]  ;;  %v12115_v60 = vor.u32 %v13902_v36, %v12112_v44  ;;  %v13907_v54 = vld [vmem:[%s21599_s7 + $0x8c] sm:$0xf]  ;;  %v12136_v1 = vld [vmem:[%s21599_s7 + $0x98] sm:$0xf0] }
 0xaa4   :  { %6772 = vmatpush.bf16.msra.mxu2 %v12147_v38  ;;  %v12167_v48 = vor.u32 %v13917_v40, %v12166_v18  ;;  %v12127_v38 = vor.u32 %v13908_v6, %v12126_v55  ;;  %v12139_v43 = vor.u32 %v13907_v54, %v12136_v1  ;;  %v12102_v36 = vld [vmem:[%s21599_s7 + $0x48] sm:$0xf]  ;;  %v13901_v44 = vld [vmem:[%s21599_s7 + $0x54] sm:$0xf0]  ;;  %v13895_v40 = vld [vmem:[%s21599_s7 + $0x2c] sm:$0xf] }
 0xaa5   :  { %v19652_v29 = vadd.f32 %v6187_v4, %v6186_v58  ;;  %v13915_v58 = vld [vmem:[%s21599_s7 + $0xcc] sm:$0xf]  ;;  %v12168_v4 = vld [vmem:[%s21599_s7 + $0xd8] sm:$0xf0]  ;;  %v12094_v54 = vld [vmem:[%s21599_s7 + $0x40] sm:$0xf] }
 0xaa6   :  { %v12171_v7 = vor.u32 %v13915_v58, %v12168_v4  ;;  %6760 = vmatpush.bf16.msra.mxu1 %v12127_v38  ;;  %v12087_v58 = vor.u32 %v13897_v62, %v12086_v17  ;;  %v13891_v55 = vld [vmem:[%s21599_s7 + $0xc] sm:$0xf]  ;;  %v12072_v6 = vld [vmem:[%s21599_s7 + $0x18] sm:$0xf0]  ;;  %v13990_v38 = vld [vmem:[%s21594_s3 + $0xe4] sm:$0xf] }
 0xaa7   :  { %14388 = vtanh.f32 %v19652_v29  ;;  %v13900_v1 = vld [vmem:[%s21599_s7 + $0x4c] sm:$0xf0]  ;;  %v13982_v62 = vld [vmem:[%s21594_s3 + $0xa4] sm:$0xf] }
 0xaa8   :  { %6773 = vmatpush.bf16.msra.mxu2 %v12131_v39  ;;  %v12120_v39 = vld [vmem:[%s21599_s7 + $0x78] sm:$0xf0] }
 0xaa9   :  { %v19670_v31 = vpop.f32.mrf.mxu2 }
 0xaaa   :  { %6761 = vmatpush.bf16.msra.mxu1 %v12111_v56  ;;  %v12276_v56 = vld [vmem:[%s21594_s3 + $0x60] sm:$0xf] }
 0xaac   :  { %6774 = vmatpush.bf16.msra.mxu2 %v12115_v60  ;;  %v12064_v60 = vld [vmem:[%s21599_s7 + $0x10] sm:$0xf0] }
 0xaad   :  { %v14389_v28 = vpop.eup %14388 }
 0xaae   :  { %v6190_v27 = vmul.f32 %v14389_v28, %v6183_v16  ;;  %v13905_v28 = vld [vmem:[%s21599_s7 + $0x74] sm:$0xf0]  ;;  %v13903_v16 = vld [vmem:[%s21599_s7 + $0x6c] sm:$0xf] }
 0xaaf   :  { %v12119_v15 = vor.u32 %v13905_v28, %v12118_v23  ;;  %v13986_v23 = vld [vmem:[%s21594_s3 + $0xc4] sm:$0xf]  ;;  %v12326_v28 = vld [vmem:[%s21594_s3 + $0xd0] sm:$0xf0] }
 0xab0   :  { %v19720_v34 = vpack.c.bf16 %v6190_v27, %v6190_v27  ;;  %6775 = vmatpush.bf16.msra.mxu2 %v12099_v35  ;;  %v12123_v27 = vor.u32 %v13903_v16, %v12120_v39  ;;  %v13992_v35 = vld [vmem:[%s21594_s3 + $0xec] sm:$0xf0]  ;;  %v12329_v39 = vor.u32 %v13986_v23, %v12326_v28  ;;  %v12268_v23 = vld [vmem:[%s21594_s3 + $0x48] sm:$0xf]  ;;  %v13973_v28 = vld [vmem:[%s21594_s3 + $0x54] sm:$0xf0] }
 0xab1   :  { %v6569_v26 = vpop.f32.mrf.mxu2  ;;  %v12341_v5 = vor.u32 %v13992_v35, %v12340_v24 }
 0xab2   :  { %6296 = vmatmul.bf16.vlgmr.msra.gmra.mxu3 %v19720_v34  ;;  %6309 = vmatmul.bf16.vlgmr.msrb.gmra.mxu0 %v19720_v34  ;;  %v13890_v26 = vld [vmem:[%s21599_s7 + $0x4] sm:$0xf] }
 0xab3   :  { %6783 = vmatpush.bf16.msra.mxu3 %v12183_v10  ;;  %6796 = vmatpush.bf16.msrb.mxu0 %v12187_v57  ;;  %v12104_v10 = vld [vmem:[%s21599_s7 + $0x58] sm:$0xf0]  ;;  %v12103_v57 = vor.u32 %v13901_v44, %v12102_v36  ;;  %v12067_v3 = vor.u32 %v13890_v26, %v12064_v60  ;;  %v12078_v36 = vld [vmem:[%s21599_s7 + $0x20] sm:$0xf]  ;;  %v13892_v60 = vld [vmem:[%s21599_s7 + $0xc] sm:$0xf0] }
 0xab4   :  { %6776 = vmatpush.bf16.msra.mxu2 %v12083_v19  ;;  %v12107_v18 = vor.u32 %v13899_v53, %v12104_v10  ;;  %v12324_v19 = vld [vmem:[%s21594_s3 + $0xc0] sm:$0xf]  ;;  %v13896_v53 = vld [vmem:[%s21599_s7 + $0x2c] sm:$0xf0] }
 0xab5   :  { %v12308_v10 = vld [vmem:[%s21594_s3 + $0xa0] sm:$0xf] }
 0xab6   :  { %v12062_v26 = vld [vmem:[%s21599_s7] sm:$0xf] }
 0xab7   :  { %6784 = vmatpush.bf16.msra.mxu3 %v12167_v48  ;;  %6797 = vmatpush.bf16.msrb.mxu0 %v12171_v7  ;;  %v12071_v48 = vor.u32 %v13893_v22, %v12070_v37  ;;  %v12075_v7 = vor.u32 %v13891_v55, %v12072_v6  ;;  %v13980_v22 = vld [vmem:[%s21594_s3 + $0x8c] sm:$0xf0]  ;;  %v13978_v55 = vld [vmem:[%s21594_s3 + $0x84] sm:$0xf]  ;;  %v12063_v6 = vor.u32 %v13892_v60, %v12062_v26 }
 0xab8   :  { %6777 = vmatpush.bf16.msra.mxu2 %v12067_v3  ;;  %v12292_v3 = vld [vmem:[%s21594_s3 + $0x80] sm:$0xf] }
 0xab9   :  { %v12293_v46 = vor.u32 %v13980_v22, %v12292_v3  ;;  %v13961_v3 = vld [vmem:[%s21602_s10 + $0x38] sm:$0xff]  ;;  %v12236_v22 = vld [vmem:[%s21594_s3 + $0x8] sm:$0xf] }
 0xabb   :  { %6785 = vmatpush.bf16.msra.mxu3 %v12151_v59  ;;  %6798 = vmatpush.bf16.msrb.mxu0 %v12155_v50  ;;  %v12345_v59 = vor.u32 %v13990_v38, %v12342_v9  ;;  %v12348_v50 = vld [vmem:[%s21594_s3 + $0xe8] sm:$0xf]  ;;  %v13976_v38 = vld [vmem:[%s21594_s3 + $0x6c] sm:$0xf0]  ;;  %v13974_v9 = vld [vmem:[%s21594_s3 + $0x64] sm:$0xf] }
 0xabc   :  { %v12349_v25 = vor.u32 %v13993_v33, %v12348_v50  ;;  %7158 = vmatpush.bf16.msrb.mxu2 %v12341_v5  ;;  %v12278_v5 = vld [vmem:[%s21594_s3 + $0x70] sm:$0xf0]  ;;  %v13977_v50 = vld [vmem:[%s21594_s3 + $0x74] sm:$0xf0]  ;;  %v12277_v33 = vor.u32 %v13976_v38, %v12276_v56  ;;  %v11931_v56 = vld [vmem:[%s21603_s1 + $0x28] sm:$0xff] }
 0xabf   :  { %6786 = vmatpush.bf16.msra.mxu3 %v12135_v61  ;;  %6799 = vmatpush.bf16.msrb.mxu0 %v12139_v43  ;;  %v12095_v61 = vor.u32 %v13900_v1, %v12094_v54  ;;  %v13988_v43 = vld [vmem:[%s21594_s3 + $0xcc] sm:$0xf0]  ;;  %v12260_v54 = vld [vmem:[%s21594_s3 + $0x40] sm:$0xf] }
 0xac0   :  { %v12325_v16 = vor.u32 %v13988_v43, %v12324_v19  ;;  %v13972_v19 = vld [vmem:[%s21594_s3 + $0x4c] sm:$0xf0]  ;;  %v12262_v43 = vld [vmem:[%s21594_s3 + $0x50] sm:$0xf0] }
 0xac1   :  { %6762 = vmatpush.bf16.msra.mxu1 %v12095_v61  ;;  %v13970_v61 = vld [vmem:[%s21594_s3 + $0x44] sm:$0xf] }
 0xac2   :  { %6579 = vmatmul.bf16.vlgmr.msrb.gmra.mxu3 %v19336_v13  ;;  %6592 = vmatmul.bf16.vlgmr.msra.gmra.mxu0 %v19336_v13  ;;  %v12088_v13 = vld [vmem:[%s21599_s7 + $0x38] sm:$0xf0] }
 0xac3   :  { %6787 = vmatpush.bf16.msra.mxu3 %v12119_v15  ;;  %6800 = vmatpush.bf16.msrb.mxu0 %v12123_v27  ;;  %v12091_v4 = vor.u32 %v13895_v40, %v12088_v13  ;;  %v12332_v15 = vld [vmem:[%s21594_s3 + $0xc8] sm:$0xf]  ;;  %v13989_v27 = vld [vmem:[%s21594_s3 + $0xd4] sm:$0xf0]  ;;  %v12310_v40 = vld [vmem:[%s21594_s3 + $0xb0] sm:$0xf0] }
 0xac4   :  { %v12333_v44 = vor.u32 %v13989_v27, %v12332_v15  ;;  %7159 = vmatpush.bf16.msrb.mxu2 %v12325_v16  ;;  %v12316_v13 = vld [vmem:[%s21594_s3 + $0xa8] sm:$0xf]  ;;  %v12261_v16 = vor.u32 %v13972_v19, %v12260_v54  ;;  %v12244_v15 = vld [vmem:[%s21594_s3 + $0x20] sm:$0xf]  ;;  %v12269_v27 = vor.u32 %v13973_v28, %v12268_v23  ;;  %v13956_v23 = vld [vmem:[%s21602_s10 + $0x10] sm:$0xff] }
 0xac5   :  { %v13959_v19 = vld [vmem:[%s21602_s10 + $0x28] sm:$0xff] }
 0xac6   :  { %v13955_v28 = vld [vmem:[%s21602_s10 + $0x8] sm:$0xff] }
 0xac7   :  { %6788 = vmatpush.bf16.msra.mxu3 %v12103_v57  ;;  %6801 = vmatpush.bf16.msrb.mxu0 %v12107_v18  ;;  %v13984_v57 = vld [vmem:[%s21594_s3 + $0xac] sm:$0xf0]  ;;  %v12079_v18 = vor.u32 %v13896_v53, %v12078_v36  ;;  %v12246_v53 = vld [vmem:[%s21594_s3 + $0x30] sm:$0xf0] }
 0xac8   :  { %v12309_v17 = vor.u32 %v13984_v57, %v12308_v10  ;;  %v13968_v36 = vld [vmem:[%s21594_s3 + $0x2c] sm:$0xf0]  ;;  %v12252_v57 = vld [vmem:[%s21594_s3 + $0x28] sm:$0xf] }
 0xac9   :  { %6763 = vmatpush.bf16.msra.mxu1 %v12079_v18  ;;  %v13969_v18 = vld [vmem:[%s21594_s3 + $0x34] sm:$0xf0] }
 0xaca   :  { %7160 = vmatpush.bf16.msrb.mxu2 %v12309_v17  ;;  %v12253_v60 = vor.u32 %v13969_v18, %v12252_v57  ;;  %v12350_v57 = vld [vmem:[%s21594_s3 + $0xf8] sm:$0xf0] }
 0xacb   :  { %6789 = vmatpush.bf16.msra.mxu3 %v12087_v58  ;;  %6802 = vmatpush.bf16.msrb.mxu0 %v12091_v4  ;;  %v12313_v58 = vor.u32 %v13982_v62, %v12310_v40  ;;  %v13985_v4 = vld [vmem:[%s21594_s3 + $0xb4] sm:$0xf0]  ;;  %v12245_v62 = vor.u32 %v13968_v36, %v12244_v15 }
 0xacc   :  { %v12317_v37 = vor.u32 %v13985_v4, %v12316_v13  ;;  %v12228_v13 = vld [vmem:[%s21594_s3] sm:$0xf]  ;;  %v13962_v4 = vld [vmem:[%s21594_s3 + $0x4] sm:$0xf] }
 0xacd   :  { %6764 = vmatpush.bf16.msra.mxu1 %v12063_v6 }
 0xace   :  { %7161 = vmatpush.bf16.msrb.mxu2 %v12293_v46 }
 0xacf   :  { %6790 = vmatpush.bf16.msra.mxu3 %v12071_v48  ;;  %6803 = vmatpush.bf16.msrb.mxu0 %v12075_v7  ;;  %v12294_v48 = vld [vmem:[%s21594_s3 + $0x90] sm:$0xf0]  ;;  %v12300_v7 = vld [vmem:[%s21594_s3 + $0x88] sm:$0xf] }
 0xad0   :  { %v12297_v24 = vor.u32 %v13978_v55, %v12294_v48  ;;  %v12301_v35 = vor.u32 %v13981_v63, %v12300_v7  ;;  %v13965_v55 = vld [vmem:[%s21594_s3 + $0x14] sm:$0xf0] }
 0xad1   :  { %6941 = vmatpush.bf16.msrb.mxu1 %v13961_v3  ;;  %v12237_v46 = vor.u32 %v13965_v55, %v12236_v22  ;;  %v14064_v3 = vld [vmem:[%s21598_s8 + $0xac] sm:$0xf0] }
 0xad2   :  { %7162 = vmatpush.bf16.msrb.mxu2 %v12277_v33 }
 0xad3   :  { %7171 = vmatpush.bf16.msrb.mxu3 %v12345_v59  ;;  %7184 = vmatpush.bf16.msra.mxu0 %v12349_v25  ;;  %v12284_v59 = vld [vmem:[%s21594_s3 + $0x68] sm:$0xf]  ;;  %v12281_v25 = vor.u32 %v13974_v9, %v12278_v5 }
 0xad4   :  { %v12285_v1 = vor.u32 %v13977_v50, %v12284_v59 }
 0xad6   :  { %7163 = vmatpush.bf16.msrb.mxu2 %v12261_v16  ;;  %v12536_v16 = vld [vmem:[%s21598_s8 + $0xe0] sm:$0xf] }
 0xad7   :  { %7172 = vmatpush.bf16.msrb.mxu3 %v12329_v39  ;;  %7185 = vmatpush.bf16.msra.mxu0 %v12333_v44  ;;  %v12265_v39 = vor.u32 %v13970_v61, %v12262_v43  ;;  %v13966_v44 = vld [vmem:[%s21594_s3 + $0x24] sm:$0xf]  ;;  %v13957_v43 = vld [vmem:[%s21602_s10 + $0x18] sm:$0xff] }
 0xad8   :  { %v12249_v40 = vor.u32 %v13966_v44, %v12246_v53  ;;  %v13958_v61 = vld [vmem:[%s21602_s10 + $0x20] sm:$0xff] }
 0xad9   :  { %v13954_v53 = vld [vmem:[%s21602_s10] sm:$0xff] }
 0xada   :  { %7164 = vmatpush.bf16.msrb.mxu2 %v12245_v62 }
 0xadb   :  { %7173 = vmatpush.bf16.msrb.mxu3 %v12313_v58  ;;  %7186 = vmatpush.bf16.msra.mxu0 %v12317_v37  ;;  %v13964_v58 = vld [vmem:[%s21594_s3 + $0xc] sm:$0xf0]  ;;  %v12230_v37 = vld [vmem:[%s21594_s3 + $0x10] sm:$0xf0] }
 0xadc   :  { %v12229_v48 = vor.u32 %v13964_v58, %v12228_v13  ;;  %v12233_v7 = vor.u32 %v13962_v4, %v12230_v37  ;;  %v13987_v58 = vld [vmem:[%s21594_s3 + $0xcc] sm:$0xf]  ;;  %v12334_v4 = vld [vmem:[%s21594_s3 + $0xd8] sm:$0xf0]  ;;  %v12504_v37 = vld [vmem:[%s21598_s8 + $0xa0] sm:$0xf] }
 0xade   :  { %7165 = vmatpush.bf16.msrb.mxu2 %v12229_v48 }
 0xadf   :  { %7174 = vmatpush.bf16.msrb.mxu3 %v12297_v24  ;;  %7187 = vmatpush.bf16.msra.mxu0 %v12301_v35 }
 0xae3   :  { %7175 = vmatpush.bf16.msrb.mxu3 %v12281_v25  ;;  %7188 = vmatpush.bf16.msra.mxu0 %v12285_v1  ;;  %v13960_v1 = vld [vmem:[%s21602_s10 + $0x30] sm:$0xff] }
 0xae4   :  { %6942 = vmatpush.bf16.msrb.mxu1 %v13960_v1  ;;  %v12302_v1 = vld [vmem:[%s21594_s3 + $0x98] sm:$0xf0] }
 0xae7   :  { %7176 = vmatpush.bf16.msrb.mxu3 %v12265_v39  ;;  %7189 = vmatpush.bf16.msra.mxu0 %v12269_v27  ;;  %v14072_v39 = vld [vmem:[%s21598_s8 + $0xec] sm:$0xf0] }
 0xae8   :  { %6943 = vmatpush.bf16.msrb.mxu1 %v13959_v19  ;;  %v12537_v15 = vor.u32 %v14072_v39, %v12536_v16 }
 0xaeb   :  { %7177 = vmatpush.bf16.msrb.mxu3 %v12249_v40  ;;  %7190 = vmatpush.bf16.msra.mxu0 %v12253_v60  ;;  %v12337_v60 = vor.u32 %v13987_v58, %v12334_v4 }
 0xaec   :  { %6944 = vmatpush.bf16.msrb.mxu1 %v13958_v61 }
 0xaef   :  { %7178 = vmatpush.bf16.msrb.mxu3 %v12233_v7  ;;  %7191 = vmatpush.bf16.msra.mxu0 %v12237_v46 }
 0xaf0   :  { %6945 = vmatpush.bf16.msrb.mxu1 %v13957_v43 }
 0xaf4   :  { %6946 = vmatpush.bf16.msrb.mxu1 %v13956_v23  ;;  %v12472_v23 = vld [vmem:[%s21598_s8 + $0x60] sm:$0xf] }
 0xaf8   :  { %6947 = vmatpush.bf16.msrb.mxu1 %v13955_v28  ;;  %v14056_v28 = vld [vmem:[%s21598_s8 + $0x6c] sm:$0xf0] }
 0xaf9   :  { %v12473_v39 = vor.u32 %v14056_v28, %v12472_v23 }
 0xafc   :  { %6948 = vmatpush.bf16.msrb.mxu1 %v13954_v53 }
 0xb2f   :  { %v6310_v10 = vpop.f32.mrf.mxu0 }
 0xb30   :  { %v6311_v17 = vadd.f32 %v6310_v10, %v15763_v45  ;;  %v13991_v10 = vld [vmem:[%s21594_s3 + $0xec] sm:$0xf] }
 0xb31   :  { %v12353_v18 = vor.u32 %v13991_v10, %v12350_v57  ;;  %v12456_v57 = vld [vmem:[%s21598_s8 + $0x40] sm:$0xf] }
 0xb32   :  { %v6314_v26 = vmul.f32 1.442695, %v6311_v17  ;;  %12224 = vst [vmem:[%s21601_s12 + $0x58] sm:$0xff] %v6311_v17  ;;  %v14068_v17 = vld [vmem:[%s21598_s8 + $0xcc] sm:$0xf0] }
 0xb34   :  { %14390 = vpow2.f32 %v6314_v26 }
 0xb35   :  { %v6297_v6 = vpop.f32.mrf.mxu3 }
 0xb36   :  { %v6298_v63 = vadd.f32 %v6297_v6, %v15761_v42  ;;  %v12505_v6 = vor.u32 %v14064_v3, %v12504_v37 }
 0xb37   :  { %v6312_v24 = vpop.f32.mrf.mxu0 }
 0xb38   :  { %12223 = vst [vmem:[%s21601_s12 + $0x50] sm:$0xff] %v6298_v63  ;;  %v13983_v24 = vld [vmem:[%s21594_s3 + $0xac] sm:$0xf] }
 0xb3a   :  { %v14391_v35 = vpop.eup %14390 }
 0xb3b   :  { %v6318_v38 = vmul.f32 %v14391_v35, %v11931_v56  ;;  %v12318_v56 = vld [vmem:[%s21594_s3 + $0xb8] sm:$0xf0] }
 0xb3d   :  { %v6319_v9 = vadd.f32 %v6318_v38, %v6298_v63  ;;  %v6299_v5 = vpop.f32.mrf.mxu3  ;;  %v12488_v38 = vld [vmem:[%s21598_s8 + $0x80] sm:$0xf] }
 0xb3f   :  { %v6320_v59 = vpack.c.bf16 %v6319_v9, %v6319_v9  ;;  %v20013_v50 = vpop.f32.mrf.mxu0  ;;  %v14060_v9 = vld [vmem:[%s21598_s8 + $0x8c] sm:$0xf0] }
 0xb41   :  { %6765 = vmatmul.bf16.vlgmr.msra.gmra.mxu1 %v6320_v59  ;;  %6778 = vmatmul.bf16.vlgmr.msra.gmra.mxu2 %v6320_v59 }
 0xb42   :  { %6791 = vmatmul.bf16.vlgmr.msra.gmra.mxu3 %v6320_v59  ;;  %6804 = vmatmul.bf16.vlgmr.msrb.gmra.mxu0 %v6320_v59  ;;  %v12489_v59 = vor.u32 %v14060_v9, %v12488_v38 }
 0xb43   :  { %7631 = vmatpush.bf16.msrb.mxu0 %v12537_v15  ;;  %7197 = vmatpush.bf16.msra.mxu1 %v12353_v18  ;;  %v14052_v18 = vld [vmem:[%s21598_s8 + $0x4c] sm:$0xf0] }
 0xb45   :  { %v6580_v33 = vpop.f32.mrf.mxu3 }
 0xb47   :  { %v6595_v25 = vpop.f32.mrf.mxu0  ;;  %7198 = vmatpush.bf16.msra.mxu1 %v12337_v60 }
 0xb4d   :  { %v6582_v54 = vpop.f32.mrf.mxu3 }
 0xb4e   :  { %v13979_v54 = vld [vmem:[%s21594_s3 + $0x8c] sm:$0xf] }
 0xb4f   :  { %v12305_v43 = vor.u32 %v13979_v54, %v12302_v1 }
 0xb51   :  { %7166 = vmatmul.bf16.vlgmr.msrb.gmra.mxu2 %v19720_v34 }
 0xb52   :  { %7179 = vmatmul.bf16.vlgmr.msrb.gmra.mxu3 %v19720_v34  ;;  %7192 = vmatmul.bf16.vlgmr.msra.gmra.mxu0 %v19720_v34 }
 0xbbe   :  { %v6766_v27 = vpop.f32.mrf.mxu1 }
 0xbbf   :  { %v6767_v36 = vadd.f32 %v6766_v27, %v19463_v41  ;;  %v20043_v44 = vpop.f32.mrf.mxu0  ;;  %v12520_v41 = vld [vmem:[%s21598_s8 + $0xc0] sm:$0xf]  ;;  %v13975_v27 = vld [vmem:[%s21594_s3 + $0x6c] sm:$0xf] }
 0xbc0   :  { %v12521_v40 = vor.u32 %v14068_v17, %v12520_v41  ;;  %v12457_v17 = vor.u32 %v14052_v18, %v12456_v57 }
 0xbc1   :  { %v6809_v62 = vadd.f32 %v6767_v36, %v15855_v32  ;;  %v12286_v36 = vld [vmem:[%s21594_s3 + $0x78] sm:$0xf0] }
 0xbc2   :  { %7632 = vmatpush.bf16.msrb.mxu0 %v12521_v40  ;;  %v12289_v10 = vor.u32 %v13975_v27, %v12286_v36  ;;  %v12440_v40 = vld [vmem:[%s21598_s8 + $0x20] sm:$0xf] }
 0xbc3   :  { %v12188_v13 = vmul.f32 -1.442695, %v6809_v62  ;;  %v13971_v62 = vld [vmem:[%s21594_s3 + $0x4c] sm:$0xf] }
 0xbc4   :  { %v6779_v26 = vpop.f32.mrf.mxu2 }
 0xbc5   :  { %14392 = vpow2.f32 %v12188_v13  ;;  %v6780_v22 = vadd.f32 %v6779_v26, %v19670_v31  ;;  %v6792_v55 = vpop.f32.mrf.mxu3  ;;  %v12321_v31 = vor.u32 %v13983_v24, %v12318_v56  ;;  %v14048_v26 = vld [vmem:[%s21598_s8 + $0x2c] sm:$0xf0]  ;;  %v6806_v24 = vadd.f32 %v20043_v44, %v20013_v50 }
 0xbc6   :  { %v6793_v48 = vadd.f32 %v6792_v55, %v6580_v33  ;;  %v6768_v7 = vpop.f32.mrf.mxu1  ;;  %7633 = vmatpush.bf16.msrb.mxu0 %v12505_v6  ;;  %v12441_v37 = vor.u32 %v14048_v26, %v12440_v40  ;;  %v13967_v55 = vld [vmem:[%s21594_s3 + $0x2c] sm:$0xf]  ;;  %v12254_v6 = vld [vmem:[%s21594_s3 + $0x38] sm:$0xf0] }
 0xbc7   :  { %v6810_v63 = vadd.f32 %v6780_v22, %v15858_v47  ;;  %v6807_v46 = vpop.f32.mrf.mxu0  ;;  %7199 = vmatpush.bf16.msra.mxu1 %v12321_v31  ;;  %v12257_v9 = vor.u32 %v13967_v55, %v12254_v6 }
 0xbc8   :  { %v6811_v35 = vadd.f32 %v6793_v48, %v15831_v30  ;;  %v14044_v46 = vld [vmem:[%s21598_s8 + $0xc] sm:$0xf0] }
 0xbc9   :  { %v12189_v5 = vmul.f32 -1.442695, %v6810_v63  ;;  %v12424_v63 = vld [vmem:[%s21598_s8] sm:$0xf] }
 0xbca   :  { %v12190_v33 = vmul.f32 -1.442695, %v6811_v35  ;;  %7634 = vmatpush.bf16.msrb.mxu0 %v12489_v59  ;;  %v12238_v59 = vld [vmem:[%s21594_s3 + $0x18] sm:$0xf0]  ;;  %v12425_v50 = vor.u32 %v14044_v46, %v12424_v63 }
 0xbcb   :  { %v14393_v25 = vpop.eup %14392  ;;  %14394 = vpow2.f32 %v12189_v5  ;;  %7200 = vmatpush.bf16.msra.mxu1 %v12305_v43  ;;  %v13963_v5 = vld [vmem:[%s21594_s3 + $0xc] sm:$0xf] }
 0xbcc   :  { %v20094_v19 = vadd.f32 1.0, %v14393_v25  ;;  %14396 = vpow2.f32 %v12190_v33  ;;  %v6781_v61 = vpop.f32.mrf.mxu2  ;;  %v12241_v25 = vor.u32 %v13963_v5, %v12238_v59  ;;  %v14009_v5 = vld [vmem:[%s21597_s5 + $0x74] sm:$0xf0]  ;;  %v14008_v59 = vld [vmem:[%s21597_s5 + $0x74] sm:$0xf] }
 0xbcd   :  { %v6794_v16 = vpop.f32.mrf.mxu3 }
 0xbce   :  { %14398 = vrcp.f32 %v20094_v19  ;;  %7635 = vmatpush.bf16.msrb.mxu0 %v12473_v39  ;;  %v6836_v61 = vand.u32 2147483648, %v20094_v19  ;;  %vm6830_vm5 = vweird.f32 %v20094_v19  ;;  %v6834_v28 = vand.u32 2147483647, %v20094_v19 }
 0xbcf   :  { %v7193_v15 = vpop.f32.mrf.mxu0  ;;  %7201 = vmatpush.bf16.msra.mxu1 %v12289_v10 }
 0xbd0   :  { %v20110_v53 = vadd.f32 %v7193_v15, %v15063_v0  ;;  %v12270_v0 = vld [vmem:[%s21594_s3 + $0x58] sm:$0xf0]  ;;  %v6837_v57 = vor.u32 1.1754944e-38, %v6836_v61  ;;  %vm6835_vm8 = vcmp.eq.f32.partialorder %v6834_v28, 8.507059e+37  ;;  %v12490_v61 = vld [vmem:[%s21598_s8 + $0x90] sm:$0xf0] }
 0xbd1   :  { %v14395_v41 = vpop.eup %14394  ;;  %v12273_v4 = vor.u32 %v13971_v62, %v12270_v0  ;;  %v12474_v28 = vld [vmem:[%s21598_s8 + $0x70] sm:$0xf0] }
 0xbd2   :  { %v14397_v13 = vpop.eup %14396  ;;  %v20127_v58 = vadd.f32 1.0, %v14395_v41  ;;  %7636 = vmatpush.bf16.msrb.mxu0 %v12457_v17 }
 0xbd3   :  { %v20132_v60 = vadd.f32 1.0, %v14397_v13  ;;  %7202 = vmatpush.bf16.msra.mxu1 %v12273_v4 }
 0xbd4   :  { %v14399_v3 = vpop.eup %14398  ;;  %14400 = vrcp.f32 %v20127_v58  ;;  %v7167_v22 = vpop.f32.mrf.mxu2  ;;  %v6851_v15 = vand.u32 2147483648, %v20127_v58  ;;  %v6849_v10 = vand.u32 2147483647, %v20127_v58  ;;  %vm6845_vm9 = vweird.f32 %v20127_v58 }
 0xbd5   :  { %v6826_v48 = vmul.f32 %v14399_v3, %v20094_v19  ;;  %14402 = vrcp.f32 %v20132_v60  ;;  %v7180_v7 = vpop.f32.mrf.mxu3  ;;  %v20152_v35 = vadd.f32 %v7167_v22, %v15033_v49  ;;  %v6812_v49 = vadd.f32 %v6806_v24, %v15934_v8 }
 0xbd6   :  { %v20155_v31 = vadd.f32 %v7180_v7, %v15036_v51  ;;  %7637 = vmatpush.bf16.msrb.mxu0 %v12441_v37  ;;  %vm6831_vm4 = vweird.f32 %v14399_v3  ;;  %v6852_v19 = vor.u32 1.1754944e-38, %v6851_v15  ;;  %vm6850_vm11 = vcmp.eq.f32.partialorder %v6849_v10, 8.507059e+37  ;;  %v12458_v15 = vld [vmem:[%s21598_s8 + $0x50] sm:$0xf0] }
 0xbd7   :  { %v6827_v56 = vsub.f32 1.0, %v6826_v48  ;;  %v7195_v38 = vpop.f32.mrf.mxu0  ;;  %7203 = vmatpush.bf16.msra.mxu1 %v12257_v9  ;;  %vm6832_vm6 = vmor %vm6830_vm5, %vm6831_vm4  ;;  %14404 = vtanh.f32 %v6812_v49  ;;  %v6866_v22 = vand.u32 2147483648, %v20132_v60  ;;  %vm6860_vm13 = vweird.f32 %v20132_v60  ;;  %v12538_v48 = vld [vmem:[%s21598_s8 + $0xf0] sm:$0xf0]  ;;  %v12415_v9 = vld [vmem:[%s21597_s5 + $0x70] sm:$0xf] }
 0xbd8   :  { %v12522_v38 = vld [vmem:[%s21598_s8 + $0xd0] sm:$0xf0]  ;;  %v14062_v49 = vld [vmem:[%s21598_s8 + $0xa4] sm:$0xf] }
 0xbd9   :  { %v6828_v44 = vmul.f32 %v14399_v3, %v6827_v56  ;;  %v6867_v6 = vor.u32 1.1754944e-38, %v6866_v22  ;;  %v12442_v10 = vld [vmem:[%s21598_s8 + $0x30] sm:$0xf0]  ;;  %v12401_v22 = vld [vmem:[%s21597_s5 + $0x58] sm:$0xf0] }
 0xbda   :  { %v14401_v33 = vpop.eup %14400  ;;  %7638 = vmatpush.bf16.msrb.mxu0 %v12425_v50 }
 0xbdb   :  { %v14403_v51 = vpop.eup %14402  ;;  %v6829_v54 = vadd.f32 %v14399_v3, %v6828_v44  ;;  %v6841_v1 = vmul.f32 %v14401_v33, %v20127_v58  ;;  %7204 = vmatpush.bf16.msra.mxu1 %v12241_v25  ;;  %vm6846_vm7 = vweird.f32 %v14401_v33  ;;  %v6864_v58 = vand.u32 2147483647, %v20132_v60  ;;  %v12506_v25 = vld [vmem:[%s21598_s8 + $0xb0] sm:$0xf0] }
 0xbdc   :  { %v6856_v43 = vmul.f32 %v14403_v51, %v20132_v60  ;;  %v7169_v23 = vpop.f32.mrf.mxu2  ;;  %vm6847_vm10 = vmor %vm6845_vm9, %vm6846_vm7  ;;  %vm6861_vm12 = vweird.f32 %v14403_v51  ;;  %v14066_v60 = vld [vmem:[%s21598_s8 + $0xc4] sm:$0xf]  ;;  %v12416_v44 = vor.u32 %v14009_v5, %v12415_v9  ;;  %v12354_v9 = vmul.f32 -1.442695, %v20152_v35  ;;  %v14000_v5 = vld [vmem:[%s21597_s5 + $0x34] sm:$0xf] }
 0xbdd   :  { %v6842_v16 = vsub.f32 1.0, %v6841_v1  ;;  %v7182_v39 = vpop.f32.mrf.mxu3  ;;  %v6833_v27 = vsel %vm6832_vm6, %v14399_v3, %v6829_v54  ;;  %v14405_v0 = vpop.eup %14404  ;;  %vm6862_vm14 = vmor %vm6860_vm13, %vm6861_vm12  ;;  %vm6865_vm15 = vcmp.eq.f32.partialorder %v6864_v58, 8.507059e+37  ;;  %v12525_v50 = vor.u32 %v14066_v60, %v12522_v38  ;;  %v14058_v1 = vld [vmem:[%s21598_s8 + $0x84] sm:$0xf]  ;;  %v12383_v60 = vld [vmem:[%s21597_s5 + $0x30] sm:$0xf] }
 0xbde   :  { %v6857_v18 = vsub.f32 1.0, %v6856_v43  ;;  %v6838_v17 = vsel %vm6835_vm8, %v6837_v57, %v6833_v27  ;;  %7374 = vmatpush.bf16.msra.mxu2 %v12416_v44  ;;  %v12509_v54 = vor.u32 %v14062_v49, %v12506_v25  ;;  %v12493_v43 = vor.u32 %v14058_v1, %v12490_v61  ;;  %v14054_v23 = vld [vmem:[%s21598_s8 + $0x64] sm:$0xf]  ;;  %v14001_v38 = vld [vmem:[%s21597_s5 + $0x34] sm:$0xf0] }
 0xbdf   :  { %v6843_v36 = vmul.f32 %v14401_v33, %v6842_v16  ;;  %v6872_v4 = vmul.f32 %v14405_v0, %v6838_v17  ;;  %v12477_v16 = vor.u32 %v14054_v23, %v12474_v28  ;;  %v14050_v39 = vld [vmem:[%s21598_s8 + $0x44] sm:$0xf]  ;;  %v12407_v17 = vld [vmem:[%s21597_s5 + $0x60] sm:$0xf]  ;;  %v12356_v35 = vmul.f32 -1.442695, %v20110_v53 }
 0xbe0   :  { %v6858_v13 = vmul.f32 %v14403_v51, %v6857_v18  ;;  %v12461_v27 = vor.u32 %v14050_v39, %v12458_v15  ;;  %v14042_v18 = vld [vmem:[%s21598_s8 + $0x4] sm:$0xf]  ;;  %v12375_v25 = vld [vmem:[%s21597_s5 + $0x20] sm:$0xf]  ;;  %v12377_v53 = vld [vmem:[%s21597_s5 + $0x28] sm:$0xf0] }
 0xbe1   :  { %v6844_v41 = vadd.f32 %v14401_v33, %v6843_v36  ;;  %v14046_v36 = vld [vmem:[%s21598_s8 + $0x24] sm:$0xf]  ;;  %v12367_v23 = vld [vmem:[%s21597_s5 + $0x10] sm:$0xf]  ;;  %v13997_v28 = vld [vmem:[%s21597_s5 + $0x14] sm:$0xf0] }
 0xbe2   :  { %v6859_v3 = vadd.f32 %v14403_v51, %v6858_v13  ;;  %v12445_v57 = vor.u32 %v14046_v36, %v12442_v10  ;;  %v12399_v13 = vld [vmem:[%s21597_s5 + $0x50] sm:$0xf]  ;;  %v12368_v39 = vor.u32 %v13997_v28, %v12367_v23  ;;  %v12369_v15 = vld [vmem:[%s21597_s5 + $0x18] sm:$0xf0]  ;;  %v12359_v36 = vld [vmem:[%s21597_s5] sm:$0xf] }
 0xbe3   :  { %v6848_v62 = vsel %vm6847_vm10, %v14401_v33, %v6844_v41  ;;  %v12417_v33 = vld [vmem:[%s21597_s5 + $0x78] sm:$0xf0]  ;;  %v13995_v10 = vld [vmem:[%s21597_s5 + $0x4] sm:$0xf0] }
 0xbe4   :  { %v6853_v40 = vsel %vm6850_vm11, %v6852_v19, %v6848_v62  ;;  %v6863_v55 = vsel %vm6862_vm14, %v14403_v51, %v6859_v3  ;;  %v12420_v51 = vor.u32 %v14008_v59, %v12417_v33  ;;  %v14007_v19 = vld [vmem:[%s21597_s5 + $0x64] sm:$0xf0]  ;;  %v14006_v62 = vld [vmem:[%s21597_s5 + $0x64] sm:$0xf]  ;;  %v14004_v3 = vld [vmem:[%s21597_s5 + $0x54] sm:$0xf]  ;;  %v12384_v59 = vor.u32 %v14001_v38, %v12383_v60 }
 0xbe5   :  { %v6871_v26 = vmul.f32 %v6853_v40, %v19324_v52  ;;  %v14070_v52 = vld [vmem:[%s21598_s8 + $0xe4] sm:$0xf]  ;;  %v6868_v63 = vsel %vm6865_vm15, %v6867_v6, %v6863_v55  ;;  %v12408_v0 = vor.u32 %v14007_v19, %v12407_v17  ;;  %v12409_v40 = vld [vmem:[%s21597_s5 + $0x68] sm:$0xf0]  ;;  %v12404_v55 = vor.u32 %v14004_v3, %v12401_v22  ;;  %v12391_v6 = vld [vmem:[%s21597_s5 + $0x40] sm:$0xf] }
 0xbe6   :  { %v12541_v24 = vor.u32 %v14070_v52, %v12538_v48  ;;  %7387 = vmatpush.bf16.msra.mxu3 %v12420_v51  ;;  %v14003_v52 = vld [vmem:[%s21597_s5 + $0x44] sm:$0xf0]  ;;  %v14002_v48 = vld [vmem:[%s21597_s5 + $0x44] sm:$0xf]  ;;  %v14073_v17 = vld [vmem:[%s21598_s8 + $0xf4] sm:$0xf0] }
 0xbe7   :  { %v20173_v37 = vadd.f32 %v6872_v4, %v6871_v26  ;;  %v14005_v4 = vld [vmem:[%s21597_s5 + $0x54] sm:$0xf0]  ;;  %v12412_v26 = vor.u32 %v14006_v62, %v12409_v40  ;;  %7375 = vmatpush.bf16.msra.mxu2 %v12408_v0  ;;  %v13999_v51 = vld [vmem:[%s21597_s5 + $0x24] sm:$0xf0]  ;;  %v14480_v22 = vld [vmem:[%s21605_s11] ss:$0 sm:$0xff] }
 0xbe8   :  { %v12400_v58 = vor.u32 %v14005_v4, %v12399_v13  ;;  %v12376_v61 = vor.u32 %v13999_v51, %v12375_v25  ;;  %v14071_v4 = vld [vmem:[%s21598_s8 + $0xec] sm:$0xf]  ;;  %v12498_v23 = vld [vmem:[%s21598_s8 + $0x98] sm:$0xf0] }
 0xbe9   :  { %14406 = vtanh.f32 %v20173_v37 }
 0xbea   :  { %7388 = vmatpush.bf16.msra.mxu3 %v12412_v26  ;;  %v12546_v26 = vld [vmem:[%s21598_s8 + $0xf8] sm:$0xf0] }
 0xbeb   :  { %7376 = vmatpush.bf16.msra.mxu2 %v12400_v58 }
 0xbee   :  { %7389 = vmatpush.bf16.msra.mxu3 %v12404_v55  ;;  %v12549_v55 = vor.u32 %v14071_v4, %v12546_v26  ;;  %v12464_v4 = vld [vmem:[%s21598_s8 + $0x48] sm:$0xf]  ;;  %v14053_v26 = vld [vmem:[%s21598_s8 + $0x54] sm:$0xf0] }
 0xbef   :  { %v14407_v7 = vpop.eup %14406 }
 0xbf0   :  { %v6875_v46 = vmul.f32 %v14407_v7, %v6868_v63  ;;  %v12393_v7 = vld [vmem:[%s21597_s5 + $0x48] sm:$0xf0]  ;;  %v12355_v63 = vmul.f32 -1.442695, %v20155_v31  ;;  %v12385_v31 = vld [vmem:[%s21597_s5 + $0x38] sm:$0xf0] }
 0xbf2   :  { %v20185_v56 = vpack.c.bf16 %v6875_v46, %v6875_v46  ;;  %v12392_v46 = vor.u32 %v14003_v52, %v12391_v6  ;;  %14408 = vpow2.f32 %v12355_v63  ;;  %v12528_v6 = vld [vmem:[%s21598_s8 + $0xc8] sm:$0xf]  ;;  %v14069_v52 = vld [vmem:[%s21598_s8 + $0xd4] sm:$0xf0] }
 0xbf3   :  { %14410 = vpow2.f32 %v12354_v9  ;;  %v12529_v60 = vor.u32 %v14069_v52, %v12528_v6  ;;  %v12512_v9 = vld [vmem:[%s21598_s8 + $0xa8] sm:$0xf]  ;;  %v14040_v6 = vld [vmem:[%s21599_s7 + $0xec] sm:$0xf0] }
 0xbf4   :  { %6949 = vmatmul.bf16.vlgmr.msrb.gmra.mxu1 %v20185_v56  ;;  %7639 = vmatmul.bf16.vlgmr.msrb.gmra.mxu0 %v20185_v56  ;;  %14412 = vpow2.f32 %v12356_v35 }
 0xbf5   :  { %7644 = vmatpush.bf16.msrb.mxu1 %v12541_v24  ;;  %v12396_v24 = vor.u32 %v14002_v48, %v12393_v7  ;;  %7377 = vmatpush.bf16.msra.mxu2 %v12392_v46  ;;  %v14067_v48 = vld [vmem:[%s21598_s8 + $0xcc] sm:$0xf]  ;;  %v12530_v7 = vld [vmem:[%s21598_s8 + $0xd8] sm:$0xf0] }
 0xbf6   :  { %v12533_v38 = vor.u32 %v14067_v48, %v12530_v7  ;;  %v12465_v7 = vor.u32 %v14053_v26, %v12464_v4 }
 0xbf7   :  { %7390 = vmatpush.bf16.msra.mxu3 %v12396_v24 }
 0xbf8   :  { %v14409_v44 = vpop.eup %14408 }
 0xbf9   :  { %7645 = vmatpush.bf16.msrb.mxu1 %v12525_v50  ;;  %v12388_v50 = vor.u32 %v14000_v5, %v12385_v31  ;;  %7378 = vmatpush.bf16.msra.mxu2 %v12384_v59  ;;  %v14411_v33 = vpop.eup %14410  ;;  %v20296_v49 = vadd.f32 1.0, %v14409_v44  ;;  %v14065_v5 = vld [vmem:[%s21598_s8 + $0xb4] sm:$0xf0]  ;;  %v14063_v59 = vld [vmem:[%s21598_s8 + $0xac] sm:$0xf] }
 0xbfa   :  { %v20307_v1 = vadd.f32 1.0, %v14411_v33  ;;  %v14413_v19 = vpop.eup %14412  ;;  %v12513_v25 = vor.u32 %v14065_v5, %v12512_v9  ;;  %v12448_v5 = vld [vmem:[%s21598_s8 + $0x28] sm:$0xf] }
 0xbfb   :  { %7391 = vmatpush.bf16.msra.mxu3 %v12388_v50  ;;  %14414 = vrcp.f32 %v20296_v49  ;;  %v20374_v46 = vadd.f32 1.0, %v14413_v19  ;;  %v12514_v50 = vld [vmem:[%s21598_s8 + $0xb8] sm:$0xf0]  ;;  %vm7246_vm1 = vweird.f32 %v20296_v49 }
 0xbfc   :  { %14416 = vrcp.f32 %v20307_v1  ;;  %v12517_v51 = vor.u32 %v14063_v59, %v12514_v50  ;;  %v7237_v52 = vand.u32 2147483648, %v20307_v1  ;;  %vm7231_vm4 = vweird.f32 %v20307_v1  ;;  %v12450_v59 = vld [vmem:[%s21598_s8 + $0x38] sm:$0xf0] }
 0xbfd   :  { %7646 = vmatpush.bf16.msrb.mxu1 %v12509_v54  ;;  %v13998_v54 = vld [vmem:[%s21597_s5 + $0x24] sm:$0xf]  ;;  %7379 = vmatpush.bf16.msra.mxu2 %v12376_v61  ;;  %14418 = vrcp.f32 %v20374_v46  ;;  %v14061_v61 = vld [vmem:[%s21598_s8 + $0x94] sm:$0xf0]  ;;  %vm7261_vm9 = vweird.f32 %v20374_v46 }
 0xbfe   :  { %v7238_v50 = vor.u32 1.1754944e-38, %v7237_v52 }
 0xc01   :  { %7647 = vmatpush.bf16.msrb.mxu1 %v12493_v43  ;;  %v12380_v43 = vor.u32 %v13998_v54, %v12377_v53  ;;  %7380 = vmatpush.bf16.msra.mxu2 %v12368_v39  ;;  %v20352_v3 = vpop.eup %14414  ;;  %v12496_v54 = vld [vmem:[%s21598_s8 + $0x88] sm:$0xf] }
 0xc02   :  { %v20369_v63 = vpop.eup %14416  ;;  %v7242_v24 = vmul.f32 %v20352_v3, %v20296_v49  ;;  %vm7247_vm0 = vweird.f32 %v20352_v3 }
 0xc03   :  { %7392 = vmatpush.bf16.msra.mxu3 %v12380_v43  ;;  %v7227_v31 = vmul.f32 %v20369_v63, %v20307_v1  ;;  %v14059_v43 = vld [vmem:[%s21598_s8 + $0x8c] sm:$0xf]  ;;  %vm7232_vm2 = vweird.f32 %v20369_v63  ;;  %vm20445_vm3 = vmor %vm7246_vm1, %vm7247_vm0 }
 0xc04   :  { %7205 = vmatmul.bf16.vlgmr.msra.gmra.mxu1 %v19720_v34  ;;  %v12426_v34 = vld [vmem:[%s21598_s8 + $0x10] sm:$0xf0]  ;;  %v7243_v44 = vsub.f32 1.0, %v7242_v24  ;;  %v12501_v39 = vor.u32 %v14059_v43, %v12498_v23  ;;  %vm20455_vm5 = vmor %vm7231_vm4, %vm7232_vm2  ;;  %v14038_v43 = vld [vmem:[%s21599_s7 + $0xe4] sm:$0xf] }
 0xc05   :  { %7648 = vmatpush.bf16.msrb.mxu1 %v12477_v16  ;;  %v12429_v41 = vor.u32 %v14042_v18, %v12426_v34  ;;  %v13996_v16 = vld [vmem:[%s21597_s5 + $0x14] sm:$0xf]  ;;  %v12360_v18 = vor.u32 %v13995_v10, %v12359_v36  ;;  %v12361_v34 = vld [vmem:[%s21597_s5 + $0x8] sm:$0xf0]  ;;  %v7228_v53 = vsub.f32 1.0, %v7227_v31  ;;  %v20412_v36 = vpop.eup %14418 }
 0xc06   :  { %v7244_v28 = vmul.f32 %v20352_v3, %v7243_v44  ;;  %v7257_v19 = vmul.f32 %v20412_v36, %v20374_v46  ;;  %v14047_v31 = vld [vmem:[%s21598_s8 + $0x2c] sm:$0xf]  ;;  %v12666_v23 = vld [vmem:[%s21599_s7 + $0xf0] sm:$0xf0]  ;;  %vm7262_vm8 = vweird.f32 %v20412_v36 }
 0xc07   :  { %7381 = vmatpush.bf16.msra.mxu2 %v12360_v18  ;;  %v7229_v10 = vmul.f32 %v20369_v63, %v7228_v53  ;;  %v12482_v18 = vld [vmem:[%s21598_s8 + $0x78] sm:$0xf0]  ;;  %v14045_v53 = vld [vmem:[%s21598_s8 + $0x14] sm:$0xf0]  ;;  %vm20514_vm10 = vmor %vm7261_vm9, %vm7262_vm8 }
 0xc08   :  { %v7258_v24 = vsub.f32 1.0, %v7257_v19  ;;  %v14030_v19 = vld [vmem:[%s21599_s7 + $0xa4] sm:$0xf] }
 0xc09   :  { %7649 = vmatpush.bf16.msrb.mxu1 %v12461_v27  ;;  %v12372_v27 = vor.u32 %v13996_v16, %v12369_v15  ;;  %v12497_v16 = vor.u32 %v14061_v61, %v12496_v54  ;;  %v12480_v15 = vld [vmem:[%s21598_s8 + $0x68] sm:$0xf]  ;;  %v12453_v61 = vor.u32 %v14047_v31, %v12450_v59  ;;  %v14022_v31 = vld [vmem:[%s21599_s7 + $0x64] sm:$0xf]  ;;  %v12602_v59 = vld [vmem:[%s21599_s7 + $0x70] sm:$0xf0] }
 0xc0b   :  { %7393 = vmatpush.bf16.msra.mxu3 %v12372_v27  ;;  %v14057_v27 = vld [vmem:[%s21598_s8 + $0x74] sm:$0xf0] }
 0xc0d   :  { %7650 = vmatpush.bf16.msrb.mxu1 %v12445_v57  ;;  %v13994_v57 = vld [vmem:[%s21597_s5 + $0x4] sm:$0xf] }
 0xc0e   :  { %v12364_v40 = vor.u32 %v13994_v57, %v12361_v34  ;;  %v14055_v57 = vld [vmem:[%s21598_s8 + $0x6c] sm:$0xf] }
 0xc10   :  { %7394 = vmatpush.bf16.msra.mxu3 %v12364_v40 }
 0xc11   :  { %7651 = vmatpush.bf16.msrb.mxu1 %v12429_v41  ;;  %v12544_v41 = vld [vmem:[%s21598_s8 + $0xe8] sm:$0xf] }
 0xc12   :  { %v12545_v13 = vor.u32 %v14073_v17, %v12544_v41  ;;  %v7245_v41 = vadd.f32 %v20352_v3, %v7244_v28  ;;  %v12481_v17 = vor.u32 %v14057_v27, %v12480_v15  ;;  %v12434_v15 = vld [vmem:[%s21598_s8 + $0x18] sm:$0xf0]  ;;  %v12669_v27 = vor.u32 %v14038_v43, %v12666_v23 }
 0xc13   :  { %v12605_v23 = vor.u32 %v14022_v31, %v12602_v59 }
 0xc14   :  { %7652 = vmatmul.bf16.vlgmr.msrb.gmra.mxu1 %v20185_v56  ;;  %7657 = vmatpush.bf16.msrb.mxu2 %v12545_v13  ;;  %v12485_v13 = vor.u32 %v14055_v57, %v12482_v18  ;;  %v7249_v48 = vsel %vm20445_vm3, %v20352_v3, %v7245_v41  ;;  %v12650_v57 = vld [vmem:[%s21599_s7 + $0xd0] sm:$0xf0] }
 0xc15   :  { %7670 = vmatpush.bf16.msrb.mxu3 %v12549_v55  ;;  %v12466_v55 = vld [vmem:[%s21598_s8 + $0x58] sm:$0xf0]  ;;  %7856 = vmatpush.bf16.msra.mxu1 %v12669_v27  ;;  %v14028_v27 = vld [vmem:[%s21599_s7 + $0x8c] sm:$0xf0] }
 0xc18   :  { %7658 = vmatpush.bf16.msrb.mxu2 %v12529_v60 }
 0xc19   :  { %7671 = vmatpush.bf16.msrb.mxu3 %v12533_v38 }
 0xc1c   :  { %7659 = vmatpush.bf16.msrb.mxu2 %v12513_v25  ;;  %v12432_v25 = vld [vmem:[%s21598_s8 + $0x8] sm:$0xf] }
 0xc1d   :  { %7672 = vmatpush.bf16.msrb.mxu3 %v12517_v51  ;;  %v7259_v51 = vmul.f32 %v20412_v36, %v7258_v24  ;;  %v12674_v24 = vld [vmem:[%s21599_s7 + $0xf8] sm:$0xf0] }
 0xc1f   :  { %v7260_v41 = vadd.f32 %v20412_v36, %v7259_v51 }
 0xc20   :  { %7660 = vmatpush.bf16.msrb.mxu2 %v12497_v16 }
 0xc21   :  { %7673 = vmatpush.bf16.msrb.mxu3 %v12501_v39  ;;  %v14043_v39 = vld [vmem:[%s21598_s8 + $0xc] sm:$0xf] }
 0xc24   :  { %7661 = vmatpush.bf16.msrb.mxu2 %v12481_v17  ;;  %v12437_v17 = vor.u32 %v14043_v39, %v12434_v15  ;;  %v12586_v39 = vld [vmem:[%s21599_s7 + $0x50] sm:$0xf0]  ;;  %v12616_v15 = vld [vmem:[%s21599_s7 + $0x80] sm:$0xf] }
 0xc25   :  { %7674 = vmatpush.bf16.msrb.mxu3 %v12485_v13  ;;  %v7267_v13 = vand.u32 2147483648, %v20374_v46 }
 0xc27   :  { %v7268_v52 = vor.u32 1.1754944e-38, %v7267_v13  ;;  %v12570_v13 = vld [vmem:[%s21599_s7 + $0x30] sm:$0xf0] }
 0xc28   :  { %7662 = vmatpush.bf16.msrb.mxu2 %v12465_v7  ;;  %v14039_v7 = vld [vmem:[%s21599_s7 + $0xec] sm:$0xf] }
 0xc71   :  { %v6950_v62 = vpop.f32.mrf.mxu1  ;;  %v20344_v0 = vpop.f32.mrf.mxu0 }
 0xc72   :  { %v6951_v58 = vadd.f32 %v14480_v22, %v6950_v62  ;;  %v7252_v62 = vand.u32 2147483648, %v20296_v49  ;;  %v7230_v22 = vadd.f32 %v20369_v63, %v7229_v10  ;;  %v14034_v10 = vld [vmem:[%s21599_s7 + $0xc4] sm:$0xf] }
 0xc74   :  { %12225 = vst [vmem:[%s21606_s13 + $0x28] sm:$0xff] %v6951_v58  ;;  %v7250_v58 = vand.u32 2147483647, %v20296_v49  ;;  %v7235_v49 = vand.u32 2147483647, %v20307_v1  ;;  %v7253_v60 = vor.u32 1.1754944e-38, %v7252_v62  ;;  %v7234_v3 = vsel %vm20455_vm5, %v20369_v63, %v7230_v22 }
 0xc75   :  { %v14049_v1 = vld [vmem:[%s21598_s8 + $0x34] sm:$0xf0]  ;;  %v12634_v62 = vld [vmem:[%s21599_s7 + $0xb0] sm:$0xf0] }
 0xc76   :  { %vm7251_vm6 = vcmp.eq.f32.partialorder %v7250_v58, 8.507059e+37  ;;  %vm7236_vm7 = vcmp.eq.f32.partialorder %v7235_v49, 8.507059e+37  ;;  %v12637_v22 = vor.u32 %v14030_v19, %v12634_v62  ;;  %v14026_v58 = vld [vmem:[%s21599_s7 + $0x84] sm:$0xf]  ;;  %v12672_v49 = vld [vmem:[%s21599_s7 + $0xe8] sm:$0xf]  ;;  %v12617_v62 = vor.u32 %v14028_v27, %v12616_v15 }
 0xc77   :  { %v7254_v44 = vsel %vm7251_vm6, %v7253_v60, %v7249_v48  ;;  %v7239_v54 = vsel %vm7236_vm7, %v7238_v50, %v7234_v3  ;;  %v12648_v60 = vld [vmem:[%s21599_s7 + $0xc0] sm:$0xf]  ;;  %v14024_v27 = vld [vmem:[%s21599_s7 + $0x6c] sm:$0xf0] }
 0xc78   :  { %v7272_v28 = vmul.f32 %v7254_v44, %v19652_v29  ;;  %v12433_v29 = vor.u32 %v14045_v53, %v12432_v25  ;;  %v12632_v25 = vld [vmem:[%s21599_s7 + $0xa0] sm:$0xf]  ;;  %v12658_v53 = vld [vmem:[%s21599_s7 + $0xd8] sm:$0xf0] }
 0xc79   :  { %v6952_v33 = vpop.f32.mrf.mxu1  ;;  %v7642_v35 = vpop.f32.mrf.mxu0  ;;  %v12600_v15 = vld [vmem:[%s21599_s7 + $0x60] sm:$0xf] }
 0xc7a   :  { %v12449_v35 = vor.u32 %v14049_v1, %v12448_v5  ;;  %v14036_v1 = vld [vmem:[%s21599_s7 + $0xcc] sm:$0xf0] }
 0xc7b   :  { %v12649_v50 = vor.u32 %v14036_v1, %v12648_v60  ;;  %v14019_v1 = vld [vmem:[%s21599_s7 + $0x4c] sm:$0xf] }
 0xc7c   :  { %7663 = vmatpush.bf16.msrb.mxu2 %v12449_v35  ;;  %v12656_v35 = vld [vmem:[%s21599_s7 + $0xc8] sm:$0xf] }
 0xc80   :  { %7664 = vmatpush.bf16.msrb.mxu2 %v12433_v29  ;;  %v12640_v29 = vld [vmem:[%s21599_s7 + $0xa8] sm:$0xf] }
 0xc81   :  { %v7206_v34 = vpop.f32.mrf.mxu1 }
 0xc82   :  { %v7213_v40 = vadd.f32 %v7206_v34, %v15068_v11  ;;  %v14051_v11 = vld [vmem:[%s21598_s8 + $0x4c] sm:$0xf]  ;;  %v12653_v34 = vor.u32 %v14034_v10, %v12650_v57 }
 0xc83   :  { %v12469_v9 = vor.u32 %v14051_v11, %v12466_v55  ;;  %v7264_v11 = vsel %vm20514_vm10, %v20412_v36, %v7260_v41  ;;  %v12664_v55 = vld [vmem:[%s21599_s7 + $0xe0] sm:$0xf]  ;;  %v14041_v36 = vld [vmem:[%s21599_s7 + $0xf4] sm:$0xf0]  ;;  %v14031_v41 = vld [vmem:[%s21599_s7 + $0xac] sm:$0xf] }
 0xc84   :  { %14420 = vtanh.f32 %v7213_v40  ;;  %v7265_v40 = vand.u32 2147483647, %v20374_v46  ;;  %7857 = vmatpush.bf16.msra.mxu1 %v12653_v34  ;;  %v12618_v46 = vld [vmem:[%s21599_s7 + $0x90] sm:$0xf0]  ;;  %v12665_v48 = vor.u32 %v14040_v6, %v12664_v55  ;;  %v12673_v44 = vor.u32 %v14041_v36, %v12672_v49  ;;  %v14033_v34 = vld [vmem:[%s21599_s7 + $0xb4] sm:$0xf0] }
 0xc85   :  { %7675 = vmatpush.bf16.msrb.mxu3 %v12469_v9  ;;  %v12621_v5 = vor.u32 %v14026_v58, %v12618_v46  ;;  %v12641_v4 = vor.u32 %v14033_v34, %v12640_v29  ;;  %v12624_v58 = vld [vmem:[%s21599_s7 + $0x88] sm:$0xf]  ;;  %v14027_v46 = vld [vmem:[%s21599_s7 + $0x8c] sm:$0xf]  ;;  %v12626_v55 = vld [vmem:[%s21599_s7 + $0x98] sm:$0xf0] }
 0xc86   :  { %vm7266_vm11 = vcmp.eq.f32.partialorder %v7265_v40, 8.507059e+37  ;;  %7843 = vmatpush.bf16.msra.mxu0 %v12665_v48  ;;  %v14014_v40 = vld [vmem:[%s21599_s7 + $0x24] sm:$0xf]  ;;  %v12629_v49 = vor.u32 %v14027_v46, %v12626_v55  ;;  %v12608_v36 = vld [vmem:[%s21599_s7 + $0x68] sm:$0xf] }
 0xc87   :  { %v7269_v9 = vsel %vm7266_vm11, %v7268_v52, %v7264_v11  ;;  %v14029_v11 = vld [vmem:[%s21599_s7 + $0x94] sm:$0xf0]  ;;  %v12573_v6 = vor.u32 %v14014_v40, %v12570_v13  ;;  %v14112_v29 = vld [vmem:[%s21594_s3 + $0xec] sm:$0xf0]  ;;  %v14110_v34 = vld [vmem:[%s21594_s3 + $0xe4] sm:$0xf] }
 0xc88   :  { %7858 = vmatpush.bf16.msra.mxu1 %v12637_v22  ;;  %v12625_v52 = vor.u32 %v14029_v11, %v12624_v58  ;;  %v14025_v48 = vld [vmem:[%s21599_s7 + $0x74] sm:$0xf0]  ;;  %v12814_v58 = vld [vmem:[%s21594_s3 + $0xc0] sm:$0xf]  ;;  %v14108_v46 = vld [vmem:[%s21594_s3 + $0xcc] sm:$0xf0] }
 0xc89   :  { %v7208_v33 = vpop.f32.mrf.mxu1  ;;  %7676 = vmatpush.bf16.msrb.mxu3 %v12453_v61  ;;  %v14035_v61 = vld [vmem:[%s21599_s7 + $0xcc] sm:$0xf]  ;;  %v12609_v60 = vor.u32 %v14025_v48, %v12608_v36  ;;  %v14113_v40 = vld [vmem:[%s21594_s3 + $0xf4] sm:$0xf0]  ;;  %v14106_v55 = vld [vmem:[%s21594_s3 + $0xc4] sm:$0xf] }
 0xc8a   :  { %v14421_v63 = vpop.eup %14420  ;;  %v12677_v33 = vor.u32 %v14039_v7, %v12674_v24  ;;  %7844 = vmatpush.bf16.msra.mxu0 %v12649_v50  ;;  %v12661_v57 = vor.u32 %v14035_v61, %v12658_v53  ;;  %v14023_v7 = vld [vmem:[%s21599_s7 + $0x6c] sm:$0xf]  ;;  %v12610_v24 = vld [vmem:[%s21599_s7 + $0x78] sm:$0xf0]  ;;  %v12576_v50 = vld [vmem:[%s21599_s7 + $0x28] sm:$0xf] }
 0xc8b   :  { %v7273_v16 = vmul.f32 %v14421_v63, %v7239_v54  ;;  %v14032_v63 = vld [vmem:[%s21599_s7 + $0xac] sm:$0xf0]  ;;  %v14037_v54 = vld [vmem:[%s21599_s7 + $0xd4] sm:$0xf0]  ;;  %v12560_v61 = vld [vmem:[%s21599_s7 + $0x8] sm:$0xf] }
 0xc8c   :  { %7859 = vmatpush.bf16.msra.mxu1 %v12621_v5  ;;  %v12657_v10 = vor.u32 %v14037_v54, %v12656_v35  ;;  %v14021_v5 = vld [vmem:[%s21599_s7 + $0x54] sm:$0xf0]  ;;  %v12554_v54 = vld [vmem:[%s21599_s7 + $0x10] sm:$0xf0]  ;;  %v12822_v36 = vld [vmem:[%s21594_s3 + $0xc8] sm:$0xf] }
 0xc8d   :  { %v20500_v18 = vadd.f32 %v7273_v16, %v7272_v28  ;;  %7677 = vmatpush.bf16.msrb.mxu3 %v12437_v17  ;;  %v14018_v28 = vld [vmem:[%s21599_s7 + $0x44] sm:$0xf]  ;;  %v12633_v16 = vor.u32 %v14032_v63, %v12632_v25  ;;  %v12642_v17 = vld [vmem:[%s21599_s7 + $0xb8] sm:$0xf0]  ;;  %v14109_v48 = vld [vmem:[%s21594_s3 + $0xd4] sm:$0xf0] }
 0xc8e   :  { %v12589_v19 = vor.u32 %v14018_v28, %v12586_v39  ;;  %v12645_v22 = vor.u32 %v14031_v41, %v12642_v17  ;;  %v14010_v63 = vld [vmem:[%s21599_s7 + $0x4] sm:$0xf]  ;;  %v12562_v28 = vld [vmem:[%s21599_s7 + $0x18] sm:$0xf0]  ;;  %v12832_v41 = vld [vmem:[%s21594_s3 + $0xf0] sm:$0xf0] }
 0xc8f   :  { %14422 = vtanh.f32 %v20500_v18  ;;  %7845 = vmatpush.bf16.msra.mxu0 %v12633_v16  ;;  %v12557_v53 = vor.u32 %v14010_v63, %v12554_v54  ;;  %v14100_v63 = vld [vmem:[%s21594_s3 + $0x8c] sm:$0xf0]  ;;  %v14098_v54 = vld [vmem:[%s21594_s3 + $0x84] sm:$0xf] }
 0xc90   :  { %7860 = vmatpush.bf16.msra.mxu1 %v12605_v23  ;;  %v14011_v23 = vld [vmem:[%s21599_s7 + $0xc] sm:$0xf] }
 0xc91   :  { %v20518_v26 = vpop.f32.mrf.mxu1  ;;  %v12565_v39 = vor.u32 %v14011_v23, %v12562_v28 }
 0xc93   :  { %7846 = vmatpush.bf16.msra.mxu0 %v12617_v62  ;;  %v12838_v62 = vld [vmem:[%s21594_s3 + $0xe8] sm:$0xf] }
 0xc94   :  { %7861 = vmatpush.bf16.msra.mxu1 %v12589_v19  ;;  %v12835_v19 = vor.u32 %v14110_v34, %v12832_v41  ;;  %v12839_v13 = vor.u32 %v14113_v40, %v12838_v62  ;;  %v14097_v34 = vld [vmem:[%s21594_s3 + $0x74] sm:$0xf0]  ;;  %v14092_v40 = vld [vmem:[%s21594_s3 + $0x4c] sm:$0xf0] }
 0xc95   :  { %v14423_v38 = vpop.eup %14422 }
 0xc96   :  { %v7276_v3 = vmul.f32 %v14423_v38, %v7269_v9  ;;  %v12613_v38 = vor.u32 %v14023_v7, %v12610_v24  ;;  %v12592_v9 = vld [vmem:[%s21599_s7 + $0x48] sm:$0xf]  ;;  %v12568_v7 = vld [vmem:[%s21599_s7 + $0x20] sm:$0xf]  ;;  %v12823_v24 = vor.u32 %v14109_v48, %v12822_v36  ;;  %v14088_v36 = vld [vmem:[%s21594_s3 + $0x2c] sm:$0xf0] }
 0xc97   :  { %v12593_v31 = vor.u32 %v14021_v5, %v12592_v9  ;;  %v14104_v9 = vld [vmem:[%s21594_s3 + $0xac] sm:$0xf0]  ;;  %v14086_v48 = vld [vmem:[%s21594_s3 + $0x24] sm:$0xf] }
 0xc98   :  { %v20568_v51 = vpack.c.bf16 %v7276_v3, %v7276_v3  ;;  %7862 = vmatpush.bf16.msra.mxu1 %v12573_v6  ;;  %v12594_v3 = vld [vmem:[%s21599_s7 + $0x58] sm:$0xf0]  ;;  %v12816_v6 = vld [vmem:[%s21594_s3 + $0xd0] sm:$0xf0] }
 0xc99   :  { %v7655_v43 = vpop.f32.mrf.mxu1  ;;  %v12597_v59 = vor.u32 %v14019_v1, %v12594_v3  ;;  %v14102_v1 = vld [vmem:[%s21594_s3 + $0xa4] sm:$0xf]  ;;  %v12800_v3 = vld [vmem:[%s21594_s3 + $0xb0] sm:$0xf0] }
 0xc9a   :  { %7382 = vmatmul.bf16.vlgmr.msra.gmra.mxu2 %v20568_v51  ;;  %7395 = vmatmul.bf16.vlgmr.msra.gmra.mxu3 %v20568_v51  ;;  %v14013_v43 = vld [vmem:[%s21599_s7 + $0x14] sm:$0xf0] }
 0xc9b   :  { %7869 = vmatpush.bf16.msra.mxu2 %v12673_v44  ;;  %7882 = vmatpush.bf16.msra.mxu3 %v12677_v33  ;;  %v14017_v44 = vld [vmem:[%s21599_s7 + $0x34] sm:$0xf0]  ;;  %v14015_v33 = vld [vmem:[%s21599_s7 + $0x2c] sm:$0xf]  ;;  %v12561_v16 = vor.u32 %v14013_v43, %v12560_v61  ;;  %v12784_v61 = vld [vmem:[%s21594_s3 + $0x90] sm:$0xf0] }
 0xc9c   :  { %v12577_v35 = vor.u32 %v14017_v44, %v12576_v50  ;;  %7863 = vmatpush.bf16.msra.mxu1 %v12557_v53  ;;  %v12803_v50 = vor.u32 %v14102_v1, %v12800_v3  ;;  %v14105_v44 = vld [vmem:[%s21594_s3 + $0xb4] sm:$0xf0]  ;;  %v12790_v53 = vld [vmem:[%s21594_s3 + $0x88] sm:$0xf] }
 0xc9d   :  { %v14101_v43 = vld [vmem:[%s21594_s3 + $0x94] sm:$0xf0] }
 0xc9f   :  { %7870 = vmatpush.bf16.msra.mxu2 %v12657_v10  ;;  %7883 = vmatpush.bf16.msra.mxu3 %v12661_v57  ;;  %v12830_v10 = vld [vmem:[%s21594_s3 + $0xe0] sm:$0xf]  ;;  %v12601_v57 = vor.u32 %v14024_v27, %v12600_v15  ;;  %v12791_v15 = vor.u32 %v14101_v43, %v12790_v53  ;;  %v14096_v27 = vld [vmem:[%s21594_s3 + $0x6c] sm:$0xf0] }
 0xca0   :  { %v12831_v17 = vor.u32 %v14112_v29, %v12830_v10  ;;  %v14094_v10 = vld [vmem:[%s21594_s3 + $0x64] sm:$0xf]  ;;  %v12774_v29 = vld [vmem:[%s21594_s3 + $0x68] sm:$0xf] }
 0xca1   :  { %7847 = vmatpush.bf16.msra.mxu0 %v12601_v57  ;;  %v12768_v57 = vld [vmem:[%s21594_s3 + $0x70] sm:$0xf0]  ;;  %v12775_v62 = vor.u32 %v14097_v34, %v12774_v29 }
 0xca2   :  { %8244 = vmatpush.bf16.msrb.mxu1 %v12831_v17  ;;  %v12771_v17 = vor.u32 %v14094_v10, %v12768_v57 }
 0xca3   :  { %7871 = vmatpush.bf16.msra.mxu2 %v12641_v4  ;;  %7884 = vmatpush.bf16.msra.mxu3 %v12645_v22  ;;  %v12584_v4 = vld [vmem:[%s21599_s7 + $0x40] sm:$0xf]  ;;  %v14020_v22 = vld [vmem:[%s21599_s7 + $0x4c] sm:$0xf0] }
 0xca4   :  { %v12585_v11 = vor.u32 %v14020_v22, %v12584_v4  ;;  %v12752_v4 = vld [vmem:[%s21594_s3 + $0x50] sm:$0xf0]  ;;  %v12758_v22 = vld [vmem:[%s21594_s3 + $0x48] sm:$0xf] }
 0xca6   :  { %7848 = vmatpush.bf16.msra.mxu0 %v12585_v11 }
 0xca7   :  { %7872 = vmatpush.bf16.msra.mxu2 %v12625_v52  ;;  %7885 = vmatpush.bf16.msra.mxu3 %v12629_v49  ;;  %v12815_v52 = vor.u32 %v14108_v46, %v12814_v58  ;;  %v12819_v49 = vor.u32 %v14106_v55, %v12816_v6  ;;  %v14093_v58 = vld [vmem:[%s21594_s3 + $0x54] sm:$0xf0]  ;;  %v12734_v55 = vld [vmem:[%s21594_s3 + $0x20] sm:$0xf] }
 0xca8   :  { %v12735_v3 = vor.u32 %v14088_v36, %v12734_v55  ;;  %v14107_v36 = vld [vmem:[%s21594_s3 + $0xcc] sm:$0xf] }
 0xca9   :  { %8245 = vmatpush.bf16.msrb.mxu1 %v12815_v52 }
 0xcaa   :  { %7665 = vmatmul.bf16.vlgmr.msrb.gmra.mxu2 %v20185_v56  ;;  %7678 = vmatmul.bf16.vlgmr.msrb.gmra.mxu3 %v20185_v56  ;;  %v12578_v56 = vld [vmem:[%s21599_s7 + $0x38] sm:$0xf0] }
 0xcab   :  { %7873 = vmatpush.bf16.msra.mxu2 %v12609_v60  ;;  %7886 = vmatpush.bf16.msra.mxu3 %v12613_v38  ;;  %v12581_v25 = vor.u32 %v14015_v33, %v12578_v56  ;;  %v14016_v60 = vld [vmem:[%s21599_s7 + $0x2c] sm:$0xf0]  ;;  %v12798_v38 = vld [vmem:[%s21594_s3 + $0xa0] sm:$0xf] }
 0xcac   :  { %v12569_v5 = vor.u32 %v14016_v60, %v12568_v7  ;;  %v12552_v33 = vld [vmem:[%s21599_s7] sm:$0xf]  ;;  %v14012_v56 = vld [vmem:[%s21599_s7 + $0xc] sm:$0xf0]  ;;  %v12736_v7 = vld [vmem:[%s21594_s3 + $0x30] sm:$0xf0] }
 0xcad   :  { %v12553_v23 = vor.u32 %v14012_v56, %v12552_v33  ;;  %v14082_v33 = vld [vmem:[%s21594_s3 + $0x4] sm:$0xf]  ;;  %v12720_v56 = vld [vmem:[%s21594_s3 + $0x10] sm:$0xf0] }
 0xcae   :  { %7849 = vmatpush.bf16.msra.mxu0 %v12569_v5  ;;  %v12718_v5 = vld [vmem:[%s21594_s3] sm:$0xf] }
 0xcaf   :  { %7874 = vmatpush.bf16.msra.mxu2 %v12593_v31  ;;  %7887 = vmatpush.bf16.msra.mxu3 %v12597_v59  ;;  %v12806_v31 = vld [vmem:[%s21594_s3 + $0xa8] sm:$0xf]  ;;  %v12799_v59 = vor.u32 %v14104_v9, %v12798_v38  ;;  %v14089_v9 = vld [vmem:[%s21594_s3 + $0x34] sm:$0xf0] }
 0xcb0   :  { %v12742_v38 = vld [vmem:[%s21594_s3 + $0x28] sm:$0xf] }
 0xcb1   :  { %8246 = vmatpush.bf16.msrb.mxu1 %v12799_v59  ;;  %v14084_v59 = vld [vmem:[%s21594_s3 + $0xc] sm:$0xf0] }
 0xcb2   :  { %7850 = vmatpush.bf16.msra.mxu0 %v12553_v23 }
 0xcb3   :  { %7875 = vmatpush.bf16.msra.mxu2 %v12577_v35  ;;  %7888 = vmatpush.bf16.msra.mxu3 %v12581_v25  ;;  %v12807_v35 = vor.u32 %v14105_v44, %v12806_v31  ;;  %v12782_v25 = vld [vmem:[%s21594_s3 + $0x80] sm:$0xf]  ;;  %v12739_v31 = vor.u32 %v14086_v48, %v12736_v7  ;;  %v12743_v44 = vor.u32 %v14089_v9, %v12742_v38  ;;  %v12824_v48 = vld [vmem:[%s21594_s3 + $0xd8] sm:$0xf0]  ;;  %v14184_v9 = vld [vmem:[%s21598_s8 + $0xac] sm:$0xf0] }
 0xcb4   :  { %v12783_v28 = vor.u32 %v14100_v63, %v12782_v25  ;;  %v14085_v25 = vld [vmem:[%s21594_s3 + $0x14] sm:$0xf0]  ;;  %v14080_v63 = vld [vmem:[%s21602_s10 + $0x30] sm:$0xff]  ;;  %v12994_v38 = vld [vmem:[%s21598_s8 + $0xa0] sm:$0xf] }
 0xcb6   :  { %8247 = vmatpush.bf16.msrb.mxu1 %v12783_v28  ;;  %v12421_v28 = vld [vmem:[%s21603_s1 + $0x30] sm:$0xff] }
 0xcb7   :  { %7876 = vmatpush.bf16.msra.mxu2 %v12561_v16  ;;  %7889 = vmatpush.bf16.msra.mxu3 %v12565_v39  ;;  %v12787_v16 = vor.u32 %v14098_v54, %v12784_v61  ;;  %v12766_v39 = vld [vmem:[%s21594_s3 + $0x60] sm:$0xf]  ;;  %v12719_v54 = vor.u32 %v14084_v59, %v12718_v5  ;;  %v12723_v61 = vor.u32 %v14082_v33, %v12720_v56 }
 0xcb8   :  { %v12767_v41 = vor.u32 %v14096_v27, %v12766_v39 }
 0xcba   :  { %8248 = vmatpush.bf16.msrb.mxu1 %v12767_v41 }
 0xcbb   :  { %8257 = vmatpush.bf16.msrb.mxu2 %v12835_v19  ;;  %8270 = vmatpush.bf16.msrb.mxu3 %v12839_v13  ;;  %v12750_v19 = vld [vmem:[%s21594_s3 + $0x40] sm:$0xf]  ;;  %v14090_v13 = vld [vmem:[%s21594_s3 + $0x44] sm:$0xf] }
 0xcbc   :  { %v12751_v11 = vor.u32 %v14092_v40, %v12750_v19  ;;  %v12755_v46 = vor.u32 %v14090_v13, %v12752_v4  ;;  %v14077_v19 = vld [vmem:[%s21602_s10 + $0x18] sm:$0xff]  ;;  %v14075_v40 = vld [vmem:[%s21602_s10 + $0x8] sm:$0xff]  ;;  %v13026_v13 = vld [vmem:[%s21598_s8 + $0xe0] sm:$0xf] }
 0xcbd   :  { %v14192_v4 = vld [vmem:[%s21598_s8 + $0xec] sm:$0xf0] }
 0xcbe   :  { %8249 = vmatpush.bf16.msrb.mxu1 %v12751_v11  ;;  %v14111_v11 = vld [vmem:[%s21594_s3 + $0xec] sm:$0xf] }
 0xcbf   :  { %8258 = vmatpush.bf16.msrb.mxu2 %v12819_v49  ;;  %8271 = vmatpush.bf16.msrb.mxu3 %v12823_v24  ;;  %v12759_v49 = vor.u32 %v14093_v58, %v12758_v22  ;;  %v13027_v22 = vor.u32 %v14192_v4, %v13026_v13  ;;  %v14074_v58 = vld [vmem:[%s21602_s10] sm:$0xff] }
 0xcc2   :  { %8250 = vmatpush.bf16.msrb.mxu1 %v12735_v3  ;;  %v12995_v3 = vor.u32 %v14184_v9, %v12994_v38  ;;  %v12914_v9 = vld [vmem:[%s21598_s8] sm:$0xf] }
 0xcc3   :  { %8259 = vmatpush.bf16.msrb.mxu2 %v12803_v50  ;;  %8272 = vmatpush.bf16.msrb.mxu3 %v12807_v35  ;;  %v14081_v50 = vld [vmem:[%s21602_s10 + $0x38] sm:$0xff]  ;;  %v12726_v35 = vld [vmem:[%s21594_s3 + $0x8] sm:$0xf] }
 0xcc4   :  { %8027 = vmatpush.bf16.msrb.mxu0 %v14081_v50  ;;  %v12727_v23 = vor.u32 %v14085_v25, %v12726_v35  ;;  %v14103_v50 = vld [vmem:[%s21594_s3 + $0xac] sm:$0xf] }
 0xcc6   :  { %8251 = vmatpush.bf16.msrb.mxu1 %v12719_v54 }
 0xcc7   :  { %8260 = vmatpush.bf16.msrb.mxu2 %v12787_v16  ;;  %8273 = vmatpush.bf16.msrb.mxu3 %v12791_v15  ;;  %v14079_v16 = vld [vmem:[%s21602_s10 + $0x28] sm:$0xff] }
 0xcc8   :  { %8028 = vmatpush.bf16.msrb.mxu0 %v14080_v63 }
 0xccb   :  { %8261 = vmatpush.bf16.msrb.mxu2 %v12771_v17  ;;  %8274 = vmatpush.bf16.msrb.mxu3 %v12775_v62  ;;  %v14078_v17 = vld [vmem:[%s21602_s10 + $0x20] sm:$0xff]  ;;  %v14076_v62 = vld [vmem:[%s21602_s10 + $0x10] sm:$0xff] }
 0xccc   :  { %8029 = vmatpush.bf16.msrb.mxu0 %v14079_v16 }
 0xccf   :  { %8262 = vmatpush.bf16.msrb.mxu2 %v12755_v46  ;;  %8275 = vmatpush.bf16.msrb.mxu3 %v12759_v49  ;;  %v12840_v46 = vld [vmem:[%s21594_s3 + $0xf8] sm:$0xf0] }
 0xcd0   :  { %8030 = vmatpush.bf16.msrb.mxu0 %v14078_v17  ;;  %v12843_v55 = vor.u32 %v14111_v11, %v12840_v46 }
 0xcd3   :  { %8263 = vmatpush.bf16.msrb.mxu2 %v12739_v31  ;;  %8276 = vmatpush.bf16.msrb.mxu3 %v12743_v44  ;;  %v12808_v44 = vld [vmem:[%s21594_s3 + $0xb8] sm:$0xf0] }
 0xcd4   :  { %8031 = vmatpush.bf16.msrb.mxu0 %v14077_v19  ;;  %v12811_v33 = vor.u32 %v14103_v50, %v12808_v44  ;;  %v12946_v19 = vld [vmem:[%s21598_s8 + $0x40] sm:$0xf]  ;;  %v12728_v50 = vld [vmem:[%s21594_s3 + $0x18] sm:$0xf0] }
 0xcd7   :  { %8264 = vmatpush.bf16.msrb.mxu2 %v12723_v61  ;;  %8277 = vmatpush.bf16.msrb.mxu3 %v12727_v23  ;;  %v14099_v61 = vld [vmem:[%s21594_s3 + $0x8c] sm:$0xf] }
 0xcd8   :  { %8032 = vmatpush.bf16.msrb.mxu0 %v14076_v62  ;;  %v14172_v62 = vld [vmem:[%s21598_s8 + $0x4c] sm:$0xf0] }
 0xcd9   :  { %v12947_v13 = vor.u32 %v14172_v62, %v12946_v19 }
 0xcdc   :  { %8033 = vmatpush.bf16.msrb.mxu0 %v14075_v40 }
 0xce0   :  { %8034 = vmatpush.bf16.msrb.mxu0 %v14074_v58 }
 0xd1d   :  { %v7383_v6 = vpop.f32.mrf.mxu2  ;;  %v7396_v52 = vpop.f32.mrf.mxu3 }
 0xd1e   :  { %v7384_v24 = vadd.f32 %v7383_v6, %v15761_v42  ;;  %v7397_v60 = vadd.f32 %v7396_v52, %v15763_v45  ;;  %v13010_v6 = vld [vmem:[%s21598_s8 + $0xc0] sm:$0xf]  ;;  %v14188_v52 = vld [vmem:[%s21598_s8 + $0xcc] sm:$0xf0] }
 0xd1f   :  { %v13011_v49 = vor.u32 %v14188_v52, %v13010_v6  ;;  %v12760_v6 = vld [vmem:[%s21594_s3 + $0x58] sm:$0xf0]  ;;  %v305_v52 = vadd.f32 %v15065_v2, %v14968_v12  ;;  %v14087_v12 = vld [vmem:[%s21594_s3 + $0x2c] sm:$0xf] }
 0xd20   :  { %12713 = vst [vmem:[%s21601_s12 + $0x60] sm:$0xff] %v7384_v24  ;;  %v7400_v1 = vmul.f32 1.442695, %v7397_v60  ;;  %v12744_v2 = vld [vmem:[%s21594_s3 + $0x38] sm:$0xf0] }
 0xd21   :  { %12714 = vst [vmem:[%s21601_s12 + $0x68] sm:$0xff] %v7397_v60  ;;  %v12827_v60 = vor.u32 %v14107_v36, %v12824_v48  ;;  %v12930_v36 = vld [vmem:[%s21598_s8 + $0x20] sm:$0xf]  ;;  %v14168_v48 = vld [vmem:[%s21598_s8 + $0x2c] sm:$0xf0] }
 0xd22   :  { %14424 = vpow2.f32 %v7400_v1  ;;  %v12931_v38 = vor.u32 %v14168_v48, %v12930_v36 }
 0xd25   :  { %v7385_v53 = vpop.f32.mrf.mxu2  ;;  %v7398_v43 = vpop.f32.mrf.mxu3 }
 0xd26   :  { %v12792_v53 = vld [vmem:[%s21594_s3 + $0x98] sm:$0xf0] }
 0xd27   :  { %v12795_v16 = vor.u32 %v14099_v61, %v12792_v53 }
 0xd28   :  { %v14425_v39 = vpop.eup %14424 }
 0xd29   :  { %v7404_v15 = vmul.f32 %v14425_v39, %v12421_v28  ;;  %v12962_v39 = vld [vmem:[%s21598_s8 + $0x60] sm:$0xf] }
 0xd2b   :  { %v7405_v27 = vadd.f32 %v7404_v15, %v7384_v24  ;;  %v14176_v15 = vld [vmem:[%s21598_s8 + $0x6c] sm:$0xf0] }
 0xd2d   :  { %v20867_v10 = vpop.f32.mrf.mxu2  ;;  %v20869_v57 = vpop.f32.mrf.mxu3  ;;  %v7406_v29 = vpack.c.bf16 %v7405_v27, %v7405_v27  ;;  %v12963_v27 = vor.u32 %v14176_v15, %v12962_v39 }
 0xd2f   :  { %7851 = vmatmul.bf16.vlgmr.msra.gmra.mxu0 %v7406_v29  ;;  %7864 = vmatmul.bf16.vlgmr.msra.gmra.mxu1 %v7406_v29 }
 0xd30   :  { %7877 = vmatmul.bf16.vlgmr.msra.gmra.mxu2 %v7406_v29  ;;  %7890 = vmatmul.bf16.vlgmr.msra.gmra.mxu3 %v7406_v29 }
 0xd31   :  { %8717 = vmatpush.bf16.msra.mxu3 %v13027_v22  ;;  %8283 = vmatpush.bf16.msra.mxu0 %v12843_v55  ;;  %v14091_v55 = vld [vmem:[%s21594_s3 + $0x4c] sm:$0xf] }
 0xd35   :  { %v7668_v34 = vpop.f32.mrf.mxu2  ;;  %v7681_v41 = vpop.f32.mrf.mxu3  ;;  %8718 = vmatpush.bf16.msra.mxu3 %v13011_v49  ;;  %8284 = vmatpush.bf16.msra.mxu0 %v12827_v60  ;;  %v12763_v60 = vor.u32 %v14091_v55, %v12760_v6 }
 0xd36   :  { %v12776_v34 = vld [vmem:[%s21594_s3 + $0x78] sm:$0xf0] }
 0xd39   :  { %8719 = vmatpush.bf16.msra.mxu3 %v12995_v3  ;;  %8285 = vmatpush.bf16.msra.mxu0 %v12811_v33  ;;  %v21660_v33 = vld [vmem:[#allocation3_spill] sm:$0xff] }
 0xd3d   :  { %8286 = vmatpush.bf16.msra.mxu0 %v12795_v16 }
 0xd3f   :  { %8252 = vmatmul.bf16.vlgmr.msrb.gmra.mxu1 %v20568_v51 }
 0xd40   :  { %8265 = vmatmul.bf16.vlgmr.msrb.gmra.mxu2 %v20568_v51  ;;  %8278 = vmatmul.bf16.vlgmr.msrb.gmra.mxu3 %v20568_v51 }
 0xdac   :  { %v7852_v7 = vpop.f32.mrf.mxu0  ;;  %v7865_v24 = vpop.f32.mrf.mxu1 }
 0xdad   :  { %v7853_v5 = vadd.f32 %v7852_v7, %v20344_v0  ;;  %v7866_v1 = vadd.f32 %v7865_v24, %v20518_v26  ;;  %v12978_v0 = vld [vmem:[%s21598_s8 + $0x80] sm:$0xf]  ;;  %v14180_v26 = vld [vmem:[%s21598_s8 + $0x8c] sm:$0xf0] }
 0xdae   :  { %v12979_v25 = vor.u32 %v14180_v26, %v12978_v0  ;;  %v334_v0 = vadd.f32 %v21660_v33, %v14972_v14  ;;  %v12905_v33 = vld [vmem:[%s21597_s5 + $0x70] sm:$0xf] }
 0xdaf   :  { %v7895_v31 = vadd.f32 %v7853_v5, %v15855_v32  ;;  %v7896_v59 = vadd.f32 %v7866_v1, %v15858_v47  ;;  %v12747_v1 = vor.u32 %v14087_v12, %v12744_v2 }
 0xdb0   :  { %8720 = vmatpush.bf16.msra.mxu3 %v12979_v25 }
 0xdb1   :  { %v12678_v56 = vmul.f32 -1.442695, %v7895_v31  ;;  %v12679_v35 = vmul.f32 -1.442695, %v7896_v59  ;;  %v14083_v59 = vld [vmem:[%s21594_s3 + $0xc] sm:$0xf] }
 0xdb3   :  { %14426 = vpow2.f32 %v12678_v56  ;;  %v7878_v63 = vpop.f32.mrf.mxu2  ;;  %v7891_v54 = vpop.f32.mrf.mxu3 }
 0xdb4   :  { %14428 = vpow2.f32 %v12679_v35  ;;  %v7879_v43 = vadd.f32 %v7878_v63, %v20867_v10  ;;  %v7854_v23 = vpop.f32.mrf.mxu0  ;;  %v7867_v28 = vpop.f32.mrf.mxu1  ;;  %8721 = vmatpush.bf16.msra.mxu3 %v12963_v27  ;;  %v14095_v10 = vld [vmem:[%s21594_s3 + $0x6c] sm:$0xf]  ;;  %v7892_v7 = vadd.f32 %v7891_v54, %v20869_v57  ;;  %v14164_v57 = vld [vmem:[%s21598_s8 + $0xc] sm:$0xf0] }
 0xdb5   :  { %v12779_v17 = vor.u32 %v14095_v10, %v12776_v34  ;;  %v12915_v31 = vor.u32 %v14164_v57, %v12914_v9  ;;  %v21661_v35 = vld [vmem:[#allocation4_spill] sm:$0xff]  ;;  %v12731_v28 = vor.u32 %v14083_v59, %v12728_v50  ;;  %v13028_v57 = vld [vmem:[%s21598_s8 + $0xf0] sm:$0xf0] }
 0xdb6   :  { %v7897_v29 = vadd.f32 %v7879_v43, %v15831_v30  ;;  %v7898_v26 = vadd.f32 %v7892_v7, %v15934_v8  ;;  %v363_v25 = vadd.f32 %v21661_v35, %v14982_v20 }
 0xdb7   :  { %8287 = vmatpush.bf16.msra.mxu0 %v12779_v17 }
 0xdb8   :  { %v12680_v41 = vmul.f32 -1.442695, %v7897_v29  ;;  %8722 = vmatpush.bf16.msra.mxu3 %v12947_v13 }
 0xdb9   :  { %v14427_v40 = vpop.eup %14426 }
 0xdba   :  { %v14429_v4 = vpop.eup %14428  ;;  %v20961_v22 = vadd.f32 1.0, %v14427_v40  ;;  %14430 = vpow2.f32 %v12680_v41 }
 0xdbb   :  { %v20963_v58 = vadd.f32 1.0, %v14429_v4  ;;  %v7880_v11 = vpop.f32.mrf.mxu2  ;;  %v7893_v46 = vpop.f32.mrf.mxu3  ;;  %8288 = vmatpush.bf16.msra.mxu0 %v12763_v60 }
 0xdbc   :  { %14432 = vrcp.f32 %v20961_v22  ;;  %v8253_v49 = vpop.f32.mrf.mxu1  ;;  %8723 = vmatpush.bf16.msra.mxu3 %v12931_v38  ;;  %v7922_v20 = vand.u32 2147483648, %v20961_v22  ;;  %v7920_v29 = vand.u32 2147483647, %v20961_v22  ;;  %vm7916_vm14 = vweird.f32 %v20961_v22 }
 0xdbd   :  { %14434 = vrcp.f32 %v20963_v58  ;;  %v20982_v24 = vadd.f32 %v8253_v49, %v305_v52  ;;  %v7937_v15 = vand.u32 2147483648, %v20963_v58  ;;  %v7935_v34 = vand.u32 2147483647, %v20963_v58 }
 0xdbe   :  { %vm7931_vm15 = vweird.f32 %v20963_v58  ;;  %v7923_v62 = vor.u32 1.1754944e-38, %v7922_v20  ;;  %vm7921_vm2 = vcmp.eq.f32.partialorder %v7920_v29, 8.507059e+37  ;;  %v12964_v20 = vld [vmem:[%s21598_s8 + $0x70] sm:$0xf0] }
 0xdbf   :  { %8289 = vmatpush.bf16.msra.mxu0 %v12747_v1  ;;  %v7938_v13 = vor.u32 1.1754944e-38, %v7937_v15  ;;  %vm7936_vm3 = vcmp.eq.f32.partialorder %v7935_v34, 8.507059e+37  ;;  %v12948_v29 = vld [vmem:[%s21598_s8 + $0x50] sm:$0xf0]  ;;  %v14166_v34 = vld [vmem:[%s21598_s8 + $0x24] sm:$0xf] }
 0xdc0   :  { %v14431_v5 = vpop.eup %14430  ;;  %8724 = vmatpush.bf16.msra.mxu3 %v12915_v31 }
 0xdc1   :  { %v20996_v3 = vadd.f32 1.0, %v14431_v5 }
 0xdc2   :  { %v14433_v44 = vpop.eup %14432 }
 0xdc3   :  { %v14435_v56 = vpop.eup %14434  ;;  %v7912_v63 = vmul.f32 %v14433_v44, %v20961_v22  ;;  %14436 = vrcp.f32 %v20996_v3  ;;  %v8266_v54 = vpop.f32.mrf.mxu2  ;;  %vm7917_vm12 = vweird.f32 %v14433_v44  ;;  %8290 = vmatpush.bf16.msra.mxu0 %v12731_v28  ;;  %v7952_v12 = vand.u32 2147483648, %v20996_v3  ;;  %v12980_v28 = vld [vmem:[%s21598_s8 + $0x90] sm:$0xf0] }
 0xdc4   :  { %v8279_v61 = vpop.f32.mrf.mxu3  ;;  %v7927_v53 = vmul.f32 %v14435_v56, %v20963_v58  ;;  %v21012_v43 = vadd.f32 %v8266_v54, %v334_v0  ;;  %v8255_v23 = vpop.f32.mrf.mxu1  ;;  %14438 = vtanh.f32 %v7898_v26  ;;  %vm7932_vm13 = vweird.f32 %v14435_v56  ;;  %vm7918_vm0 = vmor %vm7916_vm14, %vm7917_vm12  ;;  %v14129_v0 = vld [vmem:[%s21597_s5 + $0x74] sm:$0xf0]  ;;  %v14128_v26 = vld [vmem:[%s21597_s5 + $0x74] sm:$0xf] }
 0xdc5   :  { %v7913_v14 = vsub.f32 1.0, %v7912_v63  ;;  %v21014_v16 = vadd.f32 %v8279_v61, %v363_v25  ;;  %vm7933_vm1 = vmor %vm7931_vm15, %vm7932_vm13  ;;  %vm7946_vm5 = vweird.f32 %v20996_v3  ;;  %v7950_v2 = vand.u32 2147483647, %v20996_v3  ;;  %v12907_v25 = vld [vmem:[%s21597_s5 + $0x78] sm:$0xf0] }
 0xdc6   :  { %v7928_v39 = vsub.f32 1.0, %v7927_v53  ;;  %v7953_v9 = vor.u32 1.1754944e-38, %v7952_v12  ;;  %v12906_v35 = vor.u32 %v14129_v0, %v12905_v33  ;;  %v14182_v63 = vld [vmem:[%s21598_s8 + $0xa4] sm:$0xf]  ;;  %v12996_v54 = vld [vmem:[%s21598_s8 + $0xb0] sm:$0xf0]  ;;  %v12910_v61 = vor.u32 %v14128_v26, %v12907_v25 }
 0xdc7   :  { %v7914_v27 = vmul.f32 %v14433_v44, %v7913_v14  ;;  %vm7951_vm7 = vcmp.eq.f32.partialorder %v7950_v2, 8.507059e+37  ;;  %v12999_v53 = vor.u32 %v14182_v63, %v12996_v54  ;;  %v14178_v23 = vld [vmem:[%s21598_s8 + $0x84] sm:$0xf]  ;;  %v12845_v2 = vmul.f32 -1.442695, %v21012_v43 }
 0xdc8   :  { %v7929_v10 = vmul.f32 %v14435_v56, %v7928_v39  ;;  %8460 = vmatpush.bf16.msra.mxu1 %v12906_v35  ;;  %8473 = vmatpush.bf16.msra.mxu2 %v12910_v61  ;;  %v12983_v14 = vor.u32 %v14178_v23, %v12980_v28  ;;  %v14174_v39 = vld [vmem:[%s21598_s8 + $0x64] sm:$0xf]  ;;  %v14120_v43 = vld [vmem:[%s21597_s5 + $0x34] sm:$0xf]  ;;  %v12865_v26 = vld [vmem:[%s21597_s5 + $0x20] sm:$0xf] }
 0xdc9   :  { %v14437_v41 = vpop.eup %14436  ;;  %v7915_v17 = vadd.f32 %v14433_v44, %v7914_v27  ;;  %v12967_v15 = vor.u32 %v14174_v39, %v12964_v20  ;;  %v14170_v27 = vld [vmem:[%s21598_s8 + $0x44] sm:$0xf]  ;;  %v12867_v63 = vld [vmem:[%s21597_s5 + $0x28] sm:$0xf0]  ;;  %v12857_v61 = vld [vmem:[%s21597_s5 + $0x10] sm:$0xf] }
 0xdca   :  { %v7942_v19 = vmul.f32 %v14437_v41, %v20996_v3  ;;  %v7930_v40 = vadd.f32 %v14435_v56, %v7929_v10  ;;  %v14439_v55 = vpop.eup %14438  ;;  %vm7947_vm4 = vweird.f32 %v14437_v41  ;;  %v14186_v3 = vld [vmem:[%s21598_s8 + $0xc4] sm:$0xf]  ;;  %v12951_v10 = vor.u32 %v14170_v27, %v12948_v29  ;;  %v14116_v23 = vld [vmem:[%s21597_s5 + $0x14] sm:$0xf]  ;;  %v12849_v20 = vld [vmem:[%s21597_s5] sm:$0xf] }
 0xdcb   :  { %v7919_v4 = vsel %vm7918_vm0, %v14433_v44, %v7915_v17  ;;  %v8268_v11 = vpop.f32.mrf.mxu2  ;;  %vm7948_vm6 = vmor %vm7946_vm5, %vm7947_vm4  ;;  %v13012_v44 = vld [vmem:[%s21598_s8 + $0xd0] sm:$0xf0]  ;;  %v14122_v12 = vld [vmem:[%s21597_s5 + $0x44] sm:$0xf] }
 0xdcc   :  { %v8281_v46 = vpop.f32.mrf.mxu3  ;;  %v7943_v6 = vsub.f32 1.0, %v7942_v19  ;;  %v7924_v52 = vsel %vm7921_vm2, %v7923_v62, %v7919_v4  ;;  %v7934_v49 = vsel %vm7933_vm1, %v14435_v56, %v7930_v40  ;;  %v13015_v56 = vor.u32 %v14186_v3, %v13012_v44  ;;  %v14162_v19 = vld [vmem:[%s21598_s8 + $0x4] sm:$0xf]  ;;  %v12897_v40 = vld [vmem:[%s21597_s5 + $0x60] sm:$0xf] }
 0xdcd   :  { %v7939_v36 = vsel %vm7936_vm3, %v7938_v13, %v7934_v49  ;;  %v7958_v22 = vmul.f32 %v14439_v55, %v7924_v52  ;;  %v14127_v13 = vld [vmem:[%s21597_s5 + $0x64] sm:$0xf0]  ;;  %v14126_v4 = vld [vmem:[%s21597_s5 + $0x64] sm:$0xf]  ;;  %v12899_v46 = vld [vmem:[%s21597_s5 + $0x68] sm:$0xf0] }
 0xdce   :  { %v7944_v48 = vmul.f32 %v14437_v41, %v7943_v6  ;;  %v7957_v58 = vmul.f32 %v7939_v36, %v20173_v37  ;;  %v14190_v37 = vld [vmem:[%s21598_s8 + $0xe4] sm:$0xf]  ;;  %v12898_v11 = vor.u32 %v14127_v13, %v12897_v40  ;;  %v12889_v55 = vld [vmem:[%s21597_s5 + $0x50] sm:$0xf]  ;;  %v14125_v6 = vld [vmem:[%s21597_s5 + $0x54] sm:$0xf0]  ;;  %v12902_v52 = vor.u32 %v14126_v4, %v12899_v46 }
 0xdcf   :  { %v13031_v59 = vor.u32 %v14190_v37, %v13028_v57  ;;  %v14124_v49 = vld [vmem:[%s21597_s5 + $0x54] sm:$0xf]  ;;  %v12891_v36 = vld [vmem:[%s21597_s5 + $0x58] sm:$0xf0]  ;;  %v12873_v57 = vld [vmem:[%s21597_s5 + $0x30] sm:$0xf] }
 0xdd0   :  { %v21024_v7 = vadd.f32 %v7958_v22, %v7957_v58  ;;  %v7945_v60 = vadd.f32 %v14437_v41, %v7944_v48  ;;  %8461 = vmatpush.bf16.msra.mxu1 %v12898_v11  ;;  %v12890_v22 = vor.u32 %v14125_v6, %v12889_v55  ;;  %8474 = vmatpush.bf16.msra.mxu2 %v12902_v52  ;;  %v12881_v58 = vld [vmem:[%s21597_s5 + $0x40] sm:$0xf]  ;;  %v14118_v35 = vld [vmem:[%s21597_s5 + $0x24] sm:$0xf]  ;;  %v14191_v40 = vld [vmem:[%s21598_s8 + $0xec] sm:$0xf] }
 0xdd1   :  { %v12894_v48 = vor.u32 %v14124_v49, %v12891_v36  ;;  %v14114_v27 = vld [vmem:[%s21597_s5 + $0x4] sm:$0xf]  ;;  %v13036_v13 = vld [vmem:[%s21598_s8 + $0xf8] sm:$0xf0]  ;;  %v13018_v4 = vld [vmem:[%s21598_s8 + $0xc8] sm:$0xf] }
 0xdd2   :  { %14440 = vtanh.f32 %v21024_v7  ;;  %v7949_v38 = vsel %vm7948_vm6, %v14437_v41, %v7945_v60  ;;  %v12932_v41 = vld [vmem:[%s21598_s8 + $0x30] sm:$0xf0]  ;;  %v14123_v60 = vld [vmem:[%s21597_s5 + $0x44] sm:$0xf0]  ;;  %v21209_v46 = vld [vmem:[%s21605_s11] ss:$0 sm:$0xff]  ;;  %v13039_v6 = vor.u32 %v14191_v40, %v13036_v13 }
 0xdd3   :  { %v7954_v1 = vsel %vm7951_vm7, %v7953_v9, %v7949_v38  ;;  %v12935_v17 = vor.u32 %v14166_v34, %v12932_v41  ;;  %v12883_v38 = vld [vmem:[%s21597_s5 + $0x48] sm:$0xf0]  ;;  %v12882_v9 = vor.u32 %v14123_v60, %v12881_v58  ;;  %14442 = vpow2.f32 %v12845_v2  ;;  %v13034_v34 = vld [vmem:[%s21598_s8 + $0xe8] sm:$0xf]  ;;  %v14193_v41 = vld [vmem:[%s21598_s8 + $0xf4] sm:$0xf0] }
 0xdd4   :  { %8462 = vmatpush.bf16.msra.mxu1 %v12890_v22  ;;  %8475 = vmatpush.bf16.msra.mxu2 %v12894_v48  ;;  %v12886_v37 = vor.u32 %v14122_v12, %v12883_v38  ;;  %v14189_v52 = vld [vmem:[%s21598_s8 + $0xd4] sm:$0xf0]  ;;  %v14187_v49 = vld [vmem:[%s21598_s8 + $0xcc] sm:$0xf]  ;;  %v13020_v36 = vld [vmem:[%s21598_s8 + $0xd8] sm:$0xf0] }
 0xdd5   :  { %v13019_v48 = vor.u32 %v14189_v52, %v13018_v4  ;;  %v13023_v12 = vor.u32 %v14187_v49, %v13020_v36  ;;  %v13002_v2 = vld [vmem:[%s21598_s8 + $0xa8] sm:$0xf]  ;;  %v14185_v38 = vld [vmem:[%s21598_s8 + $0xb4] sm:$0xf0] }
 0xdd6   :  { %v12938_v36 = vld [vmem:[%s21598_s8 + $0x28] sm:$0xf] }
 0xdd8   :  { %v14441_v5 = vpop.eup %14440  ;;  %8463 = vmatpush.bf16.msra.mxu1 %v12882_v9  ;;  %8476 = vmatpush.bf16.msra.mxu2 %v12886_v37  ;;  %v14183_v9 = vld [vmem:[%s21598_s8 + $0xac] sm:$0xf]  ;;  %v13004_v37 = vld [vmem:[%s21598_s8 + $0xb8] sm:$0xf0] }
 0xdd9   :  { %v7961_v31 = vmul.f32 %v14441_v5, %v7954_v1  ;;  %v14121_v5 = vld [vmem:[%s21597_s5 + $0x34] sm:$0xf0]  ;;  %v12844_v1 = vmul.f32 -1.442695, %v20982_v24  ;;  %v14443_v44 = vpop.eup %14442  ;;  %v12846_v24 = vmul.f32 -1.442695, %v21014_v16  ;;  %v12870_v16 = vor.u32 %v14118_v35, %v12867_v63 }
 0xdda   :  { %v21146_v0 = vadd.f32 1.0, %v14443_v44  ;;  %v14181_v44 = vld [vmem:[%s21598_s8 + $0x94] sm:$0xf0]  ;;  %v12970_v63 = vld [vmem:[%s21598_s8 + $0x68] sm:$0xf] }
 0xddb   :  { %v21036_v50 = vpack.c.bf16 %v7961_v31, %v7961_v31  ;;  %v12875_v31 = vld [vmem:[%s21597_s5 + $0x38] sm:$0xf0]  ;;  %14444 = vpow2.f32 %v12844_v1  ;;  %v13003_v1 = vor.u32 %v14185_v38, %v13002_v2 }
 0xddc   :  { %v12878_v3 = vor.u32 %v14120_v43, %v12875_v31  ;;  %14446 = vpow2.f32 %v12846_v24  ;;  %v12988_v24 = vld [vmem:[%s21598_s8 + $0x98] sm:$0xf0]  ;;  %vm8332_vm9 = vweird.f32 %v21146_v0  ;;  %v8336_v13 = vand.u32 2147483647, %v21146_v0 }
 0xddd   :  { %8035 = vmatmul.bf16.vlgmr.msrb.gmra.mxu0 %v21036_v50  ;;  %8725 = vmatmul.bf16.vlgmr.msra.gmra.mxu3 %v21036_v50  ;;  %14448 = vrcp.f32 %v21146_v0  ;;  %v12940_v2 = vld [vmem:[%s21598_s8 + $0x38] sm:$0xf0] }
 0xdde   :  { %8730 = vmatpush.bf16.msrb.mxu0 %v13031_v59  ;;  %v12874_v59 = vor.u32 %v14121_v5, %v12873_v57  ;;  %8477 = vmatpush.bf16.msra.mxu2 %v12878_v3  ;;  %v12986_v3 = vld [vmem:[%s21598_s8 + $0x88] sm:$0xf]  ;;  %vm8337_vm14 = vcmp.eq.f32.partialorder %v8336_v13, 8.507059e+37  ;;  %v13164_v13 = vld [vmem:[%s21599_s7 + $0xf8] sm:$0xf0] }
 0xde0   :  { %8464 = vmatpush.bf16.msra.mxu1 %v12874_v59  ;;  %v13007_v59 = vor.u32 %v14183_v9, %v13004_v37 }
 0xde1   :  { %v14445_v33 = vpop.eup %14444 }
 0xde2   :  { %8731 = vmatpush.bf16.msrb.mxu0 %v13015_v56  ;;  %v14119_v56 = vld [vmem:[%s21597_s5 + $0x24] sm:$0xf0]  ;;  %v21161_v54 = vadd.f32 1.0, %v14445_v33  ;;  %8478 = vmatpush.bf16.msra.mxu2 %v12870_v16  ;;  %v14179_v33 = vld [vmem:[%s21598_s8 + $0x8c] sm:$0xf] }
 0xde3   :  { %v12866_v25 = vor.u32 %v14119_v56, %v12865_v26  ;;  %v12987_v56 = vor.u32 %v14181_v44, %v12986_v3  ;;  %v14177_v16 = vld [vmem:[%s21598_s8 + $0x74] sm:$0xf0]  ;;  %v12924_v3 = vld [vmem:[%s21598_s8 + $0x18] sm:$0xf0] }
 0xde4   :  { %14450 = vrcp.f32 %v21161_v54  ;;  %vm8317_vm12 = vweird.f32 %v21161_v54 }
 0xde5   :  { %8465 = vmatpush.bf16.msra.mxu1 %v12866_v25  ;;  %v12991_v25 = vor.u32 %v14179_v33, %v12988_v24 }
 0xde6   :  { %8732 = vmatpush.bf16.msrb.mxu0 %v12999_v53  ;;  %v14117_v53 = vld [vmem:[%s21597_s5 + $0x14] sm:$0xf0] }
 0xde7   :  { %v12858_v28 = vor.u32 %v14117_v53, %v12857_v61  ;;  %v14175_v61 = vld [vmem:[%s21598_s8 + $0x6c] sm:$0xf]  ;;  %v12972_v53 = vld [vmem:[%s21598_s8 + $0x78] sm:$0xf0] }
 0xde9   :  { %8466 = vmatpush.bf16.msra.mxu1 %v12858_v28 }
 0xdea   :  { %8733 = vmatpush.bf16.msrb.mxu0 %v12983_v14  ;;  %v12859_v14 = vld [vmem:[%s21597_s5 + $0x18] sm:$0xf0] }
 0xdeb   :  { %v12862_v39 = vor.u32 %v14116_v23, %v12859_v14 }
 0xded   :  { %8291 = vmatmul.bf16.vlgmr.msra.gmra.mxu0 %v20568_v51  ;;  %v12916_v51 = vld [vmem:[%s21598_s8 + $0x10] sm:$0xf0]  ;;  %8479 = vmatpush.bf16.msra.mxu2 %v12862_v39 }
 0xdee   :  { %8734 = vmatpush.bf16.msrb.mxu0 %v12967_v15  ;;  %v12919_v62 = vor.u32 %v14162_v19, %v12916_v51  ;;  %v14115_v15 = vld [vmem:[%s21597_s5 + $0x4] sm:$0xf0]  ;;  %v21662_v39 = vld [vmem:[#allocation5_spill] sm:$0xff] }
 0xdef   :  { %v12850_v29 = vor.u32 %v14115_v15, %v12849_v20  ;;  %v392_v20 = vadd.f32 %v21662_v39, %v14984_v21  ;;  %v12971_v15 = vor.u32 %v14177_v16, %v12970_v63 }
 0xdf1   :  { %8467 = vmatpush.bf16.msra.mxu1 %v12850_v29 }
 0xdf2   :  { %8735 = vmatpush.bf16.msrb.mxu0 %v12951_v10  ;;  %v12851_v10 = vld [vmem:[%s21597_s5 + $0x8] sm:$0xf0] }
 0xdf3   :  { %v12854_v51 = vor.u32 %v14114_v27, %v12851_v10  ;;  %v12975_v10 = vor.u32 %v14175_v61, %v12972_v53  ;;  %v13156_v61 = vld [vmem:[%s21599_s7 + $0xf0] sm:$0xf0] }
 0xdf5   :  { %8480 = vmatpush.bf16.msra.mxu2 %v12854_v51  ;;  %v14171_v51 = vld [vmem:[%s21598_s8 + $0x4c] sm:$0xf] }
 0xdf6   :  { %8736 = vmatpush.bf16.msrb.mxu0 %v12935_v17  ;;  %v14447_v17 = vpop.eup %14446 }
 0xdf7   :  { %v21204_v11 = vpop.eup %14448  ;;  %v21228_v60 = vadd.f32 1.0, %v14447_v17  ;;  %v8338_v17 = vand.u32 2147483648, %v21146_v0 }
 0xdf8   :  { %v21221_v22 = vpop.eup %14450  ;;  %v8328_v58 = vmul.f32 %v21204_v11, %v21146_v0  ;;  %vm8333_vm8 = vweird.f32 %v21204_v11 }
 0xdf9   :  { %8756 = vmatpush.bf16.msrb.mxu2 %v13039_v6  ;;  %v8313_v57 = vmul.f32 %v21221_v22, %v21161_v54  ;;  %14452 = vrcp.f32 %v21228_v60  ;;  %vm8318_vm10 = vweird.f32 %v21221_v22  ;;  %vm21300_vm11 = vmor %vm8332_vm9, %vm8333_vm8  ;;  %v8323_v6 = vand.u32 2147483648, %v21161_v54 }
 0xdfa   :  { %8737 = vmatpush.bf16.msrb.mxu0 %v12919_v62  ;;  %v13035_v62 = vor.u32 %v14193_v41, %v13034_v34  ;;  %v8329_v43 = vsub.f32 1.0, %v8328_v58  ;;  %v12954_v34 = vld [vmem:[%s21598_s8 + $0x48] sm:$0xf]  ;;  %v14173_v41 = vld [vmem:[%s21598_s8 + $0x54] sm:$0xf0]  ;;  %v8339_v58 = vor.u32 1.1754944e-38, %v8338_v17  ;;  %vm21318_vm13 = vmor %vm8317_vm12, %vm8318_vm10  ;;  %vm8347_vm1 = vweird.f32 %v21228_v60 }
 0xdfb   :  { %v8314_v26 = vsub.f32 1.0, %v8313_v57  ;;  %v12955_v52 = vor.u32 %v14173_v41, %v12954_v34  ;;  %v8324_v9 = vor.u32 1.1754944e-38, %v8323_v6  ;;  %v8351_v41 = vand.u32 2147483647, %v21228_v60 }
 0xdfc   :  { %8743 = vmatpush.bf16.msrb.mxu1 %v13035_v62  ;;  %v8330_v35 = vmul.f32 %v21204_v11, %v8329_v43  ;;  %v12956_v62 = vld [vmem:[%s21598_s8 + $0x58] sm:$0xf0]  ;;  %v8353_v17 = vand.u32 2147483648, %v21228_v60 }
 0xdfd   :  { %8738 = vmatmul.bf16.vlgmr.msrb.gmra.mxu0 %v21036_v50  ;;  %8757 = vmatpush.bf16.msrb.mxu2 %v13023_v12  ;;  %v8315_v14 = vmul.f32 %v21221_v22, %v8314_v26  ;;  %v12959_v0 = vor.u32 %v14171_v51, %v12956_v62  ;;  %v13154_v26 = vld [vmem:[%s21599_s7 + $0xe0] sm:$0xf]  ;;  %vm8352_vm3 = vcmp.eq.f32.partialorder %v8351_v41, 8.507059e+37  ;;  %v13162_v62 = vld [vmem:[%s21599_s7 + $0xe8] sm:$0xf] }
 0xdfe   :  { %v8331_v29 = vadd.f32 %v21204_v11, %v8330_v35  ;;  %v14158_v35 = vld [vmem:[%s21599_s7 + $0xe4] sm:$0xf]  ;;  %v8354_v51 = vor.u32 1.1754944e-38, %v8353_v17  ;;  %v14143_v41 = vld [vmem:[%s21599_s7 + $0x6c] sm:$0xf] }
 0xdff   :  { %v21272_v23 = vpop.eup %14452  ;;  %v8316_v40 = vadd.f32 %v21221_v22, %v8315_v14  ;;  %v13138_v14 = vld [vmem:[%s21599_s7 + $0xc0] sm:$0xf]  ;;  %v13100_v17 = vld [vmem:[%s21599_s7 + $0x78] sm:$0xf0] }
 0xe00   :  { %8744 = vmatpush.bf16.msrb.mxu1 %v13019_v48  ;;  %v8343_v21 = vmul.f32 %v21272_v23, %v21228_v60  ;;  %v8335_v49 = vsel %vm21300_vm11, %v21204_v11, %v8331_v29  ;;  %v14169_v48 = vld [vmem:[%s21598_s8 + $0x34] sm:$0xf0]  ;;  %v14167_v11 = vld [vmem:[%s21598_s8 + $0x2c] sm:$0xf]  ;;  %vm8348_vm0 = vweird.f32 %v21272_v23 }
 0xe01   :  { %8758 = vmatpush.bf16.msrb.mxu2 %v13007_v59  ;;  %v8320_v38 = vsel %vm21318_vm13, %v21221_v22, %v8316_v40  ;;  %v8340_v37 = vsel %vm8337_vm14, %v8339_v58, %v8335_v49  ;;  %v12939_v57 = vor.u32 %v14169_v48, %v12938_v36  ;;  %v14165_v59 = vld [vmem:[%s21598_s8 + $0x14] sm:$0xf0]  ;;  %v14163_v22 = vld [vmem:[%s21598_s8 + $0xc] sm:$0xf]  ;;  %vm8349_vm2 = vmor %vm8347_vm1, %vm8348_vm0 }
 0xe02   :  { %v8344_v12 = vsub.f32 1.0, %v8343_v21  ;;  %v14161_v40 = vld [vmem:[%s21599_s7 + $0xf4] sm:$0xf0]  ;;  %v14159_v60 = vld [vmem:[%s21599_s7 + $0xec] sm:$0xf] }
 0xe03   :  { %v13163_v6 = vor.u32 %v14161_v40, %v13162_v62  ;;  %v13146_v49 = vld [vmem:[%s21599_s7 + $0xc8] sm:$0xf]  ;;  %v14157_v36 = vld [vmem:[%s21599_s7 + $0xd4] sm:$0xf0]  ;;  %v14155_v48 = vld [vmem:[%s21599_s7 + $0xcc] sm:$0xf] }
 0xe04   :  { %8745 = vmatpush.bf16.msrb.mxu1 %v13003_v1  ;;  %v12922_v1 = vld [vmem:[%s21598_s8 + $0x8] sm:$0xf]  ;;  %v8345_v33 = vmul.f32 %v21272_v23, %v8344_v12  ;;  %v13148_v58 = vld [vmem:[%s21599_s7 + $0xd8] sm:$0xf0]  ;;  %v14140_v62 = vld [vmem:[%s21599_s7 + $0x4c] sm:$0xf0] }
 0xe05   :  { %8759 = vmatpush.bf16.msrb.mxu2 %v12991_v25  ;;  %v8358_v25 = vmul.f32 %v8340_v37, %v20500_v18  ;;  %v12923_v53 = vor.u32 %v14165_v59, %v12922_v1  ;;  %v14156_v18 = vld [vmem:[%s21599_s7 + $0xcc] sm:$0xf0]  ;;  %v14153_v1 = vld [vmem:[%s21599_s7 + $0xb4] sm:$0xf0]  ;;  %v14151_v59 = vld [vmem:[%s21599_s7 + $0xac] sm:$0xf] }
 0xe06   :  { %v8346_v29 = vadd.f32 %v21272_v23, %v8345_v33  ;;  %v14148_v33 = vld [vmem:[%s21599_s7 + $0x8c] sm:$0xf0]  ;;  %v14138_v40 = vld [vmem:[%s21599_s7 + $0x44] sm:$0xf] }
 0xe08   :  { %8746 = vmatpush.bf16.msrb.mxu1 %v12987_v56  ;;  %v14160_v56 = vld [vmem:[%s21599_s7 + $0xec] sm:$0xf0] }
 0xe09   :  { %8760 = vmatpush.bf16.msrb.mxu2 %v12975_v10  ;;  %v13155_v16 = vor.u32 %v14160_v56, %v13154_v26  ;;  %v13139_v10 = vor.u32 %v14156_v18, %v13138_v14  ;;  %v13108_v26 = vld [vmem:[%s21599_s7 + $0x90] sm:$0xf0]  ;;  %v13090_v14 = vld [vmem:[%s21599_s7 + $0x60] sm:$0xf] }
 0xe0b   :  { %8929 = vmatpush.bf16.msrb.mxu3 %v13155_v16  ;;  %v14147_v16 = vld [vmem:[%s21599_s7 + $0x8c] sm:$0xf] }
 0xe0c   :  { %8747 = vmatpush.bf16.msrb.mxu1 %v12971_v15  ;;  %v14154_v15 = vld [vmem:[%s21599_s7 + $0xc4] sm:$0xf] }
 0xe0d   :  { %8761 = vmatpush.bf16.msrb.mxu2 %v12959_v0 }
 0xe0f   :  { %8930 = vmatpush.bf16.msrb.mxu3 %v13139_v10 }
 0xe10   :  { %8748 = vmatpush.bf16.msrb.mxu1 %v12955_v52  ;;  %v13167_v52 = vor.u32 %v14159_v60, %v13164_v13  ;;  %v13076_v13 = vld [vmem:[%s21599_s7 + $0x50] sm:$0xf0] }
 0xe14   :  { %8749 = vmatpush.bf16.msrb.mxu1 %v12939_v57  ;;  %v13124_v57 = vld [vmem:[%s21599_s7 + $0xb0] sm:$0xf0] }
 0xe18   :  { %8750 = vmatpush.bf16.msrb.mxu1 %v12923_v53  ;;  %v13116_v53 = vld [vmem:[%s21599_s7 + $0x98] sm:$0xf0] }
 0xe5a   :  { %v8036_v19 = vpop.f32.mrf.mxu0 }
 0xe5b   :  { %v8037_v55 = vadd.f32 %v21209_v46, %v8036_v19 }
 0xe5d   :  { %12715 = vst [vmem:[%s21606_s13 + $0x30] sm:$0xff] %v8037_v55  ;;  %v8321_v55 = vand.u32 2147483647, %v21161_v54  ;;  %v13147_v54 = vor.u32 %v14157_v36, %v13146_v49  ;;  %v13084_v49 = vld [vmem:[%s21599_s7 + $0x58] sm:$0xf0] }
 0xe5f   :  { %vm8322_vm15 = vcmp.eq.f32.partialorder %v8321_v55, 8.507059e+37 }
 0xe60   :  { %v21244_v5 = vpop.f32.mrf.mxu3  ;;  %v8325_v24 = vsel %vm8322_vm15, %v8324_v9, %v8320_v38  ;;  %v14152_v38 = vld [vmem:[%s21599_s7 + $0xac] sm:$0xf0]  ;;  %v14150_v9 = vld [vmem:[%s21599_s7 + $0xa4] sm:$0xf] }
 0xe62   :  { %v8038_v31 = vpop.f32.mrf.mxu0 }
 0xe63   :  { %v12943_v31 = vor.u32 %v14167_v11, %v12940_v2  ;;  %v13151_v11 = vor.u32 %v14155_v48, %v13148_v58  ;;  %v13122_v2 = vld [vmem:[%s21599_s7 + $0xa0] sm:$0xf]  ;;  %v14136_v48 = vld [vmem:[%s21599_s7 + $0x2c] sm:$0xf0]  ;;  %v14134_v58 = vld [vmem:[%s21599_s7 + $0x24] sm:$0xf] }
 0xe64   :  { %v13123_v37 = vor.u32 %v14152_v38, %v13122_v2  ;;  %v13066_v2 = vld [vmem:[%s21599_s7 + $0x28] sm:$0xf]  ;;  %v14137_v38 = vld [vmem:[%s21599_s7 + $0x34] sm:$0xf0] }
 0xe65   :  { %8762 = vmatpush.bf16.msrb.mxu2 %v12943_v31 }
 0xe66   :  { %8931 = vmatpush.bf16.msrb.mxu3 %v13123_v37  ;;  %v13067_v37 = vor.u32 %v14137_v38, %v13066_v2 }
 0xe68   :  { %v8728_v28 = vpop.f32.mrf.mxu3 }
 0xe69   :  { %v13159_v28 = vor.u32 %v14158_v35, %v13156_v61 }
 0xe6a   :  { %v8292_v27 = vpop.f32.mrf.mxu0 }
 0xe6b   :  { %v8299_v19 = vadd.f32 %v8292_v27, %v392_v20  ;;  %v12927_v20 = vor.u32 %v14163_v22, %v12924_v3  ;;  %v13140_v27 = vld [vmem:[%s21599_s7 + $0xd0] sm:$0xf0]  ;;  %8942 = vmatpush.bf16.msra.mxu0 %v13159_v28  ;;  %v13132_v22 = vld [vmem:[%s21599_s7 + $0xb8] sm:$0xf0]  ;;  %v13106_v3 = vld [vmem:[%s21599_s7 + $0x80] sm:$0xf]  ;;  %v13119_v28 = vor.u32 %v14147_v16, %v13116_v53 }
 0xe6c   :  { %v13143_v34 = vor.u32 %v14154_v15, %v13140_v27  ;;  %v13107_v56 = vor.u32 %v14148_v33, %v13106_v3  ;;  %v13092_v15 = vld [vmem:[%s21599_s7 + $0x70] sm:$0xf0]  ;;  %v13098_v27 = vld [vmem:[%s21599_s7 + $0x68] sm:$0xf]  ;;  %v14131_v33 = vld [vmem:[%s21599_s7 + $0xc] sm:$0xf] }
 0xe6d   :  { %14454 = vtanh.f32 %v8299_v19  ;;  %8763 = vmatpush.bf16.msrb.mxu2 %v12927_v20  ;;  %v8350_v19 = vsel %vm8349_vm2, %v21272_v23, %v8346_v29  ;;  %v14142_v20 = vld [vmem:[%s21599_s7 + $0x64] sm:$0xf]  ;;  %v14145_v29 = vld [vmem:[%s21599_s7 + $0x74] sm:$0xf0] }
 0xe6e   :  { %v8355_v4 = vsel %vm8352_vm3, %v8354_v51, %v8350_v19  ;;  %8932 = vmatpush.bf16.msrb.mxu3 %v13107_v56  ;;  %v13095_v10 = vor.u32 %v14142_v20, %v13092_v15  ;;  %v13103_v19 = vor.u32 %v14143_v41, %v13100_v17  ;;  %v13074_v51 = vld [vmem:[%s21599_s7 + $0x40] sm:$0xf] }
 0xe6f   :  { %8943 = vmatpush.bf16.msra.mxu0 %v13143_v34  ;;  %v13099_v34 = vor.u32 %v14145_v29, %v13098_v27  ;;  %v13075_v60 = vor.u32 %v14140_v62, %v13074_v51  ;;  %v14200_v62 = vld [vmem:[%s21602_s10 + $0x30] sm:$0xff] }
 0xe72   :  { %v8294_v43 = vpop.f32.mrf.mxu0 }
 0xe73   :  { %v14455_v44 = vpop.eup %14454  ;;  %v13127_v43 = vor.u32 %v14150_v9, %v13124_v57  ;;  %v14135_v9 = vld [vmem:[%s21599_s7 + $0x2c] sm:$0xf]  ;;  %v13068_v57 = vld [vmem:[%s21599_s7 + $0x38] sm:$0xf0] }
 0xe74   :  { %v8359_v63 = vmul.f32 %v14455_v44, %v8325_v24  ;;  %v13135_v44 = vor.u32 %v14151_v59, %v13132_v22  ;;  %v14146_v24 = vld [vmem:[%s21599_s7 + $0x84] sm:$0xf]  ;;  %v13044_v59 = vld [vmem:[%s21599_s7 + $0x10] sm:$0xf0]  ;;  %v13050_v22 = vld [vmem:[%s21599_s7 + $0x8] sm:$0xf] }
 0xe75   :  { %8944 = vmatpush.bf16.msra.mxu0 %v13127_v43  ;;  %v13111_v35 = vor.u32 %v14146_v24, %v13108_v26  ;;  %v13071_v43 = vor.u32 %v14135_v9, %v13068_v57  ;;  %v13052_v24 = vld [vmem:[%s21599_s7 + $0x18] sm:$0xf0]  ;;  %v14195_v9 = vld [vmem:[%s21602_s10 + $0x8] sm:$0xff] }
 0xe76   :  { %v8360_v39 = vadd.f32 %v8359_v63, %v8358_v25  ;;  %v13114_v25 = vld [vmem:[%s21599_s7 + $0x88] sm:$0xf]  ;;  %v14149_v63 = vld [vmem:[%s21599_s7 + $0x94] sm:$0xf0] }
 0xe77   :  { %v13115_v61 = vor.u32 %v14149_v63, %v13114_v25 }
 0xe78   :  { %14456 = vtanh.f32 %v8360_v39  ;;  %v14144_v39 = vld [vmem:[%s21599_s7 + $0x6c] sm:$0xf0] }
 0xe79   :  { %8945 = vmatpush.bf16.msra.mxu0 %v13111_v35  ;;  %v13091_v18 = vor.u32 %v14144_v39, %v13090_v14  ;;  %v13055_v35 = vor.u32 %v14131_v33, %v13052_v24  ;;  %v12911_v39 = vld [vmem:[%s21603_s1 + $0x38] sm:$0xff] }
 0xe7a   :  { %v21374_v21 = vpop.f32.mrf.mxu0 }
 0xe7b   :  { %8933 = vmatpush.bf16.msrb.mxu3 %v13091_v18 }
 0xe7d   :  { %8946 = vmatpush.bf16.msra.mxu0 %v13095_v10 }
 0xe7e   :  { %v14457_v23 = vpop.eup %14456 }
 0xe7f   :  { %v8362_v55 = vmul.f32 %v14457_v23, %v8355_v4  ;;  %v13082_v23 = vld [vmem:[%s21599_s7 + $0x48] sm:$0xf]  ;;  %v14141_v4 = vld [vmem:[%s21599_s7 + $0x54] sm:$0xf0]  ;;  %8934 = vmatpush.bf16.msrb.mxu3 %v13075_v60 }
 0xe81   :  { %v8363_v0 = vpack.c.bf16 %v8362_v55, %v8362_v55  ;;  %v13079_v55 = vor.u32 %v14138_v40, %v13076_v13 }
 0xe82   :  { %v8741_v12 = vpop.f32.mrf.mxu0 }
 0xe83   :  { %8468 = vmatmul.bf16.vlgmr.msra.gmra.mxu1 %v8363_v0  ;;  %8481 = vmatmul.bf16.vlgmr.msra.gmra.mxu2 %v8363_v0  ;;  %v13058_v0 = vld [vmem:[%s21599_s7 + $0x20] sm:$0xf]  ;;  %v13060_v12 = vld [vmem:[%s21599_s7 + $0x30] sm:$0xf0] }
 0xe84   :  { %8955 = vmatpush.bf16.msra.mxu1 %v13163_v6  ;;  %8968 = vmatpush.bf16.msra.mxu2 %v13167_v52  ;;  %v13083_v6 = vor.u32 %v14141_v4, %v13082_v23  ;;  %v14139_v52 = vld [vmem:[%s21599_s7 + $0x4c] sm:$0xf] }
 0xe85   :  { %v13087_v36 = vor.u32 %v14139_v52, %v13084_v49  ;;  %8947 = vmatpush.bf16.msra.mxu0 %v13079_v55  ;;  %v14199_v55 = vld [vmem:[%s21602_s10 + $0x28] sm:$0xff] }
 0xe88   :  { %8956 = vmatpush.bf16.msra.mxu1 %v13147_v54  ;;  %8969 = vmatpush.bf16.msra.mxu2 %v13151_v11  ;;  %v13059_v54 = vor.u32 %v14136_v48, %v13058_v0  ;;  %v13063_v11 = vor.u32 %v14134_v58, %v13060_v12 }
 0xe8a   :  { %8935 = vmatpush.bf16.msrb.mxu3 %v13059_v54  ;;  %8948 = vmatpush.bf16.msra.mxu0 %v13063_v11 }
 0xe8c   :  { %8970 = vmatpush.bf16.msra.mxu2 %v13135_v44  ;;  %v14133_v44 = vld [vmem:[%s21599_s7 + $0x14] sm:$0xf0] }
 0xe8d   :  { %v13051_v56 = vor.u32 %v14133_v44, %v13050_v22 }
 0xe90   :  { %8971 = vmatpush.bf16.msra.mxu2 %v13119_v28 }
 0xe93   :  { %8751 = vmatmul.bf16.vlgmr.msrb.gmra.mxu1 %v21036_v50  ;;  %8764 = vmatmul.bf16.vlgmr.msrb.gmra.mxu2 %v21036_v50  ;;  %v13130_v50 = vld [vmem:[%s21599_s7 + $0xa8] sm:$0xf] }
 0xe94   :  { %v13131_v31 = vor.u32 %v14153_v1, %v13130_v50  ;;  %8972 = vmatpush.bf16.msra.mxu2 %v13103_v19  ;;  %v13042_v50 = vld [vmem:[%s21599_s7] sm:$0xf]  ;;  %v14132_v1 = vld [vmem:[%s21599_s7 + $0xc] sm:$0xf0] }
 0xe95   :  { %v13043_v3 = vor.u32 %v14132_v1, %v13042_v50  ;;  %v14194_v1 = vld [vmem:[%s21602_s10] sm:$0xff] }
 0xe96   :  { %8957 = vmatpush.bf16.msra.mxu1 %v13131_v31  ;;  %v14130_v31 = vld [vmem:[%s21599_s7 + $0x4] sm:$0xf] }
 0xe97   :  { %v13047_v26 = vor.u32 %v14130_v31, %v13044_v59  ;;  %8936 = vmatpush.bf16.msrb.mxu3 %v13043_v3 }
 0xe98   :  { %8973 = vmatpush.bf16.msra.mxu2 %v13087_v36  ;;  %v14197_v36 = vld [vmem:[%s21602_s10 + $0x18] sm:$0xff] }
 0xe99   :  { %8949 = vmatpush.bf16.msra.mxu0 %v13047_v26 }
 0xe9a   :  { %8958 = vmatpush.bf16.msra.mxu1 %v13115_v61 }
 0xe9c   :  { %8974 = vmatpush.bf16.msra.mxu2 %v13071_v43 }
 0xe9e   :  { %8959 = vmatpush.bf16.msra.mxu1 %v13099_v34  ;;  %v14201_v34 = vld [vmem:[%s21602_s10 + $0x38] sm:$0xff] }
 0xe9f   :  { %9113 = vmatpush.bf16.msra.mxu3 %v14201_v34 }
 0xea0   :  { %8975 = vmatpush.bf16.msra.mxu2 %v13055_v35 }
 0xea2   :  { %8960 = vmatpush.bf16.msra.mxu1 %v13083_v6 }
 0xea3   :  { %9114 = vmatpush.bf16.msra.mxu3 %v14200_v62 }
 0xea6   :  { %8961 = vmatpush.bf16.msra.mxu1 %v13067_v37 }
 0xea7   :  { %9115 = vmatpush.bf16.msra.mxu3 %v14199_v55 }
 0xeaa   :  { %8962 = vmatpush.bf16.msra.mxu1 %v13051_v56 }
 0xf00   :  { %v8469_v25 = vpop.f32.mrf.mxu1 }
 0xf01   :  { %v8470_v63 = vadd.f32 %v8469_v25, %v15761_v42 }
 0xf03   :  { %13203 = vst [vmem:[%s21601_s12 + $0x70] sm:$0xff] %v8470_v63 }
 0xf06   :  { %v8482_v16 = vpop.f32.mrf.mxu2 }
 0xf07   :  { %v8483_v61 = vadd.f32 %v8482_v16, %v15763_v45 }
 0xf08   :  { %v8471_v53 = vpop.f32.mrf.mxu1 }
 0xf09   :  { %v8486_v28 = vmul.f32 1.442695, %v8483_v61  ;;  %13204 = vst [vmem:[%s21601_s12 + $0x78] sm:$0xff] %v8483_v61 }
 0xf0b   :  { %14458 = vpow2.f32 %v8486_v28 }
 0xf0e   :  { %v8484_v14 = vpop.f32.mrf.mxu2 }
 0xf10   :  { %v8752_v42 = vpop.f32.mrf.mxu1 }
 0xf11   :  { %v14459_v20 = vpop.eup %14458 }
 0xf12   :  { %v8490_v18 = vmul.f32 %v14459_v20, %v12911_v39 }
 0xf14   :  { %v8491_v15 = vadd.f32 %v8490_v18, %v8470_v63 }
 0xf16   :  { %v8765_v27 = vpop.f32.mrf.mxu2  ;;  %v8492_v29 = vpack.c.bf16 %v8491_v15, %v8491_v15 }
 0xf18   :  { %v8754_v10 = vpop.f32.mrf.mxu1  ;;  %8937 = vmatmul.bf16.vlgmr.msrb.gmra.mxu3 %v8492_v29  ;;  %8950 = vmatmul.bf16.vlgmr.msra.gmra.mxu0 %v8492_v29 }
 0xf19   :  { %8963 = vmatmul.bf16.vlgmr.msra.gmra.mxu1 %v8492_v29  ;;  %8976 = vmatmul.bf16.vlgmr.msra.gmra.mxu2 %v8492_v29 }
 0xf1e   :  { %v8767_v45 = vpop.f32.mrf.mxu2 }
 0xf95   :  { %v8951_v41 = vpop.f32.mrf.mxu0 }
 0xf96   :  { %v8952_v17 = vadd.f32 %v8951_v41, %v21374_v21  ;;  %v8964_v19 = vpop.f32.mrf.mxu1 }
 0xf97   :  { %v8965_v51 = vadd.f32 %v8964_v19, %v8752_v42 }
 0xf98   :  { %v8982_v40 = vadd.f32 %v8952_v17, %v15858_v47 }
 0xf99   :  { %v8983_v60 = vadd.f32 %v8965_v51, %v15831_v30  ;;  %v14198_v30 = vld [vmem:[%s21602_s10 + $0x20] sm:$0xff] }
 0xf9a   :  { %v13169_v13 = vmul.f32 -1.442695, %v8982_v40  ;;  %9116 = vmatpush.bf16.msra.mxu3 %v14198_v30 }
 0xf9b   :  { %v13170_v23 = vmul.f32 -1.442695, %v8983_v60  ;;  %v8938_v4 = vpop.f32.mrf.mxu3 }
 0xf9c   :  { %14460 = vpow2.f32 %v13169_v13  ;;  %v8939_v21 = vadd.f32 %v8938_v4, %v21244_v5  ;;  %v8977_v6 = vpop.f32.mrf.mxu2 }
 0xf9d   :  { %14462 = vpow2.f32 %v13170_v23  ;;  %v8953_v52 = vpop.f32.mrf.mxu0  ;;  %v8978_v50 = vadd.f32 %v8977_v6, %v8765_v27 }
 0xf9e   :  { %v8981_v49 = vadd.f32 %v8939_v21, %v15855_v32  ;;  %v8966_v47 = vpop.f32.mrf.mxu1  ;;  %9117 = vmatpush.bf16.msra.mxu3 %v14197_v36  ;;  %v14196_v32 = vld [vmem:[%s21602_s10 + $0x10] sm:$0xff] }
 0xf9f   :  { %v8984_v3 = vadd.f32 %v8978_v50, %v15934_v8 }
 0xfa0   :  { %v13168_v0 = vmul.f32 -1.442695, %v8981_v49 }
 0xfa2   :  { %v14461_v48 = vpop.eup %14460  ;;  %14464 = vpow2.f32 %v13168_v0  ;;  %9118 = vmatpush.bf16.msra.mxu3 %v14196_v32 }
 0xfa3   :  { %v14463_v5 = vpop.eup %14462  ;;  %v8995_v58 = vadd.f32 1.0, %v14461_v48  ;;  %v8940_v12 = vpop.f32.mrf.mxu3 }
 0xfa4   :  { %v8979_v54 = vpop.f32.mrf.mxu2  ;;  %v8996_v11 = vadd.f32 1.0, %v14463_v5 }
 0xfa5   :  { %14466 = vrcp.f32 %v8995_v58  ;;  %v9023_v24 = vand.u32 2147483648, %v8995_v58  ;;  %vm9017_vm5 = vweird.f32 %v8995_v58  ;;  %v9021_v35 = vand.u32 2147483647, %v8995_v58 }
 0xfa6   :  { %14468 = vrcp.f32 %v8996_v11  ;;  %9119 = vmatpush.bf16.msra.mxu3 %v14195_v9  ;;  %v9038_v34 = vand.u32 2147483648, %v8996_v11  ;;  %vm9032_vm13 = vweird.f32 %v8996_v11  ;;  %v9036_v41 = vand.u32 2147483647, %v8996_v11 }
 0xfa7   :  { %v9024_v53 = vor.u32 1.1754944e-38, %v9023_v24  ;;  %vm9022_vm9 = vcmp.eq.f32.partialorder %v9021_v35, 8.507059e+37 }
 0xfa8   :  { %v14465_v2 = vpop.eup %14464  ;;  %v9039_v19 = vor.u32 1.1754944e-38, %v9038_v34  ;;  %vm9037_vm15 = vcmp.eq.f32.partialorder %v9036_v41, 8.507059e+37 }
 0xfa9   :  { %v8994_v38 = vadd.f32 1.0, %v14465_v2 }
 0xfaa   :  { %9120 = vmatpush.bf16.msra.mxu3 %v14194_v1 }
 0xfab   :  { %v14467_v37 = vpop.eup %14466  ;;  %14470 = vrcp.f32 %v8994_v38  ;;  %v9008_v25 = vand.u32 2147483648, %v8994_v38  ;;  %v9006_v16 = vand.u32 2147483647, %v8994_v38  ;;  %vm9002_vm8 = vweird.f32 %v8994_v38 }
 0xfac   :  { %v9013_v57 = vmul.f32 %v14467_v37, %v8995_v58  ;;  %v14469_v31 = vpop.eup %14468  ;;  %vm9018_vm4 = vweird.f32 %v14467_v37  ;;  %14472 = vtanh.f32 %v8984_v3 }
 0xfad   :  { %v9028_v26 = vmul.f32 %v14469_v31, %v8996_v11  ;;  %vm9019_vm6 = vmor %vm9017_vm5, %vm9018_vm4  ;;  %v9009_v8 = vor.u32 1.1754944e-38, %v9008_v25  ;;  %vm9007_vm11 = vcmp.eq.f32.partialorder %v9006_v16, 8.507059e+37  ;;  %vm9033_vm12 = vweird.f32 %v14469_v31 }
 0xfae   :  { %v9014_v43 = vsub.f32 1.0, %v9013_v57  ;;  %vm9034_vm14 = vmor %vm9032_vm13, %vm9033_vm12 }
 0xfaf   :  { %v9029_v28 = vsub.f32 1.0, %v9028_v26 }
 0xfb0   :  { %v9015_v59 = vmul.f32 %v14467_v37, %v9014_v43 }
 0xfb1   :  { %v14471_v22 = vpop.eup %14470  ;;  %v9030_v18 = vmul.f32 %v14469_v31, %v9029_v28 }
 0xfb2   :  { %v8998_v44 = vmul.f32 %v14471_v22, %v8994_v38  ;;  %v9016_v33 = vadd.f32 %v14467_v37, %v9015_v59  ;;  %vm9003_vm7 = vweird.f32 %v14471_v22  ;;  %v14473_v20 = vpop.eup %14472 }
 0xfb3   :  { %vm9004_vm10 = vmor %vm9002_vm8, %vm9003_vm7  ;;  %v9031_v45 = vadd.f32 %v14469_v31, %v9030_v18 }
 0xfb4   :  { %v8999_v56 = vsub.f32 1.0, %v8998_v44  ;;  %v9020_v61 = vsel %vm9019_vm6, %v14467_v37, %v9016_v33 }
 0xfb5   :  { %v9025_v39 = vsel %vm9022_vm9, %v9024_v53, %v9020_v61  ;;  %v9035_v17 = vsel %vm9034_vm14, %v14469_v31, %v9031_v45 }
 0xfb6   :  { %v9000_v63 = vmul.f32 %v14471_v22, %v8999_v56  ;;  %v9043_v27 = vmul.f32 %v9025_v39, %v21024_v7  ;;  %v9040_v62 = vsel %vm9037_vm15, %v9039_v19, %v9035_v17 }
 0xfb8   :  { %v9001_v14 = vadd.f32 %v14471_v22, %v9000_v63 }
 0xfba   :  { %v9005_v42 = vsel %vm9004_vm10, %v14471_v22, %v9001_v14 }
 0xfbb   :  { %v9010_v15 = vsel %vm9007_vm11, %v9009_v8, %v9005_v42 }
 0xfbc   :  { %v9044_v29 = vmul.f32 %v14473_v20, %v9010_v15 }
 0xfbe   :  { %v9045_v10 = vadd.f32 %v9044_v29, %v9043_v27 }
 0xfc0   :  { %14474 = vtanh.f32 %v9045_v10 }
 0xfc6   :  { %v14475_v51 = vpop.eup %14474 }
 0xfc7   :  { %v9047_v40 = vmul.f32 %v14475_v51, %v9040_v62 }
 0xfc9   :  { %v9048_v60 = vpack.c.bf16 %v9047_v40, %v9047_v40 }
 0xfcb   :  { %9121 = vmatmul.bf16.vlgmr.msra.gmra.mxu3 %v9048_v60 }
0x104e   :  { %v9122_v13 = vpop.f32.mrf.mxu3 }
0x104f   :  { %v9123_v7 = vadd.f32 %v21209_v46, %v9122_v13 }
0x1051   :  { %13205 = vst [vmem:[%s21606_s13 + $0x38] sm:$0xff] %v9123_v7 }
0x1056   :  { %v9124_v23 = vpop.f32.mrf.mxu3 }

</bundles_post_ra>
